<compile_context>
chip_gen: v6e
topology: v6e:2x2x1
jax: 0.10.0
libtpu: 0.0.40
codegen_flags: <defaults>
</compile_context>

<pallas_src>
import functools

import jax
import jax.numpy as jnp
import numpy as np
from jax.experimental import pallas as pl
from jax.experimental.pallas import tpu as pltpu

NEG_SLOPE = 0.2      # GATConv default leaky-relu negative slope
MASK_VAL = -1e30
LANE = 128


def _ceil_to(x, m):
    return ((x + m - 1) // m) * m


# ---------------------------------------------------------------------------
# Fused kernel: GATConv1 + ReLU + GATConv2 + ReLU + Linear + ReLU + Linear
# ---------------------------------------------------------------------------
def _gat_forward_kernel(x_ref, w1_ref, b1_ref, w2_ref, b2_ref,
                        ffw1_ref, ffb1_ref, ffw2_ref, ffb2_ref,
                        mask_ref, bm1_ref, bm2_ref, coll_ref,
                        out_ref, *, heads, hc1, hc2):
    n = x_ref.shape[0]

    def mxu(a, b):
        return jnp.dot(a.astype(jnp.bfloat16), b.astype(jnp.bfloat16),
                       preferred_element_type=jnp.float32)

    def gat_attention(x, w_ref, bm_ref, hc):
        # One lane-dense MXU matmul: [x@W | alpha_src | alpha_dst | 0-pad].
        xp = mxu(x, w_ref[...])                                  # (N, PAD)
        al_t = xp[:, hc:hc + 2 * heads].T                        # (2H, N) one transpose
        a_src_t = al_t[:heads]                                   # (H, N)
        a_dst_t = al_t[heads:]                                   # (H, N)

        # Stacked scores for ALL heads: s[h,i,j] = LR(a_dst[i,h] + a_src[j,h]) + mask[i,j]
        s = a_dst_t[:, :, None] + a_src_t[:, None, :]            # (H, N, N)
        s = jnp.maximum(s, NEG_SLOPE * s)                        # leaky-relu (mul+max)
        s = s + mask_ref[...][None, :, :]                        # mask read at point of use
        # Row softmax over src nodes j; masked entries underflow to exactly 0
        # because self-loops guarantee a finite row max.
        s_max = jnp.max(s, axis=-1, keepdims=True)
        p = jnp.exp(s - s_max)
        p = p * pl.reciprocal(jnp.sum(p, axis=-1, keepdims=True), approx=True)

        # Single merged aggregation matmul for all heads: (H*N, N) @ (N, PAD).
        # (reshape only merges tile-aligned leading dims -> no relayout)
        agg = mxu(p.reshape(heads * n, n), xp)                   # (H*N, PAD)

        # Block-diagonal extraction (per-head scale baked into the block mask).
        bm = bm_ref[...]                                         # (H, PAD) tiny
        out = agg[0:n, :] * bm[0:1, :]
        for h in range(1, heads):
            out = out + agg[h * n:(h + 1) * n, :] * bm[h:h + 1, :]
        return out                                               # (N, PAD)

    x = x_ref[...]                                               # (N, Fin)

    # --- GATConv 1 (heads concatenated) + bias + ReLU ---
    h1 = jnp.maximum(gat_attention(x, w1_ref, bm1_ref, hc1) + b1_ref[...], 0.0)

    # --- GATConv 2 (head mean): bm2 carries the 1/H scale; the constant
    # "collapse" matrix sums the disjoint head column blocks into cols [:c2]. ---
    bd = gat_attention(h1, w2_ref, bm2_ref, hc2)                 # (N, PAD2)
    h2 = jnp.maximum(
        jnp.dot(bd, coll_ref[...], preferred_element_type=jnp.float32) + b2_ref[...],
        0.0)                                                     # (N, FFPAD)

    # --- Feed-forward head (weights lane-padded to 128 -> full-vreg stores) ---
    h3 = jnp.maximum(mxu(h2, ffw1_ref[...]) + ffb1_ref[...], 0.0)
    out_ref[...] = mxu(h3, ffw2_ref[...]) + ffb2_ref[...]


# ---------------------------------------------------------------------------
# Wrapper-side preprocessing (all of this is hoisted OUT of the jitted path)
# ---------------------------------------------------------------------------
def build_attention_mask(edge_index, num_nodes):
    """Dense additive attention mask: 0 on edges (incl. self-loops), -1e30 off."""
    adj = jnp.zeros((num_nodes, num_nodes), jnp.float32)
    adj = adj.at[edge_index[1], edge_index[0]].set(1.0)          # adj[dst, src] = 1
    adj = jnp.maximum(adj, jnp.eye(num_nodes, dtype=jnp.float32))
    return jnp.where(adj > 0, 0.0, MASK_VAL).astype(jnp.float32)


def _augment_gat_weight(w, att_src, att_dst, heads, out_ch):
    """[W | A_src | A_dst] so alpha_{src,dst} ride the main MXU matmul."""
    w_heads = w.reshape(w.shape[0], heads, out_ch)               # (Fin, H, C)
    a_src = jnp.einsum("fhc,hc->fh", w_heads, att_src)           # (Fin, H)
    a_dst = jnp.einsum("fhc,hc->fh", w_heads, att_dst)           # (Fin, H)
    return jnp.concatenate([w, a_src, a_dst], axis=1)            # (Fin, H*C + 2H)


def _block_mask(heads, c, width, scale):
    m = np.zeros((heads, width), np.float32)
    for h in range(heads):
        m[h, h * c:(h + 1) * c] = scale
    return jnp.asarray(m)


def preprocess_params(params, hidden_channels, heads):
    c1, c2 = hidden_channels
    hc1, hc2 = heads * c1, heads * c2
    pad1 = _ceil_to(hc1 + 2 * heads, LANE)
    pad2 = _ceil_to(hc2 + 2 * heads, LANE)
    out_cols = params["ff2_w"].shape[1]
    ffpad = _ceil_to(max(c2, c2 // 2, out_cols), LANE)

    w1a = _augment_gat_weight(params["w1"], params["att_src1"],
                              params["att_dst1"], heads, c1)
    w1a = jnp.pad(w1a, ((0, 0), (0, pad1 - w1a.shape[1])))
    b1 = jnp.pad(params["bias1"], ((0, 0), (0, pad1 - hc1)))

    w2a = _augment_gat_weight(params["w2"], params["att_src2"],
                              params["att_dst2"], heads, c2)
    w2a = jnp.pad(w2a, ((0, pad1 - w2a.shape[0]), (0, pad2 - w2a.shape[1])))
    b2 = jnp.pad(params["bias2"], ((0, 0), (0, ffpad - c2)))

    # Collapse matrix: sums the H (already 1/H-scaled) head blocks into cols [:c2].
    coll = np.zeros((pad2, ffpad), np.float32)
    for h in range(heads):
        coll[h * c2:(h + 1) * c2, :c2] += np.eye(c2, dtype=np.float32)

    ff1w = jnp.pad(params["ff1_w"], ((0, ffpad - c2), (0, ffpad - c2 // 2)))
    ff1b = jnp.pad(params["ff1_b"], ((0, 0), (0, ffpad - c2 // 2)))
    ff2w = jnp.pad(params["ff2_w"], ((0, ffpad - c2 // 2), (0, ffpad - out_cols)))
    ff2b = jnp.pad(params["ff2_b"], ((0, 0), (0, ffpad - out_cols)))

    return {
        "w1": w1a, "b1": b1, "w2": w2a, "b2": b2,
        "ff1_w": ff1w, "ff1_b": ff1b, "ff2_w": ff2w, "ff2_b": ff2b,
        "bm1": _block_mask(heads, c1, pad1, 1.0),
        "bm2": _block_mask(heads, c2, pad2, 1.0 / heads),
        "collapse": jnp.asarray(coll),
    }


# ---------------------------------------------------------------------------
# Hot path: single pallas_call
# ---------------------------------------------------------------------------
def _full_spec(shape):
    ndim = len(shape)
    return pl.BlockSpec(shape, lambda i, _n=ndim: (0,) * _n)


def gat_forward(prepped, x, mask, *, hidden_channels, heads, out_cols):
    n = x.shape[0]
    c1, c2 = hidden_channels
    hc1, hc2 = heads * c1, heads * c2
    ffpad = prepped["ff2_w"].shape[1]

    operands = (x, prepped["w1"], prepped["b1"], prepped["w2"], prepped["b2"],
                prepped["ff1_w"], prepped["ff1_b"], prepped["ff2_w"], prepped["ff2_b"],
                mask, prepped["bm1"], prepped["bm2"], prepped["collapse"])

    kernel = functools.partial(_gat_forward_kernel, heads=heads, hc1=hc1, hc2=hc2)
    out_pad = pl.pallas_call(
        kernel,
        out_shape=jax.ShapeDtypeStruct((n, ffpad), jnp.float32),
        grid=(1,),
        in_specs=[_full_spec(op.shape) for op in operands],
        out_specs=_full_spec((n, ffpad)),
        compiler_params=pltpu.CompilerParams(dimension_semantics=("arbitrary",)),
    )(*operands)

    return out_pad[:, :out_cols]


# ---------------------------------------------------------------------------
# Parameters
# ---------------------------------------------------------------------------
def init_params(key, in_channels, hidden_channels, heads):
    c1, c2 = hidden_channels
    ks = jax.random.split(key, 12)
    scale = 0.1
    return {
        # GATConv 1: in -> c1, heads, concat
        "w1":        jax.random.normal(ks[0], (in_channels, heads * c1), jnp.float32) * scale,
        "att_src1":  jax.random.normal(ks[1], (heads, c1), jnp.float32) * scale,
        "att_dst1":  jax.random.normal(ks[2], (heads, c1), jnp.float32) * scale,
        "bias1":     jax.random.normal(ks[3], (1, heads * c1), jnp.float32) * scale,
        # GATConv 2: heads*c1 -> c2, heads, mean
        "w2":        jax.random.normal(ks[4], (heads * c1, heads * c2), jnp.float32) * scale,
        "att_src2":  jax.random.normal(ks[5], (heads, c2), jnp.float32) * scale,
        "att_dst2":  jax.random.normal(ks[6], (heads, c2), jnp.float32) * scale,
        "bias2":     jax.random.normal(ks[7], (1, c2), jnp.float32) * scale,
        # ff1: c2 -> c2//2, ff2: c2//2 -> 2
        "ff1_w":     jax.random.normal(ks[8], (c2, c2 // 2), jnp.float32) * scale,
        "ff1_b":     jax.random.normal(ks[9], (1, c2 // 2), jnp.float32) * scale,
        "ff2_w":     jax.random.normal(ks[10], (c2 // 2, 2), jnp.float32) * scale,
        "ff2_b":     jax.random.normal(ks[11], (1, 2), jnp.float32) * scale,
    }


# ---------------------------------------------------------------------------
# Example
# ---------------------------------------------------------------------------
if __name__ == "__main__":
    N = 128                 # number of graph nodes
    IN_CHANNELS = 16
    HIDDEN = (16, 16)
    HEADS = 5

    key = jax.random.PRNGKey(0)
    k_x, k_e, k_p = jax.random.split(key, 3)

    x = jax.random.normal(k_x, (N, IN_CHANNELS), jnp.float32)

    # Deterministic sparse graph: each node receives edges from 4 fixed offsets.
    offsets = (1, 2, 5, 11)
    src = jnp.concatenate([(jnp.arange(N) + o) % N for o in offsets]).astype(jnp.int32)
    dst = jnp.tile(jnp.arange(N), len(offsets)).astype(jnp.int32)
    edge_index = jnp.stack([src, dst])                       # (2, 512)
    edge_attr = jax.random.uniform(k_e, (edge_index.shape[1],), jnp.float32)
    del edge_attr  # TODO(synk): unused — GATConv with edge_dim=None ignores edge_attr.

    params = init_params(k_p, IN_CHANNELS, HIDDEN, HEADS)

    # Hoisted out of the jitted hot path (review item): dense-mask scatter and
    # all parameter augmentation / lane padding run once, eagerly.
    mask = build_attention_mask(edge_index, N)
    prepped = preprocess_params(params, HIDDEN, HEADS)

    fwd = jax.jit(functools.partial(gat_forward, hidden_channels=HIDDEN,
                                    heads=HEADS, out_cols=2))
    out = fwd(prepped, x, mask)
    jax.block_until_ready(out)

    assert out.shape == (N, 2), out.shape
    assert bool(jnp.all(jnp.isfinite(out)))
    print("KERNEL_OK")
</pallas_src>

<mosaic_0001>
module attributes {stable_mosaic.version = 11 : i64} {
  func.func @_gat_forward_kernel(%arg0: i32, %arg1: memref<128x16xf32, #tpu.memory_space<vmem>>, %arg2: memref<16x128xf32, #tpu.memory_space<vmem>>, %arg3: memref<1x128xf32, #tpu.memory_space<vmem>>, %arg4: memref<128x128xf32, #tpu.memory_space<vmem>>, %arg5: memref<1x128xf32, #tpu.memory_space<vmem>>, %arg6: memref<128x128xf32, #tpu.memory_space<vmem>>, %arg7: memref<1x128xf32, #tpu.memory_space<vmem>>, %arg8: memref<128x128xf32, #tpu.memory_space<vmem>>, %arg9: memref<1x128xf32, #tpu.memory_space<vmem>>, %arg10: memref<128x128xf32, #tpu.memory_space<vmem>>, %arg11: memref<5x128xf32, #tpu.memory_space<vmem>>, %arg12: memref<5x128xf32, #tpu.memory_space<vmem>>, %arg13: memref<128x128xf32, #tpu.memory_space<vmem>>, %arg14: memref<128x128xf32, #tpu.memory_space<vmem>>) attributes {dimension_semantics = [#tpu.dimension_semantics<arbitrary>], iteration_bounds = array<i64: 1>, scalar_prefetch = 0 : i64, scratch_operands = 0 : i64, tpu.core_type = #tpu.core_type<tc>, window_params = [{pipeline_mode = #tpu.pipeline_mode<synchronous>, transform_indices = @transform_0, window_bounds = array<i64: 128, 16>}, {pipeline_mode = #tpu.pipeline_mode<synchronous>, transform_indices = @transform_1, window_bounds = array<i64: 16, 128>}, {pipeline_mode = #tpu.pipeline_mode<synchronous>, transform_indices = @transform_2, window_bounds = array<i64: 1, 128>}, {pipeline_mode = #tpu.pipeline_mode<synchronous>, transform_indices = @transform_3, window_bounds = array<i64: 128, 128>}, {pipeline_mode = #tpu.pipeline_mode<synchronous>, transform_indices = @transform_4, window_bounds = array<i64: 1, 128>}, {pipeline_mode = #tpu.pipeline_mode<synchronous>, transform_indices = @transform_5, window_bounds = array<i64: 128, 128>}, {pipeline_mode = #tpu.pipeline_mode<synchronous>, transform_indices = @transform_6, window_bounds = array<i64: 1, 128>}, {pipeline_mode = #tpu.pipeline_mode<synchronous>, transform_indices = @transform_7, window_bounds = array<i64: 128, 128>}, {pipeline_mode = #tpu.pipeline_mode<synchronous>, transform_indices = @transform_8, window_bounds = array<i64: 1, 128>}, {pipeline_mode = #tpu.pipeline_mode<synchronous>, transform_indices = @transform_9, window_bounds = array<i64: 128, 128>}, {pipeline_mode = #tpu.pipeline_mode<synchronous>, transform_indices = @transform_10, window_bounds = array<i64: 5, 128>}, {pipeline_mode = #tpu.pipeline_mode<synchronous>, transform_indices = @transform_11, window_bounds = array<i64: 5, 128>}, {pipeline_mode = #tpu.pipeline_mode<synchronous>, transform_indices = @transform_12, window_bounds = array<i64: 128, 128>}, {pipeline_mode = #tpu.pipeline_mode<synchronous>, transform_indices = @transform_13, window_bounds = array<i64: 128, 128>}]} {
    %c0 = arith.constant 0 : index
    %c0_0 = arith.constant 0 : index
    %0 = vector.load %arg1[%c0, %c0_0] : memref<128x16xf32, #tpu.memory_space<vmem>>, vector<128x16xf32>
    %c0_1 = arith.constant 0 : index
    %c0_2 = arith.constant 0 : index
    %1 = vector.load %arg2[%c0_1, %c0_2] : memref<16x128xf32, #tpu.memory_space<vmem>>, vector<16x128xf32>
    %2 = arith.truncf %0 : vector<128x16xf32> to vector<128x16xbf16>
    %3 = arith.truncf %1 : vector<16x128xf32> to vector<16x128xbf16>
    %cst = arith.constant dense<0.000000e+00> : vector<128x128xf32>
    %4 = tpu.matmul %2, %3, %cst {dimension_numbers = #tpu.dot_dimension_numbers<[1], [0], [0], [1], [0, 0, 1, 1], [], []>} : vector<128x16xbf16>, vector<16x128xbf16>, vector<128x128xf32> -> vector<128x128xf32>
    %5 = vector.extract_strided_slice %4 {offsets = [0, 80], sizes = [128, 10], strides = [1, 1]} : vector<128x128xf32> to vector<128x10xf32>
    %6 = tpu.transpose %5, [1, 0] : vector<128x10xf32> -> vector<10x128xf32>
    %7 = vector.extract_strided_slice %6 {offsets = [0, 0], sizes = [5, 128], strides = [1, 1]} : vector<10x128xf32> to vector<5x128xf32>
    %8 = vector.extract_strided_slice %6 {offsets = [5, 0], sizes = [5, 128], strides = [1, 1]} : vector<10x128xf32> to vector<5x128xf32>
    %9 = vector.shape_cast %8 : vector<5x128xf32> to vector<5x128x1xf32>
    %10 = vector.shape_cast %7 : vector<5x128xf32> to vector<5x1x128xf32>
    %11 = vector.broadcast %9 : vector<5x128x1xf32> to vector<5x128x128xf32>
    %12 = vector.broadcast %10 : vector<5x1x128xf32> to vector<5x128x128xf32>
    %13 = arith.addf %11, %12 : vector<5x128x128xf32>
    %cst_3 = arith.constant 2.000000e-01 : f32
    %14 = vector.broadcast %cst_3 : f32 to vector<5x128x128xf32>
    %15 = arith.mulf %14, %13 : vector<5x128x128xf32>
    %16 = arith.maximumf %13, %15 : vector<5x128x128xf32>
    %c0_4 = arith.constant 0 : index
    %c0_5 = arith.constant 0 : index
    %17 = vector.load %arg10[%c0_4, %c0_5] : memref<128x128xf32, #tpu.memory_space<vmem>>, vector<128x128xf32>
    %18 = vector.shape_cast %17 : vector<128x128xf32> to vector<1x128x128xf32>
    %19 = vector.broadcast %18 : vector<1x128x128xf32> to vector<5x128x128xf32>
    %20 = arith.addf %16, %19 : vector<5x128x128xf32>
    %cst_6 = arith.constant dense<0xFF800000> : vector<5x128xf32>
    %21 = vector.multi_reduction <maximumf>, %20, %cst_6 [2] : vector<5x128x128xf32> to vector<5x128xf32>
    %22 = vector.shape_cast %21 : vector<5x128xf32> to vector<5x128x1xf32>
    %23 = vector.broadcast %22 : vector<5x128x1xf32> to vector<5x128x128xf32>
    %24 = arith.subf %20, %23 : vector<5x128x128xf32>
    %25 = math.exp %24 : vector<5x128x128xf32>
    %cst_7 = arith.constant dense<0.000000e+00> : vector<5x128xf32>
    %26 = vector.multi_reduction <add>, %25, %cst_7 [2] : vector<5x128x128xf32> to vector<5x128xf32>
    %27 = vector.shape_cast %26 : vector<5x128xf32> to vector<5x128x1xf32>
    %28 = tpu.reciprocal %27 {approx = true} : vector<5x128x1xf32> -> vector<5x128x1xf32>
    %29 = vector.broadcast %28 : vector<5x128x1xf32> to vector<5x128x128xf32>
    %30 = arith.mulf %25, %29 : vector<5x128x128xf32>
    %31 = vector.shape_cast %30 : vector<5x128x128xf32> to vector<640x128xf32>
    %32 = arith.truncf %31 : vector<640x128xf32> to vector<640x128xbf16>
    %33 = arith.truncf %4 : vector<128x128xf32> to vector<128x128xbf16>
    %cst_8 = arith.constant dense<0.000000e+00> : vector<640x128xf32>
    %34 = tpu.matmul %32, %33, %cst_8 {dimension_numbers = #tpu.dot_dimension_numbers<[1], [0], [0], [1], [0, 0, 1, 1], [], []>} : vector<640x128xbf16>, vector<128x128xbf16>, vector<640x128xf32> -> vector<640x128xf32>
    %c0_9 = arith.constant 0 : index
    %c0_10 = arith.constant 0 : index
    %35 = vector.load %arg11[%c0_9, %c0_10] : memref<5x128xf32, #tpu.memory_space<vmem>>, vector<5x128xf32>
    %36 = vector.extract_strided_slice %34 {offsets = [0, 0], sizes = [128, 128], strides = [1, 1]} : vector<640x128xf32> to vector<128x128xf32>
    %37 = vector.extract_strided_slice %35 {offsets = [0, 0], sizes = [1, 128], strides = [1, 1]} : vector<5x128xf32> to vector<1x128xf32>
    %38 = vector.broadcast %37 : vector<1x128xf32> to vector<128x128xf32>
    %39 = arith.mulf %36, %38 : vector<128x128xf32>
    %40 = vector.extract_strided_slice %34 {offsets = [128, 0], sizes = [128, 128], strides = [1, 1]} : vector<640x128xf32> to vector<128x128xf32>
    %41 = vector.extract_strided_slice %35 {offsets = [1, 0], sizes = [1, 128], strides = [1, 1]} : vector<5x128xf32> to vector<1x128xf32>
    %42 = vector.broadcast %41 : vector<1x128xf32> to vector<128x128xf32>
    %43 = arith.mulf %40, %42 : vector<128x128xf32>
    %44 = arith.addf %39, %43 : vector<128x128xf32>
    %45 = vector.extract_strided_slice %34 {offsets = [256, 0], sizes = [128, 128], strides = [1, 1]} : vector<640x128xf32> to vector<128x128xf32>
    %46 = vector.extract_strided_slice %35 {offsets = [2, 0], sizes = [1, 128], strides = [1, 1]} : vector<5x128xf32> to vector<1x128xf32>
    %47 = vector.broadcast %46 : vector<1x128xf32> to vector<128x128xf32>
    %48 = arith.mulf %45, %47 : vector<128x128xf32>
    %49 = arith.addf %44, %48 : vector<128x128xf32>
    %50 = vector.extract_strided_slice %34 {offsets = [384, 0], sizes = [128, 128], strides = [1, 1]} : vector<640x128xf32> to vector<128x128xf32>
    %51 = vector.extract_strided_slice %35 {offsets = [3, 0], sizes = [1, 128], strides = [1, 1]} : vector<5x128xf32> to vector<1x128xf32>
    %52 = vector.broadcast %51 : vector<1x128xf32> to vector<128x128xf32>
    %53 = arith.mulf %50, %52 : vector<128x128xf32>
    %54 = arith.addf %49, %53 : vector<128x128xf32>
    %55 = vector.extract_strided_slice %34 {offsets = [512, 0], sizes = [128, 128], strides = [1, 1]} : vector<640x128xf32> to vector<128x128xf32>
    %56 = vector.extract_strided_slice %35 {offsets = [4, 0], sizes = [1, 128], strides = [1, 1]} : vector<5x128xf32> to vector<1x128xf32>
    %57 = vector.broadcast %56 : vector<1x128xf32> to vector<128x128xf32>
    %58 = arith.mulf %55, %57 : vector<128x128xf32>
    %59 = arith.addf %54, %58 : vector<128x128xf32>
    %c0_11 = arith.constant 0 : index
    %c0_12 = arith.constant 0 : index
    %60 = vector.load %arg3[%c0_11, %c0_12] : memref<1x128xf32, #tpu.memory_space<vmem>>, vector<1x128xf32>
    %61 = vector.broadcast %60 : vector<1x128xf32> to vector<128x128xf32>
    %62 = arith.addf %59, %61 : vector<128x128xf32>
    %cst_13 = arith.constant 0.000000e+00 : f32
    %63 = vector.broadcast %cst_13 : f32 to vector<128x128xf32>
    %64 = arith.maximumf %62, %63 : vector<128x128xf32>
    %c0_14 = arith.constant 0 : index
    %c0_15 = arith.constant 0 : index
    %65 = vector.load %arg4[%c0_14, %c0_15] : memref<128x128xf32, #tpu.memory_space<vmem>>, vector<128x128xf32>
    %66 = arith.truncf %64 : vector<128x128xf32> to vector<128x128xbf16>
    %67 = arith.truncf %65 : vector<128x128xf32> to vector<128x128xbf16>
    %cst_16 = arith.constant dense<0.000000e+00> : vector<128x128xf32>
    %68 = tpu.matmul %66, %67, %cst_16 {dimension_numbers = #tpu.dot_dimension_numbers<[1], [0], [0], [1], [0, 0, 1, 1], [], []>} : vector<128x128xbf16>, vector<128x128xbf16>, vector<128x128xf32> -> vector<128x128xf32>
    %69 = vector.extract_strided_slice %68 {offsets = [0, 80], sizes = [128, 10], strides = [1, 1]} : vector<128x128xf32> to vector<128x10xf32>
    %70 = tpu.transpose %69, [1, 0] : vector<128x10xf32> -> vector<10x128xf32>
    %71 = vector.extract_strided_slice %70 {offsets = [0, 0], sizes = [5, 128], strides = [1, 1]} : vector<10x128xf32> to vector<5x128xf32>
    %72 = vector.extract_strided_slice %70 {offsets = [5, 0], sizes = [5, 128], strides = [1, 1]} : vector<10x128xf32> to vector<5x128xf32>
    %73 = vector.shape_cast %72 : vector<5x128xf32> to vector<5x128x1xf32>
    %74 = vector.shape_cast %71 : vector<5x128xf32> to vector<5x1x128xf32>
    %75 = vector.broadcast %73 : vector<5x128x1xf32> to vector<5x128x128xf32>
    %76 = vector.broadcast %74 : vector<5x1x128xf32> to vector<5x128x128xf32>
    %77 = arith.addf %75, %76 : vector<5x128x128xf32>
    %cst_17 = arith.constant 2.000000e-01 : f32
    %78 = vector.broadcast %cst_17 : f32 to vector<5x128x128xf32>
    %79 = arith.mulf %78, %77 : vector<5x128x128xf32>
    %80 = arith.maximumf %77, %79 : vector<5x128x128xf32>
    %c0_18 = arith.constant 0 : index
    %c0_19 = arith.constant 0 : index
    %81 = vector.load %arg10[%c0_18, %c0_19] : memref<128x128xf32, #tpu.memory_space<vmem>>, vector<128x128xf32>
    %82 = vector.shape_cast %81 : vector<128x128xf32> to vector<1x128x128xf32>
    %83 = vector.broadcast %82 : vector<1x128x128xf32> to vector<5x128x128xf32>
    %84 = arith.addf %80, %83 : vector<5x128x128xf32>
    %cst_20 = arith.constant dense<0xFF800000> : vector<5x128xf32>
    %85 = vector.multi_reduction <maximumf>, %84, %cst_20 [2] : vector<5x128x128xf32> to vector<5x128xf32>
    %86 = vector.shape_cast %85 : vector<5x128xf32> to vector<5x128x1xf32>
    %87 = vector.broadcast %86 : vector<5x128x1xf32> to vector<5x128x128xf32>
    %88 = arith.subf %84, %87 : vector<5x128x128xf32>
    %89 = math.exp %88 : vector<5x128x128xf32>
    %cst_21 = arith.constant dense<0.000000e+00> : vector<5x128xf32>
    %90 = vector.multi_reduction <add>, %89, %cst_21 [2] : vector<5x128x128xf32> to vector<5x128xf32>
    %91 = vector.shape_cast %90 : vector<5x128xf32> to vector<5x128x1xf32>
    %92 = tpu.reciprocal %91 {approx = true} : vector<5x128x1xf32> -> vector<5x128x1xf32>
    %93 = vector.broadcast %92 : vector<5x128x1xf32> to vector<5x128x128xf32>
    %94 = arith.mulf %89, %93 : vector<5x128x128xf32>
    %95 = vector.shape_cast %94 : vector<5x128x128xf32> to vector<640x128xf32>
    %96 = arith.truncf %95 : vector<640x128xf32> to vector<640x128xbf16>
    %97 = arith.truncf %68 : vector<128x128xf32> to vector<128x128xbf16>
    %cst_22 = arith.constant dense<0.000000e+00> : vector<640x128xf32>
    %98 = tpu.matmul %96, %97, %cst_22 {dimension_numbers = #tpu.dot_dimension_numbers<[1], [0], [0], [1], [0, 0, 1, 1], [], []>} : vector<640x128xbf16>, vector<128x128xbf16>, vector<640x128xf32> -> vector<640x128xf32>
    %c0_23 = arith.constant 0 : index
    %c0_24 = arith.constant 0 : index
    %99 = vector.load %arg12[%c0_23, %c0_24] : memref<5x128xf32, #tpu.memory_space<vmem>>, vector<5x128xf32>
    %100 = vector.extract_strided_slice %98 {offsets = [0, 0], sizes = [128, 128], strides = [1, 1]} : vector<640x128xf32> to vector<128x128xf32>
    %101 = vector.extract_strided_slice %99 {offsets = [0, 0], sizes = [1, 128], strides = [1, 1]} : vector<5x128xf32> to vector<1x128xf32>
    %102 = vector.broadcast %101 : vector<1x128xf32> to vector<128x128xf32>
    %103 = arith.mulf %100, %102 : vector<128x128xf32>
    %104 = vector.extract_strided_slice %98 {offsets = [128, 0], sizes = [128, 128], strides = [1, 1]} : vector<640x128xf32> to vector<128x128xf32>
    %105 = vector.extract_strided_slice %99 {offsets = [1, 0], sizes = [1, 128], strides = [1, 1]} : vector<5x128xf32> to vector<1x128xf32>
    %106 = vector.broadcast %105 : vector<1x128xf32> to vector<128x128xf32>
    %107 = arith.mulf %104, %106 : vector<128x128xf32>
    %108 = arith.addf %103, %107 : vector<128x128xf32>
    %109 = vector.extract_strided_slice %98 {offsets = [256, 0], sizes = [128, 128], strides = [1, 1]} : vector<640x128xf32> to vector<128x128xf32>
    %110 = vector.extract_strided_slice %99 {offsets = [2, 0], sizes = [1, 128], strides = [1, 1]} : vector<5x128xf32> to vector<1x128xf32>
    %111 = vector.broadcast %110 : vector<1x128xf32> to vector<128x128xf32>
    %112 = arith.mulf %109, %111 : vector<128x128xf32>
    %113 = arith.addf %108, %112 : vector<128x128xf32>
    %114 = vector.extract_strided_slice %98 {offsets = [384, 0], sizes = [128, 128], strides = [1, 1]} : vector<640x128xf32> to vector<128x128xf32>
    %115 = vector.extract_strided_slice %99 {offsets = [3, 0], sizes = [1, 128], strides = [1, 1]} : vector<5x128xf32> to vector<1x128xf32>
    %116 = vector.broadcast %115 : vector<1x128xf32> to vector<128x128xf32>
    %117 = arith.mulf %114, %116 : vector<128x128xf32>
    %118 = arith.addf %113, %117 : vector<128x128xf32>
    %119 = vector.extract_strided_slice %98 {offsets = [512, 0], sizes = [128, 128], strides = [1, 1]} : vector<640x128xf32> to vector<128x128xf32>
    %120 = vector.extract_strided_slice %99 {offsets = [4, 0], sizes = [1, 128], strides = [1, 1]} : vector<5x128xf32> to vector<1x128xf32>
    %121 = vector.broadcast %120 : vector<1x128xf32> to vector<128x128xf32>
    %122 = arith.mulf %119, %121 : vector<128x128xf32>
    %123 = arith.addf %118, %122 : vector<128x128xf32>
    %c0_25 = arith.constant 0 : index
    %c0_26 = arith.constant 0 : index
    %124 = vector.load %arg13[%c0_25, %c0_26] : memref<128x128xf32, #tpu.memory_space<vmem>>, vector<128x128xf32>
    %cst_27 = arith.constant dense<0.000000e+00> : vector<128x128xf32>
    %125 = tpu.matmul %123, %124, %cst_27 {dimension_numbers = #tpu.dot_dimension_numbers<[1], [0], [0], [1], [0, 0, 1, 1], [], []>} : vector<128x128xf32>, vector<128x128xf32>, vector<128x128xf32> -> vector<128x128xf32>
    %c0_28 = arith.constant 0 : index
    %c0_29 = arith.constant 0 : index
    %126 = vector.load %arg5[%c0_28, %c0_29] : memref<1x128xf32, #tpu.memory_space<vmem>>, vector<1x128xf32>
    %127 = vector.broadcast %126 : vector<1x128xf32> to vector<128x128xf32>
    %128 = arith.addf %125, %127 : vector<128x128xf32>
    %cst_30 = arith.constant 0.000000e+00 : f32
    %129 = vector.broadcast %cst_30 : f32 to vector<128x128xf32>
    %130 = arith.maximumf %128, %129 : vector<128x128xf32>
    %c0_31 = arith.constant 0 : index
    %c0_32 = arith.constant 0 : index
    %131 = vector.load %arg6[%c0_31, %c0_32] : memref<128x128xf32, #tpu.memory_space<vmem>>, vector<128x128xf32>
    %132 = arith.truncf %130 : vector<128x128xf32> to vector<128x128xbf16>
    %133 = arith.truncf %131 : vector<128x128xf32> to vector<128x128xbf16>
    %cst_33 = arith.constant dense<0.000000e+00> : vector<128x128xf32>
    %134 = tpu.matmul %132, %133, %cst_33 {dimension_numbers = #tpu.dot_dimension_numbers<[1], [0], [0], [1], [0, 0, 1, 1], [], []>} : vector<128x128xbf16>, vector<128x128xbf16>, vector<128x128xf32> -> vector<128x128xf32>
    %c0_34 = arith.constant 0 : index
    %c0_35 = arith.constant 0 : index
    %135 = vector.load %arg7[%c0_34, %c0_35] : memref<1x128xf32, #tpu.memory_space<vmem>>, vector<1x128xf32>
    %136 = vector.broadcast %135 : vector<1x128xf32> to vector<128x128xf32>
    %137 = arith.addf %134, %136 : vector<128x128xf32>
    %cst_36 = arith.constant 0.000000e+00 : f32
    %138 = vector.broadcast %cst_36 : f32 to vector<128x128xf32>
    %139 = arith.maximumf %137, %138 : vector<128x128xf32>
    %c0_37 = arith.constant 0 : index
    %c0_38 = arith.constant 0 : index
    %140 = vector.load %arg8[%c0_37, %c0_38] : memref<128x128xf32, #tpu.memory_space<vmem>>, vector<128x128xf32>
    %141 = arith.truncf %139 : vector<128x128xf32> to vector<128x128xbf16>
    %142 = arith.truncf %140 : vector<128x128xf32> to vector<128x128xbf16>
    %cst_39 = arith.constant dense<0.000000e+00> : vector<128x128xf32>
    %143 = tpu.matmul %141, %142, %cst_39 {dimension_numbers = #tpu.dot_dimension_numbers<[1], [0], [0], [1], [0, 0, 1, 1], [], []>} : vector<128x128xbf16>, vector<128x128xbf16>, vector<128x128xf32> -> vector<128x128xf32>
    %c0_40 = arith.constant 0 : index
    %c0_41 = arith.constant 0 : index
    %144 = vector.load %arg9[%c0_40, %c0_41] : memref<1x128xf32, #tpu.memory_space<vmem>>, vector<1x128xf32>
    %145 = vector.broadcast %144 : vector<1x128xf32> to vector<128x128xf32>
    %146 = arith.addf %143, %145 : vector<128x128xf32>
    %c0_42 = arith.constant 0 : index
    %c0_43 = arith.constant 0 : index
    %147 = vector.load %arg14[%c0_42, %c0_43] : memref<128x128xf32, #tpu.memory_space<vmem>>, vector<128x128xf32>
    tpu.vector_store %arg14[%c0_42, %c0_43], %146 {strides = array<i32>} : memref<128x128xf32, #tpu.memory_space<vmem>>, vector<128x128xf32>,
    return
  }
  func.func @transform_0(%arg0: i32) -> (i32, i32) {
    %c0_i32 = arith.constant 0 : i32
    %c0_i32_0 = arith.constant 0 : i32
    %c0_i32_1 = arith.constant 0 : i32
    return %c0_i32, %c0_i32_0 : i32, i32
  }
  func.func @transform_1(%arg0: i32) -> (i32, i32) {
    %c0_i32 = arith.constant 0 : i32
    %c0_i32_0 = arith.constant 0 : i32
    %c0_i32_1 = arith.constant 0 : i32
    return %c0_i32, %c0_i32_0 : i32, i32
  }
  func.func @transform_2(%arg0: i32) -> (i32, i32) {
    %c0_i32 = arith.constant 0 : i32
    %c0_i32_0 = arith.constant 0 : i32
    %c0_i32_1 = arith.constant 0 : i32
    return %c0_i32, %c0_i32_0 : i32, i32
  }
  func.func @transform_3(%arg0: i32) -> (i32, i32) {
    %c0_i32 = arith.constant 0 : i32
    %c0_i32_0 = arith.constant 0 : i32
    %c0_i32_1 = arith.constant 0 : i32
    return %c0_i32, %c0_i32_0 : i32, i32
  }
  func.func @transform_4(%arg0: i32) -> (i32, i32) {
    %c0_i32 = arith.constant 0 : i32
    %c0_i32_0 = arith.constant 0 : i32
    %c0_i32_1 = arith.constant 0 : i32
    return %c0_i32, %c0_i32_0 : i32, i32
  }
  func.func @transform_5(%arg0: i32) -> (i32, i32) {
    %c0_i32 = arith.constant 0 : i32
    %c0_i32_0 = arith.constant 0 : i32
    %c0_i32_1 = arith.constant 0 : i32
    return %c0_i32, %c0_i32_0 : i32, i32
  }
  func.func @transform_6(%arg0: i32) -> (i32, i32) {
    %c0_i32 = arith.constant 0 : i32
    %c0_i32_0 = arith.constant 0 : i32
    %c0_i32_1 = arith.constant 0 : i32
    return %c0_i32, %c0_i32_0 : i32, i32
  }
  func.func @transform_7(%arg0: i32) -> (i32, i32) {
    %c0_i32 = arith.constant 0 : i32
    %c0_i32_0 = arith.constant 0 : i32
    %c0_i32_1 = arith.constant 0 : i32
    return %c0_i32, %c0_i32_0 : i32, i32
  }
  func.func @transform_8(%arg0: i32) -> (i32, i32) {
    %c0_i32 = arith.constant 0 : i32
    %c0_i32_0 = arith.constant 0 : i32
    %c0_i32_1 = arith.constant 0 : i32
    return %c0_i32, %c0_i32_0 : i32, i32
  }
  func.func @transform_9(%arg0: i32) -> (i32, i32) {
    %c0_i32 = arith.constant 0 : i32
    %c0_i32_0 = arith.constant 0 : i32
    %c0_i32_1 = arith.constant 0 : i32
    return %c0_i32, %c0_i32_0 : i32, i32
  }
  func.func @transform_10(%arg0: i32) -> (i32, i32) {
    %c0_i32 = arith.constant 0 : i32
    %c0_i32_0 = arith.constant 0 : i32
    %c0_i32_1 = arith.constant 0 : i32
    return %c0_i32, %c0_i32_0 : i32, i32
  }
  func.func @transform_11(%arg0: i32) -> (i32, i32) {
    %c0_i32 = arith.constant 0 : i32
    %c0_i32_0 = arith.constant 0 : i32
    %c0_i32_1 = arith.constant 0 : i32
    return %c0_i32, %c0_i32_0 : i32, i32
  }
  func.func @transform_12(%arg0: i32) -> (i32, i32) {
    %c0_i32 = arith.constant 0 : i32
    %c0_i32_0 = arith.constant 0 : i32
    %c0_i32_1 = arith.constant 0 : i32
    return %c0_i32, %c0_i32_0 : i32, i32
  }
  func.func @transform_13(%arg0: i32) -> (i32, i32) {
    %c0_i32 = arith.constant 0 : i32
    %c0_i32_0 = arith.constant 0 : i32
    %c0_i32_1 = arith.constant 0 : i32
    return %c0_i32, %c0_i32_0 : i32, i32
  }
}

</mosaic_0001>

<bundles_post_ra>
// kernel: gat_forward.1
= control target key start
LH: loop header
LB: loop body
LE: loop exit
PB: predicated region body
PF: predicated region fallthrough
CT: control target
= control target key end

     0   :  { %18 = vsyncpa [#allocation3], 0  ;;  %s9823_s0 = inlined_call_operand.vmem [shape: f32[128,16], index: 0, kind: input, shape index: {}]   ;;  %s9824_s1 = inlined_call_operand.vmem [shape: f32[16,128], index: 1, kind: input, shape index: {}]   ;;  %s9825_s2 = inlined_call_operand.vmem [shape: f32[1,128], index: 2, kind: input, shape index: {}]   ;;  %s9826_s3 = inlined_call_operand.vmem [shape: f32[128,128], index: 3, kind: input, shape index: {}]   ;;  %s9827_s4 = inlined_call_operand.vmem [shape: f32[1,128], index: 4, kind: input, shape index: {}]   ;;  %s9828_s5 = inlined_call_operand.hbm [shape: f32[128,128], index: 5, kind: input, shape index: {}]   ;;  %s9829_s6 = inlined_call_operand.vmem [shape: f32[1,128], index: 6, kind: input, shape index: {}]   ;;  %s9830_s7 = inlined_call_operand.hbm [shape: f32[128,128], index: 7, kind: input, shape index: {}]   ;;  %s9831_s8 = inlined_call_operand.vmem [shape: f32[1,128], index: 8, kind: input, shape index: {}]   ;;  %s9832_s9 = inlined_call_operand.hbm [shape: f32[128,128], index: 9, kind: input, shape index: {}]   ;;  %s9833_s10 = inlined_call_operand.hbm [shape: f32[5,128], index: 10, kind: input, shape index: {}]   ;;  %s9834_s11 = inlined_call_operand.hbm [shape: f32[5,128], index: 11, kind: input, shape index: {}]   ;;  %s9835_s12 = inlined_call_operand.hbm [shape: f32[128,128], index: 12, kind: input, shape index: {}]   ;;  %s9836_s13 = inlined_call_operand.vmem [shape: f32[128,128], index: 13, kind: output, shape index: {}]  }
   0x1   :  { %19 = vsyncpa [#allocation5], 0 }
   0x2   :  { %20 = vsyncpa [#allocation8], 0 }
   0x3   :  { %21 = vsyncpa [#allocation11], 0  ;;  %s6534_s25 = smov [#allocation4]   ;;  %s6535_s27 = smov [#allocation7]  }
   0x4   :  { %s51_s26 = sshll.u32 %s6534_s25, 4  ;;  %s78_s28 = sshll.u32 %s6535_s27, 4  ;;  %s52_s26 = int_to_ptr.vmem [resolvable:$true] %s51_s26  ;;  %s79_s28 = int_to_ptr.vmem [resolvable:$true] %s78_s28 }
   0x5   :  { %s6414_s29 = scalar_lea.vmem %s52_s26, 2048  ;;  %p6419_p1 = scmp.lt.s32.totalorder %s52_s26, %s52_s26 }
   0x6   :  { %p6415_p0 = scmp.ne.s32.totalorder %s52_s26, %s6414_s29  ;;  %p6420_p2 = scmp.lt.s32.totalorder %s6414_s29, %s6414_s29 }
   0x8   :  { %p6421_p3 = por %p6420_p2, %p6419_p1 }
   0xa   :  { %p6422_p4 = pnand %p6421_p3, %p6415_p0 }
   0xc   :  { %6425 = shalt.err (!%p6422_p4)
}
   0xd   :  { %s6536_s30 = smov 128   ;;  %s6537_s14 = smov 8  }
   0xe   :  { %57 = dma.hbm_to_vmem [thread:$0]  %s9830_s7, 2048, %s52_s26, [#allocation5], %s6536_s30, %s6536_s30, %s6537_s14  }
   0xf   :  { %s6434_s17 = scalar_lea.vmem %s79_s28, 128  ;;  %p6439_p6 = scmp.lt.s32.totalorder %s79_s28, %s79_s28 }
  0x10   :  { %p6435_p5 = scmp.ne.s32.totalorder %s79_s28, %s6434_s17  ;;  %p6440_p7 = scmp.lt.s32.totalorder %s6434_s17, %s6434_s17 }
  0x12   :  { %p6441_p8 = por %p6440_p7, %p6439_p6 }
  0x14   :  { %p6442_p9 = pnand %p6441_p8, %p6435_p5 }
  0x16   :  { %6445 = shalt.err (!%p6442_p9)
}
  0x17   :  { %81 = dma.hbm_to_vmem [thread:$0]  %s9833_s10, 128, %s79_s28, [#allocation8]  }
  0x18   :  { %s6538_s20 = smov [#allocation2]   ;;  %s6539_s22 = smov [#allocation6]  }
  0x19   :  { %s37_s21 = sshll.u32 %s6538_s20, 4  ;;  %s65_s23 = sshll.u32 %s6539_s22, 4  ;;  %s38_s21 = int_to_ptr.vmem [resolvable:$true] %s37_s21  ;;  %s66_s23 = int_to_ptr.vmem [resolvable:$true] %s65_s23 }
  0x1a   :  { %s6454_s24 = scalar_lea.vmem %s38_s21, 2048  ;;  %p6459_p11 = scmp.lt.s32.totalorder %s38_s21, %s38_s21 }
  0x1b   :  { %p6455_p10 = scmp.ne.s32.totalorder %s38_s21, %s6454_s24  ;;  %p6460_p12 = scmp.lt.s32.totalorder %s6454_s24, %s6454_s24 }
  0x1d   :  { %p6461_p13 = por %p6460_p12, %p6459_p11 }
  0x1f   :  { %p6462_p0 = pnand %p6461_p13, %p6455_p10 }
  0x21   :  { %6465 = shalt.err (!%p6462_p0)
}
  0x22   :  { %43 = dma.hbm_to_vmem [thread:$0]  %s9828_s5, 2048, %s38_s21, [#allocation3], %s6536_s30, %s6536_s30, %s6537_s14  }
  0x23   :  { %s6474_s10 = scalar_lea.vmem %s66_s23, 2048  ;;  %p6479_p2 = scmp.lt.s32.totalorder %s66_s23, %s66_s23 }
  0x24   :  { %p6475_p1 = scmp.ne.s32.totalorder %s66_s23, %s6474_s10  ;;  %p6480_p3 = scmp.lt.s32.totalorder %s6474_s10, %s6474_s10 }
  0x26   :  { %p6481_p4 = por %p6480_p3, %p6479_p2 }
  0x28   :  { %p6482_p5 = pnand %p6481_p4, %p6475_p1 }
  0x2a   :  { %6485 = shalt.err (!%p6482_p5)
}
  0x2b   :  { %71 = dma.hbm_to_vmem [thread:$0]  %s9832_s9, 2048, %s66_s23, [#allocation5], %s6536_s30, %s6536_s30, %s6537_s14  }
  0x2c   :  { %s6540_s28 = smov [#allocation9]   ;;  %s6541_s15 = smov [#allocation10]  }
  0x2d   :  { %s88_s29 = sshll.u32 %s6540_s28, 4  ;;  %s97_s16 = sshll.u32 %s6541_s15, 4  ;;  %s89_s29 = int_to_ptr.vmem [resolvable:$true] %s88_s29  ;;  %s98_s16 = int_to_ptr.vmem [resolvable:$true] %s97_s16 }
  0x2e   :  { %s6494_s5 = scalar_lea.vmem %s89_s29, 128  ;;  %p6499_p7 = scmp.lt.s32.totalorder %s89_s29, %s89_s29 }
  0x2f   :  { %p6495_p6 = scmp.ne.s32.totalorder %s89_s29, %s6494_s5  ;;  %p6500_p8 = scmp.lt.s32.totalorder %s6494_s5, %s6494_s5 }
  0x31   :  { %p6501_p9 = por %p6500_p8, %p6499_p7 }
  0x33   :  { %p6502_p10 = pnand %p6501_p9, %p6495_p6 }
  0x35   :  { %6505 = shalt.err (!%p6502_p10)
}
  0x36   :  { %91 = dma.hbm_to_vmem [thread:$0]  %s9834_s11, 128, %s89_s29, [#allocation8]  }
  0x37   :  { %s6514_s19 = scalar_lea.vmem %s98_s16, 2048  ;;  %p6519_p12 = scmp.lt.s32.totalorder %s98_s16, %s98_s16 }
  0x38   :  { %p6515_p11 = scmp.ne.s32.totalorder %s98_s16, %s6514_s19  ;;  %p6520_p13 = scmp.lt.s32.totalorder %s6514_s19, %s6514_s19 }
  0x3a   :  { %p6521_p0 = por %p6520_p13, %p6519_p12 }
  0x3c   :  { %p6522_p1 = pnand %p6521_p0, %p6515_p11 }
  0x3e   :  { %6525 = shalt.err (!%p6522_p1)
}
  0x3f   :  { %103 = dma.hbm_to_vmem [thread:$0]  %s9835_s12, 2048, %s98_s16, [#allocation11], %s6536_s30, %s6536_s30, %s6537_s14  }
  0x40   :  { %6526 = dma.done.wait [#allocation3], 2048  }
  0x41   :  { %6527 = vsyncadd [#allocation3], 4294965248 }
  0x42   :  { %6528 = dma.done.wait [#allocation5], 4096  }
  0x43   :  { %6529 = vsyncadd [#allocation5], 4294963200 }
  0x44   :  { %6530 = dma.done.wait [#allocation8], 256  }
  0x45   :  { %6531 = vsyncadd [#allocation8], 4294967040 }
  0x46   :  { %6532 = dma.done.wait [#allocation11], 2048  }
  0x47   :  { %6533 = vsyncadd [#allocation11], 4294965248  ;;  %v139_v0 = vld [vmem:[%s9824_s1] sm:$0xff]  ;;  %v140_v1 = vld [vmem:[%s9824_s1 + $0x8] sm:$0xff]  ;;  %vm150_vm0 = vcmask 130048   ;;  %s6542_s1 = smov 48  }
  0x48   :  { %v123_v2 = vld [vmem:[%s9823_s0] sm:$0xff]  ;;  %v149_v3 = vpack.c.bf16 %v140_v1, %v139_v0  ;;  %v124_v4 = vld [vmem:[%s9823_s0 + $0x8] sm:$0xff]  ;;  %v125_v5 = vld [vmem:[%s9823_s0 + $0x10] sm:$0xff] }
  0x49   :  { %v126_v6 = vld [vmem:[%s9823_s0 + $0x18] sm:$0xff]  ;;  %v141_v7 = vpack.c.bf16 %v124_v4, %v123_v2  ;;  %v127_v8 = vld [vmem:[%s9823_s0 + $0x20] sm:$0xff]  ;;  %v128_v9 = vld [vmem:[%s9823_s0 + $0x28] sm:$0xff] }
  0x4a   :  { %5353 = vmatprep.subr.bf16.mxu0 %v149_v3  ;;  %v142_v10 = vpack.c.bf16 %v126_v6, %v125_v5  ;;  %v143_v11 = vpack.c.bf16 %v128_v9, %v127_v8  ;;  %v129_v12 = vld [vmem:[%s9823_s0 + $0x30] sm:$0xff]  ;;  %v130_v13 = vld [vmem:[%s9823_s0 + $0x38] sm:$0xff]  ;;  %v131_v14 = vld [vmem:[%s9823_s0 + $0x40] sm:$0xff] }
  0x4b   :  { %5354 = vmatpush3.bf16.msra.mxu0 %v149_v3  ;;  %5355 = vmatprep.mubr.msk.bf16.mxu0 %vm150_vm0, %v141_v7  ;;  %v132_v15 = vld [vmem:[%s9823_s0 + $0x48] sm:$0xff]  ;;  %v144_v16 = vpack.c.bf16 %v130_v13, %v129_v12  ;;  %v133_v18 = vld [vmem:[%s9823_s0 + $0x50] sm:$0xff]  ;;  %v134_v19 = vld [vmem:[%s9823_s0 + $0x58] sm:$0xff]  ;;  %v368_v3 = vlaneseq }
  0x4c   :  { %v145_v17 = vpack.c.bf16 %v132_v15, %v131_v14  ;;  %v135_v20 = vld [vmem:[%s9823_s0 + $0x60] sm:$0xff]  ;;  %v136_v21 = vld [vmem:[%s9823_s0 + $0x68] sm:$0xff]  ;;  %v146_v22 = vpack.c.bf16 %v134_v19, %v133_v18  ;;  %v137_v24 = vld [vmem:[%s9823_s0 + $0x70] sm:$0xff]  ;;  %v6543_v15 = vmov 1966171168  }
  0x4d   :  { %v147_v23 = vpack.c.bf16 %v136_v21, %v135_v20  ;;  %v138_v25 = vld [vmem:[%s9823_s0 + $0x78] sm:$0xff]  ;;  %v6722_v4 = vshrl.u32 %v368_v3, 7 }
  0x4e   :  { %5356 = vmatmul.mubr.msk.bf16.vlgmr.msra.gmra.mxu0 %vm150_vm0, %v142_v10  ;;  %v148_v26 = vpack.c.bf16 %v138_v25, %v137_v24 }
  0x4f   :  { %5359 = vmatprep.mubr.msk.bf16.mxu0 %vm150_vm0, %v143_v11  ;;  %9994 = vst [vmem:[#allocation16_spill] sm:$0xff] %v6722_v4  ;;  %v9839_v5 = vsub.s32 5, %v6722_v4  ;;  %v9838_v6 = vsub.s32 6, %v6722_v4  ;;  %v9837_v8 = vsub.s32 7, %v6722_v4  ;;  %v6746_v13 = vsub.s32 0, %v6722_v4 }
  0x51   :  { %9995 = vst [vmem:[#allocation17_spill] sm:$0xff] %v6746_v13 }
  0x56   :  { %5360 = vmatmul.mubr.msk.bf16.gmra.mxu0 %vm150_vm0, %v144_v16  ;;  %v706_v16 = vunpack.c.l.s4 %v6543_v15 }
  0x57   :  { %5363 = vmatprep.mubr.msk.bf16.mxu0 %vm150_vm0, %v145_v17 }
  0x58   :  { %v707_v17 = vunpack.c.0.s8 %v706_v16  ;;  %v6836_v16 = vld [vmem:[#allocation6 + $0x50] sm:$0xff] }
  0x5a   :  { %v6757_v18 = vsub.s32 %v707_v17, %v6722_v4 }
  0x5c   :  { %9996 = vst [vmem:[#allocation18_spill] sm:$0xff] %v6757_v18 }
  0x5e   :  { %5364 = vmatmul.mubr.msk.bf16.gmra.mxu0 %vm150_vm0, %v146_v22 }
  0x5f   :  { %5367 = vmatprep.mubr.msk.bf16.mxu0 %vm150_vm0, %v147_v23 }
  0x66   :  { %5368 = vmatmul.mubr.msk.bf16.gmra.mxu0 %vm150_vm0, %v148_v26  ;;  %v6774_v26 = vld [vmem:[#allocation6] sm:$0xff] }
 0x10e   :  { %v5357_v27 = vpop.f32.mrf.mxu0 }
 0x10f   :  { %292 = vrot.lane.b32.xlu1 %v5357_v27, %s6542_s1 }
 0x110   :  { %v209_v28 = vpop.f32.mrf.mxu0 }
 0x111   :  { %288 = vrot.lane.b32.xlu0 %v209_v28, %s6542_s1 }
 0x112   :  { %v5358_v29 = vpop.f32.mrf.mxu0 }
 0x113   :  { %294 = vrot.lane.b32.xlu1 %v5358_v29, %s6542_s1  ;;  %v1865_v49 = vpack.c.bf16 %v5358_v29, %v5357_v27 }
 0x114   :  { %v212_v30 = vpop.f32.mrf.mxu0 }
 0x115   :  { %290 = vrot.lane.b32.xlu0 %v212_v30, %s6542_s1  ;;  %v1864_v50 = vpack.c.bf16 %v212_v30, %v209_v28 }
 0x116   :  { %v5361_v31 = vpop.f32.mrf.mxu0 }
 0x118   :  { %v225_v32 = vpop.f32.mrf.mxu0 }
 0x119   :  { %300 = vrot.lane.b32.xlu0 %v5361_v31, %s6542_s1 }
 0x11a   :  { %v5362_v33 = vpop.f32.mrf.mxu0 }
 0x11b   :  { %302 = vrot.lane.b32.xlu1 %v5362_v33, %s6542_s1  ;;  %v1867_v47 = vpack.c.bf16 %v5362_v33, %v5361_v31 }
 0x11c   :  { %v228_v34 = vpop.f32.mrf.mxu0 }
 0x11d   :  { %296 = vrot.lane.b32.xlu0 %v225_v32, %s6542_s1  ;;  %v1866_v48 = vpack.c.bf16 %v228_v34, %v225_v32 }
 0x11e   :  { %v5365_v35 = vpop.f32.mrf.mxu0 }
 0x11f   :  { %298 = vrot.lane.b32.xlu1 %v228_v34, %s6542_s1 }
 0x120   :  { %v241_v36 = vpop.f32.mrf.mxu0 }
 0x121   :  { %308 = vrot.lane.b32.xlu0 %v5365_v35, %s6542_s1 }
 0x122   :  { %v5366_v37 = vpop.f32.mrf.mxu0 }
 0x123   :  { %310 = vrot.lane.b32.xlu1 %v5366_v37, %s6542_s1  ;;  %v1869_v45 = vpack.c.bf16 %v5366_v37, %v5365_v35  ;;  %v6784_v35 = vld [vmem:[#allocation6 + $0x10] sm:$0xff] }
 0x124   :  { %v244_v38 = vpop.f32.mrf.mxu0  ;;  %9997 = vst [vmem:[#allocation19_spill] sm:$0xff] %v6784_v35 }
 0x125   :  { %304 = vrot.lane.b32.xlu0 %v241_v36, %s6542_s1  ;;  %v1868_v46 = vpack.c.bf16 %v244_v38, %v241_v36 }
 0x126   :  { %v5369_v39 = vpop.f32.mrf.mxu0 }
 0x127   :  { %306 = vrot.lane.b32.xlu1 %v244_v38, %s6542_s1 }
 0x128   :  { %v257_v40 = vpop.f32.mrf.mxu0 }
 0x129   :  { %316 = vrot.lane.b32.xlu0 %v5369_v39, %s6542_s1 }
 0x12a   :  { %v5370_v41 = vpop.f32.mrf.mxu0 }
 0x12b   :  { %v1871_v42 = vpack.c.bf16 %v5370_v41, %v5369_v39  ;;  %318 = vrot.lane.b32.xlu1 %v5370_v41, %s6542_s1  ;;  %v6789_v39 = vld [vmem:[#allocation6 + $0x18] sm:$0xff] }
 0x12c   :  { %v260_v43 = vpop.f32.mrf.mxu0 }
 0x12d   :  { %5371 = vmatprep.subr.bf16.mxu1 %v1871_v42  ;;  %v1870_v44 = vpack.c.bf16 %v260_v43, %v257_v40  ;;  %312 = vrot.lane.b32.xlu0 %v257_v40, %s6542_s1 }
 0x12e   :  { %5372 = vmatpush3.bf16.msra.mxu1 %v1871_v42 }
 0x12f   :  { %5373 = vmatprep.subr.bf16.mxu1 %v1870_v44  ;;  %314 = vrot.lane.b32.xlu1 %v260_v43, %s6542_s1 }
 0x132   :  { %5374 = vmatpush3.bf16.msra.mxu1 %v1870_v44 }
 0x133   :  { %5375 = vmatprep.subr.bf16.mxu1 %v1869_v45 }
 0x136   :  { %5376 = vmatpush3.bf16.msra.mxu1 %v1869_v45  ;;  %v6799_v45 = vld [vmem:[#allocation6 + $0x20] sm:$0xff] }
 0x137   :  { %5377 = vmatprep.subr.bf16.mxu1 %v1868_v46 }
 0x13a   :  { %5378 = vmatpush3.bf16.msra.mxu1 %v1868_v46 }
 0x13b   :  { %5379 = vmatprep.subr.bf16.mxu1 %v1867_v47 }
 0x13e   :  { %5380 = vmatpush3.bf16.msra.mxu1 %v1867_v47 }
 0x13f   :  { %5381 = vmatprep.subr.bf16.mxu1 %v1866_v48 }
 0x142   :  { %5382 = vmatpush3.bf16.msra.mxu1 %v1866_v48 }
 0x143   :  { %5383 = vmatprep.subr.bf16.mxu1 %v1865_v49 }
 0x146   :  { %5384 = vmatpush3.bf16.msra.mxu1 %v1865_v49 }
 0x147   :  { %5385 = vmatprep.subr.bf16.mxu1 %v1864_v50 }
 0x14a   :  { %5386 = vmatpush3.bf16.msra.mxu1 %v1864_v50 }
 0x181   :  { %v293_v52 = vpop.permute.xlu1 %292 }
 0x183   :  { %v289_v51 = vpop.permute.xlu0 %288 }
 0x184   :  { %336 = vxpose.xlu0.b32.start [1/16] (narrow) %v289_v51, 16 }
 0x185   :  { %v295_v54 = vpop.permute.xlu1 %294 }
 0x187   :  { %v291_v53 = vpop.permute.xlu0 %290 }
 0x188   :  { %337 = vxpose.xlu0.b32.cont [2/16] (narrow) %v291_v53, 16 }
 0x18b   :  { %v301_v55 = vpop.permute.xlu0 %300 }
 0x18c   :  { %338 = vxpose.xlu0.b32.cont [3/16] (narrow) %v293_v52, 16  ;;  %v6809_v52 = vld [vmem:[#allocation6 + $0x30] sm:$0xff] }
 0x18d   :  { %v303_v56 = vpop.permute.xlu1 %302 }
 0x18f   :  { %v297_v57 = vpop.permute.xlu0 %296 }
 0x190   :  { %339 = vxpose.xlu0.b32.cont [4/16] (narrow) %v295_v54, 16 }
 0x191   :  { %v299_v58 = vpop.permute.xlu1 %298 }
 0x193   :  { %v309_v59 = vpop.permute.xlu0 %308 }
 0x194   :  { %340 = vxpose.xlu0.b32.cont [5/16] (narrow) %v297_v57, 16 }
 0x195   :  { %v311_v60 = vpop.permute.xlu1 %310 }
 0x197   :  { %v305_v61 = vpop.permute.xlu0 %304 }
 0x198   :  { %341 = vxpose.xlu0.b32.cont [6/16] (narrow) %v299_v58, 16 }
 0x199   :  { %v307_v62 = vpop.permute.xlu1 %306 }
 0x19b   :  { %v317_v63 = vpop.permute.xlu0 %316 }
 0x19c   :  { %342 = vxpose.xlu0.b32.cont [7/16] (narrow) %v301_v55, 16 }
 0x19d   :  { %v319_v0 = vpop.permute.xlu1 %318 }
 0x19f   :  { %v313_v1 = vpop.permute.xlu0 %312 }
 0x1a0   :  { %343 = vxpose.xlu0.b32.cont [8/16] (narrow) %v303_v56, 16 }
 0x1a1   :  { %v315_v2 = vpop.permute.xlu1 %314 }
 0x1a4   :  { %344 = vxpose.xlu0.b32.cont [9/16] (narrow) %v305_v61, 16 }
 0x1a8   :  { %345 = vxpose.xlu0.b32.cont [10/16] (narrow) %v307_v62, 16 }
 0x1ac   :  { %346 = vxpose.xlu0.b32.cont [11/16] (narrow) %v309_v59, 16 }
 0x1b0   :  { %347 = vxpose.xlu0.b32.cont [12/16] (narrow) %v311_v60, 16  ;;  %v6819_v60 = vld [vmem:[#allocation6 + $0x38] sm:$0xff] }
 0x1b4   :  { %348 = vxpose.xlu0.b32.cont [13/16] (narrow) %v313_v1, 16 }
 0x1b8   :  { %349 = vxpose.xlu0.b32.cont [14/16] (narrow) %v315_v2, 16 }
 0x1bc   :  { %350 = vxpose.xlu0.b32.cont [15/16] (narrow) %v317_v63, 16 }
 0x1c0   :  { %351 = vxpose.xlu0.b32.end [16/16] (narrow) %v319_v0, 16  ;;  %v6826_v0 = vld [vmem:[#allocation6 + $0x40] sm:$0xff] }
 0x200   :  { %v6726_v7 = vpop.trf.xlu0 }
 0x201   :  { %v371_v9 = vrot.slane %v6726_v7, %v9839_v5  ;;  %v438_v10 = vrot.slane %v6726_v7, %v9838_v6  ;;  %v6738_v11 = vrot.slane %v6726_v7, %v9837_v8  ;;  %v6761_v19 = vrot.slane %v6726_v7, %v6757_v18 }
 0x203   :  { %468 = vbcast.lane.b32.xlu0 %v438_v10, 312  ;;  %373 = vbcast.lane.b32.xlu1 %v371_v9, 256  ;;  %v6765_v20 = vrot.slane %v6761_v19, %v6757_v18 }
 0x204   :  { %v6743_v12 = vpop.trf.xlu0 }
 0x205   :  { %v6751_v14 = vrot.slane %v6743_v12, %v6746_v13  ;;  %v6769_v21 = vrot.slane %v6765_v20, %v6746_v13 }
 0x207   :  { %515 = vbcast.lane.b32.xlu0 %v6738_v11, 272  ;;  %377 = vbcast.lane.b32.xlu1 %v371_v9, 264 }
 0x20b   :  { %527 = vbcast.lane.b32.xlu0 %v6738_v11, 296  ;;  %381 = vbcast.lane.b32.xlu1 %v371_v9, 272 }
 0x20f   :  { %543 = vbcast.lane.b32.xlu0 %v6738_v11, 328  ;;  %385 = vbcast.lane.b32.xlu1 %v371_v9, 280 }
 0x213   :  { %559 = vbcast.lane.b32.xlu0 %v6738_v11, 360  ;;  %389 = vbcast.lane.b32.xlu1 %v371_v9, 288 }
 0x217   :  { %393 = vbcast.lane.b32.xlu1 %v371_v9, 296  ;;  %578 = vbcast.lane.b32.xlu0 %v6751_v14, 264 }
 0x21b   :  { %397 = vbcast.lane.b32.xlu1 %v371_v9, 304  ;;  %594 = vbcast.lane.b32.xlu0 %v6751_v14, 296 }
 0x21f   :  { %401 = vbcast.lane.b32.xlu1 %v371_v9, 312  ;;  %610 = vbcast.lane.b32.xlu0 %v6751_v14, 328 }
 0x223   :  { %405 = vbcast.lane.b32.xlu1 %v371_v9, 320 }
 0x227   :  { %409 = vbcast.lane.b32.xlu1 %v371_v9, 328 }
 0x22b   :  { %413 = vbcast.lane.b32.xlu1 %v371_v9, 336 }
 0x22f   :  { %417 = vbcast.lane.b32.xlu1 %v371_v9, 344 }
 0x233   :  { %421 = vbcast.lane.b32.xlu1 %v371_v9, 352 }
 0x237   :  { %425 = vbcast.lane.b32.xlu1 %v371_v9, 360 }
 0x23b   :  { %429 = vbcast.lane.b32.xlu1 %v371_v9, 368 }
 0x23f   :  { %433 = vbcast.lane.b32.xlu1 %v371_v9, 376 }
 0x243   :  { %440 = vbcast.lane.b32.xlu1 %v438_v10, 256 }
 0x247   :  { %444 = vbcast.lane.b32.xlu1 %v438_v10, 264 }
 0x24b   :  { %448 = vbcast.lane.b32.xlu1 %v438_v10, 272 }
 0x24f   :  { %452 = vbcast.lane.b32.xlu1 %v438_v10, 280 }
 0x253   :  { %456 = vbcast.lane.b32.xlu1 %v438_v10, 288 }
 0x257   :  { %460 = vbcast.lane.b32.xlu1 %v438_v10, 296 }
 0x25b   :  { %464 = vbcast.lane.b32.xlu1 %v438_v10, 304 }
 0x25f   :  { %472 = vbcast.lane.b32.xlu1 %v438_v10, 320 }
 0x263   :  { %476 = vbcast.lane.b32.xlu1 %v438_v10, 328 }
 0x267   :  { %480 = vbcast.lane.b32.xlu1 %v438_v10, 336 }
 0x26b   :  { %484 = vbcast.lane.b32.xlu1 %v438_v10, 344 }
 0x26f   :  { %488 = vbcast.lane.b32.xlu1 %v438_v10, 352 }
 0x273   :  { %492 = vbcast.lane.b32.xlu1 %v438_v10, 360 }
 0x275   :  { %v374_v22 = vpop.permute.xlu1 %373 }
 0x276   :  { %v768_v23 = vadd.f32 %v6769_v21, %v374_v22 }
 0x277   :  { %496 = vbcast.lane.b32.xlu1 %v438_v10, 368 }
 0x278   :  { %v848_v24 = vmul.f32 0.2, %v768_v23 }
 0x279   :  { %v6772_v25 = vpop.permute.xlu1 %377 }
 0x27a   :  { %v928_v27 = vmax.f32 %v768_v23, %v848_v24 }
 0x27b   :  { %500 = vbcast.lane.b32.xlu1 %v438_v10, 376 }
 0x27c   :  { %v6777_v28 = vadd.f32 %v6774_v26, %v928_v27 }
 0x27d   :  { %v382_v29 = vpop.permute.xlu1 %381 }
 0x27e   :  { %v770_v30 = vadd.f32 %v6769_v21, %v382_v29  ;;  %1104 = vmax.xlane.f32.xlu0 %v6777_v28  ;;  %v6843_v29 = vld [vmem:[#allocation6 + $0x58] sm:$0xff] }
 0x27f   :  { %507 = vbcast.lane.b32.xlu1 %v6738_v11, 256 }
 0x280   :  { %v850_v31 = vmul.f32 0.2, %v770_v30 }
 0x281   :  { %v386_v32 = vpop.permute.xlu1 %385 }
 0x282   :  { %v771_v33 = vadd.f32 %v6769_v21, %v386_v32  ;;  %v930_v34 = vmax.f32 %v770_v30, %v850_v31 }
 0x283   :  { %511 = vbcast.lane.b32.xlu1 %v6738_v11, 264 }
 0x284   :  { %v851_v36 = vmul.f32 0.2, %v771_v33  ;;  %v6787_v37 = vadd.f32 %v6784_v35, %v930_v34 }
 0x285   :  { %v390_v38 = vpop.permute.xlu1 %389 }
 0x286   :  { %v772_v40 = vadd.f32 %v6769_v21, %v390_v38  ;;  %1108 = vmax.xlane.f32.xlu0 %v6787_v37  ;;  %v931_v41 = vmax.f32 %v771_v33, %v851_v36  ;;  %v6853_v36 = vld [vmem:[#allocation6 + $0x60] sm:$0xff] }
 0x287   :  { %519 = vbcast.lane.b32.xlu1 %v6738_v11, 280 }
 0x288   :  { %v852_v42 = vmul.f32 0.2, %v772_v40  ;;  %v6795_v43 = vadd.f32 %v6789_v39, %v931_v41 }
 0x289   :  { %v6797_v44 = vpop.permute.xlu1 %393 }
 0x28a   :  { %1110 = vmax.xlane.f32.xlu0 %v6795_v43  ;;  %v932_v46 = vmax.f32 %v772_v40, %v852_v42  ;;  %v719_v40 = vcombine.high %v6761_v19, %v6761_v19 }
 0x28b   :  { %523 = vbcast.lane.b32.xlu1 %v6738_v11, 288 }
 0x28c   :  { %v6804_v47 = vadd.f32 %v6799_v45, %v932_v46 }
 0x28d   :  { %v398_v48 = vpop.permute.xlu1 %397 }
 0x28e   :  { %v774_v49 = vadd.f32 %v6769_v21, %v398_v48  ;;  %1112 = vmax.xlane.f32.xlu0 %v6804_v47  ;;  %v6866_v48 = vrot.slane %v719_v40, %v6757_v18 }
 0x28f   :  { %531 = vbcast.lane.b32.xlu1 %v6738_v11, 304 }
 0x290   :  { %v854_v50 = vmul.f32 0.2, %v774_v49 }
 0x291   :  { %v402_v51 = vpop.permute.xlu1 %401 }
 0x292   :  { %v775_v53 = vadd.f32 %v6769_v21, %v402_v51  ;;  %v934_v54 = vmax.f32 %v774_v49, %v854_v50  ;;  %v6868_v51 = vld [vmem:[#allocation6 + $0x70] sm:$0xff] }
 0x293   :  { %535 = vbcast.lane.b32.xlu1 %v6738_v11, 312 }
 0x294   :  { %v855_v55 = vmul.f32 0.2, %v775_v53  ;;  %v6814_v56 = vadd.f32 %v6809_v52, %v934_v54 }
 0x295   :  { %v406_v57 = vpop.permute.xlu1 %405 }
 0x296   :  { %v776_v58 = vadd.f32 %v6769_v21, %v406_v57  ;;  %1116 = vmax.xlane.f32.xlu0 %v6814_v56  ;;  %v935_v59 = vmax.f32 %v775_v53, %v855_v55  ;;  %v6874_v53 = vrot.slane %v6866_v48, %v6746_v13 }
 0x297   :  { %539 = vbcast.lane.b32.xlu1 %v6738_v11, 320 }
 0x298   :  { %v856_v61 = vmul.f32 0.2, %v776_v58  ;;  %v6822_v62 = vadd.f32 %v6819_v60, %v935_v59 }
 0x299   :  { %v6824_v63 = vpop.permute.xlu1 %409 }
 0x29a   :  { %1118 = vmax.xlane.f32.xlu0 %v6822_v62  ;;  %v936_v1 = vmax.f32 %v776_v58, %v856_v61  ;;  %v6879_v58 = vld [vmem:[#allocation6 + $0x78] sm:$0xff] }
 0x29b   :  { %547 = vbcast.lane.b32.xlu1 %v6738_v11, 336 }
 0x29c   :  { %v6831_v2 = vadd.f32 %v6826_v0, %v936_v1 }
 0x29d   :  { %v414_v3 = vpop.permute.xlu1 %413 }
 0x29e   :  { %v778_v9 = vadd.f32 %v6769_v21, %v414_v3  ;;  %1120 = vmax.xlane.f32.xlu0 %v6831_v2 }
 0x29f   :  { %551 = vbcast.lane.b32.xlu1 %v6738_v11, 344 }
 0x2a0   :  { %v858_v10 = vmul.f32 0.2, %v778_v9 }
 0x2a1   :  { %v418_v15 = vpop.permute.xlu1 %417 }
 0x2a2   :  { %v779_v17 = vadd.f32 %v6769_v21, %v418_v15  ;;  %v938_v22 = vmax.f32 %v778_v9, %v858_v10 }
 0x2a3   :  { %555 = vbcast.lane.b32.xlu1 %v6738_v11, 352 }
 0x2a4   :  { %v859_v23 = vmul.f32 0.2, %v779_v17  ;;  %v6841_v24 = vadd.f32 %v6836_v16, %v938_v22 }
 0x2a5   :  { %v422_v27 = vpop.permute.xlu1 %421 }
 0x2a6   :  { %9998 = vst [vmem:[#allocation20_spill] sm:$0xff] %v6841_v24  ;;  %v780_v30 = vadd.f32 %v6769_v21, %v422_v27  ;;  %1124 = vmax.xlane.f32.xlu0 %v6841_v24  ;;  %v939_v31 = vmax.f32 %v779_v17, %v859_v23 }
 0x2a7   :  { %563 = vbcast.lane.b32.xlu1 %v6738_v11, 368 }
 0x2a8   :  { %v860_v32 = vmul.f32 0.2, %v780_v30  ;;  %v6849_v33 = vadd.f32 %v6843_v29, %v939_v31 }
 0x2a9   :  { %v6851_v34 = vpop.permute.xlu1 %425 }
 0x2aa   :  { %1126 = vmax.xlane.f32.xlu0 %v6849_v33  ;;  %v940_v38 = vmax.f32 %v780_v30, %v860_v32 }
 0x2ab   :  { %567 = vbcast.lane.b32.xlu1 %v6738_v11, 376 }
 0x2ac   :  { %v6860_v41 = vadd.f32 %v6853_v36, %v940_v38 }
 0x2ad   :  { %v430_v42 = vpop.permute.xlu1 %429 }
 0x2ae   :  { %9999 = vst [vmem:[#allocation21_spill] sm:$0xff] %v6860_v41  ;;  %v782_v46 = vadd.f32 %v6769_v21, %v430_v42  ;;  %1128 = vmax.xlane.f32.xlu0 %v6860_v41 }
 0x2af   :  { %574 = vbcast.lane.b32.xlu1 %v6751_v14, 256 }
 0x2b0   :  { %v862_v49 = vmul.f32 0.2, %v782_v46 }
 0x2b1   :  { %v434_v50 = vpop.permute.xlu1 %433 }
 0x2b2   :  { %v783_v11 = vadd.f32 %v6769_v21, %v434_v50  ;;  %v942_v19 = vmax.f32 %v782_v46, %v862_v49 }
 0x2b3   :  { %582 = vbcast.lane.b32.xlu1 %v6751_v14, 272 }
 0x2b4   :  { %v863_v54 = vmul.f32 0.2, %v783_v11  ;;  %v6877_v55 = vadd.f32 %v6868_v51, %v942_v19 }
 0x2b5   :  { %v441_v57 = vpop.permute.xlu1 %440 }
 0x2b6   :  { %10000 = vst [vmem:[#allocation22_spill] sm:$0xff] %v6877_v55  ;;  %v784_v59 = vadd.f32 %v6874_v53, %v441_v57  ;;  %1132 = vmax.xlane.f32.xlu0 %v6877_v55  ;;  %v943_v61 = vmax.f32 %v783_v11, %v863_v54  ;;  %v469_v11 = vpop.permute.xlu0 %468 }
 0x2b7   :  { %586 = vbcast.lane.b32.xlu1 %v6751_v14, 280  ;;  %v791_v57 = vadd.f32 %v6874_v53, %v469_v11 }
 0x2b8   :  { %v864_v1 = vmul.f32 0.2, %v784_v59  ;;  %v6885_v3 = vadd.f32 %v6879_v58, %v943_v61 }
 0x2b9   :  { %v6887_v9 = vpop.permute.xlu1 %444 }
 0x2ba   :  { %1134 = vmax.xlane.f32.xlu0 %v6885_v3  ;;  %v944_v10 = vmax.f32 %v784_v59, %v864_v1 }
 0x2bb   :  { %590 = vbcast.lane.b32.xlu1 %v6751_v14, 288 }
 0x2bc   :  { %v6892_v15 = vadd.f32 %v6774_v26, %v944_v10  ;;  %v871_v10 = vmul.f32 0.2, %v791_v57 }
 0x2bd   :  { %v449_v17 = vpop.permute.xlu1 %448 }
 0x2be   :  { %10001 = vst [vmem:[#allocation23_spill] sm:$0xff] %v6892_v15  ;;  %v786_v22 = vadd.f32 %v6874_v53, %v449_v17  ;;  %1136 = vmax.xlane.f32.xlu0 %v6892_v15 }
 0x2bf   :  { %598 = vbcast.lane.b32.xlu1 %v6751_v14, 304 }
 0x2c0   :  { %v866_v23 = vmul.f32 0.2, %v786_v22 }
 0x2c1   :  { %v453_v27 = vpop.permute.xlu1 %452 }
 0x2c2   :  { %v787_v30 = vadd.f32 %v6874_v53, %v453_v27  ;;  %v946_v31 = vmax.f32 %v786_v22, %v866_v23 }
 0x2c3   :  { %602 = vbcast.lane.b32.xlu1 %v6751_v14, 312 }
 0x2c4   :  { %v867_v32 = vmul.f32 0.2, %v787_v30  ;;  %v6900_v38 = vadd.f32 %v6784_v35, %v946_v31 }
 0x2c5   :  { %v457_v40 = vpop.permute.xlu1 %456 }
 0x2c6   :  { %10002 = vst [vmem:[#allocation24_spill] sm:$0xff] %v6900_v38  ;;  %v788_v42 = vadd.f32 %v6874_v53, %v457_v40  ;;  %1140 = vmax.xlane.f32.xlu0 %v6900_v38  ;;  %v947_v46 = vmax.f32 %v787_v30, %v867_v32  ;;  %v951_v32 = vmax.f32 %v791_v57, %v871_v10 }
 0x2c7   :  { %606 = vbcast.lane.b32.xlu1 %v6751_v14, 320 }
 0x2c8   :  { %v868_v49 = vmul.f32 0.2, %v788_v42  ;;  %v6906_v50 = vadd.f32 %v6789_v39, %v947_v46 }
 0x2c9   :  { %v461_v19 = vpop.permute.xlu1 %460 }
 0x2ca   :  { %1142 = vmax.xlane.f32.xlu0 %v6906_v50  ;;  %v948_v54 = vmax.f32 %v788_v42, %v868_v49  ;;  %v6923_v42 = vadd.f32 %v6819_v60, %v951_v32 }
 0x2cb   :  { %614 = vbcast.lane.b32.xlu1 %v6751_v14, 336 }
 0x2cc   :  { %v6912_v59 = vadd.f32 %v6799_v45, %v948_v54  ;;  %10005 = vst [vmem:[#allocation27_spill] sm:$0xff] %v6923_v42 }
 0x2cd   :  { %v465_v61 = vpop.permute.xlu1 %464 }
 0x2ce   :  { %10003 = vst [vmem:[#allocation25_spill] sm:$0xff] %v6912_v59  ;;  %v790_v1 = vadd.f32 %v6874_v53, %v465_v61  ;;  %1144 = vmax.xlane.f32.xlu0 %v6912_v59 }
 0x2cf   :  { %618 = vbcast.lane.b32.xlu1 %v6751_v14, 344 }
 0x2d0   :  { %v870_v17 = vmul.f32 0.2, %v790_v1 }
 0x2d1   :  { %v473_v22 = vpop.permute.xlu1 %472 }
 0x2d2   :  { %v792_v23 = vadd.f32 %v6874_v53, %v473_v22  ;;  %v950_v27 = vmax.f32 %v790_v1, %v870_v17 }
 0x2d4   :  { %v872_v30 = vmul.f32 0.2, %v792_v23  ;;  %v6919_v31 = vadd.f32 %v6809_v52, %v950_v27 }
 0x2d5   :  { %v477_v40 = vpop.permute.xlu1 %476 }
 0x2d6   :  { %10004 = vst [vmem:[#allocation26_spill] sm:$0xff] %v6919_v31  ;;  %1148 = vmax.xlane.f32.xlu0 %v6919_v31  ;;  %v952_v46 = vmax.f32 %v792_v23, %v872_v30  ;;  %v769_v30 = vadd.f32 %v6769_v21, %v6772_v25 }
 0x2d8   :  { %v6928_v61 = vadd.f32 %v6826_v0, %v952_v46  ;;  %v849_v32 = vmul.f32 0.2, %v769_v30  ;;  %v773_v46 = vadd.f32 %v6769_v21, %v6797_v44 }
 0x2d9   :  { %v481_v49 = vpop.permute.xlu1 %480 }
 0x2da   :  { %v794_v11 = vadd.f32 %v6874_v53, %v481_v49  ;;  %1150 = vmax.xlane.f32.xlu0 %v6923_v42  ;;  %10006 = vst [vmem:[#allocation28_spill] sm:$0xff] %v6928_v61  ;;  %v929_v49 = vmax.f32 %v769_v30, %v849_v32  ;;  %v785_v32 = vadd.f32 %v6874_v53, %v6887_v9 }
 0x2dc   :  { %v874_v54 = vmul.f32 0.2, %v794_v11 }
 0x2dd   :  { %v485_v1 = vpop.permute.xlu1 %484 }
 0x2de   :  { %v795_v17 = vadd.f32 %v6874_v53, %v485_v1  ;;  %1152 = vmax.xlane.f32.xlu0 %v6928_v61  ;;  %v954_v57 = vmax.f32 %v794_v11, %v874_v54  ;;  %v853_v11 = vmul.f32 0.2, %v773_v46  ;;  %v777_v54 = vadd.f32 %v6769_v21, %v6824_v63  ;;  %v6946_v1 = vld [vmem:[#allocation6 + $0x8] sm:$0xff] }
 0x2df   :  { %v6951_v25 = vadd.f32 %v6946_v1, %v929_v49  ;;  %v789_v49 = vadd.f32 %v6874_v53, %v461_v19 }
 0x2e0   :  { %v875_v10 = vmul.f32 0.2, %v795_v17  ;;  %v6933_v22 = vadd.f32 %v6836_v16, %v954_v57  ;;  %v857_v57 = vmul.f32 0.2, %v777_v54 }
 0x2e2   :  { %10007 = vst [vmem:[#allocation29_spill] sm:$0xff] %v6933_v22  ;;  %1156 = vmax.xlane.f32.xlu0 %v6933_v22  ;;  %v955_v23 = vmax.f32 %v795_v17, %v875_v10  ;;  %v933_v17 = vmax.f32 %v773_v46, %v853_v11  ;;  %v781_v10 = vadd.f32 %v6769_v21, %v6851_v34  ;;  %v6962_v46 = vld [vmem:[#allocation6 + $0x48] sm:$0xff]  ;;  %v865_v34 = vmul.f32 0.2, %v785_v32 }
 0x2e3   :  { %v937_v44 = vmax.f32 %v777_v54, %v857_v57  ;;  %v6970_v54 = vld [vmem:[#allocation6 + $0x68] sm:$0xff]  ;;  %v793_v57 = vadd.f32 %v6874_v53, %v477_v40 }
 0x2e4   :  { %v6937_v27 = vadd.f32 %v6843_v29, %v955_v23  ;;  %v6954_v23 = vld [vmem:[#allocation6 + $0x28] sm:$0xff]  ;;  %v861_v30 = vmul.f32 0.2, %v781_v10  ;;  %v945_v9 = vmax.f32 %v785_v32, %v865_v34 }
 0x2e5   :  { %v6959_v63 = vadd.f32 %v6954_v23, %v933_v17  ;;  %v6966_v11 = vadd.f32 %v6962_v46, %v937_v44  ;;  %v869_v17 = vmul.f32 0.2, %v789_v49 }
 0x2e6   :  { %10008 = vst [vmem:[#allocation30_spill] sm:$0xff] %v6937_v27  ;;  %1158 = vmax.xlane.f32.xlu0 %v6937_v27  ;;  %v941_v21 = vmax.f32 %v781_v10, %v861_v30  ;;  %v489_v10 = vpop.permute.xlu1 %488  ;;  %v873_v30 = vmul.f32 0.2, %v793_v57  ;;  %v6978_v44 = vadd.f32 %v6946_v1, %v945_v9 }
 0x2e7   :  { %v949_v19 = vmax.f32 %v789_v49, %v869_v17  ;;  %v796_v34 = vadd.f32 %v6874_v53, %v489_v10 }
 0x2e8   :  { %v6974_v8 = vadd.f32 %v6970_v54, %v941_v21  ;;  %v953_v6 = vmax.f32 %v793_v57, %v873_v30 }
 0x2e9   :  { %v6982_v5 = vadd.f32 %v6954_v23, %v949_v19  ;;  %v876_v49 = vmul.f32 0.2, %v796_v34 }
 0x2ea   :  { %v493_v32 = vpop.permute.xlu1 %492  ;;  %v6986_v40 = vadd.f32 %v6962_v46, %v953_v6 }
 0x2eb   :  { %10009 = vst [vmem:[#allocation31_spill] sm:$0xff] %v6982_v5  ;;  %v956_v19 = vmax.f32 %v796_v34, %v876_v49 }
 0x2ec   :  { %10010 = vst [vmem:[#allocation32_spill] sm:$0xff] %v6986_v40 }
 0x2ed   :  { %v6993_v61 = vadd.f32 %v6853_v36, %v956_v19 }
 0x2ee   :  { %v497_v21 = vpop.permute.xlu1 %496 }
 0x2ef   :  { %v798_v9 = vadd.f32 %v6874_v53, %v497_v21  ;;  %10011 = vst [vmem:[#allocation33_spill] sm:$0xff] %v6993_v61 }
 0x2f1   :  { %v878_v22 = vmul.f32 0.2, %v798_v9 }
 0x2f2   :  { %v501_v17 = vpop.permute.xlu1 %500 }
 0x2f3   :  { %1106 = vmax.xlane.f32.xlu1 %v6951_v25  ;;  %v799_v57 = vadd.f32 %v6874_v53, %v501_v17  ;;  %v958_v31 = vmax.f32 %v798_v9, %v878_v22  ;;  %v7008_v22 = vsub.s32 1, %v6722_v4 }
 0x2f5   :  { %v879_v30 = vmul.f32 0.2, %v799_v57  ;;  %v6998_v6 = vadd.f32 %v6868_v51, %v958_v31  ;;  %10014 = vst [vmem:[#allocation36_spill] sm:$0xff] %v7008_v22  ;;  %v7012_v34 = vrot.slane %v6743_v12, %v7008_v22  ;;  %v797_v31 = vadd.f32 %v6874_v53, %v493_v32 }
 0x2f6   :  { %v508_v17 = vpop.permute.xlu1 %507 }
 0x2f7   :  { %1114 = vmax.xlane.f32.xlu1 %v6959_v63  ;;  %10012 = vst [vmem:[#allocation34_spill] sm:$0xff] %v6998_v6  ;;  %v959_v10 = vmax.f32 %v799_v57, %v879_v30  ;;  %v877_v49 = vmul.f32 0.2, %v797_v31  ;;  %v741_v57 = vcombine.high %v6765_v20, %v6765_v20 }
 0x2f9   :  { %v7003_v21 = vadd.f32 %v6879_v58, %v959_v10  ;;  %v957_v9 = vmax.f32 %v797_v31, %v877_v49  ;;  %v516_v10 = vpop.permute.xlu0 %515 }
 0x2fa   :  { %v512_v12 = vpop.permute.xlu1 %511 }
 0x2fb   :  { %1122 = vmax.xlane.f32.xlu1 %v6966_v11  ;;  %10013 = vst [vmem:[#allocation35_spill] sm:$0xff] %v7003_v21  ;;  %v7019_v19 = vadd.f32 %v6970_v54, %v957_v9 }
 0x2fc   :  { %626 = vbcast.lane.b32.xlu0 %v6751_v14, 360 }
 0x2fd   :  { %10015 = vst [vmem:[#allocation37_spill] sm:$0xff] %v7019_v19 }
 0x2fe   :  { %v520_v31 = vpop.permute.xlu1 %519 }
 0x2ff   :  { %1130 = vmax.xlane.f32.xlu1 %v6974_v8 }
 0x303   :  { %1138 = vmax.xlane.f32.xlu1 %v6978_v44 }
 0x307   :  { %1146 = vmax.xlane.f32.xlu1 %v6982_v5 }
 0x30b   :  { %1154 = vmax.xlane.f32.xlu1 %v6986_v40 }
 0x31b   :  { %1160 = vmax.xlane.f32.xlu0 %v6993_v61 }
 0x31c   :  { %622 = vbcast.lane.b32.xlu1 %v6751_v14, 352 }
 0x31f   :  { %1164 = vmax.xlane.f32.xlu0 %v6998_v6 }
 0x320   :  { %630 = vbcast.lane.b32.xlu1 %v6751_v14, 368 }
 0x323   :  { %1166 = vmax.xlane.f32.xlu0 %v7003_v21 }
 0x324   :  { %634 = vbcast.lane.b32.xlu1 %v6751_v14, 376  ;;  %v7022_v14 = vrot.slane %v741_v57, %v6746_v13 }
 0x326   :  { %v800_v30 = vadd.f32 %v7022_v14, %v508_v17  ;;  %v802_v53 = vadd.f32 %v7022_v14, %v516_v10  ;;  %v803_v4 = vadd.f32 %v7022_v14, %v520_v31  ;;  %v524_v31 = vpop.permute.xlu1 %523 }
 0x328   :  { %v880_v32 = vmul.f32 0.2, %v800_v30  ;;  %v882_v49 = vmul.f32 0.2, %v802_v53  ;;  %v883_v22 = vmul.f32 0.2, %v803_v4 }
 0x32a   :  { %v960_v20 = vmax.f32 %v800_v30, %v880_v32  ;;  %v962_v57 = vmax.f32 %v802_v53, %v882_v49  ;;  %v963_v6 = vmax.f32 %v803_v4, %v883_v22  ;;  %v801_v30 = vadd.f32 %v7022_v14, %v512_v12  ;;  %v532_v22 = vpop.permute.xlu1 %531 }
 0x32c   :  { %v7029_v9 = vadd.f32 %v6774_v26, %v960_v20  ;;  %v7034_v17 = vadd.f32 %v6784_v35, %v962_v57  ;;  %v7039_v10 = vadd.f32 %v6789_v39, %v963_v6  ;;  %v881_v53 = vmul.f32 0.2, %v801_v30 }
 0x32d   :  { %v804_v6 = vadd.f32 %v7022_v14, %v524_v31  ;;  %v806_v20 = vadd.f32 %v7022_v14, %v532_v22 }
 0x32e   :  { %10016 = vst [vmem:[#allocation38_spill] sm:$0xff] %v7029_v9  ;;  %10017 = vst [vmem:[#allocation39_spill] sm:$0xff] %v7034_v17  ;;  %v961_v32 = vmax.f32 %v801_v30, %v881_v53  ;;  %v536_v57 = vpop.permute.xlu1 %535  ;;  %v528_v53 = vpop.permute.xlu0 %527 }
 0x32f   :  { %10018 = vst [vmem:[#allocation40_spill] sm:$0xff] %v7039_v10  ;;  %v884_v49 = vmul.f32 0.2, %v804_v6 }
 0x330   :  { %v7046_v4 = vadd.f32 %v6946_v1, %v961_v32 }
 0x331   :  { %v964_v61 = vmax.f32 %v804_v6, %v884_v49  ;;  %v805_v49 = vadd.f32 %v7022_v14, %v528_v53 }
 0x332   :  { %10019 = vst [vmem:[#allocation41_spill] sm:$0xff] %v7046_v4 }
 0x333   :  { %v7053_v30 = vadd.f32 %v6799_v45, %v964_v61  ;;  %v540_v61 = vpop.permute.xlu1 %539 }
 0x334   :  { %v808_v59 = vadd.f32 %v7022_v14, %v540_v61 }
 0x335   :  { %10020 = vst [vmem:[#allocation42_spill] sm:$0xff] %v7053_v30 }
 0x336   :  { %v888_v53 = vmul.f32 0.2, %v808_v59 }
 0x339   :  { %645 = vbcast.lane.b32.xlu0 %v7012_v34, 264 }
 0x348   :  { %1162 = vmax.xlane.f32.xlu1 %v7019_v19 }
 0x358   :  { %1168 = vmax.xlane.f32.xlu0 %v7029_v9  ;;  %v807_v9 = vadd.f32 %v7022_v14, %v536_v57  ;;  %v885_v57 = vmul.f32 0.2, %v805_v49 }
 0x359   :  { %641 = vbcast.lane.b32.xlu1 %v7012_v34, 256 }
 0x35c   :  { %1172 = vmax.xlane.f32.xlu0 %v7034_v17  ;;  %v886_v17 = vmul.f32 0.2, %v806_v20 }
 0x35d   :  { %649 = vbcast.lane.b32.xlu1 %v7012_v34, 272 }
 0x35e   :  { %v966_v12 = vmax.f32 %v806_v20, %v886_v17  ;;  %v544_v17 = vpop.permute.xlu0 %543 }
 0x360   :  { %1174 = vmax.xlane.f32.xlu0 %v7039_v10  ;;  %v887_v10 = vmul.f32 0.2, %v807_v9  ;;  %v7058_v31 = vadd.f32 %v6809_v52, %v966_v12 }
 0x361   :  { %653 = vbcast.lane.b32.xlu1 %v7012_v34, 280 }
 0x362   :  { %v967_v32 = vmax.f32 %v807_v9, %v887_v10  ;;  %10021 = vst [vmem:[#allocation43_spill] sm:$0xff] %v7058_v31  ;;  %v7067_v45 = vpop.permute.xlu0 %559  ;;  %v548_v9 = vpop.permute.xlu1 %547 }
 0x363   :  { %v810_v38 = vadd.f32 %v7022_v14, %v548_v9 }
 0x364   :  { %v7063_v22 = vadd.f32 %v6819_v60, %v967_v32 }
 0x366   :  { %10022 = vst [vmem:[#allocation44_spill] sm:$0xff] %v7063_v22  ;;  %v7069_v6 = vpop.permute.xlu0 %578  ;;  %v552_v10 = vpop.permute.xlu1 %551 }
 0x367   :  { %v811_v40 = vadd.f32 %v7022_v14, %v552_v10 }
 0x369   :  { %v891_v42 = vmul.f32 0.2, %v811_v40 }
 0x36a   :  { %v7071_v52 = vpop.permute.xlu0 %594  ;;  %v556_v32 = vpop.permute.xlu1 %555 }
 0x36b   :  { %v971_v9 = vmax.f32 %v811_v40, %v891_v42  ;;  %v812_v18 = vadd.f32 %v7022_v14, %v556_v32 }
 0x36e   :  { %v7075_v20 = vpop.permute.xlu0 %610 }
 0x372   :  { %v1105_v12 = vpop.xlane.xlu0 %1104 }
 0x376   :  { %661 = vbcast.lane.b32.xlu0 %v7012_v34, 296 }
 0x385   :  { %1170 = vmax.xlane.f32.xlu1 %v7046_v4 }
 0x395   :  { %1176 = vmax.xlane.f32.xlu0 %v7053_v30  ;;  %v7077_v30 = vpop.xlane.xlu0 %1108 }
 0x396   :  { %657 = vbcast.lane.b32.xlu1 %v7012_v34, 288 }
 0x399   :  { %1180 = vmax.xlane.f32.xlu0 %v7058_v31  ;;  %v965_v31 = vmax.f32 %v805_v49, %v885_v57  ;;  %v1111_v21 = vpop.xlane.xlu0 %1110  ;;  %v968_v49 = vmax.f32 %v808_v59, %v888_v53  ;;  %v890_v57 = vmul.f32 0.2, %v810_v38 }
 0x39a   :  { %665 = vbcast.lane.b32.xlu1 %v7012_v34, 304 }
 0x39b   :  { %v7082_v4 = vadd.f32 %v6954_v23, %v965_v31  ;;  %v970_v31 = vmax.f32 %v810_v38, %v890_v57  ;;  %v7097_v61 = vadd.f32 %v6826_v0, %v968_v49  ;;  %v7113_v0 = vadd.f32 %v6843_v29, %v971_v9 }
 0x39d   :  { %1182 = vmax.xlane.f32.xlu0 %v7063_v22  ;;  %v7079_v22 = vpop.permute.xlu1 %563  ;;  %10023 = vst [vmem:[#allocation45_spill] sm:$0xff] %v7082_v4  ;;  %v7087_v27 = vpop.xlane.xlu0 %1112  ;;  %10024 = vst [vmem:[#allocation46_spill] sm:$0xff] %v7097_v61  ;;  %v7104_v59 = vadd.f32 %v6836_v16, %v970_v31 }
 0x39e   :  { %669 = vbcast.lane.b32.xlu1 %v7012_v34, 312  ;;  %10026 = vst [vmem:[#allocation48_spill] sm:$0xff] %v7113_v0 }
 0x39f   :  { %10025 = vst [vmem:[#allocation47_spill] sm:$0xff] %v7104_v59 }
 0x3a1   :  { %v568_v19 = vpop.permute.xlu1 %567  ;;  %v7092_v55 = vpop.xlane.xlu0 %1116 }
 0x3a5   :  { %v7089_v15 = vpop.permute.xlu1 %574 }
 0x3a9   :  { %v7094_v41 = vpop.permute.xlu1 %582 }
 0x3ad   :  { %v7106_v10 = vpop.permute.xlu1 %586 }
 0x3b1   :  { %v7117_v53 = vpop.permute.xlu1 %590 }
 0x3b2   :  { %10027 = vst [vmem:[#allocation49_spill] sm:$0xff] %v7117_v53 }
 0x3b3   :  { %677 = vbcast.lane.b32.xlu0 %v7012_v34, 328 }
 0x3b5   :  { %v7121_v16 = vpop.permute.xlu1 %598 }
 0x3b6   :  { %10029 = vst [vmem:[#allocation51_spill] sm:$0xff] %v7121_v16 }
 0x3b9   :  { %v7125_v49 = vpop.permute.xlu1 %602 }
 0x3bd   :  { %v7131_v9 = vpop.permute.xlu1 %606 }
 0x3be   :  { %10032 = vst [vmem:[#allocation54_spill] sm:$0xff] %v7131_v9 }
 0x3c2   :  { %1178 = vmax.xlane.f32.xlu1 %v7082_v4  ;;  %v7099_v4 = vpop.xlane.xlu0 %1118 }
 0x3c6   :  { %v7110_v38 = vpop.xlane.xlu0 %1120 }
 0x3ca   :  { %v7119_v42 = vpop.xlane.xlu0 %1124 }
 0x3cb   :  { %10028 = vst [vmem:[#allocation50_spill] sm:$0xff] %v7119_v42 }
 0x3ce   :  { %v7123_v40 = vpop.xlane.xlu0 %1126 }
 0x3d2   :  { %1184 = vmax.xlane.f32.xlu0 %v7097_v61  ;;  %v7127_v57 = vpop.xlane.xlu0 %1128 }
 0x3d3   :  { %673 = vbcast.lane.b32.xlu1 %v7012_v34, 320  ;;  %10030 = vst [vmem:[#allocation52_spill] sm:$0xff] %v7127_v57 }
 0x3d6   :  { %1188 = vmax.xlane.f32.xlu0 %v7104_v59  ;;  %v7129_v31 = vpop.xlane.xlu0 %1132  ;;  %v809_v59 = vadd.f32 %v7022_v14, %v544_v17 }
 0x3d7   :  { %681 = vbcast.lane.b32.xlu1 %v7012_v34, 336  ;;  %10031 = vst [vmem:[#allocation53_spill] sm:$0xff] %v7129_v31  ;;  %v1264_v31 = vsub.f32 %v6777_v28, %v1105_v12  ;;  %v1267_v28 = vsub.f32 %v6795_v43, %v1111_v21 }
 0x3d8   :  { %v889_v5 = vmul.f32 0.2, %v809_v59 }
 0x3d9   :  { %v1344_v17 = vmul.f32 1.442695, %v1264_v31  ;;  %v815_v31 = vadd.f32 %v7022_v14, %v568_v19 }
 0x3da   :  { %1190 = vmax.xlane.f32.xlu0 %v7113_v0  ;;  %v7135_v61 = vpop.xlane.xlu0 %1134  ;;  %v7137_v0 = vpop.permute.xlu1 %614  ;;  %v969_v35 = vmax.f32 %v809_v59, %v889_v5  ;;  %v892_v5 = vmul.f32 0.2, %v812_v18 }
 0x3db   :  { %685 = vbcast.lane.b32.xlu1 %v7012_v34, 344  ;;  %10033 = vst [vmem:[#allocation55_spill] sm:$0xff] %v7137_v0  ;;  %5725 = vpow2.f32 %v1344_v17  ;;  %v895_v43 = vmul.f32 0.2, %v815_v31 }
 0x3dc   :  { %v7147_v9 = vadd.f32 %v6962_v46, %v969_v35  ;;  %v972_v35 = vmax.f32 %v812_v18, %v892_v5 }
 0x3dd   :  { %v975_v17 = vmax.f32 %v815_v31, %v895_v43 }
 0x3de   :  { %v7139_v16 = vpop.xlane.xlu0 %1136  ;;  %v7141_v24 = vpop.permute.xlu1 %618  ;;  %10036 = vst [vmem:[#allocation58_spill] sm:$0xff] %v7147_v9  ;;  %v7161_v32 = vadd.f32 %v6853_v36, %v972_v35 }
 0x3df   :  { %10034 = vst [vmem:[#allocation56_spill] sm:$0xff] %v7139_v16 }
 0x3e2   :  { %v7143_v42 = vpop.xlane.xlu0 %1140  ;;  %v1107_v57 = vpop.xlane.xlu1 %1106 }
 0x3e3   :  { %10035 = vst [vmem:[#allocation57_spill] sm:$0xff] %v7143_v42  ;;  %v1265_v0 = vsub.f32 %v6951_v25, %v1107_v57  ;;  %v742_v57 = vcombine.high %v6866_v48, %v6866_v48 }
 0x3e5   :  { %v1346_v59 = vmul.f32 1.442695, %v1265_v0  ;;  %v7173_v19 = vrot.slane %v742_v57, %v6746_v13 }
 0x3e6   :  { %v7152_v53 = vpop.xlane.xlu0 %1142  ;;  %v1115_v42 = vpop.xlane.xlu1 %1114 }
 0x3e7   :  { %5727 = vpow2.f32 %v1346_v59  ;;  %v1269_v18 = vsub.f32 %v6959_v63, %v1115_v42  ;;  %v817_v48 = vadd.f32 %v7173_v19, %v7069_v6  ;;  %v1271_v59 = vsub.f32 %v6822_v62, %v7099_v4 }
 0x3e8   :  { %v7168_v21 = vpop.eup %5725  ;;  %v819_v57 = vadd.f32 %v7173_v19, %v7106_v10  ;;  %v821_v10 = vadd.f32 %v7173_v19, %v7071_v52 }
 0x3e9   :  { %v897_v42 = vmul.f32 0.2, %v817_v48  ;;  %v1358_v31 = vmul.f32 1.442695, %v1271_v59 }
 0x3ea   :  { %v7154_v16 = vpop.xlane.xlu0 %1144  ;;  %v1123_v25 = vpop.xlane.xlu1 %1122  ;;  %v899_v4 = vmul.f32 0.2, %v819_v57 }
 0x3eb   :  { %v977_v6 = vmax.f32 %v817_v48, %v897_v42 }
 0x3ee   :  { %v7157_v12 = vpop.xlane.xlu0 %1148  ;;  %v1131_v36 = vpop.xlane.xlu1 %1130 }
 0x3f0   :  { %693 = vbcast.lane.b32.xlu0 %v7012_v34, 360 }
 0x3f2   :  { %v7170_v0 = vpop.xlane.xlu0 %1150  ;;  %v7190_v35 = vpop.xlane.xlu1 %1138 }
 0x3f4   :  { %v7179_v5 = vpop.eup %5727 }
 0x3f6   :  { %v7182_v63 = vpop.xlane.xlu0 %1152  ;;  %v7200_v62 = vpop.xlane.xlu1 %1146 }
 0x3ff   :  { %1186 = vmax.xlane.f32.xlu1 %v7147_v9  ;;  %v1350_v9 = vmul.f32 1.442695, %v1267_v28  ;;  %v7188_v28 = vadd.f32 %v6879_v58, %v975_v17  ;;  %v7204_v17 = vadd.f32 %v6946_v1, %v977_v6 }
 0x401   :  { %5729 = vpow2.f32 %v1350_v9  ;;  %v1354_v9 = vmul.f32 1.442695, %v1269_v18  ;;  %v1273_v18 = vsub.f32 %v6966_v11, %v1123_v25  ;;  %v1275_v11 = vsub.f32 %v6849_v33, %v7123_v40 }
 0x402   :  { %v813_v33 = vadd.f32 %v7022_v14, %v7067_v45 }
 0x403   :  { %5731 = vpow2.f32 %v1354_v9  ;;  %v979_v9 = vmax.f32 %v819_v57, %v899_v4  ;;  %v1362_v42 = vmul.f32 1.442695, %v1273_v18  ;;  %v1366_v4 = vmul.f32 1.442695, %v1275_v11 }
 0x404   :  { %5733 = vpow2.f32 %v1358_v31  ;;  %v901_v31 = vmul.f32 0.2, %v821_v10  ;;  %v823_v18 = vadd.f32 %v7173_v19, %v7125_v49  ;;  %v893_v49 = vmul.f32 0.2, %v813_v33 }
 0x405   :  { %5735 = vpow2.f32 %v1362_v42  ;;  %v7219_v25 = vadd.f32 %v6789_v39, %v979_v9  ;;  %v1266_v39 = vsub.f32 %v6787_v37, %v7077_v30  ;;  %v814_v11 = vadd.f32 %v7022_v14, %v7079_v22 }
 0x406   :  { %v981_v57 = vmax.f32 %v821_v10, %v901_v31  ;;  %5737 = vpow2.f32 %v1366_v4  ;;  %v903_v9 = vmul.f32 0.2, %v823_v18  ;;  %v1277_v10 = vsub.f32 %v6974_v8, %v1131_v36 }
 0x407   :  { %v1348_v31 = vmul.f32 1.442695, %v1266_v39  ;;  %v825_v30 = vadd.f32 %v7173_v19, %v7075_v20  ;;  %v973_v36 = vmax.f32 %v813_v33, %v893_v49  ;;  %v894_v39 = vmul.f32 0.2, %v814_v11 }
 0x408   :  { %v7239_v42 = vadd.f32 %v6954_v23, %v981_v57  ;;  %v983_v4 = vmax.f32 %v823_v18, %v903_v9  ;;  %v1268_v57 = vsub.f32 %v6804_v47, %v7087_v27  ;;  %v816_v33 = vadd.f32 %v7173_v19, %v7089_v15 }
 0x409   :  { %5739 = vpow2.f32 %v1348_v31  ;;  %v905_v22 = vmul.f32 0.2, %v825_v30  ;;  %v974_v9 = vmax.f32 %v814_v11, %v894_v39  ;;  %v7265_v47 = vadd.f32 %v6970_v54, %v973_v36 }
 0x40a   :  { %10040 = vst [vmem:[#allocation62_spill] sm:$0xff] %v7239_v42  ;;  %v7258_v20 = vadd.f32 %v6819_v60, %v983_v4  ;;  %v1352_v18 = vmul.f32 1.442695, %v1268_v57  ;;  %v827_v60 = vadd.f32 %v7173_v19, %v7141_v24  ;;  %v1270_v15 = vsub.f32 %v6814_v56, %v7092_v55 }
 0x40b   :  { %v896_v49 = vmul.f32 0.2, %v816_v33  ;;  %v7278_v31 = vadd.f32 %v6868_v51, %v974_v9  ;;  %v1281_v24 = vsub.f32 %v6978_v44, %v7190_v35  ;;  %v818_v51 = vadd.f32 %v7173_v19, %v7094_v41 }
 0x40c   :  { %v1356_v4 = vmul.f32 1.442695, %v1270_v15  ;;  %v1272_v41 = vsub.f32 %v6831_v2, %v7110_v38  ;;  %v10044_v38 = vld [vmem:[#allocation49_spill] sm:$0xff] }
 0x40d   :  { %v976_v56 = vmax.f32 %v816_v33, %v896_v49  ;;  %v1378_v35 = vmul.f32 1.442695, %v1281_v24  ;;  %v704_v33 = vcombine.high %v6726_v7, %v6726_v7  ;;  %v820_v15 = vadd.f32 %v7173_v19, %v10044_v38 }
 0x40e   :  { %v7195_v43 = vpop.eup %5729 }
 0x40f   :  { %1192 = vmax.xlane.f32.xlu0 %v7161_v32  ;;  %10037 = vst [vmem:[#allocation59_spill] sm:$0xff] %v7195_v43  ;;  %v7306_v9 = vadd.f32 %v6774_v26, %v976_v56  ;;  %v1360_v26 = vmul.f32 1.442695, %v1272_v41  ;;  %v900_v56 = vmul.f32 0.2, %v820_v15  ;;  %v10050_v41 = vld [vmem:[#allocation19_spill] sm:$0xff] }
 0x410   :  { %689 = vbcast.lane.b32.xlu1 %v7012_v34, 352  ;;  %v7211_v59 = vpop.eup %5731 }
 0x411   :  { %10038 = vst [vmem:[#allocation60_spill] sm:$0xff] %v7211_v59 }
 0x413   :  { %1504 = vadd.xlane.f32.xlu0 %v7168_v21 }
 0x414   :  { %697 = vbcast.lane.b32.xlu1 %v7012_v34, 368 }
 0x417   :  { %1506 = vadd.xlane.f32.xlu0 %v7179_v5 }
 0x418   :  { %701 = vbcast.lane.b32.xlu1 %v7012_v34, 376  ;;  %v7197_v34 = vpop.xlane.xlu0 %1156 }
 0x41b   :  { %1198 = vmax.xlane.f32.xlu0 %v7188_v28 }
 0x41c   :  { %v7207_v48 = vpop.xlane.xlu0 %1158 }
 0x41f   :  { %1510 = vadd.xlane.f32.xlu0 %v7195_v43  ;;  %v7213_v43 = vpop.xlane.xlu1 %1154 }
 0x420   :  { %v7221_v6 = vpop.permute.xlu0 %626 }
 0x421   :  { %v829_v44 = vadd.f32 %v7173_v19, %v7221_v6  ;;  %v1283_v6 = vsub.f32 %v6906_v50, %v7152_v53 }
 0x423   :  { %1202 = vmax.xlane.f32.xlu0 %v7204_v17  ;;  %v7224_v52 = vpop.permute.xlu1 %622  ;;  %v1382_v50 = vmul.f32 1.442695, %v1283_v6 }
 0x424   :  { %v7234_v40 = vpop.xlane.xlu0 %1160 }
 0x427   :  { %1514 = vadd.xlane.f32.xlu0 %v7211_v59  ;;  %v7228_v59 = vpop.eup %5733  ;;  %v7243_v45 = vpop.permute.xlu1 %630 }
 0x428   :  { %10039 = vst [vmem:[#allocation61_spill] sm:$0xff] %v7228_v59  ;;  %v7246_v37 = vpop.xlane.xlu0 %1164  ;;  %v7250_v8 = vpop.eup %5735 }
 0x429   :  { %10041 = vst [vmem:[#allocation63_spill] sm:$0xff] %v7250_v8 }
 0x42b   :  { %1206 = vmax.xlane.f32.xlu0 %v7219_v25  ;;  %v635_v14 = vpop.permute.xlu1 %634 }
 0x42f   :  { %1518 = vadd.xlane.f32.xlu0 %v7228_v59  ;;  %v1370_v59 = vmul.f32 1.442695, %v1277_v10  ;;  %v7262_v10 = vpop.xlane.xlu0 %1166  ;;  %v7268_v27 = vpop.xlane.xlu1 %1162 }
 0x431   :  { %5741 = vpow2.f32 %v1370_v59  ;;  %v7273_v59 = vpop.eup %5737 }
 0x432   :  { %10042 = vst [vmem:[#allocation64_spill] sm:$0xff] %v7273_v59  ;;  %5743 = vpow2.f32 %v1352_v18  ;;  %v7293_v36 = vpop.eup %5739  ;;  %v898_v18 = vmul.f32 0.2, %v818_v51 }
 0x433   :  { %1210 = vmax.xlane.f32.xlu0 %v7239_v42  ;;  %v1279_v42 = vsub.f32 %v6885_v3, %v7135_v61  ;;  %v985_v3 = vmax.f32 %v825_v30, %v905_v22  ;;  %v7281_v11 = vpop.permute.xlu0 %645  ;;  %v907_v30 = vmul.f32 0.2, %v827_v60  ;;  %v7291_v55 = vpop.permute.xlu1 %641 }
 0x434   :  { %v978_v2 = vmax.f32 %v818_v51, %v898_v18  ;;  %v10048_v51 = vld [vmem:[#allocation50_spill] sm:$0xff] }
 0x435   :  { %v1374_v61 = vmul.f32 1.442695, %v1279_v42  ;;  %v7287_v42 = vadd.f32 %v6962_v46, %v985_v3  ;;  %v987_v39 = vmax.f32 %v827_v60, %v907_v30  ;;  %v909_v60 = vmul.f32 0.2, %v829_v44  ;;  %v10046_v30 = vld [vmem:[#allocation18_spill] sm:$0xff] }
 0x436   :  { %v718_v24 = vrot.slane %v704_v33, %v10046_v30  ;;  %v7334_v38 = vadd.f32 %v10050_v41, %v978_v2  ;;  %v10052_v2 = vld [vmem:[#allocation51_spill] sm:$0xff] }
 0x437   :  { %1522 = vadd.xlane.f32.xlu0 %v7250_v8  ;;  %5745 = vpow2.f32 %v1374_v61  ;;  %v7296_v57 = vpop.xlane.xlu0 %1168  ;;  %v7311_v3 = vpop.permute.xlu1 %649  ;;  %v7317_v61 = vadd.f32 %v6843_v29, %v987_v39  ;;  %v989_v53 = vmax.f32 %v829_v44, %v909_v60  ;;  %v831_v29 = vadd.f32 %v7173_v19, %v635_v14  ;;  %v10049_v39 = vld [vmem:[#allocation20_spill] sm:$0xff]  ;;  %v10051_v14 = vld [vmem:[#allocation31_spill] sm:$0xff] }
 0x438   :  { %5747 = vpow2.f32 %v1356_v4  ;;  %v733_v33 = vrot.slane %v718_v24, %v10046_v30  ;;  %v1285_v44 = vsub.f32 %v10051_v14, %v7200_v62 }
 0x439   :  { %5749 = vpow2.f32 %v1378_v35  ;;  %v1274_v35 = vsub.f32 %v10049_v39, %v10048_v51  ;;  %v911_v6 = vmul.f32 0.2, %v831_v29  ;;  %v7344_v60 = vadd.f32 %v6970_v54, %v989_v53 }
 0x43a   :  { %5751 = vpow2.f32 %v1360_v26  ;;  %v980_v26 = vmax.f32 %v820_v15, %v900_v56  ;;  %v822_v39 = vadd.f32 %v7173_v19, %v10052_v2  ;;  %v7353_v30 = vrot.slane %v733_v33, %v6746_v13  ;;  %v10055_v56 = vld [vmem:[#allocation52_spill] sm:$0xff]  ;;  %v10060_v13 = vld [vmem:[#allocation54_spill] sm:$0xff] }
 0x43b   :  { %1214 = vmax.xlane.f32.xlu0 %v7258_v20  ;;  %v7321_v7 = vpop.xlane.xlu0 %1172  ;;  %v654_v18 = vpop.permute.xlu1 %653  ;;  %5753 = vpow2.f32 %v1382_v50  ;;  %v1364_v51 = vmul.f32 1.442695, %v1274_v35  ;;  %v1386_v62 = vmul.f32 1.442695, %v1285_v44  ;;  %v991_v50 = vmax.f32 %v831_v29, %v911_v6  ;;  %v10056_v35 = vld [vmem:[#allocation21_spill] sm:$0xff] }
 0x43c   :  { %1194 = vmax.xlane.f32.xlu1 %v7265_v47  ;;  %v833_v54 = vadd.f32 %v7353_v30, %v7281_v11  ;;  %v902_v53 = vmul.f32 0.2, %v822_v39  ;;  %v1276_v14 = vsub.f32 %v10056_v35, %v10055_v56  ;;  %v10058_v11 = vld [vmem:[#allocation27_spill] sm:$0xff] }
 0x43d   :  { %5755 = vpow2.f32 %v1364_v51  ;;  %v1287_v29 = vsub.f32 %v10058_v11, %v7170_v0  ;;  %v7375_v51 = vadd.f32 %v6879_v58, %v991_v50  ;;  %v10064_v50 = vld [vmem:[#allocation22_spill] sm:$0xff] }
 0x43e   :  { %v7301_v22 = vpop.eup %5741  ;;  %5757 = vpow2.f32 %v1386_v62  ;;  %v913_v6 = vmul.f32 0.2, %v833_v54  ;;  %v982_v56 = vmax.f32 %v822_v39, %v902_v53  ;;  %v1368_v35 = vmul.f32 1.442695, %v1276_v14  ;;  %v10063_v39 = vld [vmem:[#allocation53_spill] sm:$0xff]  ;;  %v7392_v14 = vld [vmem:[#allocation6 + $0x30] sm:$0xff] }
 0x43f   :  { %1526 = vadd.xlane.f32.xlu0 %v7273_v59  ;;  %10043 = vst [vmem:[#allocation65_spill] sm:$0xff] %v7301_v22  ;;  %v7323_v49 = vpop.eup %5743  ;;  %v7348_v24 = vpop.xlane.xlu1 %1170  ;;  %10059 = vst [vmem:[#allocation31_spill] sm:$0xff] %v7375_v51  ;;  %v1390_v8 = vmul.f32 1.442695, %v1287_v29  ;;  %v835_v62 = vadd.f32 %v7353_v30, %v654_v18  ;;  %v1278_v53 = vsub.f32 %v10064_v50, %v10063_v39  ;;  %v10066_v18 = vld [vmem:[#allocation32_spill] sm:$0xff]  ;;  %v10068_v50 = vld [vmem:[#allocation55_spill] sm:$0xff] }
 0x440   :  { %1196 = vmax.xlane.f32.xlu1 %v7278_v31  ;;  %10045 = vst [vmem:[#allocation49_spill] sm:$0xff] %v7323_v49  ;;  %v993_v0 = vmax.f32 %v833_v54, %v913_v6  ;;  %5759 = vpow2.f32 %v1368_v35  ;;  %v1289_v54 = vsub.f32 %v10066_v18, %v7213_v43 }
 0x441   :  { %5761 = vpow2.f32 %v1390_v8  ;;  %v915_v6 = vmul.f32 0.2, %v835_v62 }
 0x442   :  { %v7404_v35 = vadd.f32 %v6946_v1, %v993_v0  ;;  %v1394_v8 = vmul.f32 1.442695, %v1289_v54  ;;  %v10072_v0 = vld [vmem:[#allocation23_spill] sm:$0xff] }
 0x443   :  { %1218 = vmax.xlane.f32.xlu0 %v7287_v42  ;;  %v7369_v44 = vpop.permute.xlu1 %657 }
 0x444   :  { %1508 = vadd.xlane.f32.xlu1 %v7293_v36  ;;  %v7329_v4 = vpop.eup %5745  ;;  %10067 = vst [vmem:[#allocation27_spill] sm:$0xff] %v7404_v35 }
 0x445   :  { %10047 = vst [vmem:[#allocation66_spill] sm:$0xff] %v7329_v4  ;;  %v7350_v41 = vpop.eup %5747 }
 0x446   :  { %10053 = vst [vmem:[#allocation50_spill] sm:$0xff] %v7350_v41  ;;  %v7359_v15 = vpop.eup %5749 }
 0x447   :  { %1530 = vadd.xlane.f32.xlu0 %v7301_v22  ;;  %v7338_v22 = vpop.xlane.xlu0 %1174  ;;  %10054 = vst [vmem:[#allocation20_spill] sm:$0xff] %v7359_v15 }
 0x448   :  { %1200 = vmax.xlane.f32.xlu1 %v7306_v9 }
 0x44b   :  { %1222 = vmax.xlane.f32.xlu0 %v7317_v61  ;;  %v662_v2 = vpop.permute.xlu0 %661 }
 0x44c   :  { %1512 = vadd.xlane.f32.xlu1 %v7323_v49  ;;  %v837_v43 = vadd.f32 %v7353_v30, %v662_v2  ;;  %v10074_v2 = vld [vmem:[#allocation30_spill] sm:$0xff] }
 0x44f   :  { %1534 = vadd.xlane.f32.xlu0 %v7329_v4  ;;  %v7363_v4 = vld [vmem:[#allocation6 + $0x20] sm:$0xff]  ;;  %v7379_v59 = vpop.xlane.xlu0 %1176 }
 0x450   :  { %1204 = vmax.xlane.f32.xlu1 %v7334_v38  ;;  %v7366_v33 = vadd.f32 %v7363_v4, %v980_v26  ;;  %v824_v26 = vadd.f32 %v7173_v19, %v10060_v13  ;;  %v7390_v13 = vpop.permute.xlu1 %665 }
 0x452   :  { %10057 = vst [vmem:[#allocation19_spill] sm:$0xff] %v7366_v33  ;;  %v904_v58 = vmul.f32 0.2, %v824_v26 }
 0x453   :  { %1226 = vmax.xlane.f32.xlu0 %v7344_v60  ;;  %v7398_v29 = vpop.xlane.xlu0 %1180 }
 0x454   :  { %1516 = vadd.xlane.f32.xlu1 %v7350_v41  ;;  %v7395_v41 = vadd.f32 %v7392_v14, %v982_v56  ;;  %v984_v39 = vmax.f32 %v824_v26, %v904_v58  ;;  %v1372_v56 = vmul.f32 1.442695, %v1278_v53  ;;  %v10071_v26 = vld [vmem:[#allocation56_spill] sm:$0xff]  ;;  %v7419_v53 = vld [vmem:[#allocation6 + $0x40] sm:$0xff] }
 0x455   :  { %v1280_v58 = vsub.f32 %v10072_v0, %v10071_v26 }
 0x456   :  { %10065 = vst [vmem:[#allocation21_spill] sm:$0xff] %v7395_v41  ;;  %5763 = vpow2.f32 %v1372_v56  ;;  %v6368_v56 = vld [vmem:[#allocation6 + $0x18] sm:$0xff] }
 0x457   :  { %1538 = vadd.xlane.f32.xlu0 %v7359_v15  ;;  %v7381_v15 = vpop.eup %5751  ;;  %5765 = vpow2.f32 %v1394_v8 }
 0x458   :  { %1208 = vmax.xlane.f32.xlu1 %v7366_v33  ;;  %10061 = vst [vmem:[#allocation51_spill] sm:$0xff] %v7381_v15  ;;  %v7386_v11 = vpop.eup %5753 }
 0x459   :  { %10062 = vst [vmem:[#allocation52_spill] sm:$0xff] %v7386_v11  ;;  %v7408_v49 = vpop.eup %5755 }
 0x45a   :  { %10069 = vst [vmem:[#allocation54_spill] sm:$0xff] %v7408_v49  ;;  %v7413_v18 = vpop.eup %5757 }
 0x45b   :  { %1230 = vmax.xlane.f32.xlu0 %v7375_v51  ;;  %10070 = vst [vmem:[#allocation53_spill] sm:$0xff] %v7413_v18  ;;  %v7434_v51 = vpop.eup %5759 }
 0x45c   :  { %1520 = vadd.xlane.f32.xlu1 %v7381_v15  ;;  %v826_v15 = vadd.f32 %v7173_v19, %v10068_v50  ;;  %v7417_v50 = vpop.xlane.xlu0 %1182  ;;  %10075 = vst [vmem:[#allocation32_spill] sm:$0xff] %v7434_v51  ;;  %v7439_v8 = vpop.eup %5761 }
 0x45d   :  { %10076 = vst [vmem:[#allocation55_spill] sm:$0xff] %v7439_v8 }
 0x45e   :  { %v906_v1 = vmul.f32 0.2, %v826_v15 }
 0x45f   :  { %1542 = vadd.xlane.f32.xlu0 %v7386_v11  ;;  %v670_v11 = vpop.permute.xlu1 %669 }
 0x460   :  { %1212 = vmax.xlane.f32.xlu1 %v7395_v41  ;;  %v995_v41 = vmax.f32 %v835_v62, %v915_v6  ;;  %v1291_v62 = vsub.f32 %v10074_v2, %v7207_v48  ;;  %v917_v6 = vmul.f32 0.2, %v837_v43  ;;  %v986_v0 = vmax.f32 %v826_v15, %v906_v1  ;;  %v10078_v15 = vld [vmem:[#allocation24_spill] sm:$0xff] }
 0x461   :  { %v839_v48 = vadd.f32 %v7353_v30, %v670_v11 }
 0x462   :  { %v7430_v26 = vadd.f32 %v6368_v56, %v995_v41  ;;  %v997_v33 = vmax.f32 %v837_v43, %v917_v6  ;;  %v10077_v41 = vld [vmem:[#allocation57_spill] sm:$0xff] }
 0x463   :  { %1234 = vmax.xlane.f32.xlu0 %v7404_v35  ;;  %v7422_v35 = vadd.f32 %v7419_v53, %v984_v39  ;;  %v7425_v54 = vpop.xlane.xlu1 %1178  ;;  %v828_v39 = vadd.f32 %v7173_v19, %v7224_v52  ;;  %v1282_v1 = vsub.f32 %v10078_v15, %v10077_v41  ;;  %v7445_v52 = vld [vmem:[#allocation6 + $0x50] sm:$0xff]  ;;  %v919_v43 = vmul.f32 0.2, %v839_v48 }
 0x464   :  { %1524 = vadd.xlane.f32.xlu1 %v7408_v49  ;;  %v1376_v49 = vmul.f32 1.442695, %v1280_v58  ;;  %v7448_v56 = vadd.f32 %v7445_v52, %v986_v0  ;;  %v7457_v6 = vadd.f32 %v6954_v23, %v997_v33  ;;  %v830_v0 = vadd.f32 %v7173_v19, %v7243_v45  ;;  %v10083_v23 = vld [vmem:[#allocation25_spill] sm:$0xff]  ;;  %v7474_v45 = vld [vmem:[#allocation6 + $0x60] sm:$0xff] }
 0x465   :  { %10073 = vst [vmem:[#allocation22_spill] sm:$0xff] %v7422_v35  ;;  %v908_v58 = vmul.f32 0.2, %v828_v39  ;;  %v1380_v41 = vmul.f32 1.442695, %v1282_v1  ;;  %v1284_v33 = vsub.f32 %v10083_v23, %v7154_v16  ;;  %v832_v23 = vadd.f32 %v7353_v30, %v7291_v55 }
 0x466   :  { %5767 = vpow2.f32 %v1376_v49  ;;  %10079 = vst [vmem:[#allocation56_spill] sm:$0xff] %v7448_v56  ;;  %v10080_v49 = vld [vmem:[#allocation37_spill] sm:$0xff] }
 0x467   :  { %1546 = vadd.xlane.f32.xlu0 %v7413_v18  ;;  %v678_v18 = vpop.permute.xlu0 %677  ;;  %v7443_v2 = vpop.permute.xlu1 %673  ;;  %v1293_v11 = vsub.f32 %v10080_v49, %v7268_v27  ;;  %v988_v15 = vmax.f32 %v828_v39, %v908_v58  ;;  %v910_v39 = vmul.f32 0.2, %v830_v0  ;;  %v1384_v16 = vmul.f32 1.442695, %v1284_v33 }
 0x468   :  { %1216 = vmax.xlane.f32.xlu1 %v7422_v35  ;;  %v1398_v35 = vmul.f32 1.442695, %v1291_v62  ;;  %v841_v27 = vadd.f32 %v7353_v30, %v678_v18  ;;  %v10084_v18 = vld [vmem:[#allocation35_spill] sm:$0xff]  ;;  %v912_v55 = vmul.f32 0.2, %v832_v23 }
 0x469   :  { %v7477_v1 = vadd.f32 %v7474_v45, %v988_v15 }
 0x46a   :  { %5769 = vpow2.f32 %v1398_v35  ;;  %v1402_v35 = vmul.f32 1.442695, %v1293_v11  ;;  %v921_v58 = vmul.f32 0.2, %v841_v27  ;;  %v6371_v11 = vld [vmem:[#allocation6 + $0x38] sm:$0xff] }
 0x46b   :  { %1238 = vmax.xlane.f32.xlu0 %v7430_v26  ;;  %v7451_v62 = vpop.xlane.xlu0 %1184  ;;  %5771 = vpow2.f32 %v1380_v41  ;;  %v990_v41 = vmax.f32 %v830_v0, %v910_v39  ;;  %v10087_v0 = vld [vmem:[#allocation26_spill] sm:$0xff]  ;;  %v7498_v39 = vld [vmem:[#allocation6 + $0x70] sm:$0xff] }
 0x46c   :  { %1528 = vadd.xlane.f32.xlu1 %v7434_v51  ;;  %v7461_v51 = vpop.eup %5763  ;;  %5773 = vpow2.f32 %v1402_v35  ;;  %v1001_v35 = vmax.f32 %v841_v27, %v921_v58  ;;  %v1286_v33 = vsub.f32 %v10087_v0, %v7157_v12  ;;  %v10088_v27 = vld [vmem:[#allocation41_spill] sm:$0xff]  ;;  %v992_v12 = vmax.f32 %v832_v23, %v912_v55 }
 0x46d   :  { %10081 = vst [vmem:[#allocation23_spill] sm:$0xff] %v7461_v51  ;;  %v7468_v49 = vpop.eup %5765  ;;  %5775 = vpow2.f32 %v1384_v16  ;;  %v834_v0 = vadd.f32 %v7353_v30, %v7311_v3 }
 0x46e   :  { %10082 = vst [vmem:[#allocation30_spill] sm:$0xff] %v7468_v49  ;;  %v7508_v58 = vadd.f32 %v6962_v46, %v1001_v35  ;;  %v1388_v16 = vmul.f32 1.442695, %v1286_v33  ;;  %v10091_v46 = vld [vmem:[#allocation28_spill] sm:$0xff]  ;;  %v6373_v33 = vld [vmem:[#allocation6] sm:$0xff] }
 0x46f   :  { %1550 = vadd.xlane.f32.xlu0 %v7439_v8  ;;  %v7464_v8 = vpop.permute.xlu1 %681  ;;  %v7472_v19 = vpop.xlane.xlu0 %1188  ;;  %v1288_v23 = vsub.f32 %v10091_v46, %v7182_v63  ;;  %v914_v35 = vmul.f32 0.2, %v834_v0  ;;  %v7521_v3 = vadd.f32 %v6373_v33, %v992_v12  ;;  %v10094_v12 = vld [vmem:[#allocation40_spill] sm:$0xff] }
 0x470   :  { %1220 = vmax.xlane.f32.xlu1 %v7448_v56  ;;  %v999_v56 = vmax.f32 %v839_v48, %v919_v43  ;;  %v1295_v48 = vsub.f32 %v10084_v18, %v7262_v10  ;;  %v1299_v46 = vsub.f32 %v10094_v12, %v7338_v22  ;;  %v10097_v22 = vld [vmem:[#allocation45_spill] sm:$0xff] }
 0x471   :  { %v1301_v12 = vsub.f32 %v10097_v22, %v7425_v54 }
 0x472   :  { %v7483_v43 = vadd.f32 %v6371_v11, %v999_v56  ;;  %v1406_v10 = vmul.f32 1.442695, %v1295_v48  ;;  %v7501_v11 = vadd.f32 %v7498_v39, %v990_v41 }
 0x473   :  { %1242 = vmax.xlane.f32.xlu0 %v7457_v6  ;;  %v7487_v15 = vpop.eup %5767 }
 0x474   :  { %1532 = vadd.xlane.f32.xlu1 %v7461_v51  ;;  %v686_v51 = vpop.permute.xlu1 %685  ;;  %10085 = vst [vmem:[#allocation57_spill] sm:$0xff] %v7487_v15  ;;  %5777 = vpow2.f32 %v1406_v10 }
 0x475   :  { %v843_v18 = vadd.f32 %v7353_v30, %v686_v51  ;;  %v1297_v51 = vsub.f32 %v10088_v27, %v7348_v24  ;;  %5779 = vpow2.f32 %v1388_v16  ;;  %v836_v16 = vadd.f32 %v7353_v30, %v7369_v44  ;;  %v6375_v44 = vld [vmem:[#allocation6 + $0x10] sm:$0xff] }
 0x477   :  { %1554 = vadd.xlane.f32.xlu0 %v7468_v49  ;;  %v7490_v49 = vpop.xlane.xlu0 %1190  ;;  %v7494_v56 = vpop.eup %5769  ;;  %v923_v48 = vmul.f32 0.2, %v843_v18  ;;  %v1410_v10 = vmul.f32 1.442695, %v1297_v51 }
 0x478   :  { %1224 = vmax.xlane.f32.xlu1 %v7477_v1  ;;  %10086 = vst [vmem:[#allocation24_spill] sm:$0xff] %v7494_v56  ;;  %v7512_v41 = vpop.eup %5771 }
 0x479   :  { %10089 = vst [vmem:[#allocation37_spill] sm:$0xff] %v7512_v41  ;;  %v7517_v27 = vpop.eup %5773  ;;  %5781 = vpow2.f32 %v1410_v10 }
 0x47a   :  { %10090 = vst [vmem:[#allocation25_spill] sm:$0xff] %v7517_v27  ;;  %v7529_v63 = vpop.eup %5775 }
 0x47b   :  { %1246 = vmax.xlane.f32.xlu0 %v7483_v43  ;;  %10093 = vst [vmem:[#allocation26_spill] sm:$0xff] %v7529_v63 }
 0x47c   :  { %1536 = vadd.xlane.f32.xlu1 %v7487_v15  ;;  %v694_v15 = vpop.permute.xlu0 %693 }
 0x47d   :  { %v845_v24 = vadd.f32 %v7353_v30, %v694_v15  ;;  %v1392_v15 = vmul.f32 1.442695, %v1288_v23  ;;  %v916_v23 = vmul.f32 0.2, %v836_v16 }
 0x47f   :  { %1558 = vadd.xlane.f32.xlu0 %v7494_v56  ;;  %v1003_v56 = vmax.f32 %v843_v18, %v923_v48  ;;  %v925_v51 = vmul.f32 0.2, %v845_v24  ;;  %v6374_v18 = vld [vmem:[#allocation6 + $0x58] sm:$0xff]  ;;  %5783 = vpow2.f32 %v1392_v15 }
 0x480   :  { %1228 = vmax.xlane.f32.xlu1 %v7501_v11 }
 0x481   :  { %v7525_v48 = vadd.f32 %v6374_v18, %v1003_v56  ;;  %v1005_v10 = vmax.f32 %v845_v24, %v925_v51  ;;  %v10096_v56 = vld [vmem:[#allocation29_spill] sm:$0xff]  ;;  %v1414_v18 = vmul.f32 1.442695, %v1299_v46  ;;  %v6376_v24 = vld [vmem:[#allocation6 + $0x68] sm:$0xff]  ;;  %v10098_v46 = vld [vmem:[#allocation44_spill] sm:$0xff] }
 0x482   :  { %v1303_v54 = vsub.f32 %v10098_v46, %v7417_v50 }
 0x483   :  { %1250 = vmax.xlane.f32.xlu0 %v7508_v58  ;;  %10092 = vst [vmem:[#allocation35_spill] sm:$0xff] %v7525_v48  ;;  %v7549_v51 = vadd.f32 %v6376_v24, %v1005_v10  ;;  %5785 = vpow2.f32 %v1414_v18  ;;  %v10099_v10 = vld [vmem:[#allocation33_spill] sm:$0xff] }
 0x484   :  { %1540 = vadd.xlane.f32.xlu1 %v7512_v41  ;;  %v994_v41 = vmax.f32 %v834_v0, %v914_v35  ;;  %v1290_v0 = vsub.f32 %v10096_v56, %v7197_v34  ;;  %v838_v34 = vadd.f32 %v7353_v30, %v7390_v13  ;;  %v1418_v56 = vmul.f32 1.442695, %v1301_v12 }
 0x485   :  { %v1292_v22 = vsub.f32 %v10099_v10, %v7234_v40  ;;  %v1422_v50 = vmul.f32 1.442695, %v1303_v54  ;;  %v6377_v54 = vld [vmem:[#allocation6 + $0x78] sm:$0xff] }
 0x486   :  { %v7541_v35 = vadd.f32 %v6375_v44, %v994_v41  ;;  %v1396_v15 = vmul.f32 1.442695, %v1290_v0  ;;  %v918_v13 = vmul.f32 0.2, %v838_v34 }
 0x487   :  { %1562 = vadd.xlane.f32.xlu0 %v7517_v27  ;;  %v7537_v27 = vpop.eup %5777  ;;  %v1400_v40 = vmul.f32 1.442695, %v1292_v22 }
 0x488   :  { %v1187_v55 = vpop.xlane.xlu1 %1186  ;;  %1232 = vmax.xlane.f32.xlu1 %v7521_v3  ;;  %10095 = vst [vmem:[#allocation41_spill] sm:$0xff] %v7537_v27  ;;  %v7553_v41 = vpop.eup %5779  ;;  %5787 = vpow2.f32 %v1396_v15  ;;  %v998_v10 = vmax.f32 %v838_v34, %v918_v13  ;;  %v840_v15 = vadd.f32 %v7353_v30, %v7443_v2  ;;  %v10102_v34 = vld [vmem:[#allocation34_spill] sm:$0xff] }
 0x489   :  { %v7562_v0 = vpop.eup %5781  ;;  %5789 = vpow2.f32 %v1418_v56  ;;  %v1294_v22 = vsub.f32 %v10102_v34, %v7246_v37  ;;  %v842_v37 = vadd.f32 %v7353_v30, %v7464_v8 }
 0x48a   :  { %5791 = vpow2.f32 %v1422_v50  ;;  %v920_v2 = vmul.f32 0.2, %v840_v15 }
 0x48b   :  { %1254 = vmax.xlane.f32.xlu0 %v7525_v48  ;;  %5793 = vpow2.f32 %v1400_v40  ;;  %v1404_v50 = vmul.f32 1.442695, %v1294_v22 }
 0x48c   :  { %v7534_v33 = vpop.permute.xlu1 %689  ;;  %1544 = vadd.xlane.f32.xlu1 %v7529_v63  ;;  %v996_v63 = vmax.f32 %v836_v16, %v916_v23  ;;  %v10100_v23 = vld [vmem:[#allocation58_spill] sm:$0xff] }
 0x48d   :  { %v1305_v18 = vsub.f32 %v10100_v23, %v1187_v55  ;;  %v7574_v55 = vpop.eup %5783  ;;  %v844_v22 = vadd.f32 %v7353_v30, %v7534_v33 }
 0x48e   :  { %v7566_v24 = vadd.f32 %v7363_v4, %v996_v63  ;;  %v10101_v4 = vld [vmem:[#allocation48_spill] sm:$0xff] }
 0x48f   :  { %1566 = vadd.xlane.f32.xlu0 %v7537_v27  ;;  %v1426_v27 = vmul.f32 1.442695, %v1305_v18  ;;  %v1307_v63 = vsub.f32 %v10101_v4, %v7490_v49  ;;  %v922_v4 = vmul.f32 0.2, %v842_v37 }
 0x490   :  { %v7546_v48 = vpop.permute.xlu1 %697  ;;  %1236 = vmax.xlane.f32.xlu1 %v7541_v35  ;;  %v7587_v49 = vpop.eup %5785 }
 0x491   :  { %5795 = vpow2.f32 %v1426_v27  ;;  %v1430_v13 = vmul.f32 1.442695, %v1307_v63  ;;  %v1002_v34 = vmax.f32 %v842_v37, %v922_v4 }
 0x493   :  { %1258 = vmax.xlane.f32.xlu0 %v7549_v51  ;;  %v7625_v37 = vadd.f32 %v7445_v52, %v1002_v34  ;;  %v846_v52 = vadd.f32 %v7353_v30, %v7546_v48  ;;  %v10109_v48 = vld [vmem:[#allocation46_spill] sm:$0xff] }
 0x494   :  { %v702_v44 = vpop.permute.xlu1 %701  ;;  %1548 = vadd.xlane.f32.xlu1 %v7553_v41 }
 0x495   :  { %v847_v16 = vadd.f32 %v7353_v30, %v702_v44  ;;  %v7593_v40 = vpop.eup %5787 }
 0x497   :  { %v927_v12 = vmul.f32 0.2, %v847_v16  ;;  %1570 = vadd.xlane.f32.xlu0 %v7562_v0 }
 0x498   :  { %1240 = vmax.xlane.f32.xlu1 %v7566_v24  ;;  %v7570_v46 = vpop.xlane.xlu0 %1192 }
 0x499   :  { %v1007_v44 = vmax.f32 %v847_v16, %v927_v12  ;;  %v7585_v16 = vadd.f32 %v7392_v14, %v998_v10  ;;  %v1000_v12 = vmax.f32 %v840_v15, %v920_v2  ;;  %v7595_v14 = vpop.eup %5789 }
 0x49a   :  { %v7606_v8 = vpop.eup %5791 }
 0x49b   :  { %v7578_v56 = vadd.f32 %v6377_v54, %v1007_v44  ;;  %v10103_v44 = vld [vmem:[#allocation38_spill] sm:$0xff]  ;;  %v7604_v15 = vadd.f32 %v7419_v53, %v1000_v12  ;;  %10104 = vst [vmem:[#allocation28_spill] sm:$0xff] %v7606_v8  ;;  %v7612_v54 = vpop.eup %5793  ;;  %v924_v12 = vmul.f32 0.2, %v844_v22 }
 0x49c   :  { %1552 = vadd.xlane.f32.xlu1 %v7574_v55  ;;  %v1505_v23 = vpop.xlane.xlu0 %1504  ;;  %v1296_v10 = vsub.f32 %v10103_v44, %v7296_v57 }
 0x49d   :  { %1262 = vmax.xlane.f32.xlu0 %v7578_v56  ;;  %5797 = vrcp.f32 %v1505_v23 }
 0x49e   :  { %v1408_v23 = vmul.f32 1.442695, %v1296_v10  ;;  %v7616_v57 = vpop.eup %5795 }
 0x49f   :  { %10105 = vst [vmem:[#allocation40_spill] sm:$0xff] %v7616_v57 }
 0x4a0   :  { %1244 = vmax.xlane.f32.xlu1 %v7585_v16  ;;  %v1507_v18 = vpop.xlane.xlu0 %1506 }
 0x4a1   :  { %5799 = vrcp.f32 %v1507_v18  ;;  %1574 = vadd.xlane.f32.xlu0 %v7587_v49 }
 0x4a2   :  { %5801 = vpow2.f32 %v1430_v13  ;;  %v10106_v13 = vld [vmem:[#allocation39_spill] sm:$0xff] }
 0x4a3   :  { %5803 = vpow2.f32 %v1404_v50  ;;  %v1298_v18 = vsub.f32 %v10106_v13, %v7321_v7 }
 0x4a4   :  { %1556 = vadd.xlane.f32.xlu1 %v7593_v40  ;;  %v7598_v27 = vpop.xlane.xlu0 %1198  ;;  %5805 = vpow2.f32 %v1408_v23  ;;  %v10107_v23 = vld [vmem:[#allocation42_spill] sm:$0xff] }
 0x4a5   :  { %1578 = vadd.xlane.f32.xlu0 %v7595_v14  ;;  %v1300_v13 = vsub.f32 %v10107_v23, %v7379_v59 }
 0x4a7   :  { %v1416_v34 = vmul.f32 1.442695, %v1300_v13 }
 0x4a8   :  { %1248 = vmax.xlane.f32.xlu1 %v7604_v15  ;;  %v7609_v63 = vpop.xlane.xlu0 %1510 }
 0x4a9   :  { %1582 = vadd.xlane.f32.xlu0 %v7606_v8  ;;  %v1412_v8 = vmul.f32 1.442695, %v1298_v18 }
 0x4aa   :  { %v5798_v2 = vpop.eup %5797 }
 0x4ab   :  { %v1744_v33 = vmul.f32 %v5798_v2, %v7168_v21  ;;  %5807 = vpow2.f32 %v1412_v8  ;;  %v10108_v2 = vld [vmem:[#allocation43_spill] sm:$0xff] }
 0x4ac   :  { %1560 = vadd.xlane.f32.xlu1 %v7612_v54  ;;  %v7619_v53 = vpop.xlane.xlu0 %1202  ;;  %v1302_v18 = vsub.f32 %v10108_v2, %v7398_v29  ;;  %5809 = vpow2.f32 %v1416_v34  ;;  %v1311_v34 = vsub.f32 %v7188_v28, %v7598_v27 }
 0x4ad   :  { %1586 = vadd.xlane.f32.xlu0 %v7616_v57  ;;  %v1004_v57 = vmax.f32 %v844_v22, %v924_v12  ;;  %v1304_v22 = vsub.f32 %v10109_v48, %v7451_v62  ;;  %v1308_v62 = vsub.f32 %v7161_v32, %v7570_v46  ;;  %v1313_v28 = vsub.f32 %v7204_v17, %v7619_v53 }
 0x4ae   :  { %v5800_v50 = vpop.eup %5799  ;;  %v1420_v30 = vmul.f32 1.442695, %v1302_v18 }
 0x4af   :  { %v1745_v44 = vmul.f32 %v5800_v50, %v7179_v5  ;;  %v7629_v10 = vpop.eup %5801  ;;  %v926_v50 = vmul.f32 0.2, %v846_v52  ;;  %v1424_v29 = vmul.f32 1.442695, %v1304_v22  ;;  %v1432_v2 = vmul.f32 1.442695, %v1308_v62 }
 0x4b0   :  { %1252 = vmax.xlane.f32.xlu1 %v7625_v37  ;;  %v7632_v4 = vpop.xlane.xlu0 %1514  ;;  %v7639_v21 = vpop.eup %5803  ;;  %5811 = vpow2.f32 %v1420_v30  ;;  %v1438_v30 = vmul.f32 1.442695, %v1311_v34 }
 0x4b1   :  { %1590 = vadd.xlane.f32.xlu0 %v7629_v10  ;;  %v1824_v7 = vpack.c.bf16 %v1745_v44, %v1744_v33  ;;  %v7645_v33 = vadd.f32 %v7474_v45, %v1004_v57  ;;  %v1006_v12 = vmax.f32 %v846_v52, %v926_v50  ;;  %v7652_v44 = vpop.eup %5805  ;;  %v10110_v45 = vld [vmem:[#allocation47_spill] sm:$0xff]  ;;  %5813 = vpow2.f32 %v1424_v29 }
 0x4b2   :  { %v1306_v57 = vsub.f32 %v10110_v45, %v7472_v19 }
 0x4b3   :  { %5387 = vmatprep.mubr.bf16.mxu1 %v1824_v7  ;;  %v7658_v7 = vadd.f32 %v7498_v39, %v1006_v12 }
 0x4b4   :  { %1564 = vadd.xlane.f32.xlu1 %v7639_v21  ;;  %v1207_v5 = vpop.xlane.xlu0 %1206  ;;  %v1428_v52 = vmul.f32 1.442695, %v1306_v57  ;;  %v1442_v57 = vmul.f32 1.442695, %v1313_v28 }
 0x4b5   :  { %v1315_v29 = vsub.f32 %v7219_v25, %v1207_v5 }
 0x4b6   :  { %5815 = vpow2.f32 %v1428_v52  ;;  %v10111_v52 = vld [vmem:[#allocation62_spill] sm:$0xff] }
 0x4b7   :  { %5817 = vpow2.f32 %v1432_v2 }
 0x4b8   :  { %1256 = vmax.xlane.f32.xlu1 %v7645_v33  ;;  %v7648_v59 = vpop.xlane.xlu0 %1518  ;;  %v7665_v13 = vpop.eup %5807 }
 0x4b9   :  { %v7671_v50 = vpop.eup %5809 }
 0x4bc   :  { %1568 = vadd.xlane.f32.xlu1 %v7652_v44  ;;  %v1211_v8 = vpop.xlane.xlu0 %1210 }
 0x4bd   :  { %v7679_v22 = vpop.eup %5811  ;;  %v1317_v34 = vsub.f32 %v10111_v52, %v1211_v8 }
 0x4be   :  { %v7684_v62 = vpop.eup %5813 }
 0x4c0   :  { %1260 = vmax.xlane.f32.xlu1 %v7658_v7  ;;  %v7661_v23 = vpop.xlane.xlu0 %1522 }
 0x4c4   :  { %1572 = vadd.xlane.f32.xlu1 %v7665_v13  ;;  %v1215_v19 = vpop.xlane.xlu0 %1214 }
 0x4c5   :  { %v1195_v39 = vpop.xlane.xlu1 %1194 }
 0x4c6   :  { %v1309_v18 = vsub.f32 %v7265_v47, %v1195_v39  ;;  %v1319_v39 = vsub.f32 %v7258_v20, %v1215_v19 }
 0x4c8   :  { %v1434_v48 = vmul.f32 1.442695, %v1309_v18  ;;  %1576 = vadd.xlane.f32.xlu1 %v7671_v50  ;;  %v7674_v32 = vpop.xlane.xlu0 %1526  ;;  %v1454_v8 = vmul.f32 1.442695, %v1319_v39 }
 0x4c9   :  { %v1197_v46 = vpop.xlane.xlu1 %1196 }
 0x4ca   :  { %5819 = vpow2.f32 %v1434_v48  ;;  %v1310_v27 = vsub.f32 %v7278_v31, %v1197_v46  ;;  %v1446_v31 = vmul.f32 1.442695, %v1315_v29  ;;  %v1450_v48 = vmul.f32 1.442695, %v1317_v34 }
 0x4cb   :  { %5821 = vpow2.f32 %v1438_v30 }
 0x4cc   :  { %v1436_v47 = vmul.f32 1.442695, %v1310_v27  ;;  %1580 = vadd.xlane.f32.xlu1 %v7679_v22  ;;  %v1219_v12 = vpop.xlane.xlu0 %1218  ;;  %5823 = vrcp.f32 %v7609_v63  ;;  %v7691_v63 = vpop.eup %5815 }
 0x4cd   :  { %v1509_v45 = vpop.xlane.xlu1 %1508  ;;  %v7696_v30 = vpop.eup %5817  ;;  %v1321_v20 = vsub.f32 %v7287_v42, %v1219_v12  ;;  %v10112_v42 = vld [vmem:[#allocation59_spill] sm:$0xff] }
 0x4ce   :  { %5825 = vpow2.f32 %v1436_v47 }
 0x4cf   :  { %5827 = vrcp.f32 %v1509_v45 }
 0x4d0   :  { %1584 = vadd.xlane.f32.xlu1 %v7684_v62  ;;  %v7687_v17 = vpop.xlane.xlu0 %1530  ;;  %5829 = vpow2.f32 %v1442_v57 }
 0x4d1   :  { %v1201_v53 = vpop.xlane.xlu1 %1200  ;;  %5831 = vrcp.f32 %v7632_v4 }
 0x4d2   :  { %v1312_v2 = vsub.f32 %v7306_v9, %v1201_v53  ;;  %5833 = vpow2.f32 %v1446_v31 }
 0x4d4   :  { %v1440_v25 = vmul.f32 1.442695, %v1312_v2  ;;  %1588 = vadd.xlane.f32.xlu1 %v7691_v63  ;;  %v1223_v5 = vpop.xlane.xlu0 %1222 }
 0x4d5   :  { %v1513_v18 = vpop.xlane.xlu1 %1512  ;;  %v1323_v31 = vsub.f32 %v7317_v61, %v1223_v5  ;;  %v10113_v5 = vld [vmem:[#allocation19_spill] sm:$0xff] }
 0x4d6   :  { %5835 = vpow2.f32 %v1440_v25 }
 0x4d7   :  { %v7698_v46 = vpop.eup %5819  ;;  %5837 = vrcp.f32 %v1513_v18  ;;  %v1462_v39 = vmul.f32 1.442695, %v1323_v31  ;;  %v10115_v31 = vld [vmem:[#allocation49_spill] sm:$0xff] }
 0x4d8   :  { %1594 = vadd.xlane.f32.xlu0 %v7698_v46  ;;  %1592 = vadd.xlane.f32.xlu1 %v7696_v30  ;;  %v7702_v9 = vpop.xlane.xlu0 %1534  ;;  %v7704_v4 = vpop.eup %5821  ;;  %5839 = vpow2.f32 %v1450_v48 }
 0x4d9   :  { %v1205_v28 = vpop.xlane.xlu1 %1204  ;;  %v5824_v27 = vpop.eup %5823  ;;  %5841 = vrcp.f32 %v7648_v59 }
 0x4da   :  { %v1314_v19 = vsub.f32 %v7334_v38, %v1205_v28  ;;  %5843 = vpow2.f32 %v1454_v8  ;;  %v1747_v12 = vmul.f32 %v5824_v27, %v10112_v42  ;;  %v1458_v38 = vmul.f32 1.442695, %v1321_v20 }
 0x4db   :  { %v7708_v47 = vpop.eup %5825 }
 0x4dc   :  { %v5828_v29 = vpop.eup %5827  ;;  %v1444_v45 = vmul.f32 1.442695, %v1314_v19  ;;  %1596 = vadd.xlane.f32.xlu1 %v7708_v47  ;;  %1598 = vadd.xlane.f32.xlu0 %v7704_v4  ;;  %v1227_v57 = vpop.xlane.xlu0 %1226  ;;  %v10114_v19 = vld [vmem:[#allocation31_spill] sm:$0xff] }
 0x4dd   :  { %v1517_v53 = vpop.xlane.xlu1 %1516  ;;  %v1746_v52 = vmul.f32 %v5828_v29, %v7293_v36  ;;  %v7716_v34 = vpop.eup %5829  ;;  %v1325_v36 = vsub.f32 %v7344_v60, %v1227_v57  ;;  %v10116_v60 = vld [vmem:[#allocation60_spill] sm:$0xff] }
 0x4de   :  { %5845 = vpow2.f32 %v1444_v45  ;;  %v5832_v25 = vpop.eup %5831 }
 0x4df   :  { %5847 = vrcp.f32 %v1517_v53  ;;  %v1825_v59 = vpack.c.bf16 %v1747_v12, %v1746_v52  ;;  %v7721_v61 = vpop.eup %5833  ;;  %v1749_v57 = vmul.f32 %v5832_v25, %v10116_v60  ;;  %v1466_v52 = vmul.f32 1.442695, %v1325_v36 }
 0x4e0   :  { %1602 = vadd.xlane.f32.xlu0 %v7716_v34  ;;  %v7719_v2 = vpop.xlane.xlu0 %1538  ;;  %5849 = vpow2.f32 %v1458_v38 }
 0x4e1   :  { %5388 = vmatmul.mubr.bf16.vlgmr.msra.gmra.mxu1 %v1825_v59  ;;  %v1209_v18 = vpop.xlane.xlu1 %1208  ;;  %5851 = vrcp.f32 %v7661_v23 }
 0x4e2   :  { %v1316_v48 = vsub.f32 %v10113_v5, %v1209_v18  ;;  %5853 = vpow2.f32 %v1462_v39  ;;  %v10117_v5 = vld [vmem:[#allocation21_spill] sm:$0xff] }
 0x4e3   :  { %v7725_v8 = vpop.eup %5835 }
 0x4e4   :  { %v5838_v28 = vpop.eup %5837  ;;  %v1448_v27 = vmul.f32 1.442695, %v1316_v48  ;;  %1600 = vadd.xlane.f32.xlu1 %v7725_v8  ;;  %1606 = vadd.xlane.f32.xlu0 %v7721_v61  ;;  %v1231_v20 = vpop.xlane.xlu0 %1230 }
 0x4e5   :  { %v1327_v29 = vsub.f32 %v10114_v19, %v1231_v20  ;;  %v1521_v45 = vpop.xlane.xlu1 %1520  ;;  %v1748_v53 = vmul.f32 %v5838_v28, %v10115_v31  ;;  %v7733_v42 = vpop.eup %5839  ;;  %v10118_v20 = vld [vmem:[#allocation27_spill] sm:$0xff] }
 0x4e6   :  { %5855 = vpow2.f32 %v1448_v27  ;;  %v5842_v38 = vpop.eup %5841 }
 0x4e7   :  { %5857 = vrcp.f32 %v1521_v45  ;;  %v1826_v23 = vpack.c.bf16 %v1749_v57, %v1748_v53  ;;  %v1470_v59 = vmul.f32 1.442695, %v1327_v29  ;;  %v7738_v18 = vpop.eup %5843  ;;  %v10119_v45 = vld [vmem:[#allocation50_spill] sm:$0xff]  ;;  %v10120_v53 = vld [vmem:[#allocation61_spill] sm:$0xff] }
 0x4e8   :  { %1610 = vadd.xlane.f32.xlu0 %v7733_v42  ;;  %v7736_v12 = vpop.xlane.xlu0 %1542  ;;  %5859 = vpow2.f32 %v1466_v52  ;;  %v1751_v60 = vmul.f32 %v5842_v38, %v10120_v53  ;;  %v10123_v53 = vld [vmem:[#allocation63_spill] sm:$0xff] }
 0x4e9   :  { %5391 = vmatprep.mubr.bf16.mxu1 %v1826_v23  ;;  %v1213_v39 = vpop.xlane.xlu1 %1212  ;;  %5861 = vrcp.f32 %v7674_v32 }
 0x4ea   :  { %v1318_v48 = vsub.f32 %v10117_v5, %v1213_v39  ;;  %5863 = vpow2.f32 %v1470_v59 }
 0x4eb   :  { %v7741_v25 = vpop.eup %5845 }
 0x4ec   :  { %v5848_v36 = vpop.eup %5847  ;;  %v1452_v28 = vmul.f32 1.442695, %v1318_v48  ;;  %1604 = vadd.xlane.f32.xlu1 %v7741_v25  ;;  %1614 = vadd.xlane.f32.xlu0 %v7738_v18  ;;  %v1235_v27 = vpop.xlane.xlu0 %1234  ;;  %v10121_v48 = vld [vmem:[#allocation22_spill] sm:$0xff] }
 0x4ed   :  { %v1329_v19 = vsub.f32 %v10118_v20, %v1235_v27  ;;  %v1525_v29 = vpop.xlane.xlu1 %1524  ;;  %v1750_v31 = vmul.f32 %v5848_v36, %v10119_v45  ;;  %v7749_v57 = vpop.eup %5849  ;;  %v10122_v45 = vld [vmem:[#allocation51_spill] sm:$0xff] }
 0x4ee   :  { %5865 = vpow2.f32 %v1452_v28  ;;  %v5852_v39 = vpop.eup %5851 }
 0x4ef   :  { %v1474_v52 = vmul.f32 1.442695, %v1329_v19  ;;  %5867 = vrcp.f32 %v1525_v29  ;;  %v1827_v32 = vpack.c.bf16 %v1751_v60, %v1750_v31  ;;  %v7754_v5 = vpop.eup %5853  ;;  %v1753_v60 = vmul.f32 %v5852_v39, %v10123_v53  ;;  %v10127_v53 = vld [vmem:[#allocation54_spill] sm:$0xff] }
 0x4f0   :  { %1618 = vadd.xlane.f32.xlu0 %v7749_v57  ;;  %v7752_v23 = vpop.xlane.xlu0 %1546 }
 0x4f1   :  { %5869 = vpow2.f32 %v1474_v52  ;;  %5392 = vmatmul.mubr.bf16.gmra.mxu1 %v1827_v32  ;;  %v1217_v59 = vpop.xlane.xlu1 %1216 }
 0x4f2   :  { %v1320_v36 = vsub.f32 %v10121_v48, %v1217_v59  ;;  %5871 = vrcp.f32 %v7687_v17 }
 0x4f3   :  { %v7757_v27 = vpop.eup %5855 }
 0x4f4   :  { %v5858_v38 = vpop.eup %5857  ;;  %v1456_v28 = vmul.f32 1.442695, %v1320_v36  ;;  %1608 = vadd.xlane.f32.xlu1 %v7757_v27  ;;  %1622 = vadd.xlane.f32.xlu0 %v7754_v5  ;;  %v1239_v20 = vpop.xlane.xlu0 %1238 }
 0x4f5   :  { %v1331_v19 = vsub.f32 %v7430_v26, %v1239_v20  ;;  %v1529_v29 = vpop.xlane.xlu1 %1528  ;;  %v1752_v31 = vmul.f32 %v5858_v38, %v10122_v45  ;;  %v7765_v52 = vpop.eup %5859  ;;  %v10126_v20 = vld [vmem:[#allocation56_spill] sm:$0xff] }
 0x4f6   :  { %5873 = vpow2.f32 %v1456_v28  ;;  %10124 = vst [vmem:[#allocation29_spill] sm:$0xff] %v7765_v52  ;;  %v5862_v36 = vpop.eup %5861 }
 0x4f7   :  { %v1478_v32 = vmul.f32 1.442695, %v1331_v19  ;;  %5875 = vrcp.f32 %v1529_v29  ;;  %v1828_v59 = vpack.c.bf16 %v1753_v60, %v1752_v31  ;;  %v7770_v26 = vpop.eup %5863 }
 0x4f8   :  { %1626 = vadd.xlane.f32.xlu0 %v7765_v52  ;;  %v7768_v48 = vpop.xlane.xlu0 %1550  ;;  %10125 = vst [vmem:[#allocation45_spill] sm:$0xff] %v7770_v26 }
 0x4f9   :  { %5877 = vpow2.f32 %v1478_v32  ;;  %5395 = vmatprep.mubr.bf16.mxu1 %v1828_v59  ;;  %v1221_v17 = vpop.xlane.xlu1 %1220  ;;  %v10128_v32 = vld [vmem:[#allocation64_spill] sm:$0xff] }
 0x4fa   :  { %v1322_v38 = vsub.f32 %v10126_v20, %v1221_v17  ;;  %5879 = vrcp.f32 %v7702_v9  ;;  %v1755_v59 = vmul.f32 %v5862_v36, %v10128_v32  ;;  %v10130_v32 = vld [vmem:[#allocation65_spill] sm:$0xff] }
 0x4fb   :  { %v7773_v45 = vpop.eup %5865 }
 0x4fc   :  { %v5868_v39 = vpop.eup %5867  ;;  %v1460_v28 = vmul.f32 1.442695, %v1322_v38  ;;  %1612 = vadd.xlane.f32.xlu1 %v7773_v45  ;;  %1630 = vadd.xlane.f32.xlu0 %v7770_v26  ;;  %v1243_v19 = vpop.xlane.xlu0 %1242 }
 0x4fd   :  { %v1333_v29 = vsub.f32 %v7457_v6, %v1243_v19  ;;  %v1533_v31 = vpop.xlane.xlu1 %1532  ;;  %v1754_v60 = vmul.f32 %v5868_v39, %v10127_v53  ;;  %v10129_v53 = vld [vmem:[#allocation32_spill] sm:$0xff] }
 0x4fe   :  { %v7781_v52 = vpop.eup %5869  ;;  %5881 = vpow2.f32 %v1460_v28 }
 0x4ff   :  { %v1482_v17 = vmul.f32 1.442695, %v1333_v29  ;;  %5883 = vrcp.f32 %v1533_v31  ;;  %v1829_v20 = vpack.c.bf16 %v1755_v59, %v1754_v60  ;;  %v5872_v26 = vpop.eup %5871 }
 0x500   :  { %1634 = vadd.xlane.f32.xlu0 %v7781_v52  ;;  %v7784_v38 = vpop.xlane.xlu0 %1554  ;;  %v1757_v59 = vmul.f32 %v5872_v26, %v10130_v32  ;;  %v10132_v32 = vld [vmem:[#allocation66_spill] sm:$0xff] }
 0x501   :  { %5885 = vpow2.f32 %v1482_v17  ;;  %5396 = vmatmul.mubr.bf16.gmra.mxu1 %v1829_v20  ;;  %v1225_v9 = vpop.xlane.xlu1 %1224 }
 0x502   :  { %v1324_v6 = vsub.f32 %v7477_v1, %v1225_v9  ;;  %5887 = vrcp.f32 %v7719_v2 }
 0x503   :  { %v7787_v19 = vpop.eup %5873 }
 0x504   :  { %v5876_v39 = vpop.eup %5875  ;;  %v1464_v36 = vmul.f32 1.442695, %v1324_v6  ;;  %1616 = vadd.xlane.f32.xlu1 %v7787_v19  ;;  %v1247_v28 = vpop.xlane.xlu0 %1246 }
 0x505   :  { %v1335_v29 = vsub.f32 %v7483_v43, %v1247_v28  ;;  %v1537_v31 = vpop.xlane.xlu1 %1536  ;;  %v1756_v60 = vmul.f32 %v5876_v39, %v10129_v53  ;;  %v10131_v53 = vld [vmem:[#allocation23_spill] sm:$0xff] }
 0x506   :  { %v7794_v17 = vpop.eup %5877  ;;  %5889 = vpow2.f32 %v1464_v36 }
 0x507   :  { %v1486_v1 = vmul.f32 1.442695, %v1335_v29  ;;  %5891 = vrcp.f32 %v1537_v31  ;;  %1638 = vadd.xlane.f32.xlu0 %v7794_v17  ;;  %v1830_v20 = vpack.c.bf16 %v1757_v59, %v1756_v60  ;;  %v5880_v6 = vpop.eup %5879 }
 0x508   :  { %v7797_v9 = vpop.xlane.xlu0 %1558  ;;  %v1759_v59 = vmul.f32 %v5880_v6, %v10132_v32 }
 0x509   :  { %5893 = vpow2.f32 %v1486_v1  ;;  %5399 = vmatprep.mubr.bf16.mxu1 %v1830_v20  ;;  %v1229_v2 = vpop.xlane.xlu1 %1228 }
 0x50a   :  { %v1326_v43 = vsub.f32 %v7501_v11, %v1229_v2  ;;  %5895 = vrcp.f32 %v7736_v12 }
 0x50b   :  { %v7800_v28 = vpop.eup %5881 }
 0x50c   :  { %v5884_v39 = vpop.eup %5883  ;;  %v1468_v26 = vmul.f32 1.442695, %v1326_v43  ;;  %1620 = vadd.xlane.f32.xlu1 %v7800_v28  ;;  %v1251_v36 = vpop.xlane.xlu0 %1250 }
 0x50d   :  { %v1337_v29 = vsub.f32 %v7508_v58, %v1251_v36  ;;  %v1541_v31 = vpop.xlane.xlu1 %1540  ;;  %v1758_v60 = vmul.f32 %v5884_v39, %v10131_v53 }
 0x50e   :  { %v7807_v1 = vpop.eup %5885  ;;  %5897 = vpow2.f32 %v1468_v26 }
 0x50f   :  { %10133 = vst [vmem:[#allocation44_spill] sm:$0xff] %v7807_v1  ;;  %v1490_v11 = vmul.f32 1.442695, %v1337_v29  ;;  %5899 = vrcp.f32 %v1541_v31  ;;  %1642 = vadd.xlane.f32.xlu0 %v7807_v1  ;;  %v1831_v20 = vpack.c.bf16 %v1759_v59, %v1758_v60  ;;  %v5888_v43 = vpop.eup %5887  ;;  %v10134_v29 = vld [vmem:[#allocation35_spill] sm:$0xff]  ;;  %v10135_v60 = vld [vmem:[#allocation57_spill] sm:$0xff]  ;;  %v10136_v59 = vld [vmem:[#allocation20_spill] sm:$0xff] }
 0x510   :  { %v7810_v2 = vpop.xlane.xlu0 %1562 }
 0x511   :  { %5901 = vpow2.f32 %v1490_v11  ;;  %5400 = vmatmul.mubr.bf16.gmra.mxu1 %v1831_v20  ;;  %v1233_v12 = vpop.xlane.xlu1 %1232  ;;  %v1761_v11 = vmul.f32 %v5888_v43, %v10136_v59  ;;  %v10138_v59 = vld [vmem:[#allocation52_spill] sm:$0xff] }
 0x512   :  { %v1328_v58 = vsub.f32 %v7521_v3, %v1233_v12  ;;  %5903 = vrcp.f32 %v7752_v23 }
 0x513   :  { %v7813_v36 = vpop.eup %5889 }
 0x514   :  { %v5892_v39 = vpop.eup %5891  ;;  %v1472_v6 = vmul.f32 1.442695, %v1328_v58  ;;  %1624 = vadd.xlane.f32.xlu1 %v7813_v36  ;;  %v1255_v26 = vpop.xlane.xlu0 %1254 }
 0x515   :  { %v1339_v31 = vsub.f32 %v10134_v29, %v1255_v26  ;;  %v1545_v53 = vpop.xlane.xlu1 %1544  ;;  %v1760_v32 = vmul.f32 %v5892_v39, %v10135_v60  ;;  %v10137_v60 = vld [vmem:[#allocation37_spill] sm:$0xff] }
 0x516   :  { %v7820_v20 = vpop.eup %5893  ;;  %5905 = vpow2.f32 %v1472_v6 }
 0x517   :  { %v1494_v3 = vmul.f32 1.442695, %v1339_v31  ;;  %5907 = vrcp.f32 %v1545_v53  ;;  %1646 = vadd.xlane.f32.xlu0 %v7820_v20  ;;  %v1832_v12 = vpack.c.bf16 %v1761_v11, %v1760_v32  ;;  %v5896_v1 = vpop.eup %5895 }
 0x518   :  { %v7823_v58 = vpop.xlane.xlu0 %1566  ;;  %v1763_v11 = vmul.f32 %v5896_v1, %v10138_v59 }
 0x519   :  { %5909 = vpow2.f32 %v1494_v3  ;;  %5403 = vmatprep.mubr.bf16.mxu1 %v1832_v12  ;;  %v1237_v23 = vpop.xlane.xlu1 %1236 }
 0x51a   :  { %v1330_v26 = vsub.f32 %v7541_v35, %v1237_v23  ;;  %5911 = vrcp.f32 %v7768_v48 }
 0x51b   :  { %v7826_v29 = vpop.eup %5897 }
 0x51c   :  { %v5900_v39 = vpop.eup %5899  ;;  %v1476_v43 = vmul.f32 1.442695, %v1330_v26  ;;  %1628 = vadd.xlane.f32.xlu1 %v7826_v29  ;;  %v1259_v6 = vpop.xlane.xlu0 %1258 }
 0x51d   :  { %v1341_v31 = vsub.f32 %v7549_v51, %v1259_v6  ;;  %v1549_v53 = vpop.xlane.xlu1 %1548  ;;  %v1762_v32 = vmul.f32 %v5900_v39, %v10137_v60  ;;  %v10141_v60 = vld [vmem:[#allocation53_spill] sm:$0xff] }
 0x51e   :  { %v7833_v3 = vpop.eup %5901  ;;  %5913 = vpow2.f32 %v1476_v43 }
 0x51f   :  { %10139 = vst [vmem:[#allocation33_spill] sm:$0xff] %v7833_v3  ;;  %v1498_v35 = vmul.f32 1.442695, %v1341_v31  ;;  %5915 = vrcp.f32 %v1549_v53  ;;  %1650 = vadd.xlane.f32.xlu0 %v7833_v3  ;;  %v1833_v12 = vpack.c.bf16 %v1763_v11, %v1762_v32  ;;  %v5904_v26 = vpop.eup %5903  ;;  %v10140_v31 = vld [vmem:[#allocation26_spill] sm:$0xff] }
 0x520   :  { %v7836_v48 = vpop.xlane.xlu0 %1570  ;;  %v1765_v32 = vmul.f32 %v5904_v26, %v10141_v60 }
 0x521   :  { %5917 = vpow2.f32 %v1498_v35  ;;  %5404 = vmatmul.mubr.bf16.gmra.mxu1 %v1833_v12  ;;  %v1241_v23 = vpop.xlane.xlu1 %1240 }
 0x522   :  { %v1332_v51 = vsub.f32 %v7566_v24, %v1241_v23  ;;  %5919 = vrcp.f32 %v7784_v38 }
 0x523   :  { %v7839_v6 = vpop.eup %5905 }
 0x524   :  { %v5908_v39 = vpop.eup %5907  ;;  %v1480_v1 = vmul.f32 1.442695, %v1332_v51  ;;  %1632 = vadd.xlane.f32.xlu1 %v7839_v6 }
 0x525   :  { %v1553_v43 = vpop.xlane.xlu1 %1552  ;;  %v1764_v53 = vmul.f32 %v5908_v39, %v10140_v31 }
 0x526   :  { %v7845_v59 = vpop.eup %5909  ;;  %5921 = vpow2.f32 %v1480_v1  ;;  %v1263_v11 = vpop.xlane.xlu0 %1262 }
 0x527   :  { %5923 = vrcp.f32 %v1553_v43  ;;  %v1343_v24 = vsub.f32 %v7578_v56, %v1263_v11  ;;  %1654 = vadd.xlane.f32.xlu0 %v7845_v59  ;;  %v1834_v35 = vpack.c.bf16 %v1765_v32, %v1764_v53  ;;  %v5912_v51 = vpop.eup %5911  ;;  %v10142_v43 = vld [vmem:[#allocation55_spill] sm:$0xff] }
 0x528   :  { %v1767_v31 = vmul.f32 %v5912_v51, %v10142_v43 }
 0x529   :  { %v1502_v12 = vmul.f32 1.442695, %v1343_v24  ;;  %5407 = vmatprep.mubr.bf16.mxu1 %v1834_v35  ;;  %v1245_v23 = vpop.xlane.xlu1 %1244 }
 0x52a   :  { %v1334_v38 = vsub.f32 %v7585_v16, %v1245_v23  ;;  %v10143_v23 = vld [vmem:[#allocation30_spill] sm:$0xff] }
 0x52b   :  { %v7850_v3 = vpop.eup %5913  ;;  %5925 = vpow2.f32 %v1502_v12 }
 0x52c   :  { %v5916_v26 = vpop.eup %5915  ;;  %v1484_v39 = vmul.f32 1.442695, %v1334_v38  ;;  %1636 = vadd.xlane.f32.xlu1 %v7850_v3  ;;  %5927 = vrcp.f32 %v7797_v9 }
 0x52d   :  { %v1557_v1 = vpop.xlane.xlu1 %1556  ;;  %v1766_v56 = vmul.f32 %v5916_v26, %v7553_v41 }
 0x52e   :  { %v7856_v53 = vpop.eup %5917  ;;  %5929 = vpow2.f32 %v1484_v39 }
 0x52f   :  { %5931 = vrcp.f32 %v1557_v1  ;;  %1658 = vadd.xlane.f32.xlu0 %v7856_v53  ;;  %v1835_v16 = vpack.c.bf16 %v1767_v31, %v1766_v56  ;;  %v5920_v32 = vpop.eup %5919 }
 0x530   :  { %5933 = vrcp.f32 %v7810_v2  ;;  %v1769_v51 = vmul.f32 %v5920_v32, %v10143_v23 }
 0x531   :  { %5408 = vmatmul.mubr.bf16.gmra.mxu1 %v1835_v16  ;;  %v1249_v60 = vpop.xlane.xlu1 %1248  ;;  %v10144_v16 = vld [vmem:[#allocation24_spill] sm:$0xff] }
 0x532   :  { %v1336_v11 = vsub.f32 %v7604_v15, %v1249_v60 }
 0x533   :  { %v7860_v24 = vpop.eup %5921 }
 0x534   :  { %v5924_v9 = vpop.eup %5923  ;;  %v1488_v35 = vmul.f32 1.442695, %v1336_v11  ;;  %1640 = vadd.xlane.f32.xlu1 %v7860_v24  ;;  %v1575_v11 = vpop.xlane.xlu0 %1574 }
 0x535   :  { %v1561_v41 = vpop.xlane.xlu1 %1560  ;;  %v1768_v12 = vmul.f32 %v5924_v9, %v7574_v55 }
 0x536   :  { %5935 = vpow2.f32 %v1488_v35 }
 0x537   :  { %5937 = vrcp.f32 %v1561_v41  ;;  %v1836_v38 = vpack.c.bf16 %v1769_v51, %v1768_v12  ;;  %v10145_v51 = vld [vmem:[#allocation25_spill] sm:$0xff] }
 0x538   :  { %v7866_v26 = vpop.eup %5925  ;;  %5939 = vrcp.f32 %v7823_v58 }
 0x539   :  { %5411 = vmatprep.mubr.bf16.mxu1 %v1836_v38  ;;  %v1253_v15 = vpop.xlane.xlu1 %1252  ;;  %1662 = vadd.xlane.f32.xlu0 %v7866_v26  ;;  %v5928_v39 = vpop.eup %5927 }
 0x53a   :  { %v1338_v1 = vsub.f32 %v7625_v37, %v1253_v15  ;;  %v1771_v60 = vmul.f32 %v5928_v39, %v10144_v16  ;;  %v1579_v15 = vpop.xlane.xlu0 %1578 }
 0x53b   :  { %v7870_v56 = vpop.eup %5929 }
 0x53c   :  { %v5932_v2 = vpop.eup %5931  ;;  %v1492_v43 = vmul.f32 1.442695, %v1338_v1  ;;  %1644 = vadd.xlane.f32.xlu1 %v7870_v56 }
 0x53d   :  { %v1565_v55 = vpop.xlane.xlu1 %1564  ;;  %v1770_v31 = vmul.f32 %v5932_v2, %v7593_v40  ;;  %v5934_v37 = vpop.eup %5933 }
 0x53e   :  { %5941 = vpow2.f32 %v1492_v43  ;;  %v1773_v38 = vmul.f32 %v5934_v37, %v10145_v51 }
 0x53f   :  { %5943 = vrcp.f32 %v1565_v55  ;;  %v1837_v32 = vpack.c.bf16 %v1771_v60, %v1770_v31  ;;  %v10146_v60 = vld [vmem:[#allocation41_spill] sm:$0xff] }
 0x540   :  { %5945 = vrcp.f32 %v7836_v48  ;;  %v1583_v48 = vpop.xlane.xlu0 %1582 }
 0x541   :  { %5412 = vmatmul.mubr.bf16.gmra.mxu1 %v1837_v32  ;;  %v1257_v9 = vpop.xlane.xlu1 %1256 }
 0x542   :  { %v1340_v35 = vsub.f32 %v7645_v33, %v1257_v9 }
 0x543   :  { %v7877_v41 = vpop.eup %5935 }
 0x544   :  { %v5938_v12 = vpop.eup %5937  ;;  %v1496_v23 = vmul.f32 1.442695, %v1340_v35  ;;  %1648 = vadd.xlane.f32.xlu1 %v7877_v41 }
 0x545   :  { %v1569_v40 = vpop.xlane.xlu1 %1568  ;;  %v1772_v58 = vmul.f32 %v5938_v12, %v7612_v54  ;;  %v5940_v33 = vpop.eup %5939 }
 0x546   :  { %5947 = vpow2.f32 %v1496_v23  ;;  %v1775_v32 = vmul.f32 %v5940_v33, %v10146_v60  ;;  %v1587_v12 = vpop.xlane.xlu0 %1586 }
 0x547   :  { %5949 = vrcp.f32 %v1569_v40  ;;  %v1838_v39 = vpack.c.bf16 %v1773_v38, %v1772_v58 }
 0x548   :  { %5951 = vrcp.f32 %v1575_v11 }
 0x549   :  { %5415 = vmatprep.mubr.bf16.mxu1 %v1838_v39  ;;  %v1261_v1 = vpop.xlane.xlu1 %1260 }
 0x54a   :  { %v1342_v2 = vsub.f32 %v7658_v7, %v1261_v1  ;;  %v1591_v51 = vpop.xlane.xlu0 %1590 }
 0x54b   :  { %v7884_v43 = vpop.eup %5941 }
 0x54c   :  { %v5944_v55 = vpop.eup %5943  ;;  %v1500_v31 = vmul.f32 1.442695, %v1342_v2  ;;  %1652 = vadd.xlane.f32.xlu1 %v7884_v43 }
 0x54d   :  { %v1573_v54 = vpop.xlane.xlu1 %1572  ;;  %v1774_v16 = vmul.f32 %v5944_v55, %v7639_v21  ;;  %v5946_v7 = vpop.eup %5945 }
 0x54e   :  { %5953 = vpow2.f32 %v1500_v31  ;;  %v1777_v40 = vmul.f32 %v5946_v7, %v7562_v0  ;;  %v10147_v7 = vld [vmem:[#allocation28_spill] sm:$0xff] }
 0x54f   :  { %5955 = vrcp.f32 %v1573_v54  ;;  %v1839_v9 = vpack.c.bf16 %v1775_v32, %v1774_v16 }
 0x550   :  { %5957 = vrcp.f32 %v1579_v15 }
 0x551   :  { %5416 = vmatmul.mubr.bf16.gmra.mxu1 %v1839_v9  ;;  %v1577_v37 = vpop.xlane.xlu1 %1576 }
 0x552   :  { %5959 = vrcp.f32 %v1577_v37 }
 0x553   :  { %v7889_v35 = vpop.eup %5947  ;;  %5961 = vrcp.f32 %v1583_v48 }
 0x554   :  { %v5950_v23 = vpop.eup %5949  ;;  %1656 = vadd.xlane.f32.xlu1 %v7889_v35 }
 0x555   :  { %v1581_v11 = vpop.xlane.xlu1 %1580  ;;  %v1776_v21 = vmul.f32 %v5950_v23, %v7652_v44  ;;  %v5952_v15 = vpop.eup %5951 }
 0x556   :  { %5963 = vrcp.f32 %v1581_v11  ;;  %v1779_v0 = vmul.f32 %v5952_v15, %v7587_v49 }
 0x557   :  { %v1840_v58 = vpack.c.bf16 %v1777_v40, %v1776_v21  ;;  %5965 = vrcp.f32 %v1587_v12  ;;  %v10148_v40 = vld [vmem:[#allocation40_spill] sm:$0xff] }
 0x559   :  { %5419 = vmatprep.mubr.bf16.mxu1 %v1840_v58  ;;  %v1585_v38 = vpop.xlane.xlu1 %1584 }
 0x55a   :  { %5967 = vrcp.f32 %v1585_v38 }
 0x55b   :  { %v7894_v39 = vpop.eup %5953  ;;  %5969 = vrcp.f32 %v1591_v51 }
 0x55c   :  { %v5956_v1 = vpop.eup %5955  ;;  %1660 = vadd.xlane.f32.xlu1 %v7894_v39 }
 0x55d   :  { %v5958_v33 = vpop.eup %5957  ;;  %v1589_v2 = vpop.xlane.xlu1 %1588  ;;  %v1778_v44 = vmul.f32 %v5956_v1, %v7665_v13 }
 0x55e   :  { %5971 = vrcp.f32 %v1589_v2  ;;  %v1781_v54 = vmul.f32 %v5958_v33, %v7595_v14 }
 0x55f   :  { %v5960_v55 = vpop.eup %5959  ;;  %v1841_v31 = vpack.c.bf16 %v1779_v0, %v1778_v44 }
 0x560   :  { %v1780_v48 = vmul.f32 %v5960_v55, %v7671_v50  ;;  %v5962_v16 = vpop.eup %5961 }
 0x561   :  { %5420 = vmatmul.mubr.bf16.gmra.mxu1 %v1841_v31  ;;  %v1593_v60 = vpop.xlane.xlu1 %1592  ;;  %v1595_v32 = vpop.xlane.xlu0 %1594  ;;  %v1783_v49 = vmul.f32 %v5962_v16, %v10147_v7 }
 0x562   :  { %5973 = vrcp.f32 %v1593_v60  ;;  %v1842_v9 = vpack.c.bf16 %v1781_v54, %v1780_v48 }
 0x563   :  { %v5964_v37 = vpop.eup %5963  ;;  %5975 = vrcp.f32 %v1595_v32 }
 0x564   :  { %5423 = vmatprep.mubr.bf16.mxu1 %v1842_v9  ;;  %v1782_v13 = vmul.f32 %v5964_v37, %v7679_v22  ;;  %v5966_v12 = vpop.eup %5965 }
 0x565   :  { %v1597_v23 = vpop.xlane.xlu1 %1596  ;;  %v1599_v11 = vpop.xlane.xlu0 %1598  ;;  %v1785_v58 = vmul.f32 %v5966_v12, %v10148_v40 }
 0x566   :  { %5977 = vrcp.f32 %v1597_v23  ;;  %v1843_v50 = vpack.c.bf16 %v1783_v49, %v1782_v13 }
 0x567   :  { %v5968_v21 = vpop.eup %5967  ;;  %5979 = vrcp.f32 %v1599_v11 }
 0x568   :  { %v1784_v14 = vmul.f32 %v5968_v21, %v7684_v62  ;;  %v5970_v51 = vpop.eup %5969 }
 0x569   :  { %5424 = vmatmul.mubr.bf16.gmra.mxu1 %v1843_v50  ;;  %v1603_v38 = vpop.xlane.xlu0 %1602  ;;  %v1787_v33 = vmul.f32 %v5970_v51, %v7629_v10 }
 0x56a   :  { %v1844_v15 = vpack.c.bf16 %v1785_v58, %v1784_v14  ;;  %5981 = vrcp.f32 %v1603_v38 }
 0x56b   :  { %v5972_v1 = vpop.eup %5971 }
 0x56c   :  { %5427 = vmatprep.mubr.bf16.mxu1 %v1844_v15  ;;  %v1786_v22 = vmul.f32 %v5972_v1, %v7691_v63 }
 0x56d   :  { %v1601_v2 = vpop.xlane.xlu1 %1600  ;;  %v1607_v31 = vpop.xlane.xlu0 %1606 }
 0x56e   :  { %5983 = vrcp.f32 %v1601_v2  ;;  %v1845_v44 = vpack.c.bf16 %v1787_v33, %v1786_v22 }
 0x56f   :  { %v5974_v0 = vpop.eup %5973  ;;  %5985 = vrcp.f32 %v1607_v31 }
 0x570   :  { %v5976_v55 = vpop.eup %5975  ;;  %v1788_v62 = vmul.f32 %v5974_v0, %v7696_v30 }
 0x571   :  { %5428 = vmatmul.mubr.bf16.gmra.mxu1 %v1845_v44  ;;  %v1789_v48 = vmul.f32 %v5976_v55, %v7698_v46  ;;  %v1611_v13 = vpop.xlane.xlu0 %1610 }
 0x573   :  { %v5978_v54 = vpop.eup %5977  ;;  %v1846_v16 = vpack.c.bf16 %v1789_v48, %v1788_v62 }
 0x574   :  { %v5980_v60 = vpop.eup %5979  ;;  %v1790_v32 = vmul.f32 %v5978_v54, %v7708_v47 }
 0x575   :  { %5431 = vmatprep.mubr.bf16.mxu1 %v1846_v16  ;;  %v1605_v63 = vpop.xlane.xlu1 %1604  ;;  %v1791_v10 = vmul.f32 %v5980_v60, %v7704_v4  ;;  %v1615_v23 = vpop.xlane.xlu0 %1614 }
 0x576   :  { %5987 = vrcp.f32 %v1605_v63 }
 0x577   :  { %v1847_v9 = vpack.c.bf16 %v1791_v10, %v1790_v32  ;;  %v5982_v37 = vpop.eup %5981  ;;  %5989 = vrcp.f32 %v1611_v13  ;;  %v10149_v13 = vld [vmem:[#allocation29_spill] sm:$0xff] }
 0x578   :  { %v1793_v46 = vmul.f32 %v5982_v37, %v7716_v34 }
 0x579   :  { %5432 = vmatmul.mubr.bf16.gmra.mxu1 %v1847_v9 }
 0x57b   :  { %v5984_v30 = vpop.eup %5983 }
 0x57c   :  { %v1792_v7 = vmul.f32 %v5984_v30, %v7725_v8  ;;  %v5986_v47 = vpop.eup %5985  ;;  %v1619_v8 = vpop.xlane.xlu0 %1618 }
 0x57d   :  { %v1609_v49 = vpop.xlane.xlu1 %1608  ;;  %v1795_v50 = vmul.f32 %v5986_v47, %v7721_v61 }
 0x57e   :  { %5991 = vrcp.f32 %v1609_v49  ;;  %v1848_v12 = vpack.c.bf16 %v1793_v46, %v1792_v7 }
 0x57f   :  { %5993 = vrcp.f32 %v1615_v23 }
 0x580   :  { %5435 = vmatprep.mubr.bf16.mxu1 %v1848_v12 }
 0x583   :  { %v5988_v11 = vpop.eup %5987 }
 0x584   :  { %v1794_v4 = vmul.f32 %v5988_v11, %v7741_v25  ;;  %v5990_v40 = vpop.eup %5989  ;;  %v1623_v25 = vpop.xlane.xlu0 %1622  ;;  %v10150_v11 = vld [vmem:[#allocation45_spill] sm:$0xff] }
 0x585   :  { %v1613_v21 = vpop.xlane.xlu1 %1612  ;;  %v1797_v51 = vmul.f32 %v5990_v40, %v7733_v42 }
 0x586   :  { %5995 = vrcp.f32 %v1613_v21  ;;  %v1849_v14 = vpack.c.bf16 %v1795_v50, %v1794_v4 }
 0x587   :  { %5997 = vrcp.f32 %v1619_v8 }
 0x588   :  { %5436 = vmatmul.mubr.bf16.gmra.mxu1 %v1849_v14 }
 0x58b   :  { %v5992_v58 = vpop.eup %5991 }
 0x58c   :  { %v1796_v34 = vmul.f32 %v5992_v58, %v7757_v27  ;;  %v5994_v1 = vpop.eup %5993  ;;  %v1627_v27 = vpop.xlane.xlu0 %1626 }
 0x58d   :  { %v1617_v38 = vpop.xlane.xlu1 %1616  ;;  %v1799_v33 = vmul.f32 %v5994_v1, %v7738_v18 }
 0x58e   :  { %5999 = vrcp.f32 %v1617_v38  ;;  %v1850_v15 = vpack.c.bf16 %v1797_v51, %v1796_v34 }
 0x58f   :  { %6001 = vrcp.f32 %v1623_v25 }
 0x590   :  { %5439 = vmatprep.mubr.bf16.mxu1 %v1850_v15 }
 0x593   :  { %v5996_v22 = vpop.eup %5995 }
 0x594   :  { %v1798_v61 = vmul.f32 %v5996_v22, %v7773_v45  ;;  %v5998_v0 = vpop.eup %5997  ;;  %v1631_v45 = vpop.xlane.xlu0 %1630 }
 0x595   :  { %v1621_v2 = vpop.xlane.xlu1 %1620  ;;  %v1801_v62 = vmul.f32 %v5998_v0, %v7749_v57 }
 0x596   :  { %6003 = vrcp.f32 %v1621_v2  ;;  %v1851_v44 = vpack.c.bf16 %v1799_v33, %v1798_v61 }
 0x597   :  { %6005 = vrcp.f32 %v1627_v27 }
 0x598   :  { %5440 = vmatmul.mubr.bf16.gmra.mxu1 %v1851_v44 }
 0x59b   :  { %v6000_v55 = vpop.eup %5999 }
 0x59c   :  { %v1800_v42 = vmul.f32 %v6000_v55, %v7787_v19  ;;  %v6002_v54 = vpop.eup %6001  ;;  %v1635_v19 = vpop.xlane.xlu0 %1634 }
 0x59d   :  { %v1625_v31 = vpop.xlane.xlu1 %1624  ;;  %v1803_v60 = vmul.f32 %v6002_v54, %v7754_v5 }
 0x59e   :  { %6007 = vrcp.f32 %v1625_v31  ;;  %v1852_v48 = vpack.c.bf16 %v1801_v62, %v1800_v42 }
 0x59f   :  { %6009 = vrcp.f32 %v1631_v45 }
 0x5a0   :  { %5443 = vmatprep.mubr.bf16.mxu1 %v1852_v48  ;;  %v1639_v49 = vpop.xlane.xlu0 %1638  ;;  %v10151_v48 = vld [vmem:[#allocation44_spill] sm:$0xff] }
 0x5a1   :  { %v7923_v9 = vpop.f32.mrf.mxu1 }
 0x5a3   :  { %v6004_v16 = vpop.eup %6003  ;;  %v7927_v7 = vpop.f32.mrf.mxu1 }
 0x5a4   :  { %v1802_v18 = vmul.f32 %v6004_v16, %v7800_v28  ;;  %v6006_v10 = vpop.eup %6005  ;;  %v1643_v8 = vpop.xlane.xlu0 %1642 }
 0x5a5   :  { %v1629_v32 = vpop.xlane.xlu1 %1628  ;;  %v1805_v30 = vmul.f32 %v6006_v10, %v10149_v13  ;;  %v7929_v12 = vpop.f32.mrf.mxu1 }
 0x5a6   :  { %6011 = vrcp.f32 %v1629_v32  ;;  %v1853_v63 = vpack.c.bf16 %v1803_v60, %v1802_v18 }
 0x5a7   :  { %6013 = vrcp.f32 %v1635_v19  ;;  %v7933_v50 = vpop.f32.mrf.mxu1 }
 0x5a8   :  { %5444 = vmatmul.mubr.bf16.gmra.mxu1 %v1853_v63  ;;  %v1647_v22 = vpop.xlane.xlu0 %1646 }
 0x5ab   :  { %v6008_v57 = vpop.eup %6007 }
 0x5ac   :  { %v1804_v37 = vmul.f32 %v6008_v57, %v7813_v36  ;;  %v6010_v5 = vpop.eup %6009  ;;  %v1651_v55 = vpop.xlane.xlu0 %1650 }
 0x5ad   :  { %v1633_v46 = vpop.xlane.xlu1 %1632  ;;  %v1807_v4 = vmul.f32 %v6010_v5, %v10150_v11 }
 0x5ae   :  { %6015 = vrcp.f32 %v1633_v46  ;;  %v1854_v28 = vpack.c.bf16 %v1805_v30, %v1804_v37 }
 0x5af   :  { %6017 = vrcp.f32 %v1639_v49 }
 0x5b0   :  { %5447 = vmatprep.mubr.bf16.mxu1 %v1854_v28  ;;  %v1655_v16 = vpop.xlane.xlu0 %1654  ;;  %v7963_v28 = vld [vmem:[#allocation7] sm:$0x1f] }
 0x5b1   :  { %v7935_v14 = vpop.f32.mrf.mxu1 }
 0x5b3   :  { %v6012_v47 = vpop.eup %6011  ;;  %v7937_v34 = vpop.f32.mrf.mxu1 }
 0x5b4   :  { %v1806_v23 = vmul.f32 %v6012_v47, %v7826_v29  ;;  %v6014_v40 = vpop.eup %6013  ;;  %v10152_v47 = vld [vmem:[#allocation33_spill] sm:$0xff] }
 0x5b5   :  { %v1637_v36 = vpop.xlane.xlu1 %1636  ;;  %v1809_v29 = vmul.f32 %v6014_v40, %v7781_v52  ;;  %v7941_v1 = vpop.f32.mrf.mxu1 }
 0x5b6   :  { %6019 = vrcp.f32 %v1637_v36  ;;  %v1855_v21 = vpack.c.bf16 %v1807_v4, %v1806_v23  ;;  %v10154_v4 = vld [vmem:[#allocation17_spill] sm:$0xff] }
 0x5b7   :  { %6021 = vrcp.f32 %v1643_v8  ;;  %v7943_v33 = vpop.f32.mrf.mxu1  ;;  %v7975_v36 = vrot.slane %v7963_v28, %v10154_v4 }
 0x5b8   :  { %5448 = vmatmul.mubr.bf16.gmra.mxu1 %v1855_v21  ;;  %v1659_v30 = vpop.xlane.xlu0 %1658 }
 0x5bb   :  { %v6016_v58 = vpop.eup %6015 }
 0x5bc   :  { %v1808_v51 = vmul.f32 %v6016_v58, %v7839_v6  ;;  %v6018_v25 = vpop.eup %6017 }
 0x5bd   :  { %v1641_v38 = vpop.xlane.xlu1 %1640  ;;  %v1811_v44 = vmul.f32 %v6018_v25, %v7794_v17 }
 0x5be   :  { %6023 = vrcp.f32 %v1641_v38  ;;  %v1856_v15 = vpack.c.bf16 %v1809_v29, %v1808_v51 }
 0x5bf   :  { %6025 = vrcp.f32 %v1647_v22 }
 0x5c0   :  { %5451 = vmatprep.mubr.bf16.mxu1 %v1856_v15  ;;  %v2230_v15 = vmul.f32 %v7975_v36, %v7927_v7 }
 0x5c1   :  { %v7947_v0 = vpop.f32.mrf.mxu1 }
 0x5c2   :  { %v1663_v58 = vpop.xlane.xlu0 %1662 }
 0x5c3   :  { %v6020_v61 = vpop.eup %6019  ;;  %v7949_v42 = vpop.f32.mrf.mxu1 }
 0x5c4   :  { %v1810_v2 = vmul.f32 %v6020_v61, %v7850_v3  ;;  %v6022_v27 = vpop.eup %6021 }
 0x5c5   :  { %v1645_v6 = vpop.xlane.xlu1 %1644  ;;  %v1813_v54 = vmul.f32 %v6022_v27, %v10151_v48  ;;  %v7953_v45 = vpop.f32.mrf.mxu1 }
 0x5c6   :  { %6027 = vrcp.f32 %v1645_v6  ;;  %v1857_v52 = vpack.c.bf16 %v1811_v44, %v1810_v2  ;;  %v2233_v6 = vmul.f32 %v7929_v12, %v7975_v36 }
 0x5c7   :  { %6029 = vrcp.f32 %v1651_v55  ;;  %v7955_v60 = vpop.f32.mrf.mxu1 }
 0x5c8   :  { %5452 = vmatmul.mubr.bf16.gmra.mxu1 %v1857_v52 }
 0x5cb   :  { %v6024_v62 = vpop.eup %6023 }
 0x5cc   :  { %v1812_v31 = vmul.f32 %v6024_v62, %v7860_v24  ;;  %v6026_v18 = vpop.eup %6025 }
 0x5cd   :  { %v1649_v3 = vpop.xlane.xlu1 %1648  ;;  %v1815_v24 = vmul.f32 %v6026_v18, %v7820_v20  ;;  %v10153_v20 = vld [vmem:[#allocation36_spill] sm:$0xff] }
 0x5ce   :  { %6031 = vrcp.f32 %v1649_v3  ;;  %v1858_v17 = vpack.c.bf16 %v1813_v54, %v1812_v31  ;;  %v7971_v11 = vrot.slane %v7963_v28, %v10153_v20 }
 0x5cf   :  { %6033 = vrcp.f32 %v1655_v16 }
 0x5d0   :  { %5455 = vmatprep.mubr.bf16.mxu1 %v1858_v17 }
 0x5d1   :  { %v7957_v63 = vpop.f32.mrf.mxu1 }
 0x5d3   :  { %v6028_v32 = vpop.eup %6027  ;;  %v7961_v37 = vpop.f32.mrf.mxu1 }
 0x5d4   :  { %v1814_v10 = vmul.f32 %v6028_v32, %v7870_v56  ;;  %v6030_v13 = vpop.eup %6029 }
 0x5d5   :  { %v1653_v19 = vpop.xlane.xlu1 %1652  ;;  %v7965_v5 = vpop.f32.mrf.mxu1  ;;  %v1817_v56 = vmul.f32 %v6030_v13, %v10152_v47 }
 0x5d6   :  { %6035 = vrcp.f32 %v1653_v19  ;;  %v1859_v57 = vpack.c.bf16 %v1815_v24, %v1814_v10  ;;  %v2234_v19 = vmul.f32 %v7975_v36, %v7937_v34  ;;  %v2235_v34 = vmul.f32 %v7975_v36, %v7943_v33  ;;  %v2441_v33 = vld [vmem:[%s9826_s3 + $0x60] sm:$0xff] }
 0x5d7   :  { %6037 = vrcp.f32 %v1659_v30  ;;  %v7977_v40 = vpop.f32.mrf.mxu1 }
 0x5d8   :  { %5456 = vmatmul.mubr.bf16.gmra.mxu1 %v1859_v57 }
 0x5db   :  { %v6032_v46 = vpop.eup %6031 }
 0x5dc   :  { %v1816_v49 = vmul.f32 %v6032_v46, %v7877_v41  ;;  %v6034_v8 = vpop.eup %6033  ;;  %v2232_v41 = vmul.f32 %v7923_v9, %v7975_v36 }
 0x5dd   :  { %v1657_v23 = vpop.xlane.xlu1 %1656  ;;  %v1819_v22 = vmul.f32 %v6034_v8, %v7845_v59  ;;  %v2231_v59 = vmul.f32 %v7975_v36, %v7933_v50  ;;  %v2236_v50 = vmul.f32 %v7935_v14, %v7975_v36 }
 0x5de   :  { %6039 = vrcp.f32 %v1657_v23  ;;  %v1860_v21 = vpack.c.bf16 %v1817_v56, %v1816_v49  ;;  %v2237_v49 = vmul.f32 %v7941_v1, %v7975_v36 }
 0x5df   :  { %6041 = vrcp.f32 %v1663_v58 }
 0x5e0   :  { %5459 = vmatprep.mubr.bf16.mxu1 %v1860_v21 }
 0x5e1   :  { %v5405_v51 = vpop.f32.mrf.mxu1 }
 0x5e2   :  { %v2252_v29 = vmul.f32 %v5405_v51, %v7971_v11  ;;  %v2442_v51 = vld [vmem:[%s9826_s3 + $0x68] sm:$0xff] }
 0x5e3   :  { %v6036_v38 = vpop.eup %6035  ;;  %v1970_v25 = vpop.f32.mrf.mxu1 }
 0x5e4   :  { %v7985_v61 = vadd.f32 %v2252_v29, %v2232_v41  ;;  %v2250_v2 = vmul.f32 %v7971_v11, %v1970_v25  ;;  %v1818_v44 = vmul.f32 %v6036_v38, %v7884_v43  ;;  %v6038_v43 = vpop.eup %6037  ;;  %v2459_v41 = vpack.c.bf16 %v2442_v51, %v2441_v33  ;;  %v2439_v38 = vld [vmem:[%s9826_s3 + $0x50] sm:$0xff]  ;;  %v2437_v25 = vld [vmem:[%s9826_s3 + $0x40] sm:$0xff] }
 0x5e5   :  { %v5406_v9 = vpop.f32.mrf.mxu1  ;;  %v1661_v52 = vpop.xlane.xlu1 %1660  ;;  %v1821_v17 = vmul.f32 %v6038_v43, %v7856_v53  ;;  %v2243_v33 = vmul.f32 %v7975_v36, %v7977_v40 }
 0x5e6   :  { %v7991_v27 = vadd.f32 %v2250_v2, %v2230_v15  ;;  %v2253_v55 = vmul.f32 %v5406_v9, %v7971_v11  ;;  %6043 = vrcp.f32 %v1661_v52  ;;  %v1861_v7 = vpack.c.bf16 %v1819_v22, %v1818_v44  ;;  %v2440_v15 = vld [vmem:[%s9826_s3 + $0x58] sm:$0xff] }
 0x5e7   :  { %v1973_v62 = vpop.f32.mrf.mxu1  ;;  %v2240_v22 = vmul.f32 %v7947_v0, %v7975_v36  ;;  %v2458_v44 = vpack.c.bf16 %v2440_v15, %v2439_v38  ;;  %v2241_v0 = vmul.f32 %v7953_v45, %v7975_v36  ;;  %v2436_v45 = vld [vmem:[%s9826_s3 + $0x38] sm:$0xff]  ;;  %v10155_v38 = vld [vmem:[#allocation16_spill] sm:$0xff] }
 0x5e8   :  { %v7996_v31 = vadd.f32 %v2253_v55, %v2233_v6  ;;  %v2251_v48 = vmul.f32 %v7971_v11, %v1973_v62  ;;  %5460 = vmatmul.mubr.bf16.gmra.mxu1 %v1861_v7  ;;  %v2438_v6 = vld [vmem:[%s9826_s3 + $0x48] sm:$0xff]  ;;  %v2238_v55 = vmul.f32 %v7975_v36, %v7949_v42  ;;  %v9919_v15 = vsub.s32 2, %v10155_v38 }
 0x5e9   :  { %v2457_v52 = vpack.c.bf16 %v2438_v6, %v2437_v25 }
 0x5ea   :  { %v7999_v54 = vadd.f32 %v2251_v48, %v2231_v59 }
 0x5eb   :  { %v6040_v12 = vpop.eup %6039 }
 0x5ec   :  { %v1820_v3 = vmul.f32 %v6040_v12, %v7889_v35  ;;  %v6042_v18 = vpop.eup %6041 }
 0x5ed   :  { %v1823_v30 = vmul.f32 %v6042_v18, %v7866_v26  ;;  %v2443_v26 = vld [vmem:[%s9826_s3 + $0x70] sm:$0xff] }
 0x5ee   :  { %v1862_v16 = vpack.c.bf16 %v1821_v17, %v1820_v3  ;;  %v2239_v3 = vmul.f32 %v7975_v36, %v7955_v60  ;;  %v2433_v60 = vld [vmem:[%s9826_s3 + $0x20] sm:$0xff] }
 0x5f0   :  { %5463 = vmatprep.mubr.bf16.mxu1 %v1862_v16  ;;  %v2435_v16 = vld [vmem:[%s9826_s3 + $0x30] sm:$0xff] }
 0x5f1   :  { %v5409_v32 = vpop.f32.mrf.mxu1 }
 0x5f2   :  { %v2256_v10 = vmul.f32 %v5409_v32, %v7971_v11  ;;  %v2456_v32 = vpack.c.bf16 %v2436_v45, %v2435_v16 }
 0x5f3   :  { %v6044_v24 = vpop.eup %6043  ;;  %v1986_v57 = vpop.f32.mrf.mxu1 }
 0x5f4   :  { %v8008_v13 = vadd.f32 %v2256_v10, %v2236_v50  ;;  %v2254_v35 = vmul.f32 %v7971_v11, %v1986_v57  ;;  %v1822_v53 = vmul.f32 %v6044_v24, %v7894_v39  ;;  %v2444_v39 = vld [vmem:[%s9826_s3 + $0x78] sm:$0xff]  ;;  %v2434_v50 = vld [vmem:[%s9826_s3 + $0x28] sm:$0xff] }
 0x5f5   :  { %v5410_v46 = vpop.f32.mrf.mxu1  ;;  %v2460_v58 = vpack.c.bf16 %v2444_v39, %v2443_v26  ;;  %v2455_v10 = vpack.c.bf16 %v2434_v50, %v2433_v60  ;;  %v2432_v57 = vld [vmem:[%s9826_s3 + $0x18] sm:$0xff] }
 0x5f6   :  { %v8015_v14 = vadd.f32 %v2254_v35, %v2234_v19  ;;  %v2257_v47 = vmul.f32 %v5410_v46, %v7971_v11  ;;  %v1863_v56 = vpack.c.bf16 %v1823_v30, %v1822_v53  ;;  %v2431_v19 = vld [vmem:[%s9826_s3 + $0x10] sm:$0xff]  ;;  %v2244_v35 = vmul.f32 %v7957_v63, %v7975_v36  ;;  %v2430_v63 = vld [vmem:[%s9826_s3 + $0x8] sm:$0xff] }
 0x5f7   :  { %v1989_v23 = vpop.f32.mrf.mxu1  ;;  %5467 = vmatprep.subr.bf16.mxu0 %v2460_v58  ;;  %v2454_v30 = vpack.c.bf16 %v2432_v57, %v2431_v19 }
 0x5f8   :  { %v8020_v21 = vadd.f32 %v2257_v47, %v2237_v49  ;;  %v2255_v8 = vmul.f32 %v7971_v11, %v1989_v23  ;;  %5464 = vmatmul.mubr.bf16.gmra.mxu1 %v1863_v56  ;;  %5468 = vmatpush3.bf16.msra.mxu0 %v2460_v58  ;;  %v2242_v49 = vmul.f32 %v7975_v36, %v7961_v37 }
 0x5f9   :  { %5469 = vmatprep.subr.bf16.mxu0 %v2459_v41 }
 0x5fa   :  { %v8029_v1 = vadd.f32 %v2255_v8, %v2235_v34  ;;  %v2429_v34 = vld [vmem:[%s9826_s3] sm:$0xff]  ;;  %v2245_v8 = vmul.f32 %v7965_v5, %v7975_v36  ;;  %v8109_v5 = vrot.slane %v7963_v28, %v9919_v15 }
 0x5fb   :  { %v2453_v39 = vpack.c.bf16 %v2430_v63, %v2429_v34 }
 0x5fc   :  { %5470 = vmatpush3.bf16.msra.mxu0 %v2459_v41 }
 0x5fd   :  { %5471 = vmatprep.subr.bf16.mxu0 %v2458_v44 }
 0x600   :  { %5472 = vmatpush3.bf16.msra.mxu0 %v2458_v44 }
 0x601   :  { %v5413_v29 = vpop.f32.mrf.mxu1  ;;  %5473 = vmatprep.subr.bf16.mxu0 %v2457_v52 }
 0x602   :  { %v2260_v2 = vmul.f32 %v5413_v29, %v7971_v11 }
 0x603   :  { %v2002_v9 = vpop.f32.mrf.mxu1 }
 0x604   :  { %v8054_v7 = vadd.f32 %v2260_v2, %v2240_v22  ;;  %v2258_v62 = vmul.f32 %v7971_v11, %v2002_v9  ;;  %5474 = vmatpush3.bf16.msra.mxu0 %v2457_v52 }
 0x605   :  { %v5414_v59 = vpop.f32.mrf.mxu1  ;;  %5475 = vmatprep.subr.bf16.mxu0 %v2456_v32 }
 0x606   :  { %v8059_v48 = vadd.f32 %v2258_v62, %v2238_v55  ;;  %v2261_v43 = vmul.f32 %v5414_v59, %v7971_v11 }
 0x607   :  { %v2005_v12 = vpop.f32.mrf.mxu1 }
 0x608   :  { %v8064_v42 = vadd.f32 %v2261_v43, %v2241_v0  ;;  %v2259_v17 = vmul.f32 %v7971_v11, %v2005_v12  ;;  %5476 = vmatpush3.bf16.msra.mxu0 %v2456_v32 }
 0x609   :  { %5477 = vmatprep.subr.bf16.mxu0 %v2455_v10 }
 0x60a   :  { %v8073_v18 = vadd.f32 %v2259_v17, %v2239_v3 }
 0x60c   :  { %5478 = vmatpush3.bf16.msra.mxu0 %v2455_v10 }
 0x60d   :  { %5479 = vmatprep.subr.bf16.mxu0 %v2454_v30 }
 0x610   :  { %5480 = vmatpush3.bf16.msra.mxu0 %v2454_v30 }
 0x611   :  { %v5417_v24 = vpop.f32.mrf.mxu1  ;;  %5481 = vmatprep.subr.bf16.mxu0 %v2453_v39 }
 0x612   :  { %v2264_v53 = vmul.f32 %v5417_v24, %v7971_v11 }
 0x613   :  { %v2018_v46 = vpop.f32.mrf.mxu1 }
 0x614   :  { %v2280_v47 = vadd.f32 %v2264_v53, %v2244_v35  ;;  %v2262_v56 = vmul.f32 %v7971_v11, %v2018_v46  ;;  %5482 = vmatpush3.bf16.msra.mxu0 %v2453_v39 }
 0x615   :  { %v5418_v23 = vpop.f32.mrf.mxu1 }
 0x616   :  { %v2278_v26 = vadd.f32 %v2262_v56, %v2242_v49  ;;  %v2265_v37 = vmul.f32 %v5418_v23, %v7971_v11 }
 0x617   :  { %v2021_v58 = vpop.f32.mrf.mxu1 }
 0x618   :  { %v2281_v51 = vadd.f32 %v2265_v37, %v2245_v8  ;;  %v2263_v41 = vmul.f32 %v7971_v11, %v2021_v58 }
 0x61a   :  { %v2279_v29 = vadd.f32 %v2263_v41, %v2243_v33 }
 0x621   :  { %v5421_v25 = vpop.f32.mrf.mxu1 }
 0x622   :  { %v2288_v22 = vmul.f32 %v5421_v25, %v8109_v5 }
 0x623   :  { %v2034_v2 = vpop.f32.mrf.mxu1 }
 0x624   :  { %v8113_v44 = vadd.f32 %v2288_v22, %v7985_v61  ;;  %v2286_v36 = vmul.f32 %v8109_v5, %v2034_v2 }
 0x625   :  { %v5422_v11 = vpop.f32.mrf.mxu1 }
 0x626   :  { %v8117_v40 = vadd.f32 %v2286_v36, %v7991_v27 }
 0x627   :  { %v2037_v6 = vpop.f32.mrf.mxu1 }
 0x629   :  { %v5425_v9 = vpop.f32.mrf.mxu1 }
 0x62a   :  { %v2292_v52 = vmul.f32 %v5425_v9, %v8109_v5  ;;  %v9917_v9 = vsub.s32 4, %v10155_v38 }
 0x62b   :  { %v2050_v55 = vpop.f32.mrf.mxu1 }
 0x62c   :  { %v8121_v62 = vadd.f32 %v2292_v52, %v8008_v13  ;;  %v2290_v59 = vmul.f32 %v8109_v5, %v2050_v55 }
 0x62d   :  { %v5426_v0 = vpop.f32.mrf.mxu1 }
 0x62e   :  { %v8125_v61 = vadd.f32 %v2290_v59, %v8015_v14  ;;  %v2293_v43 = vmul.f32 %v5426_v0, %v8109_v5  ;;  %v8188_v59 = vrot.slane %v7963_v28, %v9917_v9  ;;  %v2289_v0 = vmul.f32 %v5422_v11, %v8109_v5 }
 0x62f   :  { %v2053_v12 = vpop.f32.mrf.mxu1 }
 0x630   :  { %v8129_v27 = vadd.f32 %v2293_v43, %v8020_v21  ;;  %v2291_v3 = vmul.f32 %v8109_v5, %v2053_v12 }
 0x631   :  { %v5429_v17 = vpop.f32.mrf.mxu1 }
 0x632   :  { %v8133_v16 = vadd.f32 %v2291_v3, %v8029_v1  ;;  %v2296_v13 = vmul.f32 %v5429_v17, %v8109_v5  ;;  %v2287_v17 = vmul.f32 %v8109_v5, %v2037_v6 }
 0x633   :  { %v2066_v45 = vpop.f32.mrf.mxu1 }
 0x634   :  { %v8137_v32 = vadd.f32 %v2296_v13, %v8054_v7  ;;  %v2294_v14 = vmul.f32 %v8109_v5, %v2066_v45  ;;  %v2303_v6 = vadd.f32 %v2287_v17, %v7999_v54 }
 0x635   :  { %v5430_v60 = vpop.f32.mrf.mxu1 }
 0x636   :  { %v8141_v50 = vadd.f32 %v2294_v14, %v8059_v48  ;;  %v2297_v21 = vmul.f32 %v5430_v60, %v8109_v5  ;;  %v2305_v60 = vadd.f32 %v2289_v0, %v7996_v31 }
 0x637   :  { %v2069_v10 = vpop.f32.mrf.mxu1 }
 0x638   :  { %v8145_v24 = vadd.f32 %v2297_v21, %v8064_v42  ;;  %v2295_v1 = vmul.f32 %v8109_v5, %v2069_v10 }
 0x639   :  { %v5433_v19 = vpop.f32.mrf.mxu1 }
 0x63a   :  { %v8149_v57 = vadd.f32 %v2295_v1, %v8073_v18  ;;  %v2300_v7 = vmul.f32 %v5433_v19, %v8109_v5 }
 0x63b   :  { %v2082_v35 = vpop.f32.mrf.mxu1 }
 0x63c   :  { %v8152_v53 = vadd.f32 %v2300_v7, %v2280_v47  ;;  %v2298_v48 = vmul.f32 %v8109_v5, %v2082_v35 }
 0x63d   :  { %v5434_v30 = vpop.f32.mrf.mxu1 }
 0x63e   :  { %v8155_v46 = vadd.f32 %v2298_v48, %v2278_v26  ;;  %v2301_v49 = vmul.f32 %v5434_v30, %v8109_v5 }
 0x63f   :  { %v2085_v42 = vpop.f32.mrf.mxu1 }
 0x640   :  { %v8158_v56 = vadd.f32 %v2301_v49, %v2281_v51  ;;  %v2299_v23 = vmul.f32 %v8109_v5, %v2085_v42  ;;  %v8205_v5 = vld [vmem:[%s9825_s2] ss:$0 sm:$0xff] }
 0x642   :  { %v8161_v34 = vadd.f32 %v2299_v23, %v2279_v29  ;;  %v9918_v29 = vsub.s32 3, %v10155_v38 }
 0x644   :  { %v8179_v36 = vrot.slane %v7963_v28, %v9918_v29 }
 0x648   :  { %v5437_v18 = vpop.f32.mrf.mxu1 }
 0x649   :  { %v2324_v55 = vmul.f32 %v5437_v18, %v8179_v36 }
 0x64a   :  { %v2098_v63 = vpop.f32.mrf.mxu1 }
 0x64b   :  { %v2322_v12 = vmul.f32 %v8179_v36, %v2098_v63  ;;  %v2340_v13 = vadd.f32 %v2324_v55, %v8113_v44 }
 0x64c   :  { %v5438_v8 = vpop.f32.mrf.mxu1 }
 0x64d   :  { %v2325_v45 = vmul.f32 %v5438_v8, %v8179_v36  ;;  %v2338_v28 = vadd.f32 %v2322_v12, %v8117_v40 }
 0x64e   :  { %v2101_v37 = vpop.f32.mrf.mxu1 }
 0x64f   :  { %v2323_v11 = vmul.f32 %v8179_v36, %v2101_v37  ;;  %v2341_v19 = vadd.f32 %v2325_v45, %v2305_v60 }
 0x651   :  { %v2339_v48 = vadd.f32 %v2323_v11, %v2303_v6 }
 0x658   :  { %v5441_v47 = vpop.f32.mrf.mxu1 }
 0x659   :  { %v2328_v37 = vmul.f32 %v5441_v47, %v8179_v36 }
 0x65a   :  { %v2114_v39 = vpop.f32.mrf.mxu1 }
 0x65b   :  { %v2344_v45 = vadd.f32 %v2328_v37, %v8121_v62 }
 0x65c   :  { %v5442_v58 = vpop.f32.mrf.mxu1 }
 0x65e   :  { %v2117_v33 = vpop.f32.mrf.mxu1 }
 0x65f   :  { %v2327_v47 = vmul.f32 %v8179_v36, %v2117_v33 }
 0x668   :  { %v8163_v41 = vpop.f32.mrf.mxu1 }
 0x66a   :  { %v8165_v26 = vpop.f32.mrf.mxu1 }
 0x66c   :  { %v8167_v25 = vpop.f32.mrf.mxu1 }
 0x66e   :  { %v8169_v51 = vpop.f32.mrf.mxu1 }
 0x678   :  { %v8171_v22 = vpop.f32.mrf.mxu1 }
 0x67a   :  { %v8174_v2 = vpop.f32.mrf.mxu1 }
 0x67c   :  { %v8182_v52 = vpop.f32.mrf.mxu1 }
 0x67e   :  { %v8191_v43 = vpop.f32.mrf.mxu1 }
 0x688   :  { %v5453_v3 = vpop.f32.mrf.mxu1 }
 0x689   :  { %v2360_v14 = vmul.f32 %v5453_v3, %v8188_v59  ;;  %v2326_v3 = vmul.f32 %v8179_v36, %v2114_v39 }
 0x68a   :  { %v2162_v21 = vpop.f32.mrf.mxu1 }
 0x68b   :  { %v2376_v10 = vadd.f32 %v2360_v14, %v2340_v13  ;;  %v2358_v1 = vmul.f32 %v8188_v59, %v2162_v21  ;;  %v2329_v14 = vmul.f32 %v5442_v58, %v8179_v36  ;;  %v2343_v58 = vadd.f32 %v2327_v47, %v8133_v16 }
 0x68c   :  { %v5454_v44 = vpop.f32.mrf.mxu1 }
 0x68d   :  { %v2374_v7 = vadd.f32 %v2358_v1, %v2338_v28  ;;  %v2361_v31 = vmul.f32 %v5454_v44, %v8188_v59  ;;  %v2399_v40 = vadd.f32 %v8205_v5, %v2376_v10  ;;  %v2342_v28 = vadd.f32 %v2326_v3, %v8125_v61 }
 0x68e   :  { %v2165_v35 = vpop.f32.mrf.mxu1  ;;  %v2345_v39 = vadd.f32 %v2329_v14, %v8129_v27 }
 0x68f   :  { %v2377_v30 = vadd.f32 %v2361_v31, %v2341_v19  ;;  %v2359_v49 = vmul.f32 %v8188_v59, %v2165_v35  ;;  %v2397_v42 = vadd.f32 %v8205_v5, %v2374_v7  ;;  %v2415_v63 = vmax.f32 %v2399_v40, 0.0 }
 0x691   :  { %v2400_v23 = vadd.f32 %v8205_v5, %v2377_v30  ;;  %v2375_v18 = vadd.f32 %v2359_v49, %v2339_v48  ;;  %v2413_v55 = vmax.f32 %v2397_v42, 0.0  ;;  %v2332_v30 = vmul.f32 %v8163_v41, %v8179_v36 }
 0x693   :  { %v2416_v8 = vmax.f32 %v2400_v23, 0.0  ;;  %v2398_v54 = vadd.f32 %v8205_v5, %v2375_v18  ;;  %v2330_v23 = vmul.f32 %v8179_v36, %v8165_v26 }
 0x695   :  { %v2446_v0 = vpack.c.bf16 %v2416_v8, %v2415_v63  ;;  %v2414_v12 = vmax.f32 %v2398_v54, 0.0  ;;  %v2348_v8 = vadd.f32 %v2332_v30, %v8137_v32  ;;  %v2333_v54 = vmul.f32 %v8167_v25, %v8179_v36 }
 0x696   :  { %v2346_v41 = vadd.f32 %v2330_v23, %v8141_v50 }
 0x697   :  { %v2445_v17 = vpack.c.bf16 %v2414_v12, %v2413_v55 }
 0x698   :  { %v5457_v13 = vpop.f32.mrf.mxu1 }
 0x699   :  { %v2364_v60 = vmul.f32 %v5457_v13, %v8188_v59  ;;  %5483 = vmatprep.mubr.bf16.mxu0 %v2445_v17  ;;  %v2349_v17 = vadd.f32 %v2333_v54, %v8145_v24 }
 0x69a   :  { %v2178_v21 = vpop.f32.mrf.mxu1  ;;  %5484 = vmatmul.mubr.bf16.vlgmr.msra.gmra.mxu0 %v2446_v0  ;;  %v2331_v0 = vmul.f32 %v8179_v36, %v8169_v51 }
 0x69b   :  { %v2380_v11 = vadd.f32 %v2364_v60, %v2344_v45  ;;  %v2362_v10 = vmul.f32 %v8188_v59, %v2178_v21 }
 0x69c   :  { %v5458_v1 = vpop.f32.mrf.mxu1  ;;  %v2347_v45 = vadd.f32 %v2331_v0, %v8149_v57 }
 0x69d   :  { %v2378_v44 = vadd.f32 %v2362_v10, %v2342_v28  ;;  %v2365_v62 = vmul.f32 %v5458_v1, %v8188_v59  ;;  %v2403_v19 = vadd.f32 %v8205_v5, %v2380_v11  ;;  %v2336_v10 = vmul.f32 %v8171_v22, %v8179_v36 }
 0x69e   :  { %v2181_v6 = vpop.f32.mrf.mxu1 }
 0x69f   :  { %v2381_v7 = vadd.f32 %v2365_v62, %v2345_v39  ;;  %v2363_v31 = vmul.f32 %v8188_v59, %v2181_v6  ;;  %v2401_v61 = vadd.f32 %v8205_v5, %v2378_v44  ;;  %v2419_v48 = vmax.f32 %v2403_v19, 0.0 }
 0x6a0   :  { %v2334_v44 = vmul.f32 %v8179_v36, %v8174_v2  ;;  %v2337_v19 = vmul.f32 %v8182_v52, %v8179_v36 }
 0x6a1   :  { %v2404_v33 = vadd.f32 %v8205_v5, %v2381_v7  ;;  %v2379_v35 = vadd.f32 %v2363_v31, %v2343_v58  ;;  %v2417_v49 = vmax.f32 %v2401_v61, 0.0  ;;  %v2352_v58 = vadd.f32 %v2336_v10, %v8152_v53 }
 0x6a2   :  { %v2350_v22 = vadd.f32 %v2334_v44, %v8155_v46  ;;  %v2335_v61 = vmul.f32 %v8179_v36, %v8191_v43 }
 0x6a3   :  { %v2420_v40 = vmax.f32 %v2404_v33, 0.0  ;;  %v2402_v27 = vadd.f32 %v8205_v5, %v2379_v35 }
 0x6a5   :  { %v2418_v42 = vmax.f32 %v2402_v27, 0.0  ;;  %v2448_v16 = vpack.c.bf16 %v2420_v40, %v2419_v48  ;;  %v2353_v48 = vadd.f32 %v2337_v19, %v8158_v56  ;;  %v2351_v27 = vadd.f32 %v2335_v61, %v8161_v34 }
 0x6a7   :  { %v2447_v18 = vpack.c.bf16 %v2418_v42, %v2417_v49 }
 0x6a8   :  { %v5461_v63 = vpop.f32.mrf.mxu1 }
 0x6a9   :  { %v2368_v37 = vmul.f32 %v5461_v63, %v8188_v59  ;;  %5487 = vmatprep.mubr.bf16.mxu0 %v2447_v18 }
 0x6aa   :  { %v2194_v55 = vpop.f32.mrf.mxu1  ;;  %5488 = vmatmul.mubr.bf16.gmra.mxu0 %v2448_v16 }
 0x6ab   :  { %v2384_v12 = vadd.f32 %v2368_v37, %v2348_v8  ;;  %v2366_v26 = vmul.f32 %v8188_v59, %v2194_v55 }
 0x6ac   :  { %v5462_v3 = vpop.f32.mrf.mxu1 }
 0x6ad   :  { %v2382_v32 = vadd.f32 %v2366_v26, %v2346_v41  ;;  %v2369_v13 = vmul.f32 %v5462_v3, %v8188_v59  ;;  %v2407_v14 = vadd.f32 %v8205_v5, %v2384_v12 }
 0x6ae   :  { %v2197_v25 = vpop.f32.mrf.mxu1 }
 0x6af   :  { %v2385_v60 = vadd.f32 %v2369_v13, %v2349_v17  ;;  %v2367_v50 = vmul.f32 %v8188_v59, %v2197_v25  ;;  %v2405_v21 = vadd.f32 %v8205_v5, %v2382_v32  ;;  %v2423_v47 = vmax.f32 %v2407_v14, 0.0 }
 0x6b1   :  { %v2408_v51 = vadd.f32 %v8205_v5, %v2385_v60  ;;  %v2383_v28 = vadd.f32 %v2367_v50, %v2347_v45  ;;  %v2421_v1 = vmax.f32 %v2405_v21, 0.0 }
 0x6b3   :  { %v2424_v11 = vmax.f32 %v2408_v51, 0.0  ;;  %v2406_v24 = vadd.f32 %v8205_v5, %v2383_v28 }
 0x6b5   :  { %v2422_v39 = vmax.f32 %v2406_v24, 0.0  ;;  %v2450_v57 = vpack.c.bf16 %v2424_v11, %v2423_v47 }
 0x6b7   :  { %v2449_v62 = vpack.c.bf16 %v2422_v39, %v2421_v1 }
 0x6b8   :  { %v5465_v6 = vpop.f32.mrf.mxu1 }
 0x6b9   :  { %v2372_v7 = vmul.f32 %v5465_v6, %v8188_v59  ;;  %5491 = vmatprep.mubr.bf16.mxu0 %v2449_v62 }
 0x6ba   :  { %v2210_v31 = vpop.f32.mrf.mxu1  ;;  %5492 = vmatmul.mubr.bf16.gmra.mxu0 %v2450_v57 }
 0x6bb   :  { %v2388_v33 = vadd.f32 %v2372_v7, %v2352_v58  ;;  %v2370_v2 = vmul.f32 %v8188_v59, %v2210_v31 }
 0x6bc   :  { %v5466_v35 = vpop.f32.mrf.mxu1 }
 0x6bd   :  { %v2386_v53 = vadd.f32 %v2370_v2, %v2350_v22  ;;  %v2373_v40 = vmul.f32 %v5466_v35, %v8188_v59  ;;  %v2411_v30 = vadd.f32 %v8205_v5, %v2388_v33 }
 0x6be   :  { %v2213_v52 = vpop.f32.mrf.mxu1 }
 0x6bf   :  { %v2389_v49 = vadd.f32 %v2373_v40, %v2353_v48  ;;  %v2371_v46 = vmul.f32 %v8188_v59, %v2213_v52  ;;  %v2409_v42 = vadd.f32 %v8205_v5, %v2386_v53  ;;  %v2427_v16 = vmax.f32 %v2411_v30, 0.0 }
 0x6c0   :  { %v10156_v53 = vsub.s32 5, %v10155_v38  ;;  %v10157_v52 = vsub.s32 6, %v10155_v38  ;;  %v10158_v30 = vsub.s32 7, %v10155_v38 }
 0x6c1   :  { %v2412_v36 = vadd.f32 %v8205_v5, %v2389_v49  ;;  %v2387_v43 = vadd.f32 %v2371_v46, %v2351_v27  ;;  %v2425_v18 = vmax.f32 %v2409_v42, 0.0 }
 0x6c3   :  { %v2428_v23 = vmax.f32 %v2412_v36, 0.0  ;;  %v2410_v56 = vadd.f32 %v8205_v5, %v2387_v43  ;;  %v10159_v43 = vld [vmem:[#allocation18_spill] sm:$0xff] }
 0x6c5   :  { %v2426_v63 = vmax.f32 %v2410_v56, 0.0  ;;  %v2452_v8 = vpack.c.bf16 %v2428_v23, %v2427_v16 }
 0x6c7   :  { %v2451_v54 = vpack.c.bf16 %v2426_v63, %v2425_v18 }
 0x6c9   :  { %5495 = vmatprep.mubr.bf16.mxu0 %v2451_v54 }
 0x6ca   :  { %5496 = vmatmul.mubr.bf16.gmra.mxu0 %v2452_v8 }
 0x75a   :  { %v5485_v34 = vpop.f32.mrf.mxu0 }
 0x75b   :  { %2578 = vrot.lane.b32.xlu1 %v5485_v34, %s6542_s1 }
 0x75c   :  { %v2495_v37 = vpop.f32.mrf.mxu0 }
 0x75e   :  { %v5486_v59 = vpop.f32.mrf.mxu0 }
 0x75f   :  { %v4135_v55 = vpack.c.bf16 %v5486_v59, %v5485_v34  ;;  %2574 = vrot.lane.b32.xlu1 %v2495_v37, %s6542_s1 }
 0x760   :  { %v2498_v41 = vpop.f32.mrf.mxu0 }
 0x761   :  { %v4134_v0 = vpack.c.bf16 %v2498_v41, %v2495_v37  ;;  %2576 = vrot.lane.b32.xlu0 %v2498_v41, %s6542_s1  ;;  %v8329_v37 = vld [vmem:[#allocation6] sm:$0xff] }
 0x762   :  { %10160 = vst [vmem:[#allocation58_spill] sm:$0xff] %v8329_v37 }
 0x763   :  { %2580 = vrot.lane.b32.xlu1 %v5486_v59, %s6542_s1 }
 0x76a   :  { %v5489_v5 = vpop.f32.mrf.mxu0 }
 0x76b   :  { %2586 = vrot.lane.b32.xlu0 %v5489_v5, %s6542_s1 }
 0x76c   :  { %v2511_v12 = vpop.f32.mrf.mxu0 }
 0x76e   :  { %v5490_v26 = vpop.f32.mrf.mxu0 }
 0x76f   :  { %2582 = vrot.lane.b32.xlu0 %v2511_v12, %s6542_s1  ;;  %2588 = vrot.lane.b32.xlu1 %v5490_v26, %s6542_s1  ;;  %v4137_v11 = vpack.c.bf16 %v5490_v26, %v5489_v5 }
 0x770   :  { %v2514_v3 = vpop.f32.mrf.mxu0 }
 0x771   :  { %v4136_v24 = vpack.c.bf16 %v2514_v3, %v2511_v12 }
 0x773   :  { %2584 = vrot.lane.b32.xlu1 %v2514_v3, %s6542_s1 }
 0x77a   :  { %v5493_v17 = vpop.f32.mrf.mxu0 }
 0x77b   :  { %2594 = vrot.lane.b32.xlu0 %v5493_v17, %s6542_s1 }
 0x77c   :  { %v2527_v32 = vpop.f32.mrf.mxu0 }
 0x77e   :  { %v5494_v13 = vpop.f32.mrf.mxu0 }
 0x77f   :  { %2590 = vrot.lane.b32.xlu0 %v2527_v32, %s6542_s1  ;;  %2596 = vrot.lane.b32.xlu1 %v5494_v13, %s6542_s1  ;;  %v4139_v28 = vpack.c.bf16 %v5494_v13, %v5493_v17  ;;  %v8339_v17 = vld [vmem:[#allocation6 + $0x10] sm:$0xff] }
 0x780   :  { %v2530_v25 = vpop.f32.mrf.mxu0  ;;  %10161 = vst [vmem:[#allocation48_spill] sm:$0xff] %v8339_v17 }
 0x781   :  { %v4138_v47 = vpack.c.bf16 %v2530_v25, %v2527_v32 }
 0x783   :  { %2592 = vrot.lane.b32.xlu1 %v2530_v25, %s6542_s1 }
 0x78a   :  { %v5497_v45 = vpop.f32.mrf.mxu0 }
 0x78b   :  { %2602 = vrot.lane.b32.xlu0 %v5497_v45, %s6542_s1 }
 0x78c   :  { %v2543_v14 = vpop.f32.mrf.mxu0 }
 0x78e   :  { %v5498_v60 = vpop.f32.mrf.mxu0 }
 0x78f   :  { %v4141_v50 = vpack.c.bf16 %v5498_v60, %v5497_v45  ;;  %2598 = vrot.lane.b32.xlu0 %v2543_v14, %s6542_s1  ;;  %2604 = vrot.lane.b32.xlu1 %v5498_v60, %s6542_s1  ;;  %v8347_v60 = vld [vmem:[#allocation6 + $0x18] sm:$0xff] }
 0x790   :  { %v2546_v21 = vpop.f32.mrf.mxu0 }
 0x791   :  { %v4140_v51 = vpack.c.bf16 %v2546_v21, %v2543_v14  ;;  %5499 = vmatprep.subr.bf16.mxu0 %v4141_v50 }
 0x792   :  { %5500 = vmatpush3.bf16.msra.mxu0 %v4141_v50 }
 0x793   :  { %2600 = vrot.lane.b32.xlu1 %v2546_v21, %s6542_s1  ;;  %5501 = vmatprep.subr.bf16.mxu0 %v4140_v51 }
 0x796   :  { %5502 = vmatpush3.bf16.msra.mxu0 %v4140_v51 }
 0x797   :  { %5503 = vmatprep.subr.bf16.mxu0 %v4139_v28 }
 0x79a   :  { %5504 = vmatpush3.bf16.msra.mxu0 %v4139_v28  ;;  %v8356_v28 = vld [vmem:[#allocation6 + $0x20] sm:$0xff] }
 0x79b   :  { %5505 = vmatprep.subr.bf16.mxu0 %v4138_v47  ;;  %10162 = vst [vmem:[#allocation34_spill] sm:$0xff] %v8356_v28 }
 0x79e   :  { %5506 = vmatpush3.bf16.msra.mxu0 %v4138_v47 }
 0x79f   :  { %5507 = vmatprep.subr.bf16.mxu0 %v4137_v11 }
 0x7a2   :  { %5508 = vmatpush3.bf16.msra.mxu0 %v4137_v11 }
 0x7a3   :  { %5509 = vmatprep.subr.bf16.mxu0 %v4136_v24 }
 0x7a6   :  { %5510 = vmatpush3.bf16.msra.mxu0 %v4136_v24 }
 0x7a7   :  { %5511 = vmatprep.subr.bf16.mxu0 %v4135_v55 }
 0x7aa   :  { %5512 = vmatpush3.bf16.msra.mxu0 %v4135_v55 }
 0x7ab   :  { %5513 = vmatprep.subr.bf16.mxu0 %v4134_v0 }
 0x7ae   :  { %5514 = vmatpush3.bf16.msra.mxu0 %v4134_v0 }
 0x7cd   :  { %v2579_v10 = vpop.permute.xlu1 %2578 }
 0x7d1   :  { %v2575_v1 = vpop.permute.xlu1 %2574 }
 0x7d2   :  { %2622 = vxpose.xlu0.b32.start [1/16] (narrow) %v2575_v1, 16 }
 0x7d3   :  { %v2577_v39 = vpop.permute.xlu0 %2576 }
 0x7d5   :  { %v2581_v57 = vpop.permute.xlu1 %2580 }
 0x7d6   :  { %2623 = vxpose.xlu0.b32.cont [2/16] (narrow) %v2577_v39, 16 }
 0x7da   :  { %2624 = vxpose.xlu0.b32.cont [3/16] (narrow) %v2579_v10, 16 }
 0x7dd   :  { %v2587_v44 = vpop.permute.xlu0 %2586 }
 0x7de   :  { %2625 = vxpose.xlu0.b32.cont [4/16] (narrow) %v2581_v57, 16 }
 0x7e1   :  { %v2583_v62 = vpop.permute.xlu0 %2582  ;;  %v2589_v6 = vpop.permute.xlu1 %2588 }
 0x7e2   :  { %2626 = vxpose.xlu0.b32.cont [5/16] (narrow) %v2583_v62, 16  ;;  %v8366_v62 = vld [vmem:[#allocation6 + $0x30] sm:$0xff] }
 0x7e5   :  { %v2585_v58 = vpop.permute.xlu1 %2584 }
 0x7e6   :  { %2627 = vxpose.xlu0.b32.cont [6/16] (narrow) %v2585_v58, 16 }
 0x7ea   :  { %2628 = vxpose.xlu0.b32.cont [7/16] (narrow) %v2587_v44, 16 }
 0x7ed   :  { %v2595_v19 = vpop.permute.xlu0 %2594 }
 0x7ee   :  { %2629 = vxpose.xlu0.b32.cont [8/16] (narrow) %v2589_v6, 16 }
 0x7f1   :  { %v2591_v7 = vpop.permute.xlu0 %2590  ;;  %v2597_v31 = vpop.permute.xlu1 %2596 }
 0x7f2   :  { %2630 = vxpose.xlu0.b32.cont [9/16] (narrow) %v2591_v7, 16 }
 0x7f5   :  { %v2593_v22 = vpop.permute.xlu1 %2592 }
 0x7f6   :  { %2631 = vxpose.xlu0.b32.cont [10/16] (narrow) %v2593_v22, 16  ;;  %v8374_v22 = vld [vmem:[#allocation6 + $0x38] sm:$0xff] }
 0x7fa   :  { %2632 = vxpose.xlu0.b32.cont [11/16] (narrow) %v2595_v19, 16 }
 0x7fd   :  { %v2603_v61 = vpop.permute.xlu0 %2602 }
 0x7fe   :  { %2633 = vxpose.xlu0.b32.cont [12/16] (narrow) %v2597_v31, 16 }
 0x801   :  { %v2599_v33 = vpop.permute.xlu0 %2598  ;;  %v2605_v2 = vpop.permute.xlu1 %2604 }
 0x802   :  { %2634 = vxpose.xlu0.b32.cont [13/16] (narrow) %v2599_v33, 16 }
 0x805   :  { %v2601_v35 = vpop.permute.xlu1 %2600 }
 0x806   :  { %2635 = vxpose.xlu0.b32.cont [14/16] (narrow) %v2601_v35, 16  ;;  %v8383_v35 = vld [vmem:[#allocation6 + $0x40] sm:$0xff] }
 0x80a   :  { %2636 = vxpose.xlu0.b32.cont [15/16] (narrow) %v2603_v61, 16 }
 0x80e   :  { %2637 = vxpose.xlu0.b32.end [16/16] (narrow) %v2605_v2, 16 }
 0x84e   :  { %v8286_v48 = vpop.trf.xlu0 }
 0x84f   :  { %v2657_v40 = vrot.slane %v8286_v48, %v10156_v53  ;;  %v2724_v27 = vrot.slane %v8286_v48, %v10157_v52  ;;  %v8297_v49 = vrot.slane %v8286_v48, %v10158_v30  ;;  %v8316_v16 = vrot.slane %v8286_v48, %v10159_v43 }
 0x851   :  { %2754 = vbcast.lane.b32.xlu0 %v2724_v27, 312  ;;  %2659 = vbcast.lane.b32.xlu1 %v2657_v40, 256  ;;  %v8320_v23 = vrot.slane %v8316_v16, %v10159_v43 }
 0x852   :  { %v2639_v46 = vpop.trf.xlu0 }
 0x853   :  { %v8304_v42 = vrot.slane %v2639_v46, %v10154_v4  ;;  %v8310_v36 = vrot.slane %v2639_v46, %v10153_v20  ;;  %v8324_v56 = vrot.slane %v8320_v23, %v10154_v4 }
 0x855   :  { %2801 = vbcast.lane.b32.xlu0 %v8297_v49, 272  ;;  %2663 = vbcast.lane.b32.xlu1 %v2657_v40, 264 }
 0x859   :  { %2813 = vbcast.lane.b32.xlu0 %v8297_v49, 296  ;;  %2667 = vbcast.lane.b32.xlu1 %v2657_v40, 272 }
 0x85d   :  { %2829 = vbcast.lane.b32.xlu0 %v8297_v49, 328  ;;  %2671 = vbcast.lane.b32.xlu1 %v2657_v40, 280 }
 0x861   :  { %2845 = vbcast.lane.b32.xlu0 %v8297_v49, 360  ;;  %2675 = vbcast.lane.b32.xlu1 %v2657_v40, 288 }
 0x865   :  { %2679 = vbcast.lane.b32.xlu1 %v2657_v40, 296  ;;  %2864 = vbcast.lane.b32.xlu0 %v8304_v42, 264 }
 0x869   :  { %2683 = vbcast.lane.b32.xlu1 %v2657_v40, 304  ;;  %2880 = vbcast.lane.b32.xlu0 %v8304_v42, 296 }
 0x86d   :  { %2687 = vbcast.lane.b32.xlu1 %v2657_v40, 312  ;;  %2896 = vbcast.lane.b32.xlu0 %v8304_v42, 328 }
 0x871   :  { %2691 = vbcast.lane.b32.xlu1 %v2657_v40, 320  ;;  %2912 = vbcast.lane.b32.xlu0 %v8304_v42, 360 }
 0x875   :  { %2695 = vbcast.lane.b32.xlu1 %v2657_v40, 328  ;;  %2931 = vbcast.lane.b32.xlu0 %v8310_v36, 264 }
 0x879   :  { %2699 = vbcast.lane.b32.xlu1 %v2657_v40, 336 }
 0x87d   :  { %2703 = vbcast.lane.b32.xlu1 %v2657_v40, 344 }
 0x881   :  { %2707 = vbcast.lane.b32.xlu1 %v2657_v40, 352 }
 0x885   :  { %2711 = vbcast.lane.b32.xlu1 %v2657_v40, 360 }
 0x889   :  { %2715 = vbcast.lane.b32.xlu1 %v2657_v40, 368 }
 0x88d   :  { %2719 = vbcast.lane.b32.xlu1 %v2657_v40, 376 }
 0x891   :  { %2726 = vbcast.lane.b32.xlu1 %v2724_v27, 256 }
 0x895   :  { %2730 = vbcast.lane.b32.xlu1 %v2724_v27, 264 }
 0x899   :  { %2734 = vbcast.lane.b32.xlu1 %v2724_v27, 272 }
 0x89d   :  { %2738 = vbcast.lane.b32.xlu1 %v2724_v27, 280 }
 0x8a1   :  { %2742 = vbcast.lane.b32.xlu1 %v2724_v27, 288 }
 0x8a5   :  { %2746 = vbcast.lane.b32.xlu1 %v2724_v27, 296 }
 0x8a9   :  { %2750 = vbcast.lane.b32.xlu1 %v2724_v27, 304 }
 0x8ad   :  { %2758 = vbcast.lane.b32.xlu1 %v2724_v27, 320 }
 0x8b1   :  { %2762 = vbcast.lane.b32.xlu1 %v2724_v27, 328 }
 0x8b5   :  { %2766 = vbcast.lane.b32.xlu1 %v2724_v27, 336 }
 0x8b9   :  { %2770 = vbcast.lane.b32.xlu1 %v2724_v27, 344 }
 0x8bd   :  { %2774 = vbcast.lane.b32.xlu1 %v2724_v27, 352 }
 0x8c1   :  { %2778 = vbcast.lane.b32.xlu1 %v2724_v27, 360 }
 0x8c3   :  { %v2660_v18 = vpop.permute.xlu1 %2659 }
 0x8c4   :  { %v3054_v63 = vadd.f32 %v8324_v56, %v2660_v18 }
 0x8c5   :  { %2782 = vbcast.lane.b32.xlu1 %v2724_v27, 368 }
 0x8c6   :  { %v3134_v8 = vmul.f32 0.2, %v3054_v63 }
 0x8c7   :  { %v8327_v54 = vpop.permute.xlu1 %2663 }
 0x8c8   :  { %v3214_v34 = vmax.f32 %v3054_v63, %v3134_v8  ;;  %v8393_v8 = vld [vmem:[#allocation6 + $0x50] sm:$0xff] }
 0x8c9   :  { %2786 = vbcast.lane.b32.xlu1 %v2724_v27, 376 }
 0x8ca   :  { %v8332_v59 = vadd.f32 %v8329_v37, %v3214_v34 }
 0x8cb   :  { %v2668_v55 = vpop.permute.xlu1 %2667 }
 0x8cc   :  { %v3056_v41 = vadd.f32 %v8324_v56, %v2668_v55  ;;  %3374 = vmax.xlane.f32.xlu0 %v8332_v59 }
 0x8cd   :  { %2793 = vbcast.lane.b32.xlu1 %v8297_v49, 256 }
 0x8ce   :  { %v3136_v0 = vmul.f32 0.2, %v3056_v41 }
 0x8cf   :  { %v2672_v5 = vpop.permute.xlu1 %2671 }
 0x8d0   :  { %v3216_v12 = vmax.f32 %v3056_v41, %v3136_v0  ;;  %v3057_v26 = vadd.f32 %v8324_v56, %v2672_v5 }
 0x8d1   :  { %2797 = vbcast.lane.b32.xlu1 %v8297_v49, 264 }
 0x8d2   :  { %v3137_v3 = vmul.f32 0.2, %v3057_v26  ;;  %v8342_v32 = vadd.f32 %v8339_v17, %v3216_v12  ;;  %v8401_v12 = vld [vmem:[#allocation6 + $0x58] sm:$0xff] }
 0x8d3   :  { %v2676_v13 = vpop.permute.xlu1 %2675 }
 0x8d4   :  { %v3217_v25 = vmax.f32 %v3057_v26, %v3137_v3  ;;  %v3058_v45 = vadd.f32 %v8324_v56, %v2676_v13  ;;  %3378 = vmax.xlane.f32.xlu0 %v8342_v32 }
 0x8d5   :  { %2805 = vbcast.lane.b32.xlu1 %v8297_v49, 280 }
 0x8d6   :  { %v3138_v14 = vmul.f32 0.2, %v3058_v45  ;;  %v8350_v50 = vadd.f32 %v8347_v60, %v3217_v25  ;;  %v3005_v25 = vcombine.high %v8316_v16, %v8316_v16 }
 0x8d7   :  { %v8352_v21 = vpop.permute.xlu1 %2679 }
 0x8d8   :  { %v3218_v51 = vmax.f32 %v3058_v45, %v3138_v14  ;;  %3380 = vmax.xlane.f32.xlu0 %v8350_v50  ;;  %v8412_v45 = vld [vmem:[#allocation6 + $0x60] sm:$0xff] }
 0x8d9   :  { %2809 = vbcast.lane.b32.xlu1 %v8297_v49, 288 }
 0x8da   :  { %v8359_v47 = vadd.f32 %v8356_v28, %v3218_v51 }
 0x8db   :  { %v2684_v11 = vpop.permute.xlu1 %2683 }
 0x8dc   :  { %v3060_v24 = vadd.f32 %v8324_v56, %v2684_v11  ;;  %3382 = vmax.xlane.f32.xlu0 %v8359_v47 }
 0x8dd   :  { %2817 = vbcast.lane.b32.xlu1 %v8297_v49, 304 }
 0x8de   :  { %v3140_v10 = vmul.f32 0.2, %v3060_v24 }
 0x8df   :  { %v2688_v1 = vpop.permute.xlu1 %2687 }
 0x8e0   :  { %v3220_v39 = vmax.f32 %v3060_v24, %v3140_v10  ;;  %v3061_v57 = vadd.f32 %v8324_v56, %v2688_v1  ;;  %v8421_v24 = vrot.slane %v3005_v25, %v10159_v43 }
 0x8e1   :  { %2821 = vbcast.lane.b32.xlu1 %v8297_v49, 312 }
 0x8e2   :  { %v3141_v44 = vmul.f32 0.2, %v3061_v57  ;;  %v8369_v6 = vadd.f32 %v8366_v62, %v3220_v39  ;;  %v8427_v39 = vrot.slane %v8421_v24, %v10154_v4 }
 0x8e3   :  { %v2692_v58 = vpop.permute.xlu1 %2691 }
 0x8e4   :  { %v3221_v19 = vmax.f32 %v3061_v57, %v3141_v44  ;;  %v3062_v7 = vadd.f32 %v8324_v56, %v2692_v58  ;;  %3386 = vmax.xlane.f32.xlu0 %v8369_v6  ;;  %v8429_v44 = vld [vmem:[#allocation6 + $0x70] sm:$0xff] }
 0x8e5   :  { %2825 = vbcast.lane.b32.xlu1 %v8297_v49, 320 }
 0x8e6   :  { %v3142_v31 = vmul.f32 0.2, %v3062_v7  ;;  %v8377_v61 = vadd.f32 %v8374_v22, %v3221_v19 }
 0x8e7   :  { %v8379_v33 = vpop.permute.xlu1 %2695 }
 0x8e8   :  { %v3222_v2 = vmax.f32 %v3062_v7, %v3142_v31  ;;  %3388 = vmax.xlane.f32.xlu0 %v8377_v61 }
 0x8e9   :  { %2833 = vbcast.lane.b32.xlu1 %v8297_v49, 336 }
 0x8ea   :  { %v8386_v53 = vadd.f32 %v8383_v35, %v3222_v2 }
 0x8eb   :  { %v2700_v40 = vpop.permute.xlu1 %2699 }
 0x8ec   :  { %v3064_v52 = vadd.f32 %v8324_v56, %v2700_v40  ;;  %3390 = vmax.xlane.f32.xlu0 %v8386_v53  ;;  %v8437_v40 = vld [vmem:[#allocation6 + $0x78] sm:$0xff] }
 0x8ed   :  { %2837 = vbcast.lane.b32.xlu1 %v8297_v49, 344 }
 0x8ee   :  { %v3144_v27 = vmul.f32 0.2, %v3064_v52 }
 0x8ef   :  { %v2704_v30 = vpop.permute.xlu1 %2703 }
 0x8f0   :  { %v3224_v46 = vmax.f32 %v3064_v52, %v3144_v27  ;;  %v3065_v18 = vadd.f32 %v8324_v56, %v2704_v30 }
 0x8f1   :  { %2841 = vbcast.lane.b32.xlu1 %v8297_v49, 352 }
 0x8f2   :  { %v3145_v63 = vmul.f32 0.2, %v3065_v18  ;;  %v8396_v34 = vadd.f32 %v8393_v8, %v3224_v46 }
 0x8f3   :  { %v2708_v55 = vpop.permute.xlu1 %2707 }
 0x8f4   :  { %10163 = vst [vmem:[#allocation38_spill] sm:$0xff] %v8396_v34  ;;  %v3225_v41 = vmax.f32 %v3065_v18, %v3145_v63  ;;  %v3066_v0 = vadd.f32 %v8324_v56, %v2708_v55  ;;  %3394 = vmax.xlane.f32.xlu0 %v8396_v34 }
 0x8f5   :  { %2849 = vbcast.lane.b32.xlu1 %v8297_v49, 368 }
 0x8f6   :  { %v3146_v5 = vmul.f32 0.2, %v3066_v0  ;;  %v8404_v26 = vadd.f32 %v8401_v12, %v3225_v41 }
 0x8f7   :  { %v8406_v3 = vpop.permute.xlu1 %2711 }
 0x8f8   :  { %v3226_v13 = vmax.f32 %v3066_v0, %v3146_v5  ;;  %3396 = vmax.xlane.f32.xlu0 %v8404_v26 }
 0x8f9   :  { %2853 = vbcast.lane.b32.xlu1 %v8297_v49, 376 }
 0x8fa   :  { %v8415_v14 = vadd.f32 %v8412_v45, %v3226_v13 }
 0x8fb   :  { %v2716_v51 = vpop.permute.xlu1 %2715 }
 0x8fc   :  { %10164 = vst [vmem:[#allocation39_spill] sm:$0xff] %v8415_v14  ;;  %v3068_v11 = vadd.f32 %v8324_v56, %v2716_v51  ;;  %3398 = vmax.xlane.f32.xlu0 %v8415_v14 }
 0x8fd   :  { %2860 = vbcast.lane.b32.xlu1 %v8304_v42, 256 }
 0x8fe   :  { %v3148_v10 = vmul.f32 0.2, %v3068_v11 }
 0x8ff   :  { %v2720_v49 = vpop.permute.xlu1 %2719 }
 0x900   :  { %v3228_v1 = vmax.f32 %v3068_v11, %v3148_v10  ;;  %v3069_v16 = vadd.f32 %v8324_v56, %v2720_v49 }
 0x901   :  { %2868 = vbcast.lane.b32.xlu1 %v8304_v42, 272 }
 0x902   :  { %v3149_v57 = vmul.f32 0.2, %v3069_v16  ;;  %v8432_v58 = vadd.f32 %v8429_v44, %v3228_v1 }
 0x903   :  { %v2727_v19 = vpop.permute.xlu1 %2726 }
 0x904   :  { %10165 = vst [vmem:[#allocation42_spill] sm:$0xff] %v8432_v58  ;;  %v3229_v7 = vmax.f32 %v3069_v16, %v3149_v57  ;;  %v3070_v31 = vadd.f32 %v8427_v39, %v2727_v19  ;;  %3402 = vmax.xlane.f32.xlu0 %v8432_v58  ;;  %v2755_v16 = vpop.permute.xlu0 %2754 }
 0x905   :  { %2872 = vbcast.lane.b32.xlu1 %v8304_v42, 280 }
 0x906   :  { %v3150_v2 = vmul.f32 0.2, %v3070_v31  ;;  %v8440_v52 = vadd.f32 %v8437_v40, %v3229_v7  ;;  %v3077_v7 = vadd.f32 %v8427_v39, %v2755_v16 }
 0x907   :  { %v8442_v27 = vpop.permute.xlu1 %2730 }
 0x908   :  { %v3230_v30 = vmax.f32 %v3070_v31, %v3150_v2  ;;  %3404 = vmax.xlane.f32.xlu0 %v8440_v52 }
 0x909   :  { %2876 = vbcast.lane.b32.xlu1 %v8304_v42, 288 }
 0x90a   :  { %v8447_v46 = vadd.f32 %v8329_v37, %v3230_v30 }
 0x90b   :  { %v2735_v18 = vpop.permute.xlu1 %2734 }
 0x90c   :  { %10166 = vst [vmem:[#allocation43_spill] sm:$0xff] %v8447_v46  ;;  %v3072_v63 = vadd.f32 %v8427_v39, %v2735_v18  ;;  %3406 = vmax.xlane.f32.xlu0 %v8447_v46  ;;  %v3157_v18 = vmul.f32 0.2, %v3077_v7 }
 0x90d   :  { %2884 = vbcast.lane.b32.xlu1 %v8304_v42, 304 }
 0x90e   :  { %v3152_v55 = vmul.f32 0.2, %v3072_v63 }
 0x90f   :  { %v2739_v41 = vpop.permute.xlu1 %2738 }
 0x910   :  { %v3232_v0 = vmax.f32 %v3072_v63, %v3152_v55  ;;  %v3073_v5 = vadd.f32 %v8427_v39, %v2739_v41 }
 0x911   :  { %2888 = vbcast.lane.b32.xlu1 %v8304_v42, 312 }
 0x912   :  { %v3153_v13 = vmul.f32 0.2, %v3073_v5  ;;  %v8455_v25 = vadd.f32 %v8339_v17, %v3232_v0 }
 0x913   :  { %v2743_v51 = vpop.permute.xlu1 %2742 }
 0x914   :  { %10167 = vst [vmem:[#allocation46_spill] sm:$0xff] %v8455_v25  ;;  %v3233_v11 = vmax.f32 %v3073_v5, %v3153_v13  ;;  %v3074_v10 = vadd.f32 %v8427_v39, %v2743_v51  ;;  %3410 = vmax.xlane.f32.xlu0 %v8455_v25  ;;  %v3237_v5 = vmax.f32 %v3077_v7, %v3157_v18 }
 0x915   :  { %2892 = vbcast.lane.b32.xlu1 %v8304_v42, 320 }
 0x916   :  { %v3154_v49 = vmul.f32 0.2, %v3074_v10  ;;  %v8461_v1 = vadd.f32 %v8347_v60, %v3233_v11 }
 0x917   :  { %v8463_v57 = vpop.permute.xlu1 %2746 }
 0x918   :  { %v3234_v19 = vmax.f32 %v3074_v10, %v3154_v49  ;;  %3412 = vmax.xlane.f32.xlu0 %v8461_v1  ;;  %v8484_v49 = vadd.f32 %v8374_v22, %v3237_v5 }
 0x919   :  { %2900 = vbcast.lane.b32.xlu1 %v8304_v42, 336 }
 0x91a   :  { %v8469_v31 = vadd.f32 %v8356_v28, %v3234_v19  ;;  %10170 = vst [vmem:[#allocation59_spill] sm:$0xff] %v8484_v49 }
 0x91b   :  { %v2751_v2 = vpop.permute.xlu1 %2750 }
 0x91c   :  { %10168 = vst [vmem:[#allocation47_spill] sm:$0xff] %v8469_v31  ;;  %v3076_v30 = vadd.f32 %v8427_v39, %v2751_v2  ;;  %3414 = vmax.xlane.f32.xlu0 %v8469_v31 }
 0x91d   :  { %2904 = vbcast.lane.b32.xlu1 %v8304_v42, 344 }
 0x91e   :  { %v3156_v63 = vmul.f32 0.2, %v3076_v30 }
 0x91f   :  { %v2759_v55 = vpop.permute.xlu1 %2758 }
 0x920   :  { %v3236_v41 = vmax.f32 %v3076_v30, %v3156_v63  ;;  %v3078_v0 = vadd.f32 %v8427_v39, %v2759_v55 }
 0x921   :  { %2908 = vbcast.lane.b32.xlu1 %v8304_v42, 352 }
 0x922   :  { %v3158_v13 = vmul.f32 0.2, %v3078_v0  ;;  %v8477_v51 = vadd.f32 %v8366_v62, %v3236_v41 }
 0x923   :  { %v8479_v11 = vpop.permute.xlu1 %2762 }
 0x924   :  { %10169 = vst [vmem:[#allocation62_spill] sm:$0xff] %v8477_v51  ;;  %3418 = vmax.xlane.f32.xlu0 %v8477_v51  ;;  %v3238_v10 = vmax.f32 %v3078_v0, %v3158_v13 }
 0x925   :  { %2916 = vbcast.lane.b32.xlu1 %v8304_v42, 368 }
 0x926   :  { %v8490_v2 = vadd.f32 %v8383_v35, %v3238_v10 }
 0x927   :  { %v2767_v16 = vpop.permute.xlu1 %2766 }
 0x928   :  { %v3080_v19 = vadd.f32 %v8427_v39, %v2767_v16  ;;  %3420 = vmax.xlane.f32.xlu0 %v8484_v49  ;;  %10171 = vst [vmem:[#allocation19_spill] sm:$0xff] %v8490_v2 }
 0x929   :  { %2920 = vbcast.lane.b32.xlu1 %v8304_v42, 376 }
 0x92a   :  { %v3160_v7 = vmul.f32 0.2, %v3080_v19 }
 0x92b   :  { %v2771_v30 = vpop.permute.xlu1 %2770 }
 0x92c   :  { %v3240_v18 = vmax.f32 %v3080_v19, %v3160_v7  ;;  %v3081_v63 = vadd.f32 %v8427_v39, %v2771_v30  ;;  %3422 = vmax.xlane.f32.xlu0 %v8490_v2 }
 0x92d   :  { %2927 = vbcast.lane.b32.xlu1 %v8310_v36, 256 }
 0x92e   :  { %v3161_v55 = vmul.f32 0.2, %v3081_v63  ;;  %v8496_v41 = vadd.f32 %v8393_v8, %v3240_v18  ;;  %v3027_v18 = vcombine.high %v8320_v23, %v8320_v23 }
 0x92f   :  { %v2775_v0 = vpop.permute.xlu1 %2774 }
 0x930   :  { %10172 = vst [vmem:[#allocation31_spill] sm:$0xff] %v8496_v41  ;;  %v3241_v5 = vmax.f32 %v3081_v63, %v3161_v55  ;;  %v3082_v42 = vadd.f32 %v8427_v39, %v2775_v0  ;;  %3426 = vmax.xlane.f32.xlu0 %v8496_v41  ;;  %v2802_v0 = vpop.permute.xlu0 %2801 }
 0x931   :  { %2935 = vbcast.lane.b32.xlu1 %v8310_v36, 272 }
 0x932   :  { %v3162_v13 = vmul.f32 0.2, %v3082_v42  ;;  %v8502_v10 = vadd.f32 %v8401_v12, %v3241_v5 }
 0x933   :  { %v8504_v16 = vpop.permute.xlu1 %2778 }
 0x934   :  { %10173 = vst [vmem:[#allocation49_spill] sm:$0xff] %v8502_v10  ;;  %v3242_v19 = vmax.f32 %v3082_v42, %v3162_v13  ;;  %3428 = vmax.xlane.f32.xlu0 %v8502_v10  ;;  %v8516_v42 = vrot.slane %v3027_v18, %v10154_v4  ;;  %v3083_v41 = vadd.f32 %v8427_v39, %v8504_v16 }
 0x935   :  { %2939 = vbcast.lane.b32.xlu1 %v8310_v36, 280 }
 0x936   :  { %v8509_v7 = vadd.f32 %v8412_v45, %v3242_v19  ;;  %v3088_v19 = vadd.f32 %v8516_v42, %v2802_v0 }
 0x937   :  { %v2783_v30 = vpop.permute.xlu1 %2782 }
 0x938   :  { %10174 = vst [vmem:[#allocation60_spill] sm:$0xff] %v8509_v7  ;;  %v3084_v63 = vadd.f32 %v8427_v39, %v2783_v30  ;;  %3430 = vmax.xlane.f32.xlu0 %v8509_v7  ;;  %v3168_v20 = vmul.f32 0.2, %v3088_v19 }
 0x93a   :  { %v3164_v55 = vmul.f32 0.2, %v3084_v63  ;;  %v3248_v0 = vmax.f32 %v3088_v19, %v3168_v20  ;;  %v3059_v19 = vadd.f32 %v8324_v56, %v8352_v21 }
 0x93b   :  { %v2787_v5 = vpop.permute.xlu1 %2786 }
 0x93c   :  { %v3244_v13 = vmax.f32 %v3084_v63, %v3164_v55  ;;  %v3085_v9 = vadd.f32 %v8427_v39, %v2787_v5 }
 0x93e   :  { %v3165_v29 = vmul.f32 0.2, %v3085_v9  ;;  %v8521_v15 = vadd.f32 %v8429_v44, %v3244_v13 }
 0x93f   :  { %v2794_v23 = vpop.permute.xlu1 %2793 }
 0x940   :  { %10175 = vst [vmem:[#allocation21_spill] sm:$0xff] %v8521_v15  ;;  %v3245_v38 = vmax.f32 %v3085_v9, %v3165_v29  ;;  %v3086_v30 = vadd.f32 %v8516_v42, %v2794_v23  ;;  %3434 = vmax.xlane.f32.xlu0 %v8521_v15  ;;  %v8535_v23 = vadd.f32 %v8339_v17, %v3248_v0 }
 0x941   :  { %v3063_v0 = vadd.f32 %v8324_v56, %v8379_v33 }
 0x942   :  { %v3166_v7 = vmul.f32 0.2, %v3086_v30  ;;  %v8526_v18 = vadd.f32 %v8437_v40, %v3245_v38  ;;  %10178 = vst [vmem:[#allocation61_spill] sm:$0xff] %v8535_v23  ;;  %v3055_v38 = vadd.f32 %v8324_v56, %v8327_v54  ;;  %v3067_v54 = vadd.f32 %v8324_v56, %v8406_v3 }
 0x943   :  { %v2798_v63 = vpop.permute.xlu1 %2797 }
 0x944   :  { %10176 = vst [vmem:[#allocation27_spill] sm:$0xff] %v8526_v18  ;;  %v3246_v55 = vmax.f32 %v3086_v30, %v3166_v7  ;;  %3436 = vmax.xlane.f32.xlu0 %v8526_v18  ;;  %v3135_v7 = vmul.f32 0.2, %v3055_v38 }
 0x946   :  { %v8530_v5 = vadd.f32 %v8329_v37, %v3246_v55  ;;  %v3215_v30 = vmax.f32 %v3055_v38, %v3135_v7  ;;  %v3139_v55 = vmul.f32 0.2, %v3059_v19  ;;  %v3071_v38 = vadd.f32 %v8427_v39, %v8442_v27  ;;  %v8558_v7 = vld [vmem:[#allocation6 + $0x28] sm:$0xff] }
 0x947   :  { %v2806_v13 = vpop.permute.xlu1 %2805 }
 0x948   :  { %10177 = vst [vmem:[#allocation50_spill] sm:$0xff] %v8530_v5  ;;  %v3089_v29 = vadd.f32 %v8516_v42, %v2806_v13  ;;  %3438 = vmax.xlane.f32.xlu0 %v8530_v5  ;;  %v3219_v13 = vmax.f32 %v3059_v19, %v3139_v55  ;;  %v3143_v5 = vmul.f32 0.2, %v3063_v0  ;;  %v3151_v3 = vmul.f32 0.2, %v3071_v38 }
 0x949   :  { %v3075_v19 = vadd.f32 %v8427_v39, %v8463_v57 }
 0x94a   :  { %v3169_v9 = vmul.f32 0.2, %v3089_v29  ;;  %v3223_v21 = vmax.f32 %v3063_v0, %v3143_v5  ;;  %v8561_v33 = vadd.f32 %v8558_v7, %v3219_v13  ;;  %v3231_v27 = vmax.f32 %v3071_v38, %v3151_v3 }
 0x94b   :  { %v2810_v55 = vpop.permute.xlu1 %2809  ;;  %v3155_v0 = vmul.f32 0.2, %v3075_v19  ;;  %v3079_v13 = vadd.f32 %v8427_v39, %v8479_v11  ;;  %v3163_v3 = vmul.f32 0.2, %v3083_v41 }
 0x94c   :  { %v3249_v15 = vmax.f32 %v3089_v29, %v3169_v9  ;;  %3442 = vmax.xlane.f32.xlu0 %v8535_v23  ;;  %v8550_v29 = vld [vmem:[#allocation6 + $0x8] sm:$0xff]  ;;  %v3147_v9 = vmul.f32 0.2, %v3067_v54 }
 0x94d   :  { %v8574_v23 = vld [vmem:[#allocation6 + $0x68] sm:$0xff]  ;;  %v8584_v38 = vadd.f32 %v8550_v29, %v3231_v27 }
 0x94e   :  { %v8541_v20 = vadd.f32 %v8347_v60, %v3249_v15  ;;  %v8553_v15 = vadd.f32 %v8550_v29, %v3215_v30  ;;  %v3227_v56 = vmax.f32 %v3067_v54, %v3147_v9  ;;  %v8566_v30 = vld [vmem:[#allocation6 + $0x48] sm:$0xff]  ;;  %v3159_v9 = vmul.f32 0.2, %v3079_v13 }
 0x94f   :  { %v8569_v5 = vadd.f32 %v8566_v30, %v3223_v21  ;;  %v2818_v57 = vpop.permute.xlu1 %2817  ;;  %v3235_v21 = vmax.f32 %v3075_v19, %v3155_v0  ;;  %v3243_v19 = vmax.f32 %v3083_v41, %v3163_v3 }
 0x950   :  { %10179 = vst [vmem:[#allocation22_spill] sm:$0xff] %v8541_v20  ;;  %3444 = vmax.xlane.f32.xlu0 %v8541_v20  ;;  %v8577_v54 = vadd.f32 %v8574_v23, %v3227_v56  ;;  %v3239_v11 = vmax.f32 %v3079_v13, %v3159_v9  ;;  %v3087_v56 = vadd.f32 %v8516_v42, %v2798_v63 }
 0x951   :  { %v8589_v20 = vadd.f32 %v8558_v7, %v3235_v21  ;;  %v8597_v27 = vadd.f32 %v8574_v23, %v3243_v19  ;;  %v3090_v63 = vadd.f32 %v8516_v42, %v2810_v55  ;;  %v3092_v9 = vadd.f32 %v8516_v42, %v2818_v57  ;;  %v2814_v55 = vpop.permute.xlu0 %2813 }
 0x952   :  { %v3167_v0 = vmul.f32 0.2, %v3087_v56  ;;  %v8593_v51 = vadd.f32 %v8566_v30, %v3239_v11 }
 0x953   :  { %10180 = vst [vmem:[#allocation51_spill] sm:$0xff] %v8589_v20  ;;  %v2822_v2 = vpop.permute.xlu1 %2821  ;;  %10182 = vst [vmem:[#allocation56_spill] sm:$0xff] %v8597_v27  ;;  %v3170_v41 = vmul.f32 0.2, %v3090_v63  ;;  %v3172_v31 = vmul.f32 0.2, %v3092_v9 }
 0x954   :  { %10181 = vst [vmem:[#allocation63_spill] sm:$0xff] %v8593_v51  ;;  %v3247_v16 = vmax.f32 %v3087_v56, %v3167_v0  ;;  %v3093_v56 = vadd.f32 %v8516_v42, %v2822_v2 }
 0x955   :  { %v3250_v3 = vmax.f32 %v3090_v63, %v3170_v41  ;;  %v3252_v19 = vmax.f32 %v3092_v9, %v3172_v31  ;;  %v8617_v57 = vpop.permute.xlu0 %2829 }
 0x956   :  { %v8602_v13 = vadd.f32 %v8550_v29, %v3247_v16  ;;  %v3173_v0 = vmul.f32 0.2, %v3093_v56 }
 0x957   :  { %v2826_v39 = vpop.permute.xlu1 %2825  ;;  %v8608_v18 = vadd.f32 %v8356_v28, %v3250_v3 }
 0x958   :  { %10183 = vst [vmem:[#allocation54_spill] sm:$0xff] %v8602_v13  ;;  %v3253_v16 = vmax.f32 %v3093_v56, %v3173_v0 }
 0x959   :  { %3376 = vmax.xlane.f32.xlu1 %v8553_v15  ;;  %10184 = vst [vmem:[#allocation64_spill] sm:$0xff] %v8608_v18  ;;  %v8627_v2 = vpop.permute.xlu0 %2845 }
 0x95a   :  { %v8623_v31 = vadd.f32 %v8374_v22, %v3253_v16  ;;  %v3091_v16 = vadd.f32 %v8516_v42, %v2814_v55 }
 0x95b   :  { %v2834_v21 = vpop.permute.xlu1 %2833 }
 0x95c   :  { %10186 = vst [vmem:[#allocation65_spill] sm:$0xff] %v8623_v31  ;;  %v3096_v17 = vadd.f32 %v8516_v42, %v2834_v21 }
 0x95d   :  { %3384 = vmax.xlane.f32.xlu1 %v8561_v33 }
 0x95f   :  { %v2838_v11 = vpop.permute.xlu1 %2837 }
 0x961   :  { %3392 = vmax.xlane.f32.xlu1 %v8569_v5 }
 0x963   :  { %v8610_v25 = vpop.permute.xlu1 %2841 }
 0x965   :  { %3400 = vmax.xlane.f32.xlu1 %v8577_v54 }
 0x966   :  { %2947 = vbcast.lane.b32.xlu0 %v8310_v36, 296 }
 0x967   :  { %v8619_v63 = vpop.permute.xlu1 %2849 }
 0x969   :  { %3408 = vmax.xlane.f32.xlu1 %v8584_v38 }
 0x96b   :  { %v8629_v41 = vpop.permute.xlu1 %2853 }
 0x96d   :  { %3416 = vmax.xlane.f32.xlu1 %v8589_v20 }
 0x96f   :  { %v8634_v9 = vpop.permute.xlu1 %2860 }
 0x971   :  { %3424 = vmax.xlane.f32.xlu1 %v8593_v51  ;;  %v3094_v51 = vadd.f32 %v8516_v42, %v2826_v39 }
 0x973   :  { %v8638_v56 = vpop.permute.xlu1 %2868  ;;  %v3174_v55 = vmul.f32 0.2, %v3094_v51 }
 0x975   :  { %3432 = vmax.xlane.f32.xlu1 %v8597_v27 }
 0x977   :  { %v8642_v0 = vpop.permute.xlu1 %2872 }
 0x979   :  { %3440 = vmax.xlane.f32.xlu1 %v8602_v13  ;;  %v8614_v13 = vadd.f32 %v8366_v62, %v3252_v19  ;;  %v8632_v62 = vpop.permute.xlu0 %2864 }
 0x97b   :  { %10185 = vst [vmem:[#allocation32_spill] sm:$0xff] %v8614_v13 }
 0x97d   :  { %v8636_v3 = vpop.permute.xlu0 %2880 }
 0x981   :  { %v8640_v19 = vpop.permute.xlu0 %2896 }
 0x985   :  { %3446 = vmax.xlane.f32.xlu0 %v8608_v18  ;;  %v8648_v18 = vpop.permute.xlu1 %2876 }
 0x986   :  { %10187 = vst [vmem:[#allocation23_spill] sm:$0xff] %v8648_v18 }
 0x989   :  { %3450 = vmax.xlane.f32.xlu0 %v8614_v13  ;;  %v8646_v13 = vpop.permute.xlu0 %2912  ;;  %v8652_v46 = vpop.permute.xlu1 %2884 }
 0x98a   :  { %2943 = vbcast.lane.b32.xlu1 %v8310_v36, 288  ;;  %10189 = vst [vmem:[#allocation35_spill] sm:$0xff] %v8652_v46  ;;  %v3176_v46 = vmul.f32 0.2, %v3096_v17 }
 0x98c   :  { %v3256_v39 = vmax.f32 %v3096_v17, %v3176_v46 }
 0x98d   :  { %3452 = vmax.xlane.f32.xlu0 %v8623_v31  ;;  %v3171_v31 = vmul.f32 0.2, %v3091_v16  ;;  %v8650_v27 = vpop.permute.xlu0 %2931  ;;  %v8655_v28 = vpop.permute.xlu1 %2888 }
 0x98e   :  { %2951 = vbcast.lane.b32.xlu1 %v8310_v36, 304  ;;  %10188 = vst [vmem:[#allocation66_spill] sm:$0xff] %v8650_v27  ;;  %v3254_v27 = vmax.f32 %v3094_v51, %v3174_v55  ;;  %v8676_v21 = vadd.f32 %v8393_v8, %v3256_v39 }
 0x98f   :  { %v3251_v10 = vmax.f32 %v3091_v16, %v3171_v31  ;;  %v3097_v31 = vadd.f32 %v8516_v42, %v2838_v11 }
 0x990   :  { %10194 = vst [vmem:[#allocation26_spill] sm:$0xff] %v8676_v21 }
 0x991   :  { %v3375_v58 = vpop.xlane.xlu0 %3374  ;;  %v8658_v14 = vadd.f32 %v8558_v7, %v3251_v10  ;;  %v8664_v34 = vpop.permute.xlu1 %2892  ;;  %v3177_v20 = vmul.f32 0.2, %v3097_v31  ;;  %v8670_v10 = vadd.f32 %v8383_v35, %v3254_v27 }
 0x992   :  { %2955 = vbcast.lane.b32.xlu1 %v8310_v36, 312  ;;  %10191 = vst [vmem:[#allocation20_spill] sm:$0xff] %v8664_v34 }
 0x993   :  { %10190 = vst [vmem:[#allocation57_spill] sm:$0xff] %v8658_v14  ;;  %10193 = vst [vmem:[#allocation52_spill] sm:$0xff] %v8670_v10 }
 0x995   :  { %v8660_v49 = vpop.xlane.xlu0 %3378  ;;  %v8667_v18 = vpop.permute.xlu1 %2900 }
 0x996   :  { %10192 = vst [vmem:[#allocation37_spill] sm:$0xff] %v8667_v18 }
 0x999   :  { %v3381_v16 = vpop.xlane.xlu0 %3380  ;;  %v8680_v55 = vpop.permute.xlu1 %2904 }
 0x99d   :  { %v8672_v43 = vpop.xlane.xlu0 %3382  ;;  %v8691_v46 = vpop.permute.xlu1 %2908 }
 0x99e   :  { %10196 = vst [vmem:[#allocation55_spill] sm:$0xff] %v8691_v46 }
 0x9a1   :  { %v8678_v51 = vpop.xlane.xlu0 %3386 }
 0x9a3   :  { %2963 = vbcast.lane.b32.xlu0 %v8310_v36, 328 }
 0x9a5   :  { %v8689_v35 = vpop.xlane.xlu0 %3388 }
 0x9a9   :  { %v8694_v8 = vpop.xlane.xlu0 %3390 }
 0x9ad   :  { %v8698_v27 = vpop.xlane.xlu0 %3394 }
 0x9ae   :  { %10198 = vst [vmem:[#allocation24_spill] sm:$0xff] %v8698_v27  ;;  %v3534_v27 = vsub.f32 %v8332_v59, %v3375_v58  ;;  %v3537_v59 = vsub.f32 %v8350_v50, %v3381_v16 }
 0x9b6   :  { %3448 = vmax.xlane.f32.xlu1 %v8658_v14  ;;  %v3257_v14 = vmax.f32 %v3097_v31, %v3177_v20  ;;  %v8696_v20 = vpop.permute.xlu1 %2916 }
 0x9b7   :  { %10197 = vst [vmem:[#allocation30_spill] sm:$0xff] %v8696_v20 }
 0x9b8   :  { %v8685_v17 = vadd.f32 %v8401_v12, %v3257_v14  ;;  %v8702_v14 = vpop.xlane.xlu0 %3396 }
 0x9ba   :  { %10195 = vst [vmem:[#allocation53_spill] sm:$0xff] %v8685_v17  ;;  %v8700_v11 = vpop.permute.xlu1 %2920 }
 0x9bb   :  { %10199 = vst [vmem:[#allocation25_spill] sm:$0xff] %v8700_v11  ;;  %v3614_v11 = vmul.f32 1.442695, %v3534_v27 }
 0x9bc   :  { %v8707_v39 = vpop.xlane.xlu0 %3398 }
 0x9bd   :  { %10201 = vst [vmem:[#allocation28_spill] sm:$0xff] %v8707_v39  ;;  %v3098_v39 = vadd.f32 %v8516_v42, %v8610_v25  ;;  %6045 = vpow2.f32 %v3614_v11  ;;  %v3620_v25 = vmul.f32 1.442695, %v3537_v59  ;;  %v3028_v11 = vcombine.high %v8421_v24, %v8421_v24 }
 0x9be   :  { %v8704_v31 = vpop.permute.xlu1 %2927  ;;  %v3541_v59 = vsub.f32 %v8377_v61, %v8689_v35 }
 0x9bf   :  { %10200 = vst [vmem:[#allocation41_spill] sm:$0xff] %v8704_v31 }
 0x9c2   :  { %3454 = vmax.xlane.f32.xlu0 %v8670_v10  ;;  %v3095_v10 = vadd.f32 %v8516_v42, %v8617_v57 }
 0x9c4   :  { %v3175_v20 = vmul.f32 0.2, %v3095_v10 }
 0x9c6   :  { %3458 = vmax.xlane.f32.xlu0 %v8676_v21  ;;  %v8709_v21 = vpop.permute.xlu1 %2935  ;;  %v3255_v34 = vmax.f32 %v3095_v10, %v3175_v20 }
 0x9c7   :  { %2959 = vbcast.lane.b32.xlu1 %v8310_v36, 320  ;;  %10202 = vst [vmem:[#allocation40_spill] sm:$0xff] %v8709_v21 }
 0x9c8   :  { %v8724_v37 = vadd.f32 %v8566_v30, %v3255_v34  ;;  %v3101_v34 = vadd.f32 %v8516_v42, %v8629_v41 }
 0x9ca   :  { %3460 = vmax.xlane.f32.xlu0 %v8685_v17  ;;  %v8713_v17 = vpop.xlane.xlu0 %3402  ;;  %v8715_v46 = vpop.permute.xlu1 %2939 }
 0x9cb   :  { %2967 = vbcast.lane.b32.xlu1 %v8310_v36, 336  ;;  %10203 = vst [vmem:[#allocation29_spill] sm:$0xff] %v8713_v17  ;;  %10204 = vst [vmem:[#allocation45_spill] sm:$0xff] %v8715_v46  ;;  %v3178_v17 = vmul.f32 0.2, %v3098_v39  ;;  %v8743_v16 = vpop.eup %6045 }
 0x9cd   :  { %v3258_v58 = vmax.f32 %v3098_v39, %v3178_v17 }
 0x9ce   :  { %v8717_v18 = vpop.xlane.xlu0 %3404 }
 0x9cf   :  { %2971 = vbcast.lane.b32.xlu1 %v8310_v36, 344 }
 0x9d2   :  { %v8726_v57 = vpop.xlane.xlu0 %3406 }
 0x9d6   :  { %v8729_v10 = vpop.xlane.xlu0 %3410 }
 0x9da   :  { %v8732_v20 = vpop.xlane.xlu0 %3412 }
 0x9de   :  { %v8745_v17 = vpop.xlane.xlu0 %3414 }
 0x9e0   :  { %2979 = vbcast.lane.b32.xlu0 %v8310_v36, 360 }
 0x9e2   :  { %v3377_v31 = vpop.xlane.xlu1 %3376  ;;  %v8756_v39 = vpop.xlane.xlu0 %3418 }
 0x9e3   :  { %v3535_v21 = vsub.f32 %v8553_v15, %v3377_v31  ;;  %v8737_v15 = vadd.f32 %v8412_v45, %v3258_v58 }
 0x9e5   :  { %v3616_v46 = vmul.f32 1.442695, %v3535_v21  ;;  %v3181_v21 = vmul.f32 0.2, %v3101_v34 }
 0x9e6   :  { %v3385_v27 = vpop.xlane.xlu1 %3384 }
 0x9e7   :  { %6047 = vpow2.f32 %v3616_v46  ;;  %v3539_v50 = vsub.f32 %v8561_v33, %v3385_v27  ;;  %v8748_v46 = vrot.slane %v3028_v11, %v10154_v4  ;;  %v3261_v24 = vmax.f32 %v3101_v34, %v3181_v21 }
 0x9e8   :  { %6049 = vpow2.f32 %v3620_v25  ;;  %v3628_v34 = vmul.f32 1.442695, %v3541_v59 }
 0x9e9   :  { %v3103_v45 = vadd.f32 %v8748_v46, %v8632_v62  ;;  %v3624_v41 = vmul.f32 1.442695, %v3539_v50  ;;  %v8763_v58 = vadd.f32 %v8437_v40, %v3261_v24  ;;  %v8766_v62 = vpop.xlane.xlu0 %3420  ;;  %v3105_v27 = vadd.f32 %v8748_v46, %v8642_v0 }
 0x9ea   :  { %v3393_v21 = vpop.xlane.xlu1 %3392 }
 0x9eb   :  { %v3183_v33 = vmul.f32 0.2, %v3103_v45  ;;  %6051 = vpow2.f32 %v3624_v41  ;;  %v3185_v61 = vmul.f32 0.2, %v3105_v27  ;;  %v3543_v35 = vsub.f32 %v8569_v5, %v3393_v21 }
 0x9ec   :  { %6053 = vpow2.f32 %v3628_v34  ;;  %v3545_v5 = vsub.f32 %v8404_v26, %v8702_v14 }
 0x9ed   :  { %v3263_v25 = vmax.f32 %v3103_v45, %v3183_v33  ;;  %v8778_v24 = vpop.xlane.xlu0 %3422  ;;  %v3265_v0 = vmax.f32 %v3105_v27, %v3185_v61  ;;  %v3632_v45 = vmul.f32 1.442695, %v3543_v35  ;;  %v3109_v27 = vadd.f32 %v8748_v46, %v8655_v28 }
 0x9ee   :  { %v3401_v35 = vpop.xlane.xlu1 %3400  ;;  %v3536_v28 = vsub.f32 %v8342_v32, %v8660_v49  ;;  %v3549_v49 = vsub.f32 %v8440_v52, %v8717_v18 }
 0x9ef   :  { %v8776_v50 = vadd.f32 %v8550_v29, %v3263_v25  ;;  %6055 = vpow2.f32 %v3632_v45  ;;  %v8791_v25 = vadd.f32 %v8347_v60, %v3265_v0  ;;  %v3189_v26 = vmul.f32 0.2, %v3109_v27 }
 0x9f0   :  { %v3547_v14 = vsub.f32 %v8577_v54, %v3401_v35  ;;  %v3111_v45 = vadd.f32 %v8748_v46, %v8640_v19  ;;  %v3100_v35 = vadd.f32 %v8516_v42, %v8619_v63  ;;  %v3113_v63 = vadd.f32 %v8748_v46, %v8680_v55 }
 0x9f1   :  { %v8786_v33 = vpop.xlane.xlu0 %3426 }
 0x9f2   :  { %v3191_v32 = vmul.f32 0.2, %v3111_v45  ;;  %v3193_v55 = vmul.f32 0.2, %v3113_v63 }
 0x9f3   :  { %3456 = vmax.xlane.f32.xlu1 %v8724_v37 }
 0x9f4   :  { %v8754_v31 = vpop.eup %6047 }
 0x9f5   :  { %v8771_v11 = vpop.eup %6049  ;;  %v8798_v61 = vpop.xlane.xlu0 %3428 }
 0x9f8   :  { %v8783_v41 = vpop.eup %6051 }
 0x9f9   :  { %10205 = vst [vmem:[#allocation44_spill] sm:$0xff] %v8783_v41  ;;  %v8796_v21 = vpop.eup %6053  ;;  %v8810_v0 = vpop.xlane.xlu0 %3430 }
 0x9fa   :  { %10206 = vst [vmem:[#allocation33_spill] sm:$0xff] %v8796_v21 }
 0x9ff   :  { %3462 = vmax.xlane.f32.xlu0 %v8737_v15 }
 0xa03   :  { %3774 = vadd.xlane.f32.xlu0 %v8743_v16 }
 0xa04   :  { %2975 = vbcast.lane.b32.xlu1 %v8310_v36, 352 }
 0xa07   :  { %3776 = vadd.xlane.f32.xlu0 %v8754_v31 }
 0xa08   :  { %2983 = vbcast.lane.b32.xlu1 %v8310_v36, 368 }
 0xa0b   :  { %3468 = vmax.xlane.f32.xlu0 %v8763_v58 }
 0xa0c   :  { %2987 = vbcast.lane.b32.xlu1 %v8310_v36, 376  ;;  %v3107_v36 = vadd.f32 %v8748_v46, %v8636_v3  ;;  %v3636_v3 = vmul.f32 1.442695, %v3545_v5  ;;  %v3640_v5 = vmul.f32 1.442695, %v3547_v14 }
 0xa0d   :  { %v3180_v14 = vmul.f32 0.2, %v3100_v35 }
 0xa0e   :  { %v3187_v59 = vmul.f32 0.2, %v3107_v36  ;;  %6057 = vpow2.f32 %v3636_v3  ;;  %v8814_v3 = vpop.eup %6055 }
 0xa0f   :  { %3780 = vadd.xlane.f32.xlu0 %v8771_v11  ;;  %10207 = vst [vmem:[#allocation67_spill] sm:$0xff] %v8814_v3  ;;  %6059 = vpow2.f32 %v3640_v5  ;;  %v3260_v18 = vmax.f32 %v3100_v35, %v3180_v14  ;;  %v3553_v14 = vsub.f32 %v8461_v1, %v8732_v20  ;;  %v10212_v1 = vld [vmem:[#allocation25_spill] sm:$0xff] }
 0xa10   :  { %v3267_v34 = vmax.f32 %v3107_v36, %v3187_v59  ;;  %v3099_v36 = vadd.f32 %v8516_v42, %v8627_v2  ;;  %v3269_v59 = vmax.f32 %v3109_v27, %v3189_v26  ;;  %v8819_v2 = vpop.xlane.xlu0 %3434  ;;  %v3538_v26 = vsub.f32 %v8359_v47, %v8672_v43 }
 0xa11   :  { %v3271_v42 = vmax.f32 %v3111_v45, %v3191_v32  ;;  %v3117_v20 = vadd.f32 %v8748_v46, %v10212_v1 }
 0xa12   :  { %v8803_v60 = vadd.f32 %v8558_v7, %v3267_v34  ;;  %v3179_v54 = vmul.f32 0.2, %v3099_v36  ;;  %v3618_v34 = vmul.f32 1.442695, %v3536_v28  ;;  %v8824_v19 = vadd.f32 %v8374_v22, %v3269_v59  ;;  %v3409_v28 = vpop.xlane.xlu1 %3408 }
 0xa13   :  { %3472 = vmax.xlane.f32.xlu0 %v8776_v50  ;;  %v3622_v52 = vmul.f32 1.442695, %v3538_v26  ;;  %v3102_v22 = vadd.f32 %v8748_v46, %v8634_v9  ;;  %v3551_v45 = vsub.f32 %v8584_v38, %v3409_v28  ;;  %v8846_v59 = vadd.f32 %v8566_v30, %v3271_v42 }
 0xa14   :  { %v3259_v27 = vmax.f32 %v3099_v36, %v3179_v54  ;;  %6061 = vpow2.f32 %v3618_v34  ;;  %v8835_v36 = vpop.xlane.xlu0 %3436  ;;  %v3540_v9 = vsub.f32 %v8369_v6, %v8678_v51  ;;  %v8851_v54 = vadd.f32 %v8429_v44, %v3260_v18  ;;  %v10211_v18 = vld [vmem:[#allocation18_spill] sm:$0xff] }
 0xa15   :  { %v3182_v5 = vmul.f32 0.2, %v3102_v22  ;;  %v3115_v38 = vadd.f32 %v8748_v46, %v8646_v13  ;;  %v3648_v35 = vmul.f32 1.442695, %v3551_v45  ;;  %v3104_v6 = vadd.f32 %v8748_v46, %v8638_v56 }
 0xa16   :  { %v8838_v43 = vadd.f32 %v8574_v23, %v3259_v27  ;;  %v8841_v47 = vpop.xlane.xlu1 %3416  ;;  %v2990_v26 = vcombine.high %v8286_v48, %v8286_v48  ;;  %v3542_v42 = vsub.f32 %v8386_v53, %v8694_v8  ;;  %v10210_v48 = vld [vmem:[#allocation58_spill] sm:$0xff]  ;;  %v3652_v45 = vmul.f32 1.442695, %v3553_v14 }
 0xa17   :  { %3784 = vadd.xlane.f32.xlu0 %v8783_v41  ;;  %v3262_v27 = vmax.f32 %v3102_v22, %v3182_v5  ;;  %v3195_v13 = vmul.f32 0.2, %v3115_v38  ;;  %v3184_v56 = vmul.f32 0.2, %v3104_v6  ;;  %v10214_v5 = vld [vmem:[#allocation23_spill] sm:$0xff]  ;;  %v10232_v41 = vld [vmem:[#allocation20_spill] sm:$0xff] }
 0xa18   :  { %v8854_v34 = vpop.xlane.xlu0 %3438  ;;  %v3004_v22 = vrot.slane %v2990_v26, %v10211_v18  ;;  %v3630_v8 = vmul.f32 1.442695, %v3542_v42  ;;  %v10216_v26 = vld [vmem:[#allocation51_spill] sm:$0xff]  ;;  %v10218_v42 = vld [vmem:[#allocation38_spill] sm:$0xff] }
 0xa19   :  { %v3264_v53 = vmax.f32 %v3104_v6, %v3184_v56  ;;  %v10217_v56 = vld [vmem:[#allocation24_spill] sm:$0xff] }
 0xa1a   :  { %v8863_v44 = vpop.xlane.xlu1 %3424 }
 0xa1b   :  { %3476 = vmax.xlane.f32.xlu0 %v8791_v25 }
 0xa1f   :  { %3788 = vadd.xlane.f32.xlu0 %v8796_v21  ;;  %v8831_v21 = vpop.eup %6057 }
 0xa20   :  { %10208 = vst [vmem:[#allocation68_spill] sm:$0xff] %v8831_v21  ;;  %v8859_v32 = vpop.eup %6059 }
 0xa21   :  { %10209 = vst [vmem:[#allocation69_spill] sm:$0xff] %v8859_v32  ;;  %v8865_v51 = vpop.eup %6061 }
 0xa23   :  { %3480 = vmax.xlane.f32.xlu0 %v8803_v60 }
 0xa27   :  { %3792 = vadd.xlane.f32.xlu0 %v8814_v3  ;;  %v3644_v3 = vmul.f32 1.442695, %v3549_v49  ;;  %v3626_v49 = vmul.f32 1.442695, %v3540_v9 }
 0xa29   :  { %6063 = vpow2.f32 %v3644_v3  ;;  %v3273_v3 = vmax.f32 %v3113_v63, %v3193_v55  ;;  %v8878_v63 = vpop.xlane.xlu0 %3442  ;;  %v8885_v55 = vpop.xlane.xlu1 %3432 }
 0xa2a   :  { %6065 = vpow2.f32 %v3622_v52  ;;  %v8881_v52 = vadd.f32 %v10210_v48, %v3262_v27  ;;  %v3544_v48 = vsub.f32 %v10218_v42, %v10217_v56 }
 0xa2b   :  { %3484 = vmax.xlane.f32.xlu0 %v8824_v19  ;;  %6067 = vpow2.f32 %v3648_v35  ;;  %v8874_v28 = vadd.f32 %v8401_v12, %v3273_v3  ;;  %v3275_v12 = vmax.f32 %v3115_v38, %v3195_v13  ;;  %v3106_v3 = vadd.f32 %v8748_v46, %v10214_v5 }
 0xa2c   :  { %6069 = vpow2.f32 %v3626_v49  ;;  %v3019_v49 = vrot.slane %v3004_v22, %v10211_v18  ;;  %v3197_v38 = vmul.f32 0.2, %v3117_v20  ;;  %v3555_v13 = vsub.f32 %v10216_v26, %v8841_v47  ;;  %v10219_v22 = vld [vmem:[#allocation48_spill] sm:$0xff]  ;;  %v10220_v47 = vld [vmem:[#allocation66_spill] sm:$0xff] }
 0xa2d   :  { %v8898_v27 = vpop.xlane.xlu0 %3444  ;;  %6071 = vpow2.f32 %v3652_v45  ;;  %v8904_v6 = vadd.f32 %v8574_v23, %v3275_v12  ;;  %v3186_v14 = vmul.f32 0.2, %v3106_v3  ;;  %v8908_v18 = vpop.xlane.xlu1 %3440  ;;  %v8911_v1 = vadd.f32 %v10219_v22, %v3264_v53 }
 0xa2e   :  { %6073 = vpow2.f32 %v3630_v8  ;;  %v8914_v5 = vrot.slane %v3019_v49, %v10154_v4  ;;  %v3277_v45 = vmax.f32 %v3117_v20, %v3197_v38  ;;  %v3656_v8 = vmul.f32 1.442695, %v3555_v13  ;;  %v10224_v20 = vld [vmem:[#allocation59_spill] sm:$0xff] }
 0xa2f   :  { %3796 = vadd.xlane.f32.xlu0 %v8831_v21  ;;  %v3266_v56 = vmax.f32 %v3106_v3, %v3186_v14  ;;  %v3634_v42 = vmul.f32 1.442695, %v3544_v48  ;;  %v3557_v38 = vsub.f32 %v10224_v20, %v8766_v62  ;;  %v10227_v14 = vld [vmem:[#allocation39_spill] sm:$0xff]  ;;  %v10230_v62 = vld [vmem:[#allocation45_spill] sm:$0xff] }
 0xa30   :  { %3464 = vmax.xlane.f32.xlu1 %v8838_v43  ;;  %v3119_v12 = vadd.f32 %v8914_v5, %v10220_v47  ;;  %6075 = vpow2.f32 %v3656_v8  ;;  %v8933_v3 = vadd.f32 %v8437_v40, %v3277_v45  ;;  %v3121_v8 = vadd.f32 %v8914_v5, %v10230_v62 }
 0xa31   :  { %v2948_v22 = vpop.permute.xlu0 %2947  ;;  %v8927_v49 = vpop.permute.xlu1 %2943  ;;  %6077 = vpow2.f32 %v3634_v42  ;;  %v3660_v40 = vmul.f32 1.442695, %v3557_v38 }
 0xa32   :  { %v3199_v4 = vmul.f32 0.2, %v3119_v12  ;;  %10225 = vst [vmem:[#allocation51_spill] sm:$0xff] %v8933_v3 }
 0xa33   :  { %3488 = vmax.xlane.f32.xlu0 %v8846_v59  ;;  %6079 = vpow2.f32 %v3660_v40 }
 0xa34   :  { %3466 = vmax.xlane.f32.xlu1 %v8851_v54 }
 0xa35   :  { %v8937_v47 = vpop.xlane.xlu0 %3446 }
 0xa36   :  { %v8890_v9 = vpop.eup %6063 }
 0xa37   :  { %3800 = vadd.xlane.f32.xlu0 %v8859_v32  ;;  %10213 = vst [vmem:[#allocation58_spill] sm:$0xff] %v8890_v9  ;;  %v8894_v35 = vpop.eup %6065 }
 0xa38   :  { %3778 = vadd.xlane.f32.xlu1 %v8865_v51  ;;  %10215 = vst [vmem:[#allocation18_spill] sm:$0xff] %v8894_v35  ;;  %v8920_v26 = vpop.eup %6067 }
 0xa39   :  { %10221 = vst [vmem:[#allocation25_spill] sm:$0xff] %v8920_v26  ;;  %v8924_v32 = vpop.eup %6069 }
 0xa3a   :  { %10223 = vst [vmem:[#allocation23_spill] sm:$0xff] %v8924_v32  ;;  %v8946_v45 = vpop.eup %6071 }
 0xa3b   :  { %3492 = vmax.xlane.f32.xlu0 %v8874_v28  ;;  %10231 = vst [vmem:[#allocation38_spill] sm:$0xff] %v8946_v45 }
 0xa3c   :  { %3470 = vmax.xlane.f32.xlu1 %v8881_v52 }
 0xa3f   :  { %3804 = vadd.xlane.f32.xlu0 %v8890_v9  ;;  %v10222_v9 = vld [vmem:[#allocation35_spill] sm:$0xff] }
 0xa40   :  { %3782 = vadd.xlane.f32.xlu1 %v8894_v35  ;;  %v3108_v53 = vadd.f32 %v8748_v46, %v10222_v9  ;;  %v10226_v9 = vld [vmem:[#allocation28_spill] sm:$0xff] }
 0xa41   :  { %v3546_v48 = vsub.f32 %v10227_v14, %v10226_v9  ;;  %v3110_v9 = vadd.f32 %v8748_v46, %v10232_v41  ;;  %v8950_v14 = vpop.permute.xlu1 %2951  ;;  %v8965_v35 = vld [vmem:[#allocation6 + $0x30] sm:$0xff] }
 0xa42   :  { %v3188_v13 = vmul.f32 0.2, %v3108_v53 }
 0xa43   :  { %3496 = vmax.xlane.f32.xlu0 %v8904_v6  ;;  %v3638_v20 = vmul.f32 1.442695, %v3546_v48  ;;  %v3190_v41 = vmul.f32 0.2, %v3110_v9  ;;  %v10237_v48 = vld [vmem:[#allocation42_spill] sm:$0xff] }
 0xa44   :  { %3474 = vmax.xlane.f32.xlu1 %v8911_v1  ;;  %v3268_v42 = vmax.f32 %v3108_v53, %v3188_v13  ;;  %v10236_v13 = vld [vmem:[#allocation29_spill] sm:$0xff] }
 0xa45   :  { %6081 = vpow2.f32 %v3638_v20  ;;  %v3548_v62 = vsub.f32 %v10237_v48, %v10236_v13  ;;  %v3270_v20 = vmax.f32 %v3110_v9, %v3190_v41  ;;  %v6395_v9 = vld [vmem:[#allocation6 + $0x18] sm:$0xff] }
 0xa47   :  { %3808 = vadd.xlane.f32.xlu0 %v8920_v26  ;;  %v10228_v26 = vld [vmem:[#allocation34_spill] sm:$0xff]  ;;  %v3642_v48 = vmul.f32 1.442695, %v3548_v62  ;;  %v10244_v62 = vld [vmem:[#allocation43_spill] sm:$0xff] }
 0xa48   :  { %3786 = vadd.xlane.f32.xlu1 %v8924_v32  ;;  %v8940_v21 = vadd.f32 %v10228_v26, %v3266_v56  ;;  %v3279_v32 = vmax.f32 %v3119_v12, %v3199_v4  ;;  %v8952_v26 = vpop.eup %6073  ;;  %v8955_v56 = vpop.xlane.xlu0 %3450  ;;  %v3201_v4 = vmul.f32 0.2, %v3121_v8  ;;  %v10234_v12 = vld [vmem:[#allocation63_spill] sm:$0xff] }
 0xa49   :  { %10233 = vst [vmem:[#allocation48_spill] sm:$0xff] %v8952_v26  ;;  %v3559_v38 = vsub.f32 %v10234_v12, %v8863_v44  ;;  %v3123_v44 = vadd.f32 %v8914_v5, %v2948_v22  ;;  %v10240_v12 = vld [vmem:[#allocation37_spill] sm:$0xff] }
 0xa4a   :  { %10229 = vst [vmem:[#allocation24_spill] sm:$0xff] %v8940_v21  ;;  %v8961_v53 = vadd.f32 %v8550_v29, %v3279_v32  ;;  %v3281_v40 = vmax.f32 %v3121_v8, %v3201_v4  ;;  %v8973_v32 = vpop.eup %6075  ;;  %v3112_v13 = vadd.f32 %v8748_v46, %v10240_v12  ;;  %v10242_v22 = vld [vmem:[#allocation49_spill] sm:$0xff]  ;;  %v3550_v12 = vsub.f32 %v10244_v62, %v8726_v57 }
 0xa4b   :  { %3500 = vmax.xlane.f32.xlu0 %v8933_v3  ;;  %v3664_v29 = vmul.f32 1.442695, %v3559_v38  ;;  %10239 = vst [vmem:[#allocation59_spill] sm:$0xff] %v8973_v32  ;;  %v3561_v8 = vsub.f32 %v10242_v22, %v8798_v61  ;;  %v3203_v4 = vmul.f32 0.2, %v3123_v44 }
 0xa4c   :  { %3478 = vmax.xlane.f32.xlu1 %v8940_v21  ;;  %10235 = vst [vmem:[#allocation66_spill] sm:$0xff] %v8961_v53  ;;  %v8977_v3 = vpop.xlane.xlu0 %3452  ;;  %v8987_v38 = vadd.f32 %v6395_v9, %v3281_v40  ;;  %v3192_v41 = vmul.f32 0.2, %v3112_v13  ;;  %v10247_v9 = vld [vmem:[#allocation55_spill] sm:$0xff]  ;;  %v3646_v62 = vmul.f32 1.442695, %v3550_v12 }
 0xa4d   :  { %6083 = vpow2.f32 %v3664_v29  ;;  %v3668_v61 = vmul.f32 1.442695, %v3561_v8  ;;  %v3283_v29 = vmax.f32 %v3123_v44, %v3203_v4  ;;  %v3114_v57 = vadd.f32 %v8748_v46, %v10247_v9  ;;  %v9018_v9 = vld [vmem:[#allocation6 + $0x50] sm:$0xff] }
 0xa4e   :  { %10243 = vst [vmem:[#allocation39_spill] sm:$0xff] %v8987_v38  ;;  %6085 = vpow2.f32 %v3642_v48  ;;  %v3272_v48 = vmax.f32 %v3112_v13, %v3192_v41  ;;  %v10251_v41 = vld [vmem:[#allocation46_spill] sm:$0xff] }
 0xa4f   :  { %3812 = vadd.xlane.f32.xlu0 %v8946_v45  ;;  %v8968_v45 = vadd.f32 %v8965_v35, %v3268_v42  ;;  %v8979_v42 = vpop.eup %6077  ;;  %6087 = vpow2.f32 %v3668_v61  ;;  %v9014_v13 = vadd.f32 %v8558_v7, %v3283_v29  ;;  %v3194_v4 = vmul.f32 0.2, %v3114_v57 }
 0xa50   :  { %3790 = vadd.xlane.f32.xlu1 %v8952_v26  ;;  %v2956_v26 = vpop.permute.xlu1 %2955  ;;  %10241 = vst [vmem:[#allocation28_spill] sm:$0xff] %v8979_v42  ;;  %v8999_v22 = vpop.eup %6079  ;;  %6089 = vpow2.f32 %v3646_v62  ;;  %v3552_v12 = vsub.f32 %v10251_v41, %v8729_v10 }
 0xa51   :  { %10238 = vst [vmem:[#allocation35_spill] sm:$0xff] %v8968_v45  ;;  %v3125_v40 = vadd.f32 %v8914_v5, %v2956_v26  ;;  %10246 = vst [vmem:[#allocation45_spill] sm:$0xff] %v8999_v22  ;;  %v10249_v26 = vld [vmem:[#allocation56_spill] sm:$0xff]  ;;  %v3274_v62 = vmax.f32 %v3114_v57, %v3194_v4 }
 0xa52   :  { %v3563_v44 = vsub.f32 %v10249_v26, %v8885_v55  ;;  %10250 = vst [vmem:[#allocation63_spill] sm:$0xff] %v9014_v13  ;;  %v3650_v41 = vmul.f32 1.442695, %v3552_v12  ;;  %v9044_v12 = vld [vmem:[#allocation6 + $0x60] sm:$0xff] }
 0xa53   :  { %3504 = vmax.xlane.f32.xlu0 %v8961_v53  ;;  %v3205_v8 = vmul.f32 0.2, %v3125_v40 }
 0xa54   :  { %3482 = vmax.xlane.f32.xlu1 %v8968_v45  ;;  %v8982_v53 = vpop.xlane.xlu1 %3448  ;;  %v8991_v45 = vld [vmem:[#allocation6 + $0x40] sm:$0xff]  ;;  %v3672_v55 = vmul.f32 1.442695, %v3563_v44  ;;  %v10256_v44 = vld [vmem:[#allocation27_spill] sm:$0xff] }
 0xa55   :  { %v3285_v26 = vmax.f32 %v3125_v40, %v3205_v8  ;;  %v3565_v40 = vsub.f32 %v10256_v44, %v8835_v36  ;;  %v6398_v8 = vld [vmem:[#allocation6 + $0x38] sm:$0xff] }
 0xa56   :  { %6091 = vpow2.f32 %v3672_v55 }
 0xa57   :  { %3816 = vadd.xlane.f32.xlu0 %v8973_v32  ;;  %v8994_v32 = vadd.f32 %v8991_v45, %v3270_v20  ;;  %v9005_v20 = vpop.eup %6081  ;;  %6093 = vpow2.f32 %v3650_v41  ;;  %v3676_v36 = vmul.f32 1.442695, %v3565_v40 }
 0xa58   :  { %3794 = vadd.xlane.f32.xlu1 %v8979_v42  ;;  %v2964_v42 = vpop.permute.xlu0 %2963  ;;  %v9003_v21 = vpop.permute.xlu1 %2959  ;;  %10248 = vst [vmem:[#allocation20_spill] sm:$0xff] %v9005_v20 }
 0xa59   :  { %10245 = vst [vmem:[#allocation34_spill] sm:$0xff] %v8994_v32  ;;  %v3127_v7 = vadd.f32 %v8914_v5, %v2964_v42  ;;  %6095 = vpow2.f32 %v3676_v36 }
 0xa5a   :  { %v9028_v29 = vpop.eup %6083 }
 0xa5b   :  { %3508 = vmax.xlane.f32.xlu0 %v8987_v38  ;;  %10253 = vst [vmem:[#allocation42_spill] sm:$0xff] %v9028_v29  ;;  %v3207_v42 = vmul.f32 0.2, %v3127_v7 }
 0xa5c   :  { %3486 = vmax.xlane.f32.xlu1 %v8994_v32  ;;  %v9008_v38 = vpop.xlane.xlu0 %3454  ;;  %v9024_v61 = vpop.permute.xlu1 %2967 }
 0xa5d   :  { %v3287_v55 = vmax.f32 %v3127_v7, %v3207_v42 }
 0xa5f   :  { %3820 = vadd.xlane.f32.xlu0 %v8999_v22  ;;  %v9021_v22 = vadd.f32 %v9018_v9, %v3272_v48  ;;  %v9034_v48 = vpop.eup %6085  ;;  %v9065_v42 = vadd.f32 %v8566_v30, %v3287_v55 }
 0xa60   :  { %3798 = vadd.xlane.f32.xlu1 %v9005_v20  ;;  %v10254_v20 = vld [vmem:[#allocation30_spill] sm:$0xff]  ;;  %v9032_v32 = vpop.xlane.xlu0 %3458  ;;  %10255 = vst [vmem:[#allocation37_spill] sm:$0xff] %v9034_v48  ;;  %v2972_v4 = vpop.permute.xlu1 %2971 }
 0xa61   :  { %10252 = vst [vmem:[#allocation29_spill] sm:$0xff] %v9021_v22  ;;  %v3116_v10 = vadd.f32 %v8748_v46, %v10254_v20  ;;  %v10257_v46 = vld [vmem:[#allocation47_spill] sm:$0xff]  ;;  %v9054_v41 = vpop.eup %6087 }
 0xa62   :  { %v3554_v20 = vsub.f32 %v10257_v46, %v8745_v17  ;;  %10258 = vst [vmem:[#allocation49_spill] sm:$0xff] %v9054_v41  ;;  %v10259_v17 = vld [vmem:[#allocation41_spill] sm:$0xff] }
 0xa63   :  { %3512 = vmax.xlane.f32.xlu0 %v9014_v13  ;;  %v3196_v57 = vmul.f32 0.2, %v3116_v10  ;;  %v9058_v13 = vpop.eup %6089 }
 0xa64   :  { %3490 = vmax.xlane.f32.xlu1 %v9021_v22  ;;  %v9040_v22 = vadd.f32 %v6398_v8, %v3285_v26  ;;  %v3129_v26 = vadd.f32 %v8914_v5, %v2972_v4  ;;  %v3118_v8 = vadd.f32 %v8914_v5, %v10259_v17  ;;  %v3654_v46 = vmul.f32 1.442695, %v3554_v20  ;;  %10260 = vst [vmem:[#allocation43_spill] sm:$0xff] %v9058_v13  ;;  %v9069_v17 = vld [vmem:[#allocation6 + $0x70] sm:$0xff]  ;;  %v9077_v55 = vpop.eup %6091 }
 0xa65   :  { %v3276_v44 = vmax.f32 %v3116_v10, %v3196_v57  ;;  %v10262_v10 = vld [vmem:[#allocation62_spill] sm:$0xff]  ;;  %10264 = vst [vmem:[#allocation56_spill] sm:$0xff] %v9077_v55 }
 0xa66   :  { %v3209_v7 = vmul.f32 0.2, %v3129_v26  ;;  %v3198_v4 = vmul.f32 0.2, %v3118_v8  ;;  %6097 = vpow2.f32 %v3654_v46  ;;  %v3556_v57 = vsub.f32 %v10262_v10, %v8756_v39 }
 0xa67   :  { %3824 = vadd.xlane.f32.xlu0 %v9028_v29  ;;  %v9047_v29 = vadd.f32 %v9044_v12, %v3274_v62  ;;  %v10261_v62 = vld [vmem:[#allocation54_spill] sm:$0xff] }
 0xa68   :  { %3802 = vadd.xlane.f32.xlu1 %v9034_v48  ;;  %v9050_v48 = vpop.xlane.xlu0 %3460  ;;  %v3567_v40 = vsub.f32 %v10261_v62, %v8908_v18  ;;  %v3289_v36 = vmax.f32 %v3129_v26, %v3209_v7  ;;  %v3278_v46 = vmax.f32 %v3118_v8, %v3198_v4  ;;  %v10265_v62 = vld [vmem:[#allocation40_spill] sm:$0xff]  ;;  %v3658_v10 = vmul.f32 1.442695, %v3556_v57  ;;  %v10267_v7 = vld [vmem:[#allocation19_spill] sm:$0xff]  ;;  %v6402_v4 = vld [vmem:[#allocation6] sm:$0xff] }
 0xa69   :  { %v3120_v39 = vadd.f32 %v8914_v5, %v10265_v62  ;;  %v3558_v8 = vsub.f32 %v10267_v7, %v8778_v24  ;;  %v10270_v24 = vld [vmem:[#allocation22_spill] sm:$0xff] }
 0xa6a   :  { %v3680_v18 = vmul.f32 1.442695, %v3567_v40 }
 0xa6b   :  { %3516 = vmax.xlane.f32.xlu0 %v9040_v22  ;;  %v3200_v26 = vmul.f32 0.2, %v3120_v39 }
 0xa6c   :  { %3494 = vmax.xlane.f32.xlu1 %v9047_v29  ;;  %v2980_v20 = vpop.permute.xlu0 %2979  ;;  %6099 = vpow2.f32 %v3680_v18 }
 0xa6d   :  { %v3131_v30 = vadd.f32 %v8914_v5, %v2980_v20  ;;  %6101 = vpow2.f32 %v3658_v10  ;;  %v9089_v20 = vadd.f32 %v6402_v4, %v3278_v46  ;;  %v3280_v18 = vmax.f32 %v3120_v39, %v3200_v26 }
 0xa6e   :  { %v3569_v10 = vsub.f32 %v10270_v24, %v8898_v27  ;;  %v10272_v27 = vld [vmem:[#allocation57_spill] sm:$0xff] }
 0xa6f   :  { %3828 = vadd.xlane.f32.xlu0 %v9054_v41  ;;  %v9072_v41 = vadd.f32 %v9069_v17, %v3276_v44  ;;  %v3211_v44 = vmul.f32 0.2, %v3131_v30  ;;  %v3571_v4 = vsub.f32 %v10272_v27, %v8982_v53 }
 0xa70   :  { %3806 = vadd.xlane.f32.xlu1 %v9058_v13  ;;  %v9081_v13 = vpop.eup %6093 }
 0xa71   :  { %10263 = vst [vmem:[#allocation55_spill] sm:$0xff] %v9072_v41  ;;  %10266 = vst [vmem:[#allocation46_spill] sm:$0xff] %v9081_v13  ;;  %v3291_v62 = vmax.f32 %v3131_v30, %v3211_v44  ;;  %v10271_v30 = vld [vmem:[#allocation31_spill] sm:$0xff]  ;;  %v3688_v53 = vmul.f32 1.442695, %v3571_v4 }
 0xa72   :  { %v3560_v44 = vsub.f32 %v10271_v30, %v8786_v33 }
 0xa73   :  { %3520 = vmax.xlane.f32.xlu0 %v9065_v42  ;;  %v9108_v39 = vadd.f32 %v8574_v23, %v3291_v62  ;;  %v10274_v62 = vld [vmem:[#allocation65_spill] sm:$0xff] }
 0xa74   :  { %3498 = vmax.xlane.f32.xlu1 %v9072_v41  ;;  %v6401_v41 = vld [vmem:[#allocation6 + $0x58] sm:$0xff] }
 0xa75   :  { %v9085_v40 = vadd.f32 %v6401_v41, %v3289_v36  ;;  %v3122_v41 = vadd.f32 %v8914_v5, %v8927_v49  ;;  %v6403_v49 = vld [vmem:[#allocation6 + $0x10] sm:$0xff] }
 0xa76   :  { %v9110_v7 = vadd.f32 %v6403_v49, %v3280_v18  ;;  %v3573_v18 = vsub.f32 %v10274_v62, %v8977_v3  ;;  %v6404_v3 = vld [vmem:[#allocation6 + $0x20] sm:$0xff] }
 0xa77   :  { %3832 = vadd.xlane.f32.xlu0 %v9077_v55  ;;  %v9093_v55 = vpop.eup %6095  ;;  %v3202_v26 = vmul.f32 0.2, %v3122_v41 }
 0xa78   :  { %3810 = vadd.xlane.f32.xlu1 %v9081_v13  ;;  %10268 = vst [vmem:[#allocation30_spill] sm:$0xff] %v9093_v55  ;;  %v3662_v13 = vmul.f32 1.442695, %v3558_v8  ;;  %v9097_v36 = vpop.eup %6097  ;;  %v3684_v8 = vmul.f32 1.442695, %v3569_v10 }
 0xa79   :  { %10269 = vst [vmem:[#allocation27_spill] sm:$0xff] %v9097_v36  ;;  %v9118_v33 = vpop.eup %6099  ;;  %v3282_v23 = vmax.f32 %v3122_v41, %v3202_v26  ;;  %v3692_v27 = vmul.f32 1.442695, %v3573_v18  ;;  %v10277_v18 = vld [vmem:[#allocation53_spill] sm:$0xff] }
 0xa7a   :  { %6103 = vpow2.f32 %v3662_v13  ;;  %10273 = vst [vmem:[#allocation47_spill] sm:$0xff] %v9118_v33  ;;  %v3124_v13 = vadd.f32 %v8914_v5, %v8950_v14  ;;  %v9124_v10 = vpop.eup %6101 }
 0xa7b   :  { %3524 = vmax.xlane.f32.xlu0 %v9085_v40  ;;  %10275 = vst [vmem:[#allocation41_spill] sm:$0xff] %v9124_v10  ;;  %6105 = vpow2.f32 %v3684_v8  ;;  %v9133_v62 = vadd.f32 %v6404_v3, %v3282_v23  ;;  %v3577_v23 = vsub.f32 %v10277_v18, %v9050_v48 }
 0xa7c   :  { %v3457_v57 = vpop.xlane.xlu1 %3456  ;;  %3502 = vmax.xlane.f32.xlu1 %v9089_v20  ;;  %v3204_v26 = vmul.f32 0.2, %v3124_v13 }
 0xa7d   :  { %v3575_v8 = vsub.f32 %v8724_v37, %v3457_v57  ;;  %v3700_v48 = vmul.f32 1.442695, %v3577_v23 }
 0xa7f   :  { %3836 = vadd.xlane.f32.xlu0 %v9093_v55  ;;  %v3666_v55 = vmul.f32 1.442695, %v3560_v44  ;;  %v10276_v44 = vld [vmem:[#allocation60_spill] sm:$0xff] }
 0xa80   :  { %v9102_v46 = vpop.permute.xlu1 %2975  ;;  %3814 = vadd.xlane.f32.xlu1 %v9097_v36  ;;  %v3562_v14 = vsub.f32 %v10276_v44, %v8810_v0  ;;  %v3696_v44 = vmul.f32 1.442695, %v3575_v8  ;;  %v10279_v8 = vld [vmem:[#allocation50_spill] sm:$0xff] }
 0xa81   :  { %6107 = vpow2.f32 %v3666_v55  ;;  %v3284_v55 = vmax.f32 %v3124_v13, %v3204_v26  ;;  %v10278_v13 = vld [vmem:[#allocation21_spill] sm:$0xff] }
 0xa82   :  { %6109 = vpow2.f32 %v3688_v53  ;;  %v3670_v36 = vmul.f32 1.442695, %v3562_v14  ;;  %v6405_v53 = vld [vmem:[#allocation6 + $0x78] sm:$0xff] }
 0xa83   :  { %3528 = vmax.xlane.f32.xlu0 %v9108_v39  ;;  %6111 = vpow2.f32 %v3692_v27  ;;  %v9150_v14 = vadd.f32 %v8965_v35, %v3284_v55 }
 0xa84   :  { %v9115_v24 = vpop.permute.xlu1 %2983  ;;  %3506 = vmax.xlane.f32.xlu1 %v9110_v7 }
 0xa87   :  { %3840 = vadd.xlane.f32.xlu0 %v9118_v33  ;;  %v9139_v0 = vpop.eup %6103 }
 0xa88   :  { %v2988_v30 = vpop.permute.xlu1 %2987  ;;  %3818 = vadd.xlane.f32.xlu1 %v9124_v10  ;;  %v9128_v49 = vpop.xlane.xlu0 %3462 }
 0xa89   :  { %v3133_v41 = vadd.f32 %v8914_v5, %v2988_v30  ;;  %v3126_v30 = vadd.f32 %v8914_v5, %v9003_v21  ;;  %v3564_v21 = vsub.f32 %v10278_v13, %v8819_v2  ;;  %v3128_v2 = vadd.f32 %v8914_v5, %v9024_v61 }
 0xa8a   :  { %v3130_v13 = vadd.f32 %v8914_v5, %v9102_v46 }
 0xa8b   :  { %v3213_v4 = vmul.f32 0.2, %v3133_v41  ;;  %v3208_v55 = vmul.f32 0.2, %v3128_v2 }
 0xa8c   :  { %3510 = vmax.xlane.f32.xlu1 %v9133_v62  ;;  %v3775_v33 = vpop.xlane.xlu0 %3774  ;;  %v3210_v46 = vmul.f32 0.2, %v3130_v13 }
 0xa8d   :  { %v3293_v10 = vmax.f32 %v3133_v41, %v3213_v4  ;;  %6113 = vrcp.f32 %v3775_v33  ;;  %v3206_v41 = vmul.f32 0.2, %v3126_v30  ;;  %v9152_v33 = vpop.eup %6105  ;;  %v3566_v4 = vsub.f32 %v10279_v8, %v8854_v34 }
 0xa8e   :  { %v9158_v26 = vpop.eup %6107 }
 0xa8f   :  { %v9143_v37 = vadd.f32 %v6405_v53, %v3293_v10  ;;  %v3286_v27 = vmax.f32 %v3126_v30, %v3206_v41  ;;  %v9162_v35 = vpop.eup %6109  ;;  %v3678_v53 = vmul.f32 1.442695, %v3566_v4 }
 0xa90   :  { %3822 = vadd.xlane.f32.xlu1 %v9139_v0  ;;  %v3777_v57 = vpop.xlane.xlu0 %3776  ;;  %v9173_v30 = vpop.eup %6111 }
 0xa91   :  { %6115 = vrcp.f32 %v3777_v57  ;;  %3532 = vmax.xlane.f32.xlu0 %v9143_v37  ;;  %v9171_v18 = vadd.f32 %v8991_v45, %v3286_v27  ;;  %v3288_v57 = vmax.f32 %v3128_v2, %v3208_v55 }
 0xa92   :  { %6117 = vpow2.f32 %v3670_v36  ;;  %v3674_v36 = vmul.f32 1.442695, %v3564_v21 }
 0xa93   :  { %6119 = vpow2.f32 %v3696_v44  ;;  %v9194_v8 = vadd.f32 %v9018_v9, %v3288_v57 }
 0xa94   :  { %3514 = vmax.xlane.f32.xlu1 %v9150_v14  ;;  %v9155_v10 = vpop.xlane.xlu0 %3468  ;;  %6121 = vpow2.f32 %v3700_v48 }
 0xa95   :  { %3844 = vadd.xlane.f32.xlu0 %v9152_v33  ;;  %6123 = vpow2.f32 %v3674_v36  ;;  %v10280_v36 = vld [vmem:[#allocation61_spill] sm:$0xff] }
 0xa96   :  { %v3568_v27 = vsub.f32 %v10280_v36, %v8878_v63  ;;  %6125 = vpow2.f32 %v3678_v53  ;;  %v10281_v63 = vld [vmem:[#allocation64_spill] sm:$0xff] }
 0xa97   :  { %v3570_v55 = vsub.f32 %v10281_v63, %v8937_v47 }
 0xa98   :  { %3826 = vadd.xlane.f32.xlu1 %v9158_v26  ;;  %v9165_v3 = vpop.xlane.xlu0 %3780  ;;  %v3682_v4 = vmul.f32 1.442695, %v3568_v27 }
 0xa99   :  { %3848 = vadd.xlane.f32.xlu0 %v9162_v35  ;;  %v3686_v57 = vmul.f32 1.442695, %v3570_v55 }
 0xa9a   :  { %v6114_v61 = vpop.eup %6113  ;;  %6127 = vpow2.f32 %v3682_v4 }
 0xa9b   :  { %v4014_v45 = vmul.f32 %v6114_v61, %v8743_v16  ;;  %v3290_v61 = vmax.f32 %v3130_v13, %v3210_v46  ;;  %6129 = vpow2.f32 %v3686_v57 }
 0xa9c   :  { %3518 = vmax.xlane.f32.xlu1 %v9171_v18  ;;  %v9176_v23 = vpop.xlane.xlu0 %3472 }
 0xa9d   :  { %3852 = vadd.xlane.f32.xlu0 %v9173_v30  ;;  %v9214_v27 = vadd.f32 %v9044_v12, %v3290_v61  ;;  %v10284_v12 = vld [vmem:[#allocation26_spill] sm:$0xff] }
 0xa9e   :  { %v6116_v44 = vpop.eup %6115  ;;  %v3576_v63 = vsub.f32 %v10284_v12, %v9032_v32 }
 0xa9f   :  { %v9181_v34 = vpop.eup %6117  ;;  %v4015_v21 = vmul.f32 %v6116_v44, %v8754_v31  ;;  %v3132_v44 = vadd.f32 %v8914_v5, %v9115_v24  ;;  %v10283_v24 = vld [vmem:[#allocation52_spill] sm:$0xff] }
 0xaa0   :  { %v9185_v41 = vpop.eup %6119  ;;  %3830 = vadd.xlane.f32.xlu1 %v9181_v34  ;;  %v9188_v48 = vpop.xlane.xlu0 %3784  ;;  %v3574_v13 = vsub.f32 %v10283_v24, %v9008_v38  ;;  %v3578_v38 = vsub.f32 %v8737_v15, %v9128_v49  ;;  %v3698_v57 = vmul.f32 1.442695, %v3576_v63 }
 0xaa1   :  { %3856 = vadd.xlane.f32.xlu0 %v9185_v41  ;;  %v4094_v2 = vpack.c.bf16 %v4015_v21, %v4014_v45  ;;  %v9196_v16 = vpop.eup %6121  ;;  %v10282_v45 = vld [vmem:[#allocation32_spill] sm:$0xff]  ;;  %v3212_v36 = vmul.f32 0.2, %v3132_v44 }
 0xaa2   :  { %v9206_v53 = vpop.eup %6123  ;;  %v3572_v21 = vsub.f32 %v10282_v45, %v8955_v56  ;;  %v3694_v56 = vmul.f32 1.442695, %v3574_v13  ;;  %v3581_v45 = vsub.f32 %v8763_v58, %v9155_v10  ;;  %v3702_v32 = vmul.f32 1.442695, %v3578_v38 }
 0xaa3   :  { %5515 = vmatprep.mubr.bf16.mxu0 %v4094_v2  ;;  %v3292_v2 = vmax.f32 %v3132_v44, %v3212_v36  ;;  %v9221_v46 = vpop.eup %6125  ;;  %v3583_v58 = vsub.f32 %v8776_v50, %v9176_v23 }
 0xaa4   :  { %3522 = vmax.xlane.f32.xlu1 %v9194_v8  ;;  %v9199_v31 = vpop.xlane.xlu0 %3476  ;;  %v3690_v5 = vmul.f32 1.442695, %v3572_v21  ;;  %v3708_v24 = vmul.f32 1.442695, %v3581_v45 }
 0xaa5   :  { %3860 = vadd.xlane.f32.xlu0 %v9196_v16  ;;  %v9229_v55 = vadd.f32 %v9069_v17, %v3292_v2  ;;  %v3585_v12 = vsub.f32 %v8791_v25, %v9199_v31  ;;  %v3712_v38 = vmul.f32 1.442695, %v3583_v58 }
 0xaa6   :  { %6131 = vpow2.f32 %v3690_v5 }
 0xaa7   :  { %v9234_v44 = vpop.eup %6127  ;;  %6133 = vpow2.f32 %v3694_v56  ;;  %v3716_v23 = vmul.f32 1.442695, %v3585_v12 }
 0xaa8   :  { %3834 = vadd.xlane.f32.xlu1 %v9206_v53  ;;  %v9209_v9 = vpop.xlane.xlu0 %3788  ;;  %6135 = vpow2.f32 %v3698_v57  ;;  %v9242_v5 = vpop.eup %6129 }
 0xaa9   :  { %6137 = vpow2.f32 %v3702_v32 }
 0xaac   :  { %3526 = vmax.xlane.f32.xlu1 %v9214_v27  ;;  %v9217_v47 = vpop.xlane.xlu0 %3480 }
 0xaad   :  { %v3587_v45 = vsub.f32 %v8803_v60, %v9217_v47 }
 0xab0   :  { %3838 = vadd.xlane.f32.xlu1 %v9221_v46  ;;  %v9224_v4 = vpop.xlane.xlu0 %3792 }
 0xab3   :  { %v9248_v2 = vpop.eup %6131 }
 0xab4   :  { %3530 = vmax.xlane.f32.xlu1 %v9229_v55  ;;  %v3485_v61 = vpop.xlane.xlu0 %3484  ;;  %v9256_v50 = vpop.eup %6133 }
 0xab5   :  { %v9262_v32 = vpop.eup %6135 }
 0xab8   :  { %3842 = vadd.xlane.f32.xlu1 %v9234_v44  ;;  %v9239_v21 = vpop.xlane.xlu0 %3796 }
 0xab9   :  { %v3465_v17 = vpop.xlane.xlu1 %3464 }
 0xaba   :  { %v3579_v36 = vsub.f32 %v8838_v43, %v3465_v17  ;;  %v3589_v17 = vsub.f32 %v8824_v19, %v3485_v61 }
 0xabc   :  { %v3704_v15 = vmul.f32 1.442695, %v3579_v36  ;;  %3846 = vadd.xlane.f32.xlu1 %v9242_v5  ;;  %v3489_v49 = vpop.xlane.xlu0 %3488  ;;  %v3724_v47 = vmul.f32 1.442695, %v3589_v17 }
 0xabd   :  { %v3467_v13 = vpop.xlane.xlu1 %3466  ;;  %v3591_v19 = vsub.f32 %v8846_v59, %v3489_v49 }
 0xabe   :  { %6139 = vpow2.f32 %v3704_v15  ;;  %v3580_v10 = vsub.f32 %v8851_v54, %v3467_v13  ;;  %v3720_v15 = vmul.f32 1.442695, %v3587_v45 }
 0xabf   :  { %6141 = vpow2.f32 %v3708_v24  ;;  %v9269_v24 = vpop.eup %6137 }
 0xac0   :  { %v3706_v56 = vmul.f32 1.442695, %v3580_v10  ;;  %3850 = vadd.xlane.f32.xlu1 %v9248_v2  ;;  %v9251_v43 = vpop.xlane.xlu0 %3800  ;;  %6143 = vrcp.f32 %v9165_v3 }
 0xac1   :  { %v3779_v63 = vpop.xlane.xlu1 %3778 }
 0xac2   :  { %6145 = vpow2.f32 %v3706_v56 }
 0xac3   :  { %6147 = vrcp.f32 %v3779_v63 }
 0xac4   :  { %3854 = vadd.xlane.f32.xlu1 %v9256_v50  ;;  %v3493_v54 = vpop.xlane.xlu0 %3492  ;;  %6149 = vpow2.f32 %v3712_v38 }
 0xac5   :  { %v3471_v57 = vpop.xlane.xlu1 %3470  ;;  %6151 = vrcp.f32 %v9188_v48  ;;  %v3593_v38 = vsub.f32 %v8874_v28, %v3493_v54  ;;  %v10285_v54 = vld [vmem:[#allocation24_spill] sm:$0xff] }
 0xac6   :  { %v3582_v3 = vsub.f32 %v8881_v52, %v3471_v57  ;;  %6153 = vpow2.f32 %v3716_v23  ;;  %v3728_v57 = vmul.f32 1.442695, %v3591_v19 }
 0xac8   :  { %v3710_v25 = vmul.f32 1.442695, %v3582_v3  ;;  %3858 = vadd.xlane.f32.xlu1 %v9262_v32  ;;  %v9266_v31 = vpop.xlane.xlu0 %3804 }
 0xac9   :  { %v3783_v36 = vpop.xlane.xlu1 %3782 }
 0xaca   :  { %6155 = vpow2.f32 %v3710_v25  ;;  %v3732_v25 = vmul.f32 1.442695, %v3593_v38 }
 0xacb   :  { %v9271_v60 = vpop.eup %6139  ;;  %6157 = vrcp.f32 %v3783_v36 }
 0xacc   :  { %3864 = vadd.xlane.f32.xlu0 %v9271_v60  ;;  %3862 = vadd.xlane.f32.xlu1 %v9269_v24  ;;  %v3497_v52 = vpop.xlane.xlu0 %3496  ;;  %v9275_v48 = vpop.eup %6141  ;;  %6159 = vpow2.f32 %v3720_v15 }
 0xacd   :  { %v3475_v13 = vpop.xlane.xlu1 %3474  ;;  %v6144_v58 = vpop.eup %6143  ;;  %6161 = vrcp.f32 %v9209_v9  ;;  %v3595_v28 = vsub.f32 %v8904_v6, %v3497_v52  ;;  %v10287_v52 = vld [vmem:[#allocation18_spill] sm:$0xff] }
 0xace   :  { %v3584_v61 = vsub.f32 %v8911_v1, %v3475_v13  ;;  %6163 = vpow2.f32 %v3724_v47  ;;  %v4017_v1 = vmul.f32 %v6144_v58, %v8771_v11  ;;  %v10286_v58 = vld [vmem:[#allocation51_spill] sm:$0xff] }
 0xacf   :  { %v9279_v10 = vpop.eup %6145  ;;  %v3736_v6 = vmul.f32 1.442695, %v3595_v28  ;;  %v10290_v28 = vld [vmem:[#allocation35_spill] sm:$0xff] }
 0xad0   :  { %v3714_v56 = vmul.f32 1.442695, %v3584_v61  ;;  %3866 = vadd.xlane.f32.xlu1 %v9279_v10  ;;  %3868 = vadd.xlane.f32.xlu0 %v9275_v48  ;;  %v9284_v12 = vpop.xlane.xlu0 %3808  ;;  %v6148_v63 = vpop.eup %6147 }
 0xad1   :  { %v3787_v23 = vpop.xlane.xlu1 %3786  ;;  %v4016_v59 = vmul.f32 %v6148_v63, %v8865_v51  ;;  %v9289_v49 = vpop.eup %6149  ;;  %v10288_v63 = vld [vmem:[#allocation44_spill] sm:$0xff] }
 0xad2   :  { %6165 = vpow2.f32 %v3714_v56  ;;  %v6152_v3 = vpop.eup %6151 }
 0xad3   :  { %6167 = vrcp.f32 %v3787_v23  ;;  %v4095_v45 = vpack.c.bf16 %v4017_v1, %v4016_v59  ;;  %v9292_v36 = vpop.eup %6153  ;;  %v4019_v38 = vmul.f32 %v6152_v3, %v10288_v63 }
 0xad4   :  { %3872 = vadd.xlane.f32.xlu0 %v9289_v49  ;;  %v3501_v9 = vpop.xlane.xlu0 %3500  ;;  %6169 = vpow2.f32 %v3728_v57 }
 0xad5   :  { %v3479_v17 = vpop.xlane.xlu1 %3478  ;;  %5516 = vmatmul.mubr.bf16.vlgmr.msra.gmra.mxu0 %v4095_v45  ;;  %6171 = vrcp.f32 %v9224_v4  ;;  %v3597_v19 = vsub.f32 %v10286_v58, %v3501_v9  ;;  %v10289_v9 = vld [vmem:[#allocation66_spill] sm:$0xff] }
 0xad6   :  { %v3586_v51 = vsub.f32 %v10285_v54, %v3479_v17  ;;  %6173 = vpow2.f32 %v3732_v25 }
 0xad7   :  { %v9296_v15 = vpop.eup %6155  ;;  %v3740_v1 = vmul.f32 1.442695, %v3597_v19 }
 0xad8   :  { %v3718_v11 = vmul.f32 1.442695, %v3586_v51  ;;  %3870 = vadd.xlane.f32.xlu1 %v9296_v15  ;;  %3876 = vadd.xlane.f32.xlu0 %v9292_v36  ;;  %v9301_v47 = vpop.xlane.xlu0 %3812  ;;  %v6158_v13 = vpop.eup %6157 }
 0xad9   :  { %v3791_v61 = vpop.xlane.xlu1 %3790  ;;  %v4018_v56 = vmul.f32 %v6158_v13, %v10287_v52  ;;  %v9306_v23 = vpop.eup %6159  ;;  %v10292_v52 = vld [vmem:[#allocation33_spill] sm:$0xff] }
 0xada   :  { %6175 = vpow2.f32 %v3718_v11  ;;  %v6162_v59 = vpop.eup %6161 }
 0xadb   :  { %6177 = vrcp.f32 %v3791_v61  ;;  %v4096_v57 = vpack.c.bf16 %v4019_v38, %v4018_v56  ;;  %v9309_v25 = vpop.eup %6163  ;;  %v10291_v61 = vld [vmem:[#allocation23_spill] sm:$0xff]  ;;  %v4021_v56 = vmul.f32 %v6162_v59, %v10292_v52 }
 0xadc   :  { %3880 = vadd.xlane.f32.xlu0 %v9306_v23  ;;  %v3505_v4 = vpop.xlane.xlu0 %3504  ;;  %6179 = vpow2.f32 %v3736_v6  ;;  %v10297_v52 = vld [vmem:[#allocation67_spill] sm:$0xff] }
 0xadd   :  { %v3483_v45 = vpop.xlane.xlu1 %3482  ;;  %v3599_v17 = vsub.f32 %v10289_v9, %v3505_v4  ;;  %5519 = vmatprep.mubr.bf16.mxu0 %v4096_v57  ;;  %6181 = vrcp.f32 %v9239_v21  ;;  %v10293_v57 = vld [vmem:[#allocation39_spill] sm:$0xff] }
 0xade   :  { %v3588_v54 = vsub.f32 %v10290_v28, %v3483_v45  ;;  %6183 = vpow2.f32 %v3740_v1  ;;  %v10295_v1 = vld [vmem:[#allocation34_spill] sm:$0xff] }
 0xadf   :  { %v9313_v51 = vpop.eup %6165  ;;  %v3744_v19 = vmul.f32 1.442695, %v3599_v17 }
 0xae0   :  { %v3722_v3 = vmul.f32 1.442695, %v3588_v54  ;;  %3874 = vadd.xlane.f32.xlu1 %v9313_v51  ;;  %3884 = vadd.xlane.f32.xlu0 %v9309_v25  ;;  %v9318_v11 = vpop.xlane.xlu0 %3816  ;;  %v6168_v13 = vpop.eup %6167 }
 0xae1   :  { %v3795_v58 = vpop.xlane.xlu1 %3794  ;;  %v4020_v6 = vmul.f32 %v6168_v13, %v10291_v61  ;;  %v9322_v63 = vpop.eup %6169 }
 0xae2   :  { %6185 = vpow2.f32 %v3722_v3  ;;  %v6172_v4 = vpop.eup %6171 }
 0xae3   :  { %6187 = vrcp.f32 %v3795_v58  ;;  %v4097_v38 = vpack.c.bf16 %v4021_v56, %v4020_v6  ;;  %v9326_v28 = vpop.eup %6173  ;;  %v4023_v56 = vmul.f32 %v6172_v4, %v10297_v52  ;;  %v10302_v52 = vld [vmem:[#allocation28_spill] sm:$0xff] }
 0xae4   :  { %3888 = vadd.xlane.f32.xlu0 %v9322_v63  ;;  %v3509_v21 = vpop.xlane.xlu0 %3508  ;;  %10294 = vst [vmem:[#allocation54_spill] sm:$0xff] %v9326_v28  ;;  %6189 = vpow2.f32 %v3744_v19  ;;  %v10296_v19 = vld [vmem:[#allocation48_spill] sm:$0xff] }
 0xae5   :  { %v3601_v45 = vsub.f32 %v10293_v57, %v3509_v21  ;;  %v3487_v9 = vpop.xlane.xlu1 %3486  ;;  %5520 = vmatmul.mubr.bf16.gmra.mxu0 %v4097_v38  ;;  %6191 = vrcp.f32 %v9251_v43 }
 0xae6   :  { %v3590_v17 = vsub.f32 %v10295_v1, %v3487_v9 }
 0xae7   :  { %v9329_v54 = vpop.eup %6175  ;;  %v3748_v59 = vmul.f32 1.442695, %v3601_v45  ;;  %v10299_v45 = vld [vmem:[#allocation63_spill] sm:$0xff] }
 0xae8   :  { %v3726_v3 = vmul.f32 1.442695, %v3590_v17  ;;  %3878 = vadd.xlane.f32.xlu1 %v9329_v54  ;;  %3892 = vadd.xlane.f32.xlu0 %v9326_v28  ;;  %v9334_v13 = vpop.xlane.xlu0 %3820  ;;  %v6178_v58 = vpop.eup %6177 }
 0xae9   :  { %6193 = vpow2.f32 %v3748_v59  ;;  %v3799_v61 = vpop.xlane.xlu1 %3798  ;;  %v4022_v6 = vmul.f32 %v6178_v58, %v10296_v19  ;;  %v9338_v21 = vpop.eup %6179  ;;  %v10301_v59 = vld [vmem:[#allocation29_spill] sm:$0xff] }
 0xaea   :  { %6195 = vpow2.f32 %v3726_v3  ;;  %10298 = vst [vmem:[#allocation62_spill] sm:$0xff] %v9338_v21  ;;  %v6182_v57 = vpop.eup %6181 }
 0xaeb   :  { %6197 = vrcp.f32 %v3799_v61  ;;  %v4098_v38 = vpack.c.bf16 %v4023_v56, %v4022_v6  ;;  %v9342_v17 = vpop.eup %6183 }
 0xaec   :  { %3896 = vadd.xlane.f32.xlu0 %v9338_v21  ;;  %v3513_v43 = vpop.xlane.xlu0 %3512  ;;  %10300 = vst [vmem:[#allocation40_spill] sm:$0xff] %v9342_v17  ;;  %6199 = vrcp.f32 %v9266_v31 }
 0xaed   :  { %v3603_v9 = vsub.f32 %v10299_v45, %v3513_v43  ;;  %v3491_v1 = vpop.xlane.xlu1 %3490  ;;  %5523 = vmatprep.mubr.bf16.mxu0 %v4098_v38  ;;  %v10303_v43 = vld [vmem:[#allocation68_spill] sm:$0xff] }
 0xaee   :  { %v3592_v3 = vsub.f32 %v10301_v59, %v3491_v1  ;;  %v4025_v38 = vmul.f32 %v6182_v57, %v10303_v43 }
 0xaef   :  { %v9345_v28 = vpop.eup %6185  ;;  %v3752_v58 = vmul.f32 1.442695, %v3603_v9 }
 0xaf0   :  { %v3730_v4 = vmul.f32 1.442695, %v3592_v3  ;;  %3882 = vadd.xlane.f32.xlu1 %v9345_v28  ;;  %3900 = vadd.xlane.f32.xlu0 %v9342_v17  ;;  %v9350_v61 = vpop.xlane.xlu0 %3824  ;;  %v6188_v19 = vpop.eup %6187 }
 0xaf1   :  { %6201 = vpow2.f32 %v3752_v58  ;;  %v3803_v6 = vpop.xlane.xlu1 %3802  ;;  %v4024_v56 = vmul.f32 %v6188_v19, %v10302_v52  ;;  %v9354_v45 = vpop.eup %6189 }
 0xaf2   :  { %6203 = vpow2.f32 %v3730_v4  ;;  %10304 = vst [vmem:[#allocation19_spill] sm:$0xff] %v9354_v45  ;;  %v6192_v1 = vpop.eup %6191 }
 0xaf3   :  { %6205 = vrcp.f32 %v3803_v6  ;;  %v4099_v9 = vpack.c.bf16 %v4025_v38, %v4024_v56  ;;  %v10306_v56 = vld [vmem:[#allocation20_spill] sm:$0xff]  ;;  %v10307_v38 = vld [vmem:[#allocation69_spill] sm:$0xff] }
 0xaf4   :  { %3904 = vadd.xlane.f32.xlu0 %v9354_v45  ;;  %v3517_v31 = vpop.xlane.xlu0 %3516  ;;  %6207 = vrcp.f32 %v9284_v12 }
 0xaf5   :  { %v3605_v59 = vsub.f32 %v9040_v22, %v3517_v31  ;;  %v3495_v3 = vpop.xlane.xlu1 %3494  ;;  %5524 = vmatmul.mubr.bf16.gmra.mxu0 %v4099_v9 }
 0xaf6   :  { %v9358_v17 = vpop.eup %6193  ;;  %v3594_v58 = vsub.f32 %v9047_v29, %v3495_v3  ;;  %v4027_v29 = vmul.f32 %v6192_v1, %v10307_v38 }
 0xaf7   :  { %10305 = vst [vmem:[#allocation22_spill] sm:$0xff] %v9358_v17  ;;  %v9361_v4 = vpop.eup %6195  ;;  %v3756_v19 = vmul.f32 1.442695, %v3605_v59 }
 0xaf8   :  { %v3734_v57 = vmul.f32 1.442695, %v3594_v58  ;;  %3886 = vadd.xlane.f32.xlu1 %v9361_v4  ;;  %3908 = vadd.xlane.f32.xlu0 %v9358_v17  ;;  %v9366_v6 = vpop.xlane.xlu0 %3828  ;;  %v6198_v52 = vpop.eup %6197  ;;  %v10308_v17 = vld [vmem:[#allocation55_spill] sm:$0xff] }
 0xaf9   :  { %6209 = vpow2.f32 %v3756_v19  ;;  %v3807_v22 = vpop.xlane.xlu1 %3806  ;;  %v4026_v43 = vmul.f32 %v6198_v52, %v10306_v56  ;;  %v6200_v59 = vpop.eup %6199 }
 0xafa   :  { %6211 = vpow2.f32 %v3734_v57 }
 0xafb   :  { %6213 = vrcp.f32 %v3807_v22  ;;  %v4100_v9 = vpack.c.bf16 %v4027_v29, %v4026_v43  ;;  %v10309_v22 = vld [vmem:[#allocation37_spill] sm:$0xff]  ;;  %v10310_v43 = vld [vmem:[#allocation58_spill] sm:$0xff] }
 0xafc   :  { %v3521_v31 = vpop.xlane.xlu0 %3520  ;;  %6215 = vrcp.f32 %v9301_v47 }
 0xafd   :  { %v3607_v12 = vsub.f32 %v9065_v42, %v3521_v31  ;;  %v3499_v3 = vpop.xlane.xlu1 %3498  ;;  %5527 = vmatprep.mubr.bf16.mxu0 %v4100_v9 }
 0xafe   :  { %v9371_v58 = vpop.eup %6201  ;;  %v3596_v45 = vsub.f32 %v10308_v17, %v3499_v3  ;;  %v4029_v17 = vmul.f32 %v6200_v59, %v10310_v43 }
 0xaff   :  { %v9374_v21 = vpop.eup %6203  ;;  %v3760_v19 = vmul.f32 1.442695, %v3607_v12  ;;  %3912 = vadd.xlane.f32.xlu0 %v9371_v58 }
 0xb00   :  { %v3738_v1 = vmul.f32 1.442695, %v3596_v45  ;;  %3890 = vadd.xlane.f32.xlu1 %v9374_v21  ;;  %v9379_v57 = vpop.xlane.xlu0 %3832  ;;  %v6206_v52 = vpop.eup %6205 }
 0xb01   :  { %6217 = vpow2.f32 %v3760_v19  ;;  %v3811_v42 = vpop.xlane.xlu1 %3810  ;;  %v4028_v56 = vmul.f32 %v6206_v52, %v10309_v22  ;;  %v6208_v31 = vpop.eup %6207 }
 0xb02   :  { %6219 = vpow2.f32 %v3738_v1 }
 0xb03   :  { %6221 = vrcp.f32 %v3811_v42  ;;  %v4101_v29 = vpack.c.bf16 %v4029_v17, %v4028_v56  ;;  %v10311_v42 = vld [vmem:[#allocation43_spill] sm:$0xff]  ;;  %v10312_v56 = vld [vmem:[#allocation25_spill] sm:$0xff] }
 0xb04   :  { %v3525_v38 = vpop.xlane.xlu0 %3524  ;;  %6223 = vrcp.f32 %v9318_v11 }
 0xb05   :  { %v3609_v9 = vsub.f32 %v9085_v40, %v3525_v38  ;;  %v3503_v47 = vpop.xlane.xlu1 %3502  ;;  %5528 = vmatmul.mubr.bf16.gmra.mxu0 %v4101_v29 }
 0xb06   :  { %v9384_v45 = vpop.eup %6209  ;;  %v3598_v12 = vsub.f32 %v9089_v20, %v3503_v47  ;;  %v4031_v20 = vmul.f32 %v6208_v31, %v10312_v56 }
 0xb07   :  { %v9387_v3 = vpop.eup %6211  ;;  %v3764_v19 = vmul.f32 1.442695, %v3609_v9  ;;  %3916 = vadd.xlane.f32.xlu0 %v9384_v45 }
 0xb08   :  { %v3742_v59 = vmul.f32 1.442695, %v3598_v12  ;;  %3894 = vadd.xlane.f32.xlu1 %v9387_v3  ;;  %v9392_v1 = vpop.xlane.xlu0 %3836  ;;  %v6214_v52 = vpop.eup %6213 }
 0xb09   :  { %6225 = vpow2.f32 %v3764_v19  ;;  %v3815_v40 = vpop.xlane.xlu1 %3814  ;;  %v4030_v22 = vmul.f32 %v6214_v52, %v10311_v42  ;;  %v6216_v38 = vpop.eup %6215  ;;  %v10314_v42 = vld [vmem:[#allocation38_spill] sm:$0xff] }
 0xb0a   :  { %6227 = vpow2.f32 %v3742_v59 }
 0xb0b   :  { %6229 = vrcp.f32 %v3815_v40  ;;  %v4102_v17 = vpack.c.bf16 %v4031_v20, %v4030_v22  ;;  %v4033_v22 = vmul.f32 %v6216_v38, %v10314_v42 }
 0xb0c   :  { %v3529_v43 = vpop.xlane.xlu0 %3528  ;;  %6231 = vrcp.f32 %v9334_v13 }
 0xb0d   :  { %v3611_v29 = vsub.f32 %v9108_v39, %v3529_v43  ;;  %v3507_v11 = vpop.xlane.xlu1 %3506  ;;  %5531 = vmatprep.mubr.bf16.mxu0 %v4102_v17  ;;  %v10313_v39 = vld [vmem:[#allocation46_spill] sm:$0xff] }
 0xb0e   :  { %v9397_v9 = vpop.eup %6217  ;;  %v3600_v47 = vsub.f32 %v9110_v7, %v3507_v11 }
 0xb0f   :  { %v9400_v12 = vpop.eup %6219  ;;  %v3768_v19 = vmul.f32 1.442695, %v3611_v29  ;;  %3920 = vadd.xlane.f32.xlu0 %v9397_v9 }
 0xb10   :  { %v3746_v31 = vmul.f32 1.442695, %v3600_v47  ;;  %3898 = vadd.xlane.f32.xlu1 %v9400_v12  ;;  %v6222_v59 = vpop.eup %6221  ;;  %v9409_v17 = vpop.xlane.xlu0 %3840 }
 0xb11   :  { %6233 = vpow2.f32 %v3768_v19  ;;  %v3819_v52 = vpop.xlane.xlu1 %3818  ;;  %v4032_v40 = vmul.f32 %v6222_v59, %v10313_v39  ;;  %v6224_v56 = vpop.eup %6223 }
 0xb12   :  { %6235 = vpow2.f32 %v3746_v31  ;;  %v10315_v31 = vld [vmem:[#allocation27_spill] sm:$0xff] }
 0xb13   :  { %6237 = vrcp.f32 %v3819_v52  ;;  %v4103_v7 = vpack.c.bf16 %v4033_v22, %v4032_v40  ;;  %v10316_v52 = vld [vmem:[#allocation59_spill] sm:$0xff] }
 0xb14   :  { %6239 = vrcp.f32 %v9350_v61  ;;  %v4035_v39 = vmul.f32 %v6224_v56, %v10316_v52 }
 0xb15   :  { %v3511_v20 = vpop.xlane.xlu1 %3510  ;;  %5532 = vmatmul.mubr.bf16.gmra.mxu0 %v4103_v7 }
 0xb16   :  { %v9407_v43 = vpop.eup %6225  ;;  %v3602_v13 = vsub.f32 %v9133_v62, %v3511_v20 }
 0xb17   :  { %v9412_v29 = vpop.eup %6227  ;;  %3924 = vadd.xlane.f32.xlu0 %v9407_v43 }
 0xb18   :  { %v3750_v11 = vmul.f32 1.442695, %v3602_v13  ;;  %3902 = vadd.xlane.f32.xlu1 %v9412_v29  ;;  %v6230_v47 = vpop.eup %6229 }
 0xb19   :  { %v3823_v38 = vpop.xlane.xlu1 %3822  ;;  %v4034_v59 = vmul.f32 %v6230_v47, %v10315_v31  ;;  %v6232_v42 = vpop.eup %6231  ;;  %v10317_v47 = vld [vmem:[#allocation41_spill] sm:$0xff] }
 0xb1a   :  { %6241 = vpow2.f32 %v3750_v11  ;;  %v3533_v19 = vpop.xlane.xlu0 %3532 }
 0xb1b   :  { %6243 = vrcp.f32 %v3823_v38  ;;  %v3613_v62 = vsub.f32 %v9143_v37, %v3533_v19  ;;  %v4104_v40 = vpack.c.bf16 %v4035_v39, %v4034_v59  ;;  %v10318_v19 = vld [vmem:[#allocation45_spill] sm:$0xff] }
 0xb1c   :  { %v4037_v31 = vmul.f32 %v6232_v42, %v10318_v19 }
 0xb1d   :  { %v3772_v22 = vmul.f32 1.442695, %v3613_v62  ;;  %v3515_v7 = vpop.xlane.xlu1 %3514  ;;  %5535 = vmatprep.mubr.bf16.mxu0 %v4104_v40 }
 0xb1e   :  { %v9420_v20 = vpop.eup %6233  ;;  %v3604_v13 = vsub.f32 %v9150_v14, %v3515_v7 }
 0xb1f   :  { %v9423_v61 = vpop.eup %6235  ;;  %6245 = vpow2.f32 %v3772_v22  ;;  %3928 = vadd.xlane.f32.xlu0 %v9420_v20 }
 0xb20   :  { %v3754_v11 = vmul.f32 1.442695, %v3604_v13  ;;  %3906 = vadd.xlane.f32.xlu1 %v9423_v61  ;;  %v6238_v56 = vpop.eup %6237  ;;  %6247 = vrcp.f32 %v9366_v6  ;;  %v10319_v13 = vld [vmem:[#allocation42_spill] sm:$0xff] }
 0xb21   :  { %v3827_v37 = vpop.xlane.xlu1 %3826  ;;  %v4036_v38 = vmul.f32 %v6238_v56, %v10317_v47  ;;  %v6240_v52 = vpop.eup %6239 }
 0xb22   :  { %6249 = vpow2.f32 %v3754_v11  ;;  %v4039_v42 = vmul.f32 %v6240_v52, %v10319_v13 }
 0xb23   :  { %6251 = vrcp.f32 %v3827_v37  ;;  %v4105_v59 = vpack.c.bf16 %v4037_v31, %v4036_v38 }
 0xb24   :  { %6253 = vrcp.f32 %v9379_v57 }
 0xb25   :  { %v3519_v14 = vpop.xlane.xlu1 %3518  ;;  %5536 = vmatmul.mubr.bf16.gmra.mxu0 %v4105_v59  ;;  %v10320_v59 = vld [vmem:[#allocation49_spill] sm:$0xff] }
 0xb26   :  { %v3606_v39 = vsub.f32 %v9171_v18, %v3519_v14 }
 0xb27   :  { %v9431_v62 = vpop.eup %6241 }
 0xb28   :  { %v6244_v40 = vpop.eup %6243  ;;  %v3758_v22 = vmul.f32 1.442695, %v3606_v39  ;;  %3910 = vadd.xlane.f32.xlu1 %v9431_v62  ;;  %v3845_v39 = vpop.xlane.xlu0 %3844 }
 0xb29   :  { %v3831_v6 = vpop.xlane.xlu1 %3830  ;;  %v4038_v7 = vmul.f32 %v6244_v40, %v9139_v0 }
 0xb2a   :  { %6255 = vpow2.f32 %v3758_v22 }
 0xb2b   :  { %6257 = vrcp.f32 %v3831_v6  ;;  %v4106_v11 = vpack.c.bf16 %v4039_v42, %v4038_v7  ;;  %v10321_v42 = vld [vmem:[#allocation56_spill] sm:$0xff] }
 0xb2c   :  { %v9437_v56 = vpop.eup %6245  ;;  %6259 = vrcp.f32 %v9392_v1 }
 0xb2d   :  { %5539 = vmatprep.mubr.bf16.mxu0 %v4106_v11  ;;  %v3523_v18 = vpop.xlane.xlu1 %3522  ;;  %3932 = vadd.xlane.f32.xlu0 %v9437_v56  ;;  %v6248_v37 = vpop.eup %6247 }
 0xb2e   :  { %v3608_v47 = vsub.f32 %v9194_v8, %v3523_v18  ;;  %v4041_v14 = vmul.f32 %v6248_v37, %v10320_v59  ;;  %v3849_v18 = vpop.xlane.xlu0 %3848 }
 0xb2f   :  { %v9441_v38 = vpop.eup %6249 }
 0xb30   :  { %v6252_v57 = vpop.eup %6251  ;;  %v3762_v19 = vmul.f32 1.442695, %v3608_v47  ;;  %3914 = vadd.xlane.f32.xlu1 %v9441_v38 }
 0xb31   :  { %v3835_v0 = vpop.xlane.xlu1 %3834  ;;  %v4040_v31 = vmul.f32 %v6252_v57, %v9158_v26  ;;  %v6254_v8 = vpop.eup %6253 }
 0xb32   :  { %6261 = vpow2.f32 %v3762_v19  ;;  %v4043_v11 = vmul.f32 %v6254_v8, %v10321_v42 }
 0xb33   :  { %6263 = vrcp.f32 %v3835_v0  ;;  %v4107_v52 = vpack.c.bf16 %v4041_v14, %v4040_v31  ;;  %v10322_v14 = vld [vmem:[#allocation30_spill] sm:$0xff] }
 0xb34   :  { %6265 = vrcp.f32 %v9409_v17  ;;  %v3853_v17 = vpop.xlane.xlu0 %3852 }
 0xb35   :  { %5540 = vmatmul.mubr.bf16.gmra.mxu0 %v4107_v52  ;;  %v3527_v40 = vpop.xlane.xlu1 %3526 }
 0xb36   :  { %v3610_v22 = vsub.f32 %v9214_v27, %v3527_v40 }
 0xb37   :  { %v9448_v6 = vpop.eup %6255 }
 0xb38   :  { %v6258_v7 = vpop.eup %6257  ;;  %v3766_v13 = vmul.f32 1.442695, %v3610_v22  ;;  %3918 = vadd.xlane.f32.xlu1 %v9448_v6 }
 0xb39   :  { %v3839_v26 = vpop.xlane.xlu1 %3838  ;;  %v4042_v1 = vmul.f32 %v6258_v7, %v9181_v34  ;;  %v6260_v27 = vpop.eup %6259 }
 0xb3a   :  { %6267 = vpow2.f32 %v3766_v13  ;;  %v4045_v52 = vmul.f32 %v6260_v27, %v10322_v14  ;;  %v3857_v7 = vpop.xlane.xlu0 %3856 }
 0xb3b   :  { %6269 = vrcp.f32 %v3839_v26  ;;  %v4108_v37 = vpack.c.bf16 %v4043_v11, %v4042_v1  ;;  %v10323_v26 = vld [vmem:[#allocation47_spill] sm:$0xff] }
 0xb3c   :  { %6271 = vrcp.f32 %v3845_v39 }
 0xb3d   :  { %5543 = vmatprep.mubr.bf16.mxu0 %v4108_v37  ;;  %v3531_v47 = vpop.xlane.xlu1 %3530 }
 0xb3e   :  { %v3612_v57 = vsub.f32 %v9229_v55, %v3531_v47  ;;  %v3861_v11 = vpop.xlane.xlu0 %3860 }
 0xb3f   :  { %v9455_v19 = vpop.eup %6261 }
 0xb40   :  { %v6264_v0 = vpop.eup %6263  ;;  %v3770_v31 = vmul.f32 1.442695, %v3612_v57  ;;  %3922 = vadd.xlane.f32.xlu1 %v9455_v19 }
 0xb41   :  { %v3843_v34 = vpop.xlane.xlu1 %3842  ;;  %v4044_v59 = vmul.f32 %v6264_v0, %v9206_v53  ;;  %v6266_v55 = vpop.eup %6265 }
 0xb42   :  { %6273 = vpow2.f32 %v3770_v31  ;;  %v4047_v1 = vmul.f32 %v6266_v55, %v10323_v26 }
 0xb43   :  { %6275 = vrcp.f32 %v3843_v34  ;;  %v4109_v40 = vpack.c.bf16 %v4045_v52, %v4044_v59 }
 0xb44   :  { %6277 = vrcp.f32 %v3849_v18 }
 0xb45   :  { %5544 = vmatmul.mubr.bf16.gmra.mxu0 %v4109_v40  ;;  %v3847_v8 = vpop.xlane.xlu1 %3846 }
 0xb46   :  { %6279 = vrcp.f32 %v3847_v8 }
 0xb47   :  { %v9460_v22 = vpop.eup %6267  ;;  %6281 = vrcp.f32 %v3853_v17 }
 0xb48   :  { %v6270_v13 = vpop.eup %6269  ;;  %3926 = vadd.xlane.f32.xlu1 %v9460_v22 }
 0xb49   :  { %v3851_v39 = vpop.xlane.xlu1 %3850  ;;  %v4046_v53 = vmul.f32 %v6270_v13, %v9221_v46  ;;  %v6272_v37 = vpop.eup %6271 }
 0xb4a   :  { %6283 = vrcp.f32 %v3851_v39  ;;  %v4049_v31 = vmul.f32 %v6272_v37, %v9152_v33 }
 0xb4b   :  { %v4110_v42 = vpack.c.bf16 %v4047_v1, %v4046_v53  ;;  %6285 = vrcp.f32 %v3857_v7 }
 0xb4d   :  { %5547 = vmatprep.mubr.bf16.mxu0 %v4110_v42  ;;  %v3855_v18 = vpop.xlane.xlu1 %3854 }
 0xb4e   :  { %6287 = vrcp.f32 %v3855_v18 }
 0xb4f   :  { %v9465_v47 = vpop.eup %6273  ;;  %6289 = vrcp.f32 %v3861_v11 }
 0xb50   :  { %v6276_v27 = vpop.eup %6275  ;;  %3930 = vadd.xlane.f32.xlu1 %v9465_v47 }
 0xb51   :  { %v6278_v57 = vpop.eup %6277  ;;  %v3859_v0 = vpop.xlane.xlu1 %3858  ;;  %v4048_v46 = vmul.f32 %v6276_v27, %v9234_v44 }
 0xb52   :  { %6291 = vrcp.f32 %v3859_v0  ;;  %v4051_v14 = vmul.f32 %v6278_v57, %v9162_v35 }
 0xb53   :  { %v6280_v17 = vpop.eup %6279  ;;  %v4111_v34 = vpack.c.bf16 %v4049_v31, %v4048_v46 }
 0xb54   :  { %v4050_v59 = vmul.f32 %v6280_v17, %v9242_v5  ;;  %v6282_v52 = vpop.eup %6281 }
 0xb55   :  { %5548 = vmatmul.mubr.bf16.gmra.mxu0 %v4111_v34  ;;  %v3863_v40 = vpop.xlane.xlu1 %3862  ;;  %v3865_v8 = vpop.xlane.xlu0 %3864  ;;  %v4053_v33 = vmul.f32 %v6282_v52, %v9173_v30 }
 0xb56   :  { %6293 = vrcp.f32 %v3863_v40  ;;  %v4112_v55 = vpack.c.bf16 %v4051_v14, %v4050_v59 }
 0xb57   :  { %v6284_v7 = vpop.eup %6283  ;;  %6295 = vrcp.f32 %v3865_v8 }
 0xb58   :  { %5551 = vmatprep.mubr.bf16.mxu0 %v4112_v55  ;;  %v4052_v44 = vmul.f32 %v6284_v7, %v9248_v2  ;;  %v6286_v13 = vpop.eup %6285 }
 0xb59   :  { %v3867_v39 = vpop.xlane.xlu1 %3866  ;;  %v3869_v53 = vpop.xlane.xlu0 %3868  ;;  %v4055_v1 = vmul.f32 %v6286_v13, %v9185_v41 }
 0xb5a   :  { %6297 = vrcp.f32 %v3867_v39  ;;  %v4113_v5 = vpack.c.bf16 %v4053_v33, %v4052_v44 }
 0xb5b   :  { %v6288_v26 = vpop.eup %6287  ;;  %6299 = vrcp.f32 %v3869_v53 }
 0xb5c   :  { %v4054_v35 = vmul.f32 %v6288_v26, %v9256_v50  ;;  %v6290_v42 = vpop.eup %6289 }
 0xb5d   :  { %5552 = vmatmul.mubr.bf16.gmra.mxu0 %v4113_v5  ;;  %v3873_v11 = vpop.xlane.xlu0 %3872  ;;  %v4057_v2 = vmul.f32 %v6290_v42, %v9196_v16 }
 0xb5e   :  { %v4114_v18 = vpack.c.bf16 %v4055_v1, %v4054_v35  ;;  %6301 = vrcp.f32 %v3873_v11  ;;  %v4675_v35 = vld [vmem:[#allocation10 + $0x78] sm:$0xff] }
 0xb5f   :  { %v6292_v37 = vpop.eup %6291  ;;  %5595 = vmatprep.subr.mxu1 %v4675_v35 }
 0xb60   :  { %5555 = vmatprep.mubr.bf16.mxu0 %v4114_v18  ;;  %v4056_v30 = vmul.f32 %v6292_v37, %v9262_v32  ;;  %5596 = vmatpush3.msra.mxu1 %v4675_v35 }
 0xb61   :  { %v3871_v27 = vpop.xlane.xlu1 %3870  ;;  %v3877_v31 = vpop.xlane.xlu0 %3876 }
 0xb62   :  { %6303 = vrcp.f32 %v3871_v27  ;;  %v4115_v57 = vpack.c.bf16 %v4057_v2, %v4056_v30 }
 0xb63   :  { %v6294_v0 = vpop.eup %6293  ;;  %6305 = vrcp.f32 %v3877_v31 }
 0xb64   :  { %v6296_v46 = vpop.eup %6295  ;;  %v4058_v50 = vmul.f32 %v6294_v0, %v9269_v24 }
 0xb65   :  { %5556 = vmatmul.mubr.bf16.gmra.mxu0 %v4115_v57  ;;  %v4059_v41 = vmul.f32 %v6296_v46, %v9271_v60  ;;  %v3881_v8 = vpop.xlane.xlu0 %3880  ;;  %v4673_v46 = vld [vmem:[#allocation10 + $0x68] sm:$0xff] }
 0xb67   :  { %v6298_v17 = vpop.eup %6297  ;;  %v4116_v34 = vpack.c.bf16 %v4059_v41, %v4058_v50 }
 0xb68   :  { %v6300_v59 = vpop.eup %6299  ;;  %v4060_v14 = vmul.f32 %v6298_v17, %v9279_v10 }
 0xb69   :  { %5559 = vmatprep.mubr.bf16.mxu0 %v4116_v34  ;;  %v3875_v32 = vpop.xlane.xlu1 %3874  ;;  %v4061_v16 = vmul.f32 %v6300_v59, %v9275_v48  ;;  %v3885_v33 = vpop.xlane.xlu0 %3884 }
 0xb6a   :  { %6307 = vrcp.f32 %v3875_v32  ;;  %v10324_v32 = vld [vmem:[#allocation54_spill] sm:$0xff] }
 0xb6b   :  { %v4117_v52 = vpack.c.bf16 %v4061_v16, %v4060_v14  ;;  %v6302_v40 = vpop.eup %6301  ;;  %6309 = vrcp.f32 %v3881_v8 }
 0xb6c   :  { %v4063_v60 = vmul.f32 %v6302_v40, %v9289_v49 }
 0xb6d   :  { %5560 = vmatmul.mubr.bf16.gmra.mxu0 %v4117_v52 }
 0xb6f   :  { %v6304_v24 = vpop.eup %6303 }
 0xb70   :  { %v4062_v55 = vmul.f32 %v6304_v24, %v9296_v15  ;;  %v6306_v10 = vpop.eup %6305  ;;  %v3889_v15 = vpop.xlane.xlu0 %3888 }
 0xb71   :  { %v3879_v7 = vpop.xlane.xlu1 %3878  ;;  %v4065_v39 = vmul.f32 %v6306_v10, %v9292_v36 }
 0xb72   :  { %6311 = vrcp.f32 %v3879_v7  ;;  %v4118_v44 = vpack.c.bf16 %v4063_v60, %v4062_v55  ;;  %v10325_v60 = vld [vmem:[#allocation62_spill] sm:$0xff] }
 0xb73   :  { %6313 = vrcp.f32 %v3885_v33 }
 0xb74   :  { %5563 = vmatprep.mubr.bf16.mxu0 %v4118_v44  ;;  %v3893_v18 = vpop.xlane.xlu0 %3892  ;;  %v4672_v44 = vld [vmem:[#allocation10 + $0x60] sm:$0xff] }
 0xb77   :  { %v6308_v13 = vpop.eup %6307 }
 0xb78   :  { %v4064_v48 = vmul.f32 %v6308_v13, %v9313_v51  ;;  %v6310_v26 = vpop.eup %6309 }
 0xb79   :  { %v3883_v53 = vpop.xlane.xlu1 %3882  ;;  %v4067_v42 = vmul.f32 %v6310_v26, %v9306_v23  ;;  %v3897_v23 = vpop.xlane.xlu0 %3896 }
 0xb7a   :  { %6315 = vrcp.f32 %v3883_v53  ;;  %v4119_v5 = vpack.c.bf16 %v4065_v39, %v4064_v48 }
 0xb7b   :  { %6317 = vrcp.f32 %v3889_v15 }
 0xb7c   :  { %5564 = vmatmul.mubr.bf16.gmra.mxu0 %v4119_v5 }
 0xb7d   :  { %v3901_v34 = vpop.xlane.xlu0 %3900 }
 0xb7f   :  { %v6312_v49 = vpop.eup %6311 }
 0xb80   :  { %v4066_v1 = vmul.f32 %v6312_v49, %v9329_v54  ;;  %v6314_v36 = vpop.eup %6313  ;;  %v4674_v54 = vld [vmem:[#allocation10 + $0x70] sm:$0xff] }
 0xb81   :  { %v3887_v11 = vpop.xlane.xlu1 %3886  ;;  %v4069_v2 = vmul.f32 %v6314_v36, %v9309_v25  ;;  %5597 = vmatprep.subr.mxu1 %v4674_v54  ;;  %v3905_v8 = vpop.xlane.xlu0 %3904 }
 0xb82   :  { %6319 = vrcp.f32 %v3887_v11  ;;  %v4120_v51 = vpack.c.bf16 %v4067_v42, %v4066_v1  ;;  %5598 = vmatpush3.msra.mxu1 %v4674_v54  ;;  %v4671_v1 = vld [vmem:[#allocation10 + $0x58] sm:$0xff]  ;;  %v4670_v54 = vld [vmem:[#allocation10 + $0x50] sm:$0xff] }
 0xb83   :  { %6321 = vrcp.f32 %v3893_v18  ;;  %5599 = vmatprep.subr.mxu1 %v4673_v46 }
 0xb84   :  { %5567 = vmatprep.mubr.bf16.mxu0 %v4120_v51  ;;  %5600 = vmatpush3.msra.mxu1 %v4673_v46  ;;  %v4669_v46 = vld [vmem:[#allocation10 + $0x48] sm:$0xff] }
 0xb85   :  { %5601 = vmatprep.subr.mxu1 %v4672_v44  ;;  %v3909_v48 = vpop.xlane.xlu0 %3908 }
 0xb86   :  { %5602 = vmatpush3.msra.mxu1 %v4672_v44 }
 0xb87   :  { %v6316_v37 = vpop.eup %6315  ;;  %5603 = vmatprep.subr.mxu1 %v4671_v1 }
 0xb88   :  { %v4068_v30 = vmul.f32 %v6316_v37, %v9345_v28  ;;  %v6318_v0 = vpop.eup %6317  ;;  %5604 = vmatpush3.msra.mxu1 %v4671_v1  ;;  %v10327_v37 = vld [vmem:[#allocation19_spill] sm:$0xff] }
 0xb89   :  { %v3891_v27 = vpop.xlane.xlu1 %3890  ;;  %v4071_v41 = vmul.f32 %v6318_v0, %v9322_v63  ;;  %v3913_v51 = vpop.xlane.xlu0 %3912  ;;  %5605 = vmatprep.subr.mxu1 %v4670_v54 }
 0xb8a   :  { %6323 = vrcp.f32 %v3891_v27  ;;  %v4121_v57 = vpack.c.bf16 %v4069_v2, %v4068_v30  ;;  %5606 = vmatpush3.msra.mxu1 %v4670_v54 }
 0xb8b   :  { %6325 = vrcp.f32 %v3897_v23  ;;  %5607 = vmatprep.subr.mxu1 %v4669_v46 }
 0xb8c   :  { %5568 = vmatmul.mubr.bf16.gmra.mxu0 %v4121_v57  ;;  %5608 = vmatpush3.msra.mxu1 %v4669_v46 }
 0xb8f   :  { %v6320_v50 = vpop.eup %6319 }
 0xb90   :  { %v4070_v31 = vmul.f32 %v6320_v50, %v9361_v4  ;;  %v6322_v17 = vpop.eup %6321  ;;  %v3917_v23 = vpop.xlane.xlu0 %3916 }
 0xb91   :  { %v3895_v28 = vpop.xlane.xlu1 %3894  ;;  %v4073_v16 = vmul.f32 %v6322_v17, %v10324_v32 }
 0xb92   :  { %6327 = vrcp.f32 %v3895_v28  ;;  %v4122_v25 = vpack.c.bf16 %v4071_v41, %v4070_v31  ;;  %v10328_v41 = vld [vmem:[#allocation22_spill] sm:$0xff] }
 0xb93   :  { %6329 = vrcp.f32 %v3901_v34 }
 0xb94   :  { %5571 = vmatprep.mubr.bf16.mxu0 %v4122_v25 }
 0xb95   :  { %v9494_v63 = vpop.f32.mrf.mxu0 }
 0xb97   :  { %v6324_v59 = vpop.eup %6323 }
 0xb98   :  { %v4072_v14 = vmul.f32 %v6324_v59, %v9374_v21  ;;  %v6326_v4 = vpop.eup %6325  ;;  %v9498_v21 = vpop.f32.mrf.mxu0 }
 0xb99   :  { %v3899_v52 = vpop.xlane.xlu1 %3898  ;;  %v4075_v7 = vmul.f32 %v6326_v4, %v10325_v60  ;;  %v4668_v60 = vld [vmem:[#allocation10 + $0x40] sm:$0xff] }
 0xb9a   :  { %6331 = vrcp.f32 %v3899_v52  ;;  %v4123_v40 = vpack.c.bf16 %v4073_v16, %v4072_v14  ;;  %v9500_v39 = vpop.f32.mrf.mxu0  ;;  %v3921_v14 = vpop.xlane.xlu0 %3920  ;;  %5609 = vmatprep.subr.mxu1 %v4668_v60 }
 0xb9b   :  { %6333 = vrcp.f32 %v3905_v8  ;;  %5610 = vmatpush3.msra.mxu1 %v4668_v60 }
 0xb9c   :  { %5572 = vmatmul.mubr.bf16.gmra.mxu0 %v4123_v40  ;;  %v9504_v35 = vpop.f32.mrf.mxu0 }
 0xb9f   :  { %v6328_v24 = vpop.eup %6327 }
 0xba0   :  { %v4074_v55 = vmul.f32 %v6328_v24, %v9387_v3  ;;  %v6330_v13 = vpop.eup %6329  ;;  %v10326_v3 = vld [vmem:[#allocation40_spill] sm:$0xff] }
 0xba1   :  { %v3903_v10 = vpop.xlane.xlu1 %3902  ;;  %v4077_v26 = vmul.f32 %v6330_v13, %v10326_v3 }
 0xba2   :  { %6335 = vrcp.f32 %v3903_v10  ;;  %v4124_v33 = vpack.c.bf16 %v4075_v7, %v4074_v55  ;;  %v3925_v55 = vpop.xlane.xlu0 %3924 }
 0xba3   :  { %6337 = vrcp.f32 %v3909_v48 }
 0xba4   :  { %5575 = vmatprep.mubr.bf16.mxu0 %v4124_v33 }
 0xba5   :  { %v9506_v42 = vpop.f32.mrf.mxu0 }
 0xba7   :  { %v6332_v53 = vpop.eup %6331  ;;  %v9508_v18 = vpop.f32.mrf.mxu0 }
 0xba8   :  { %v4076_v5 = vmul.f32 %v6332_v53, %v9400_v12  ;;  %v6334_v11 = vpop.eup %6333 }
 0xba9   :  { %v3907_v15 = vpop.xlane.xlu1 %3906  ;;  %v4079_v30 = vmul.f32 %v6334_v11, %v10327_v37  ;;  %v9512_v57 = vpop.f32.mrf.mxu0 }
 0xbaa   :  { %6339 = vrcp.f32 %v3907_v15  ;;  %v4125_v49 = vpack.c.bf16 %v4077_v26, %v4076_v5  ;;  %v3929_v5 = vpop.xlane.xlu0 %3928  ;;  %v9534_v26 = vld [vmem:[#allocation9] sm:$0x1f] }
 0xbab   :  { %6341 = vrcp.f32 %v3913_v51  ;;  %v9514_v31 = vpop.f32.mrf.mxu0  ;;  %v10329_v51 = vld [vmem:[#allocation36_spill] sm:$0xff] }
 0xbac   :  { %5576 = vmatmul.mubr.bf16.gmra.mxu0 %v4125_v49 }
 0xbaf   :  { %v6336_v36 = vpop.eup %6335 }
 0xbb0   :  { %v4078_v12 = vmul.f32 %v6336_v36, %v9412_v29  ;;  %v6338_v0 = vpop.eup %6337  ;;  %v9542_v36 = vrot.slane %v9534_v26, %v10329_v51 }
 0xbb1   :  { %v3911_v2 = vpop.xlane.xlu1 %3910  ;;  %v4081_v28 = vmul.f32 %v6338_v0, %v10328_v41 }
 0xbb2   :  { %6343 = vrcp.f32 %v3911_v2  ;;  %v4126_v27 = vpack.c.bf16 %v4079_v30, %v4078_v12  ;;  %v10330_v12 = vld [vmem:[#allocation17_spill] sm:$0xff] }
 0xbb3   :  { %6345 = vrcp.f32 %v3917_v23  ;;  %v9546_v37 = vrot.slane %v9534_v26, %v10330_v12 }
 0xbb4   :  { %5579 = vmatprep.mubr.bf16.mxu0 %v4126_v27 }
 0xbb5   :  { %v9518_v17 = vpop.f32.mrf.mxu0  ;;  %v4502_v0 = vmul.f32 %v9494_v63, %v9546_v37  ;;  %v4500_v41 = vmul.f32 %v9546_v37, %v9498_v21  ;;  %v4501_v21 = vmul.f32 %v9546_v37, %v9504_v35  ;;  %v4506_v35 = vmul.f32 %v9506_v42, %v9546_v37 }
 0xbb6   :  { %v3933_v2 = vpop.xlane.xlu0 %3932  ;;  %v4507_v42 = vmul.f32 %v9512_v57, %v9546_v37  ;;  %v4663_v57 = vld [vmem:[#allocation10 + $0x18] sm:$0xff] }
 0xbb7   :  { %v6340_v50 = vpop.eup %6339  ;;  %v9520_v32 = vpop.f32.mrf.mxu0 }
 0xbb8   :  { %v4080_v29 = vmul.f32 %v6340_v50, %v9423_v61  ;;  %v6342_v59 = vpop.eup %6341 }
 0xbb9   :  { %v3915_v25 = vpop.xlane.xlu1 %3914  ;;  %v4083_v40 = vmul.f32 %v6342_v59, %v9371_v58  ;;  %v9524_v4 = vpop.f32.mrf.mxu0 }
 0xbba   :  { %6347 = vrcp.f32 %v3915_v25  ;;  %v4127_v34 = vpack.c.bf16 %v4081_v28, %v4080_v29 }
 0xbbb   :  { %6349 = vrcp.f32 %v3921_v14  ;;  %v9526_v7 = vpop.f32.mrf.mxu0  ;;  %v4503_v14 = vmul.f32 %v9500_v39, %v9546_v37 }
 0xbbc   :  { %5580 = vmatmul.mubr.bf16.gmra.mxu0 %v4127_v34 }
 0xbbf   :  { %v6344_v16 = vpop.eup %6343 }
 0xbc0   :  { %v4082_v52 = vmul.f32 %v6344_v16, %v9431_v62  ;;  %v6346_v24 = vpop.eup %6345 }
 0xbc1   :  { %v3919_v61 = vpop.xlane.xlu1 %3918  ;;  %v4085_v58 = vmul.f32 %v6346_v24, %v9384_v45  ;;  %v4667_v45 = vld [vmem:[#allocation10 + $0x38] sm:$0xff] }
 0xbc2   :  { %6351 = vrcp.f32 %v3919_v61  ;;  %v4128_v8 = vpack.c.bf16 %v4083_v40, %v4082_v52  ;;  %5611 = vmatprep.subr.mxu1 %v4667_v45 }
 0xbc3   :  { %6353 = vrcp.f32 %v3925_v55  ;;  %5612 = vmatpush3.msra.mxu1 %v4667_v45 }
 0xbc4   :  { %5583 = vmatprep.mubr.bf16.mxu0 %v4128_v8 }
 0xbc5   :  { %v9528_v10 = vpop.f32.mrf.mxu0 }
 0xbc7   :  { %v6348_v44 = vpop.eup %6347  ;;  %v9532_v48 = vpop.f32.mrf.mxu0 }
 0xbc8   :  { %v4084_v62 = vmul.f32 %v6348_v44, %v9441_v38  ;;  %v6350_v53 = vpop.eup %6349 }
 0xbc9   :  { %v3923_v33 = vpop.xlane.xlu1 %3922  ;;  %v9536_v15 = vpop.f32.mrf.mxu0  ;;  %v4087_v38 = vmul.f32 %v6350_v53, %v9397_v9  ;;  %v4666_v9 = vld [vmem:[#allocation10 + $0x30] sm:$0xff] }
 0xbca   :  { %6355 = vrcp.f32 %v3923_v33  ;;  %v4129_v13 = vpack.c.bf16 %v4085_v58, %v4084_v62  ;;  %5613 = vmatprep.subr.mxu1 %v4666_v9  ;;  %v4665_v62 = vld [vmem:[#allocation10 + $0x28] sm:$0xff] }
 0xbcb   :  { %6357 = vrcp.f32 %v3929_v5  ;;  %v9548_v30 = vpop.f32.mrf.mxu0  ;;  %5614 = vmatpush3.msra.mxu1 %v4666_v9  ;;  %v4510_v9 = vmul.f32 %v9518_v17, %v9546_v37  ;;  %v4509_v17 = vmul.f32 %v9546_v37, %v9526_v7  ;;  %v4512_v7 = vmul.f32 %v9546_v37, %v9532_v48  ;;  %v10331_v48 = vld [vmem:[#allocation16_spill] sm:$0xff] }
 0xbcc   :  { %5584 = vmatmul.mubr.bf16.gmra.mxu0 %v4129_v13  ;;  %5615 = vmatprep.subr.mxu1 %v4665_v62 }
 0xbcd   :  { %5616 = vmatpush3.msra.mxu1 %v4665_v62  ;;  %v4513_v62 = vmul.f32 %v9546_v37, %v9548_v30 }
 0xbcf   :  { %v6352_v3 = vpop.eup %6351 }
 0xbd0   :  { %v4086_v49 = vmul.f32 %v6352_v3, %v9448_v6  ;;  %v6354_v6 = vpop.eup %6353 }
 0xbd1   :  { %v3927_v1 = vpop.xlane.xlu1 %3926  ;;  %v4089_v29 = vmul.f32 %v6354_v6, %v9407_v43  ;;  %v4664_v6 = vld [vmem:[#allocation10 + $0x20] sm:$0xff] }
 0xbd2   :  { %6359 = vrcp.f32 %v3927_v1  ;;  %v4130_v11 = vpack.c.bf16 %v4087_v38, %v4086_v49  ;;  %5617 = vmatprep.subr.mxu1 %v4664_v6 }
 0xbd3   :  { %6361 = vrcp.f32 %v3933_v2  ;;  %5618 = vmatpush3.msra.mxu1 %v4664_v6 }
 0xbd4   :  { %5587 = vmatprep.mubr.bf16.mxu0 %v4130_v11  ;;  %5619 = vmatprep.subr.mxu1 %v4663_v57 }
 0xbd5   :  { %v5533_v27 = vpop.f32.mrf.mxu0  ;;  %5620 = vmatpush3.msra.mxu1 %v4663_v57 }
 0xbd6   :  { %v4522_v23 = vmul.f32 %v5533_v27, %v9542_v36 }
 0xbd7   :  { %v6356_v54 = vpop.eup %6355  ;;  %v4240_v46 = vpop.f32.mrf.mxu0 }
 0xbd8   :  { %v4088_v50 = vmul.f32 %v6356_v54, %v9455_v19  ;;  %v9557_v28 = vadd.f32 %v4522_v23, %v4502_v0  ;;  %v4520_v25 = vmul.f32 %v9542_v36, %v4240_v46  ;;  %v6358_v43 = vpop.eup %6357 }
 0xbd9   :  { %v3931_v34 = vpop.xlane.xlu1 %3930  ;;  %v5534_v59 = vpop.f32.mrf.mxu0  ;;  %v4091_v39 = vmul.f32 %v6358_v43, %v9420_v20  ;;  %v4504_v20 = vmul.f32 %v9546_v37, %v9508_v18 }
 0xbda   :  { %6363 = vrcp.f32 %v3931_v34  ;;  %v4131_v63 = vpack.c.bf16 %v4089_v29, %v4088_v50  ;;  %v9562_v16 = vadd.f32 %v4520_v25, %v4500_v41  ;;  %v4523_v19 = vmul.f32 %v5534_v59, %v9542_v36 }
 0xbdb   :  { %v4243_v52 = vpop.f32.mrf.mxu0  ;;  %v4511_v50 = vmul.f32 %v9524_v4, %v9546_v37  ;;  %v4514_v4 = vmul.f32 %v9528_v10, %v9546_v37 }
 0xbdc   :  { %5588 = vmatmul.mubr.bf16.gmra.mxu0 %v4131_v63  ;;  %v9567_v40 = vadd.f32 %v4523_v19, %v4503_v14  ;;  %v4521_v61 = vmul.f32 %v9542_v36, %v4243_v52  ;;  %v4662_v14 = vld [vmem:[#allocation10 + $0x10] sm:$0xff]  ;;  %v4660_v52 = vld [vmem:[#allocation10] sm:$0xff] }
 0xbdd   :  { %5621 = vmatprep.subr.mxu1 %v4662_v14 }
 0xbde   :  { %v9570_v24 = vadd.f32 %v4521_v61, %v4501_v21  ;;  %5622 = vmatpush3.msra.mxu1 %v4662_v14 }
 0xbdf   :  { %v6360_v8 = vpop.eup %6359 }
 0xbe0   :  { %v4090_v55 = vmul.f32 %v6360_v8, %v9460_v22  ;;  %v6362_v44 = vpop.eup %6361 }
 0xbe1   :  { %v4093_v22 = vmul.f32 %v6362_v44, %v9437_v56  ;;  %v4505_v56 = vmul.f32 %v9546_v37, %v9514_v31  ;;  %v4508_v31 = vmul.f32 %v9546_v37, %v9520_v32  ;;  %v4661_v32 = vld [vmem:[#allocation10 + $0x8] sm:$0xff] }
 0xbe2   :  { %v4132_v60 = vpack.c.bf16 %v4091_v39, %v4090_v55  ;;  %5623 = vmatprep.subr.mxu1 %v4661_v32  ;;  %v4515_v39 = vmul.f32 %v9536_v15, %v9546_v37 }
 0xbe3   :  { %5624 = vmatpush3.msra.mxu1 %v4661_v32 }
 0xbe4   :  { %5591 = vmatprep.mubr.bf16.mxu0 %v4132_v60  ;;  %5625 = vmatprep.subr.mxu1 %v4660_v52 }
 0xbe5   :  { %v5537_v58 = vpop.f32.mrf.mxu0  ;;  %5626 = vmatpush3.msra.mxu1 %v4660_v52 }
 0xbe6   :  { %v4526_v13 = vmul.f32 %v5537_v58, %v9542_v36 }
 0xbe7   :  { %v6364_v33 = vpop.eup %6363  ;;  %v4256_v53 = vpop.f32.mrf.mxu0 }
 0xbe8   :  { %v4092_v5 = vmul.f32 %v6364_v33, %v9465_v47  ;;  %v9581_v3 = vadd.f32 %v4526_v13, %v4506_v35  ;;  %v4524_v49 = vmul.f32 %v9542_v36, %v4256_v53  ;;  %v10332_v13 = vsub.s32 2, %v10331_v48 }
 0xbe9   :  { %v5538_v38 = vpop.f32.mrf.mxu0 }
 0xbea   :  { %v4133_v1 = vpack.c.bf16 %v4093_v22, %v4092_v5  ;;  %v9586_v45 = vadd.f32 %v4524_v49, %v4504_v20  ;;  %v4527_v11 = vmul.f32 %v5538_v38, %v9542_v36  ;;  %v9623_v53 = vrot.slane %v9534_v26, %v10332_v13 }
 0xbeb   :  { %v4259_v51 = vpop.f32.mrf.mxu0 }
 0xbec   :  { %5592 = vmatmul.mubr.bf16.gmra.mxu0 %v4133_v1  ;;  %v9591_v47 = vadd.f32 %v4527_v11, %v4507_v42  ;;  %v4525_v18 = vmul.f32 %v9542_v36, %v4259_v51 }
 0xbee   :  { %v9594_v12 = vadd.f32 %v4525_v18, %v4505_v56 }
 0xbf5   :  { %v5541_v2 = vpop.f32.mrf.mxu0 }
 0xbf6   :  { %v4530_v27 = vmul.f32 %v5541_v2, %v9542_v36 }
 0xbf7   :  { %v4272_v54 = vpop.f32.mrf.mxu0 }
 0xbf8   :  { %v4546_v0 = vadd.f32 %v4530_v27, %v4510_v9  ;;  %v4528_v23 = vmul.f32 %v9542_v36, %v4272_v54 }
 0xbf9   :  { %v5542_v46 = vpop.f32.mrf.mxu0 }
 0xbfa   :  { %v4544_v29 = vadd.f32 %v4528_v23, %v4508_v31  ;;  %v4531_v41 = vmul.f32 %v5542_v46, %v9542_v36 }
 0xbfb   :  { %v4275_v25 = vpop.f32.mrf.mxu0 }
 0xbfc   :  { %v4547_v34 = vadd.f32 %v4531_v41, %v4511_v50  ;;  %v4529_v59 = vmul.f32 %v9542_v36, %v4275_v25 }
 0xbfe   :  { %v4545_v63 = vadd.f32 %v4529_v59, %v4509_v17 }
 0xc05   :  { %v5545_v19 = vpop.f32.mrf.mxu0 }
 0xc06   :  { %v4534_v43 = vmul.f32 %v5545_v19, %v9542_v36 }
 0xc07   :  { %v4288_v21 = vpop.f32.mrf.mxu0 }
 0xc08   :  { %v4550_v61 = vadd.f32 %v4534_v43, %v4514_v4  ;;  %v4532_v8 = vmul.f32 %v9542_v36, %v4288_v21  ;;  %v4859_v21 = vld [vmem:[#allocation2 + $0x78] sm:$0xff] }
 0xc09   :  { %v5546_v55 = vpop.f32.mrf.mxu0 }
 0xc0a   :  { %v4548_v60 = vadd.f32 %v4532_v8, %v4512_v7  ;;  %v4535_v44 = vmul.f32 %v5546_v55, %v9542_v36 }
 0xc0b   :  { %v4291_v10 = vpop.f32.mrf.mxu0 }
 0xc0c   :  { %v4551_v58 = vadd.f32 %v4535_v44, %v4515_v39  ;;  %v4533_v33 = vmul.f32 %v9542_v36, %v4291_v10 }
 0xc0e   :  { %v4549_v35 = vadd.f32 %v4533_v33, %v4513_v62 }
 0xc15   :  { %v5549_v5 = vpop.f32.mrf.mxu0 }
 0xc16   :  { %v4558_v22 = vmul.f32 %v5549_v5, %v9623_v53 }
 0xc17   :  { %v4304_v15 = vpop.f32.mrf.mxu0 }
 0xc18   :  { %v9627_v20 = vadd.f32 %v4558_v22, %v9557_v28 }
 0xc19   :  { %v5550_v49 = vpop.f32.mrf.mxu0 }
 0xc1a   :  { %v4559_v38 = vmul.f32 %v5550_v49, %v9623_v53 }
 0xc1b   :  { %v9630_v37 = vpop.f32.mrf.mxu0 }
 0xc1c   :  { %v9633_v36 = vadd.f32 %v4559_v38, %v9567_v40  ;;  %v4556_v38 = vmul.f32 %v9623_v53, %v4304_v15 }
 0xc1d   :  { %v5553_v30 = vpop.f32.mrf.mxu0 }
 0xc1e   :  { %v4562_v1 = vmul.f32 %v5553_v30, %v9623_v53  ;;  %v10333_v30 = vsub.s32 3, %v10331_v48 }
 0xc1f   :  { %v4320_v42 = vpop.f32.mrf.mxu0 }
 0xc20   :  { %v9637_v11 = vadd.f32 %v4562_v1, %v9581_v3  ;;  %v4560_v51 = vmul.f32 %v9623_v53, %v4320_v42  ;;  %v9697_v1 = vrot.slane %v9534_v26, %v10333_v30 }
 0xc21   :  { %v5554_v56 = vpop.f32.mrf.mxu0 }
 0xc22   :  { %v9641_v28 = vadd.f32 %v4560_v51, %v9586_v45  ;;  %v4563_v18 = vmul.f32 %v5554_v56, %v9623_v53 }
 0xc23   :  { %v4323_v6 = vpop.f32.mrf.mxu0 }
 0xc24   :  { %v9645_v2 = vadd.f32 %v4563_v18, %v9591_v47  ;;  %v4561_v40 = vmul.f32 %v9623_v53, %v4323_v6  ;;  %v4572_v18 = vadd.f32 %v4556_v38, %v9562_v16  ;;  %v4557_v6 = vmul.f32 %v9623_v53, %v9630_v37  ;;  %v4856_v37 = vld [vmem:[#allocation2 + $0x60] sm:$0xff] }
 0xc25   :  { %v5557_v57 = vpop.f32.mrf.mxu0 }
 0xc26   :  { %v9649_v9 = vadd.f32 %v4561_v40, %v9594_v12  ;;  %v4566_v3 = vmul.f32 %v5557_v57, %v9623_v53  ;;  %v10334_v40 = vsub.s32 4, %v10331_v48  ;;  %v4857_v48 = vld [vmem:[#allocation2 + $0x68] sm:$0xff] }
 0xc27   :  { %v4336_v27 = vpop.f32.mrf.mxu0 }
 0xc28   :  { %v9652_v54 = vadd.f32 %v4566_v3, %v4546_v0  ;;  %v4564_v45 = vmul.f32 %v9623_v53, %v4336_v27  ;;  %v9708_v57 = vrot.slane %v9534_v26, %v10334_v40 }
 0xc29   :  { %v5558_v31 = vpop.f32.mrf.mxu0 }
 0xc2a   :  { %v9655_v23 = vadd.f32 %v4564_v45, %v4544_v29  ;;  %v4567_v46 = vmul.f32 %v5558_v31, %v9623_v53 }
 0xc2b   :  { %v4339_v47 = vpop.f32.mrf.mxu0 }
 0xc2c   :  { %v9658_v50 = vadd.f32 %v4567_v46, %v4547_v34  ;;  %v4565_v41 = vmul.f32 %v9623_v53, %v4339_v47  ;;  %v4573_v47 = vadd.f32 %v4557_v6, %v9570_v24  ;;  %v4854_v24 = vld [vmem:[#allocation2 + $0x50] sm:$0xff] }
 0xc2d   :  { %v5561_v25 = vpop.f32.mrf.mxu0 }
 0xc2e   :  { %v9661_v12 = vadd.f32 %v4565_v41, %v4545_v63  ;;  %v4570_v17 = vmul.f32 %v5561_v25, %v9623_v53  ;;  %v4858_v63 = vld [vmem:[#allocation2 + $0x70] sm:$0xff] }
 0xc2f   :  { %v4352_v59 = vpop.f32.mrf.mxu0  ;;  %v4875_v7 = vpack.c.bf16 %v4859_v21, %v4858_v63 }
 0xc30   :  { %v9664_v0 = vadd.f32 %v4570_v17, %v4550_v61  ;;  %v4568_v14 = vmul.f32 %v9623_v53, %v4352_v59 }
 0xc31   :  { %v5562_v32 = vpop.f32.mrf.mxu0  ;;  %5651 = vmatprep.subr.bf16.mxu1 %v4875_v7 }
 0xc32   :  { %v9667_v29 = vadd.f32 %v4568_v14, %v4548_v60  ;;  %v4571_v19 = vmul.f32 %v5562_v32, %v9623_v53 }
 0xc33   :  { %v4355_v52 = vpop.f32.mrf.mxu0 }
 0xc34   :  { %v9670_v34 = vadd.f32 %v4571_v19, %v4551_v58  ;;  %v4569_v4 = vmul.f32 %v9623_v53, %v4355_v52  ;;  %v4874_v19 = vpack.c.bf16 %v4857_v48, %v4856_v37 }
 0xc36   :  { %v9673_v43 = vadd.f32 %v4569_v4, %v4549_v35  ;;  %v4855_v4 = vld [vmem:[#allocation2 + $0x58] sm:$0xff] }
 0xc3c   :  { %v5565_v61 = vpop.f32.mrf.mxu0 }
 0xc3d   :  { %v4594_v31 = vmul.f32 %v5565_v61, %v9697_v1  ;;  %v4873_v61 = vpack.c.bf16 %v4855_v4, %v4854_v24 }
 0xc3e   :  { %v4368_v8 = vpop.f32.mrf.mxu0 }
 0xc3f   :  { %v4592_v51 = vmul.f32 %v9697_v1, %v4368_v8  ;;  %v4610_v59 = vadd.f32 %v4594_v31, %v9627_v20  ;;  %v4852_v8 = vld [vmem:[#allocation2 + $0x40] sm:$0xff] }
 0xc40   :  { %v5566_v55 = vpop.f32.mrf.mxu0 }
 0xc41   :  { %v4608_v3 = vadd.f32 %v4592_v51, %v4572_v18  ;;  %v4595_v26 = vmul.f32 %v5566_v55, %v9697_v1  ;;  %v4853_v55 = vld [vmem:[#allocation2 + $0x48] sm:$0xff]  ;;  %v4850_v51 = vld [vmem:[#allocation2 + $0x30] sm:$0xff] }
 0xc42   :  { %v4371_v39 = vpop.f32.mrf.mxu0  ;;  %v4872_v38 = vpack.c.bf16 %v4853_v55, %v4852_v8 }
 0xc43   :  { %v4593_v27 = vmul.f32 %v9697_v1, %v4371_v39  ;;  %v4611_v63 = vadd.f32 %v4595_v26, %v9633_v36 }
 0xc45   :  { %v4609_v25 = vadd.f32 %v4593_v27, %v4573_v47 }
 0xc4c   :  { %v9675_v44 = vpop.f32.mrf.mxu0 }
 0xc4d   :  { %v4598_v6 = vmul.f32 %v9675_v44, %v9697_v1 }
 0xc4e   :  { %v4384_v60 = vpop.f32.mrf.mxu0 }
 0xc4f   :  { %v4596_v39 = vmul.f32 %v9697_v1, %v4384_v60  ;;  %v4614_v31 = vadd.f32 %v4598_v6, %v9637_v11 }
 0xc50   :  { %v9677_v10 = vpop.f32.mrf.mxu0 }
 0xc51   :  { %v4612_v36 = vadd.f32 %v4596_v39, %v9641_v28 }
 0xc52   :  { %v4387_v62 = vpop.f32.mrf.mxu0 }
 0xc53   :  { %v4597_v18 = vmul.f32 %v9697_v1, %v4387_v62 }
 0xc55   :  { %v4613_v28 = vadd.f32 %v4597_v18, %v9649_v9  ;;  %v4849_v18 = vld [vmem:[#allocation2 + $0x28] sm:$0xff] }
 0xc5c   :  { %v9679_v58 = vpop.f32.mrf.mxu0 }
 0xc5e   :  { %v9681_v33 = vpop.f32.mrf.mxu0 }
 0xc5f   :  { %v4600_v9 = vmul.f32 %v9697_v1, %v9681_v33 }
 0xc60   :  { %v9683_v35 = vpop.f32.mrf.mxu0 }
 0xc61   :  { %v4616_v11 = vadd.f32 %v4600_v9, %v9655_v23  ;;  %v4603_v33 = vmul.f32 %v9683_v35, %v9697_v1  ;;  %v5000_v9 = vld [vmem:[#allocation4 + $0x20] sm:$0xff] }
 0xc62   :  { %v9685_v13 = vpop.f32.mrf.mxu0 }
 0xc63   :  { %v4601_v37 = vmul.f32 %v9697_v1, %v9685_v13 }
 0xc6c   :  { %v9687_v5 = vpop.f32.mrf.mxu0 }
 0xc6e   :  { %v9689_v22 = vpop.f32.mrf.mxu0 }
 0xc6f   :  { %v4604_v4 = vmul.f32 %v9697_v1, %v9689_v22 }
 0xc70   :  { %v9691_v49 = vpop.f32.mrf.mxu0 }
 0xc71   :  { %v4607_v22 = vmul.f32 %v9691_v49, %v9697_v1 }
 0xc72   :  { %v9699_v42 = vpop.f32.mrf.mxu0 }
 0xc7c   :  { %v5581_v56 = vpop.f32.mrf.mxu0 }
 0xc7d   :  { %v4630_v41 = vmul.f32 %v5581_v56, %v9708_v57  ;;  %v4851_v56 = vld [vmem:[#allocation2 + $0x38] sm:$0xff] }
 0xc7e   :  { %v4432_v15 = vpop.f32.mrf.mxu0 }
 0xc7f   :  { %v4628_v45 = vmul.f32 %v9708_v57, %v4432_v15  ;;  %v4646_v52 = vadd.f32 %v4630_v41, %v4610_v59  ;;  %v4871_v15 = vpack.c.bf16 %v4851_v56, %v4850_v51 }
 0xc80   :  { %v5582_v46 = vpop.f32.mrf.mxu0 }
 0xc81   :  { %v4644_v16 = vadd.f32 %v4628_v45, %v4608_v3  ;;  %v4631_v14 = vmul.f32 %v5582_v46, %v9708_v57  ;;  %v4599_v45 = vmul.f32 %v9677_v10, %v9697_v1 }
 0xc82   :  { %v4435_v53 = vpop.f32.mrf.mxu0 }
 0xc83   :  { %v4629_v17 = vmul.f32 %v9708_v57, %v4435_v53  ;;  %5627 = vmatprep.mubr.f32.mxu1 %v4644_v16  ;;  %v4647_v21 = vadd.f32 %v4631_v14, %v4611_v63  ;;  %v4615_v16 = vadd.f32 %v4599_v45, %v9645_v2  ;;  %v4602_v2 = vmul.f32 %v9679_v58, %v9697_v1  ;;  %v5006_v45 = vld [vmem:[#allocation4 + $0x50] sm:$0xff] }
 0xc84   :  { %v4617_v14 = vadd.f32 %v4601_v37, %v9661_v12  ;;  %v4619_v58 = vadd.f32 %v4603_v33, %v9658_v50  ;;  %v4620_v63 = vadd.f32 %v4604_v4, %v9667_v29  ;;  %v4999_v37 = vld [vmem:[#allocation4 + $0x18] sm:$0xff] }
 0xc85   :  { %v4645_v32 = vadd.f32 %v4629_v17, %v4609_v25  ;;  %v4618_v13 = vadd.f32 %v4602_v2, %v9652_v54  ;;  %v4605_v54 = vmul.f32 %v9697_v1, %v9699_v42  ;;  %v5165_v2 = vld [vmem:[%s9827_s4] ss:$0 sm:$0xff] }
 0xc87   :  { %5628 = vmatmul.mubr.f32.vlgmr.msra.gmra.mxu1 %v4645_v32 }
 0xc88   :  { %5630 = vmatprep.mubr.f32.mxu1 %v4646_v52  ;;  %5652 = vmatpush3.bf16.msra.mxu1 %v4875_v7 }
 0xc89   :  { %5653 = vmatprep.subr.bf16.mxu1 %v4874_v19 }
 0xc8b   :  { %5631 = vmatmul.mubr.f32.gmra.mxu1 %v4647_v21 }
 0xc8c   :  { %v5585_v20 = vpop.f32.mrf.mxu0  ;;  %5654 = vmatpush3.bf16.msra.mxu1 %v4874_v19 }
 0xc8d   :  { %5655 = vmatprep.subr.bf16.mxu1 %v4873_v61  ;;  %v4634_v3 = vmul.f32 %v5585_v20, %v9708_v57  ;;  %v4621_v20 = vadd.f32 %v4605_v54, %v9673_v43  ;;  %v4846_v43 = vld [vmem:[#allocation2 + $0x10] sm:$0xff] }
 0xc8e   :  { %v4448_v30 = vpop.f32.mrf.mxu0 }
 0xc8f   :  { %v4632_v7 = vmul.f32 %v9708_v57, %v4448_v30  ;;  %v4650_v47 = vadd.f32 %v4634_v3, %v4614_v31  ;;  %v5009_v3 = vld [vmem:[#allocation4 + $0x68] sm:$0xff]  ;;  %v5004_v31 = vld [vmem:[#allocation4 + $0x40] sm:$0xff] }
 0xc90   :  { %v5586_v40 = vpop.f32.mrf.mxu0  ;;  %5656 = vmatpush3.bf16.msra.mxu1 %v4873_v61  ;;  %v4606_v61 = vmul.f32 %v9687_v5, %v9697_v1  ;;  %v4623_v5 = vadd.f32 %v4607_v22, %v9670_v34  ;;  %v4847_v1 = vld [vmem:[#allocation2 + $0x18] sm:$0xff]  ;;  %v5010_v34 = vld [vmem:[#allocation4 + $0x70] sm:$0xff] }
 0xc91   :  { %v4648_v60 = vadd.f32 %v4632_v7, %v4612_v36  ;;  %5657 = vmatprep.subr.bf16.mxu1 %v4872_v38  ;;  %v4635_v44 = vmul.f32 %v5586_v40, %v9708_v57  ;;  %v4848_v36 = vld [vmem:[#allocation2 + $0x20] sm:$0xff]  ;;  %v4869_v7 = vpack.c.bf16 %v4847_v1, %v4846_v43  ;;  %v5011_v40 = vld [vmem:[#allocation4 + $0x78] sm:$0xff] }
 0xc92   :  { %v4451_v27 = vpop.f32.mrf.mxu0  ;;  %v4622_v42 = vadd.f32 %v4606_v61, %v9664_v0  ;;  %v4870_v49 = vpack.c.bf16 %v4849_v18, %v4848_v36  ;;  %v4844_v0 = vld [vmem:[#allocation2] sm:$0xff] }
 0xc93   :  { %v4633_v62 = vmul.f32 %v9708_v57, %v4451_v27  ;;  %5633 = vmatprep.mubr.f32.mxu1 %v4648_v60  ;;  %v4651_v41 = vadd.f32 %v4635_v44, %v4615_v16  ;;  %v5008_v60 = vld [vmem:[#allocation4 + $0x60] sm:$0xff]  ;;  %v5005_v44 = vld [vmem:[#allocation4 + $0x48] sm:$0xff]  ;;  %v5003_v16 = vld [vmem:[#allocation4 + $0x38] sm:$0xff] }
 0xc94   :  { %5658 = vmatpush3.bf16.msra.mxu1 %v4872_v38  ;;  %v5026_v27 = vpack.c.bf16 %v5009_v3, %v5008_v60 }
 0xc95   :  { %v4649_v46 = vadd.f32 %v4633_v62, %v4613_v28  ;;  %5659 = vmatprep.subr.bf16.mxu1 %v4871_v15  ;;  %v5007_v28 = vld [vmem:[#allocation4 + $0x58] sm:$0xff] }
 0xc96   :  { %v5025_v62 = vpack.c.bf16 %v5007_v28, %v5006_v45 }
 0xc97   :  { %5634 = vmatmul.mubr.f32.gmra.mxu1 %v4649_v46  ;;  %v5024_v46 = vpack.c.bf16 %v5005_v44, %v5004_v31 }
 0xc98   :  { %5636 = vmatprep.mubr.f32.mxu1 %v4650_v47  ;;  %5660 = vmatpush3.bf16.msra.mxu1 %v4871_v15  ;;  %v5027_v15 = vpack.c.bf16 %v5011_v40, %v5010_v34  ;;  %v5002_v47 = vld [vmem:[#allocation4 + $0x30] sm:$0xff] }
 0xc99   :  { %5661 = vmatprep.subr.bf16.mxu1 %v4870_v49 }
 0xc9a   :  { %5683 = vmatprep.subr.bf16.mxu0 %v5027_v15 }
 0xc9b   :  { %5637 = vmatmul.mubr.f32.gmra.mxu1 %v4651_v41  ;;  %5684 = vmatpush3.bf16.msra.mxu0 %v5027_v15  ;;  %v5023_v41 = vpack.c.bf16 %v5003_v16, %v5002_v47 }
 0xc9c   :  { %v5589_v10 = vpop.f32.mrf.mxu0  ;;  %5662 = vmatpush3.bf16.msra.mxu1 %v4870_v49  ;;  %5685 = vmatprep.subr.bf16.mxu0 %v5026_v27 }
 0xc9d   :  { %v4638_v17 = vmul.f32 %v5589_v10, %v9708_v57  ;;  %5663 = vmatprep.subr.bf16.mxu1 %v4869_v7  ;;  %v5001_v10 = vld [vmem:[#allocation4 + $0x28] sm:$0xff] }
 0xc9e   :  { %v4464_v53 = vpop.f32.mrf.mxu0 }
 0xc9f   :  { %v4636_v48 = vmul.f32 %v9708_v57, %v4464_v53  ;;  %v4654_v52 = vadd.f32 %v4638_v17, %v4618_v13  ;;  %5686 = vmatpush3.bf16.msra.mxu0 %v5026_v27  ;;  %v5022_v53 = vpack.c.bf16 %v5001_v10, %v5000_v9  ;;  %v4997_v9 = vld [vmem:[#allocation4 + $0x8] sm:$0xff] }
 0xca0   :  { %v5590_v26 = vpop.f32.mrf.mxu0  ;;  %5664 = vmatpush3.bf16.msra.mxu1 %v4869_v7  ;;  %5687 = vmatprep.subr.bf16.mxu0 %v5025_v62 }
 0xca1   :  { %v4652_v25 = vadd.f32 %v4636_v48, %v4616_v11  ;;  %v4639_v32 = vmul.f32 %v5590_v26, %v9708_v57  ;;  %v4998_v11 = vld [vmem:[#allocation4 + $0x10] sm:$0xff] }
 0xca2   :  { %v4467_v59 = vpop.f32.mrf.mxu0  ;;  %v5021_v48 = vpack.c.bf16 %v4999_v37, %v4998_v11  ;;  %v5166_v37 = vld [vmem:[%s9829_s6] ss:$0 sm:$0xff] }
 0xca3   :  { %v4637_v23 = vmul.f32 %v9708_v57, %v4467_v59  ;;  %5639 = vmatprep.mubr.f32.mxu1 %v4652_v25  ;;  %v4655_v24 = vadd.f32 %v4639_v32, %v4619_v58  ;;  %5688 = vmatpush3.bf16.msra.mxu0 %v5025_v62 }
 0xca4   :  { %5689 = vmatprep.subr.bf16.mxu0 %v5024_v46 }
 0xca5   :  { %v4653_v19 = vadd.f32 %v4637_v23, %v4617_v14 }
 0xca7   :  { %5640 = vmatmul.mubr.f32.gmra.mxu1 %v4653_v19  ;;  %5690 = vmatpush3.bf16.msra.mxu0 %v5024_v46 }
 0xca8   :  { %5642 = vmatprep.mubr.f32.mxu1 %v4654_v52  ;;  %5691 = vmatprep.subr.bf16.mxu0 %v5023_v41 }
 0xcab   :  { %5643 = vmatmul.mubr.f32.gmra.mxu1 %v4655_v24  ;;  %5692 = vmatpush3.bf16.msra.mxu0 %v5023_v41  ;;  %v4996_v41 = vld [vmem:[#allocation4] sm:$0xff] }
 0xcac   :  { %v5593_v35 = vpop.f32.mrf.mxu0  ;;  %5693 = vmatprep.subr.bf16.mxu0 %v5022_v53  ;;  %v5020_v10 = vpack.c.bf16 %v4997_v9, %v4996_v41 }
 0xcad   :  { %v4642_v55 = vmul.f32 %v5593_v35, %v9708_v57 }
 0xcae   :  { %v4480_v12 = vpop.f32.mrf.mxu0 }
 0xcaf   :  { %v4640_v21 = vmul.f32 %v9708_v57, %v4480_v12  ;;  %v4658_v51 = vadd.f32 %v4642_v55, %v4622_v42  ;;  %5694 = vmatpush3.bf16.msra.mxu0 %v5022_v53 }
 0xcb0   :  { %v5594_v50 = vpop.f32.mrf.mxu0  ;;  %5695 = vmatprep.subr.bf16.mxu0 %v5021_v48 }
 0xcb1   :  { %v4656_v8 = vadd.f32 %v4640_v21, %v4620_v63  ;;  %v4643_v38 = vmul.f32 %v5594_v50, %v9708_v57 }
 0xcb2   :  { %v4483_v39 = vpop.f32.mrf.mxu0 }
 0xcb3   :  { %v4641_v29 = vmul.f32 %v9708_v57, %v4483_v39  ;;  %5645 = vmatprep.mubr.f32.mxu1 %v4656_v8  ;;  %v4659_v56 = vadd.f32 %v4643_v38, %v4623_v5  ;;  %v4845_v57 = vld [vmem:[#allocation2 + $0x8] sm:$0xff]  ;;  %5696 = vmatpush3.bf16.msra.mxu0 %v5021_v48 }
 0xcb4   :  { %v4868_v6 = vpack.c.bf16 %v4845_v57, %v4844_v0  ;;  %5697 = vmatprep.subr.bf16.mxu0 %v5020_v10 }
 0xcb5   :  { %v4657_v30 = vadd.f32 %v4641_v29, %v4621_v20 }
 0xcb6   :  { %5665 = vmatprep.subr.bf16.mxu1 %v4868_v6 }
 0xcb7   :  { %5646 = vmatmul.mubr.f32.gmra.mxu1 %v4657_v30  ;;  %5698 = vmatpush3.bf16.msra.mxu0 %v5020_v10 }
 0xcb8   :  { %5648 = vmatprep.mubr.f32.mxu1 %v4658_v51  ;;  %5666 = vmatpush3.bf16.msra.mxu1 %v4868_v6 }
 0xcbb   :  { %5649 = vmatmul.mubr.f32.gmra.mxu1 %v4659_v56 }
 0xd47   :  { %v5629_v26 = vpop.f32.mrf.mxu1 }
 0xd48   :  { %v4755_v25 = vadd.f32 %v5629_v26, %v5165_v2 }
 0xd49   :  { %v4749_v17 = vpop.f32.mrf.mxu1 }
 0xd4a   :  { %v4750_v59 = vadd.f32 %v5165_v2, %v4749_v17  ;;  %v4829_v14 = vmax.f32 %v4755_v25, 0.0 }
 0xd4b   :  { %v5632_v33 = vpop.f32.mrf.mxu1 }
 0xd4c   :  { %v4828_v23 = vmax.f32 %v4750_v59, 0.0  ;;  %v4765_v13 = vadd.f32 %v5632_v33, %v5165_v2 }
 0xd4d   :  { %v4759_v32 = vpop.f32.mrf.mxu1 }
 0xd4e   :  { %v4860_v19 = vpack.c.bf16 %v4829_v14, %v4828_v23  ;;  %v4760_v52 = vadd.f32 %v5165_v2, %v4759_v32  ;;  %v4831_v58 = vmax.f32 %v4765_v13, 0.0 }
 0xd50   :  { %v4830_v24 = vmax.f32 %v4760_v52, 0.0  ;;  %5667 = vmatprep.mubr.bf16.mxu1 %v4860_v19 }
 0xd52   :  { %v4861_v4 = vpack.c.bf16 %v4831_v58, %v4830_v24 }
 0xd54   :  { %5668 = vmatmul.mubr.bf16.vlgmr.msra.gmra.mxu1 %v4861_v4 }
 0xd57   :  { %v5635_v35 = vpop.f32.mrf.mxu1 }
 0xd58   :  { %v4775_v12 = vadd.f32 %v5635_v35, %v5165_v2 }
 0xd59   :  { %v4769_v63 = vpop.f32.mrf.mxu1 }
 0xd5a   :  { %v4770_v54 = vadd.f32 %v5165_v2, %v4769_v63  ;;  %v4833_v61 = vmax.f32 %v4775_v12, 0.0 }
 0xd5b   :  { %v5638_v21 = vpop.f32.mrf.mxu1 }
 0xd5c   :  { %v4832_v50 = vmax.f32 %v4770_v54, 0.0  ;;  %v4785_v8 = vadd.f32 %v5638_v21, %v5165_v2 }
 0xd5d   :  { %v4779_v55 = vpop.f32.mrf.mxu1 }
 0xd5e   :  { %v4862_v39 = vpack.c.bf16 %v4833_v61, %v4832_v50  ;;  %v4780_v22 = vadd.f32 %v5165_v2, %v4779_v55  ;;  %v4835_v20 = vmax.f32 %v4785_v8, 0.0 }
 0xd60   :  { %v4834_v29 = vmax.f32 %v4780_v22, 0.0  ;;  %5671 = vmatprep.mubr.bf16.mxu1 %v4862_v39 }
 0xd62   :  { %v4863_v42 = vpack.c.bf16 %v4835_v20, %v4834_v29 }
 0xd64   :  { %5672 = vmatmul.mubr.bf16.gmra.mxu1 %v4863_v42 }
 0xd67   :  { %v5641_v38 = vpop.f32.mrf.mxu1 }
 0xd68   :  { %v4795_v30 = vadd.f32 %v5641_v38, %v5165_v2 }
 0xd69   :  { %v4789_v51 = vpop.f32.mrf.mxu1 }
 0xd6a   :  { %v4790_v5 = vadd.f32 %v5165_v2, %v4789_v51  ;;  %v4837_v36 = vmax.f32 %v4795_v30, 0.0 }
 0xd6b   :  { %v5644_v56 = vpop.f32.mrf.mxu1 }
 0xd6c   :  { %v4836_v18 = vmax.f32 %v4790_v5, 0.0  ;;  %v4805_v49 = vadd.f32 %v5644_v56, %v5165_v2 }
 0xd6d   :  { %v4799_v43 = vpop.f32.mrf.mxu1 }
 0xd6e   :  { %v4864_v1 = vpack.c.bf16 %v4837_v36, %v4836_v18  ;;  %v4800_v7 = vadd.f32 %v5165_v2, %v4799_v43  ;;  %v4839_v0 = vmax.f32 %v4805_v49, 0.0 }
 0xd70   :  { %v4838_v57 = vmax.f32 %v4800_v7, 0.0  ;;  %5675 = vmatprep.mubr.bf16.mxu1 %v4864_v1 }
 0xd72   :  { %v4865_v6 = vpack.c.bf16 %v4839_v0, %v4838_v57 }
 0xd74   :  { %5676 = vmatmul.mubr.bf16.gmra.mxu1 %v4865_v6 }
 0xd77   :  { %v5647_v34 = vpop.f32.mrf.mxu1 }
 0xd78   :  { %v4815_v40 = vadd.f32 %v5647_v34, %v5165_v2 }
 0xd79   :  { %v4809_v60 = vpop.f32.mrf.mxu1 }
 0xd7a   :  { %v4810_v15 = vadd.f32 %v5165_v2, %v4809_v60  ;;  %v4841_v27 = vmax.f32 %v4815_v40, 0.0 }
 0xd7b   :  { %v5650_v3 = vpop.f32.mrf.mxu1 }
 0xd7c   :  { %v4840_v45 = vmax.f32 %v4810_v15, 0.0  ;;  %v4825_v28 = vadd.f32 %v5650_v3, %v5165_v2 }
 0xd7d   :  { %v4819_v62 = vpop.f32.mrf.mxu1 }
 0xd7e   :  { %v4866_v31 = vpack.c.bf16 %v4841_v27, %v4840_v45  ;;  %v4820_v44 = vadd.f32 %v5165_v2, %v4819_v62  ;;  %v4843_v46 = vmax.f32 %v4825_v28, 0.0 }
 0xd80   :  { %v4842_v47 = vmax.f32 %v4820_v44, 0.0  ;;  %5679 = vmatprep.mubr.bf16.mxu1 %v4866_v31  ;;  %v5167_v44 = vld [vmem:[%s9831_s8] ss:$0 sm:$0xff] }
 0xd82   :  { %v4867_v16 = vpack.c.bf16 %v4843_v46, %v4842_v47 }
 0xd84   :  { %5680 = vmatmul.mubr.bf16.gmra.mxu1 %v4867_v16 }
 0xe14   :  { %v5669_v53 = vpop.f32.mrf.mxu1 }
 0xe15   :  { %v4926_v2 = vadd.f32 %v5669_v53, %v5166_v37 }
 0xe16   :  { %v4917_v11 = vpop.f32.mrf.mxu1 }
 0xe17   :  { %v4918_v26 = vadd.f32 %v5166_v37, %v4917_v11  ;;  %v4982_v13 = vmax.f32 %v4926_v2, 0.0 }
 0xe18   :  { %v5670_v48 = vpop.f32.mrf.mxu1 }
 0xe19   :  { %v4929_v25 = vadd.f32 %v5670_v48, %v5166_v37  ;;  %v4980_v14 = vmax.f32 %v4918_v26, 0.0 }
 0xe1a   :  { %v4920_v17 = vpop.f32.mrf.mxu1 }
 0xe1b   :  { %v4921_v59 = vadd.f32 %v5166_v37, %v4920_v17  ;;  %v4983_v33 = vmax.f32 %v4929_v25, 0.0 }
 0xe1d   :  { %v4981_v23 = vmax.f32 %v4921_v59, 0.0  ;;  %v5013_v19 = vpack.c.bf16 %v4983_v33, %v4982_v13 }
 0xe1f   :  { %v5012_v32 = vpack.c.bf16 %v4981_v23, %v4980_v14 }
 0xe21   :  { %5699 = vmatprep.mubr.bf16.mxu0 %v5012_v32 }
 0xe22   :  { %5700 = vmatmul.mubr.bf16.vlgmr.msra.gmra.mxu0 %v5013_v19 }
 0xe24   :  { %v5673_v52 = vpop.f32.mrf.mxu1 }
 0xe25   :  { %v4942_v12 = vadd.f32 %v5673_v52, %v5166_v37 }
 0xe26   :  { %v4933_v58 = vpop.f32.mrf.mxu1 }
 0xe27   :  { %v4934_v4 = vadd.f32 %v5166_v37, %v4933_v58  ;;  %v4986_v8 = vmax.f32 %v4942_v12, 0.0 }
 0xe28   :  { %v5674_v24 = vpop.f32.mrf.mxu1 }
 0xe29   :  { %v4945_v35 = vadd.f32 %v5674_v24, %v5166_v37  ;;  %v4984_v61 = vmax.f32 %v4934_v4, 0.0 }
 0xe2a   :  { %v4936_v63 = vpop.f32.mrf.mxu1 }
 0xe2b   :  { %v4937_v54 = vadd.f32 %v5166_v37, %v4936_v63  ;;  %v4987_v21 = vmax.f32 %v4945_v35, 0.0 }
 0xe2d   :  { %v4985_v50 = vmax.f32 %v4937_v54, 0.0  ;;  %v5015_v39 = vpack.c.bf16 %v4987_v21, %v4986_v8 }
 0xe2f   :  { %v5014_v55 = vpack.c.bf16 %v4985_v50, %v4984_v61 }
 0xe31   :  { %5703 = vmatprep.mubr.bf16.mxu0 %v5014_v55 }
 0xe32   :  { %5704 = vmatmul.mubr.bf16.gmra.mxu0 %v5015_v39 }
 0xe34   :  { %v5677_v22 = vpop.f32.mrf.mxu1 }
 0xe35   :  { %v4958_v30 = vadd.f32 %v5677_v22, %v5166_v37 }
 0xe36   :  { %v4949_v20 = vpop.f32.mrf.mxu1 }
 0xe37   :  { %v4950_v42 = vadd.f32 %v5166_v37, %v4949_v20  ;;  %v4990_v49 = vmax.f32 %v4958_v30, 0.0 }
 0xe38   :  { %v5678_v29 = vpop.f32.mrf.mxu1 }
 0xe39   :  { %v4961_v38 = vadd.f32 %v5678_v29, %v5166_v37  ;;  %v4988_v36 = vmax.f32 %v4950_v42, 0.0 }
 0xe3a   :  { %v4952_v51 = vpop.f32.mrf.mxu1 }
 0xe3b   :  { %v4953_v5 = vadd.f32 %v5166_v37, %v4952_v51  ;;  %v4991_v56 = vmax.f32 %v4961_v38, 0.0 }
 0xe3d   :  { %v4989_v18 = vmax.f32 %v4953_v5, 0.0  ;;  %v5017_v1 = vpack.c.bf16 %v4991_v56, %v4990_v49 }
 0xe3f   :  { %v5016_v43 = vpack.c.bf16 %v4989_v18, %v4988_v36 }
 0xe41   :  { %5707 = vmatprep.mubr.bf16.mxu0 %v5016_v43 }
 0xe42   :  { %5708 = vmatmul.mubr.bf16.gmra.mxu0 %v5017_v1 }
 0xe44   :  { %v5681_v7 = vpop.f32.mrf.mxu1 }
 0xe45   :  { %v4974_v40 = vadd.f32 %v5681_v7, %v5166_v37 }
 0xe46   :  { %v4965_v0 = vpop.f32.mrf.mxu1 }
 0xe47   :  { %v4966_v6 = vadd.f32 %v5166_v37, %v4965_v0  ;;  %v4994_v28 = vmax.f32 %v4974_v40, 0.0 }
 0xe48   :  { %v5682_v57 = vpop.f32.mrf.mxu1 }
 0xe49   :  { %v4977_v34 = vadd.f32 %v5682_v57, %v5166_v37  ;;  %v4992_v27 = vmax.f32 %v4966_v6, 0.0 }
 0xe4a   :  { %v4968_v60 = vpop.f32.mrf.mxu1 }
 0xe4b   :  { %v4969_v15 = vadd.f32 %v5166_v37, %v4968_v60  ;;  %v4995_v3 = vmax.f32 %v4977_v34, 0.0 }
 0xe4d   :  { %v4993_v45 = vmax.f32 %v4969_v15, 0.0  ;;  %v5019_v31 = vpack.c.bf16 %v4995_v3, %v4994_v28 }
 0xe4f   :  { %v5018_v62 = vpack.c.bf16 %v4993_v45, %v4992_v27 }
 0xe51   :  { %5711 = vmatprep.mubr.bf16.mxu0 %v5018_v62 }
 0xe52   :  { %5712 = vmatmul.mubr.bf16.gmra.mxu0 %v5019_v31 }
 0xee2   :  { %v5701_v46 = vpop.f32.mrf.mxu0 }
 0xee3   :  { %v5078_v47 = vadd.f32 %v5701_v46, %v5167_v44 }
 0xee4   :  { %v5069_v16 = vpop.f32.mrf.mxu0 }
 0xee5   :  { %5134 = vst [vmem:[%s9836_s13 + $0x10] sm:$0xff] %v5078_v47  ;;  %v5070_v41 = vadd.f32 %v5167_v44, %v5069_v16 }
 0xee6   :  { %v5702_v9 = vpop.f32.mrf.mxu0 }
 0xee7   :  { %5132 = vst [vmem:[%s9836_s13] sm:$0xff] %v5070_v41  ;;  %v5081_v10 = vadd.f32 %v5702_v9, %v5167_v44 }
 0xee8   :  { %v5072_v53 = vpop.f32.mrf.mxu0 }
 0xee9   :  { %5135 = vst [vmem:[%s9836_s13 + $0x18] sm:$0xff] %v5081_v10  ;;  %v5073_v11 = vadd.f32 %v5167_v44, %v5072_v53 }
 0xeeb   :  { %5133 = vst [vmem:[%s9836_s13 + $0x8] sm:$0xff] %v5073_v11 }
 0xef2   :  { %v5705_v37 = vpop.f32.mrf.mxu0 }
 0xef3   :  { %v5094_v48 = vadd.f32 %v5705_v37, %v5167_v44 }
 0xef4   :  { %v5085_v26 = vpop.f32.mrf.mxu0 }
 0xef5   :  { %5138 = vst [vmem:[%s9836_s13 + $0x30] sm:$0xff] %v5094_v48  ;;  %v5086_v25 = vadd.f32 %v5167_v44, %v5085_v26 }
 0xef6   :  { %v5706_v2 = vpop.f32.mrf.mxu0 }
 0xef7   :  { %5136 = vst [vmem:[%s9836_s13 + $0x20] sm:$0xff] %v5086_v25  ;;  %v5097_v17 = vadd.f32 %v5706_v2, %v5167_v44 }
 0xef8   :  { %v5088_v59 = vpop.f32.mrf.mxu0 }
 0xef9   :  { %5139 = vst [vmem:[%s9836_s13 + $0x38] sm:$0xff] %v5097_v17  ;;  %v5089_v33 = vadd.f32 %v5167_v44, %v5088_v59 }
 0xefb   :  { %5137 = vst [vmem:[%s9836_s13 + $0x28] sm:$0xff] %v5089_v33 }
 0xf02   :  { %v5709_v14 = vpop.f32.mrf.mxu0 }
 0xf03   :  { %v5110_v23 = vadd.f32 %v5709_v14, %v5167_v44 }
 0xf04   :  { %v5101_v13 = vpop.f32.mrf.mxu0 }
 0xf05   :  { %5142 = vst [vmem:[%s9836_s13 + $0x50] sm:$0xff] %v5110_v23  ;;  %v5102_v32 = vadd.f32 %v5167_v44, %v5101_v13 }
 0xf06   :  { %v5710_v19 = vpop.f32.mrf.mxu0 }
 0xf07   :  { %5140 = vst [vmem:[%s9836_s13 + $0x40] sm:$0xff] %v5102_v32  ;;  %v5113_v52 = vadd.f32 %v5710_v19, %v5167_v44 }
 0xf08   :  { %v5104_v58 = vpop.f32.mrf.mxu0 }
 0xf09   :  { %5143 = vst [vmem:[%s9836_s13 + $0x58] sm:$0xff] %v5113_v52  ;;  %v5105_v24 = vadd.f32 %v5167_v44, %v5104_v58 }
 0xf0b   :  { %5141 = vst [vmem:[%s9836_s13 + $0x48] sm:$0xff] %v5105_v24 }
 0xf12   :  { %v5713_v4 = vpop.f32.mrf.mxu0 }
 0xf13   :  { %v5126_v35 = vadd.f32 %v5713_v4, %v5167_v44 }
 0xf14   :  { %v5117_v12 = vpop.f32.mrf.mxu0 }
 0xf15   :  { %5146 = vst [vmem:[%s9836_s13 + $0x70] sm:$0xff] %v5126_v35  ;;  %v5118_v63 = vadd.f32 %v5167_v44, %v5117_v12 }
 0xf16   :  { %v5714_v54 = vpop.f32.mrf.mxu0 }
 0xf17   :  { %5144 = vst [vmem:[%s9836_s13 + $0x60] sm:$0xff] %v5118_v63  ;;  %v5129_v21 = vadd.f32 %v5714_v54, %v5167_v44 }
 0xf18   :  { %v5120_v61 = vpop.f32.mrf.mxu0 }
 0xf19   :  { %5147 = vst [vmem:[%s9836_s13 + $0x78] sm:$0xff] %v5129_v21  ;;  %v5121_v50 = vadd.f32 %v5167_v44, %v5120_v61 }
 0xf1b   :  { %5145 = vst [vmem:[%s9836_s13 + $0x68] sm:$0xff] %v5121_v50 }
 0xf1c   :  { %5152 = vsyncpa [#allocation3], 1 }
 0xf1d   :  { %5153 = vsyncpa [#allocation5], 1 }
 0xf1e   :  { %5154 = vsyncpa [#allocation8], 1 }
 0xf1f   :  { %5155 = vsyncpa [#allocation11], 1 }

</bundles_post_ra>
